<compile_context>
chip_gen: v5e
topology: v5e:2x2
jax: 0.10.0
libtpu: 0.0.40
codegen_flags: <defaults>
</compile_context>

<pallas_src>
import functools

import jax
import jax.numpy as jnp
from jax import lax
from jax.experimental import pallas as pl
from jax.experimental.pallas import tpu as pltpu


# ----------------------------- fused Pallas kernel -----------------------------
# One grid step == one batch image:
#   circular depthwise conv (H-dir for channels [0,C/2), W-dir for [C/2,C))
#   -> + bias -> LayerNorm(C) -> pwconv1 -> GELU -> pwconv2 -> +residual

def _fused_kernel(x_ref, res_ref, hw_ref, ww_ref, cbias_ref,
                  w1_ref, b1_ref, w2_ref, b2_ref, o_ref):
    _, H, W, C = x_ref.shape
    x = x_ref[0]                        # (H, W, C) f32, post positional-encoding
    hw = hw_ref[0]                      # (H, C)   zeros in channels [C/2, C)
    ww = ww_ref[0]                      # (W, C)   zeros in channels [0, C/2)

    # ---- dynamic circular depthwise conv via shifted accumulate ----
    # No circulant matrices and no doubled-x buffers are ever materialized.
    # TODO(synk): at production C (C/2 a multiple of 128 lanes) run the H loop on
    # x[..., :C/2] and the W loop on x[..., C/2:] (drop the zero-padded slabs)
    # and use pltpu.roll(x_half, shift=W-k, axis=1) for the W shifts (XLU slot).
    if W % 8 == 0:
        y = x * hw[0, :][None, None, :]            # ww[0] handled in the r/q loop
    else:
        y = x * (hw[0, :] + ww[0, :])[None, None, :]

    # H direction: shift along the LEADING axis -> two static leading-dim slices
    # + concat: pure vreg selection, no (8,128)-tile relayout, no 2x buffer.
    for k in range(1, H):
        xk = jnp.concatenate([x[k:], x[:k]], axis=0)          # x[(n+k) % H]
        y = y + xk * hw[k, :][None, None, :]

    # W direction: the shift axis is the sublane axis. Decompose k = 8*q + r so
    # only min(W,8)-1 sublane-misaligned shifts are needed; the 8*q part is an
    # aligned sublane-tile roll (cheap).  With
    #   x_q[h,n,c] = x[h,(n+8q)%W,c],  S_r = sum_q x_q * ww[8q+r],
    # we have  y_W = sum_r shift_r(S_r),  shift_r(A)[h,m,c] = A[h,(m+r)%W,c],
    # because ww is constant along the shifted axis (weights commute with shift).
    if W % 8 == 0:
        xq = [x]
        for q in range(1, W // 8):                 # aligned sublane-tile rolls
            xq.append(jnp.concatenate([x[:, 8 * q:, :], x[:, :8 * q, :]], axis=1))
        for r in range(8):
            s = xq[0] * ww[r, :][None, None, :]
            for q in range(1, W // 8):
                s = s + xq[q] * ww[8 * q + r, :][None, None, :]
            if r:                                  # the only misaligned shifts
                s = jnp.concatenate([s[:, r:, :], s[:, :r, :]], axis=1)
            y = y + s
    else:                                          # generic fallback (W % 8 != 0)
        for k in range(1, W):
            xk = jnp.concatenate([x[:, k:, :], x[:, :k, :]], axis=1)
            y = y + xk * ww[k, :][None, None, :]

    # ---- + channel bias, LayerNorm over C (eps=1e-6); LN affine folded into w1/b1
    # (reshape (H,W,C)->(H*W,C) is a free layout merge when W % 8 == 0)
    t = y.reshape(H * W, C) + cbias_ref[...]
    mu = jnp.mean(t, axis=-1, keepdims=True)
    tc = t - mu
    var = jnp.mean(tc * tc, axis=-1, keepdims=True)
    xn = tc * lax.rsqrt(var + 1e-6)

    # ---- MLP (pwconv1 -> GELU -> pwconv2) in bf16 on the MXU, f32 accumulation.
    # GELU uses the tanh form (tanh lands on the EUP slot); its 0.5 factor is
    # folded into w2 host-side, so the kernel computes x*(1+tanh(...)).
    h = jnp.dot(xn.astype(jnp.bfloat16), w1_ref[...],
                preferred_element_type=jnp.float32) + b1_ref[...]
    g = h * (1.0 + jnp.tanh(0.7978845608028654 * (h + 0.044715 * (h * h * h))))
    o = jnp.dot(g.astype(jnp.bfloat16), w2_ref[...],
                preferred_element_type=jnp.float32) + b2_ref[...]

    # ---- layer-scale gamma (and GELU 0.5) folded into w2/b2; add residual
    o_ref[0] = res_ref[0] + o


def fused_block_pallas(x_nhwc, res_tok, hw_full, ww_full, cbias,
                       w1p, b1p, w2p, b2p):
    B, H, W, C = x_nhwc.shape
    C4 = w1p.shape[1]
    T = H * W
    # TODO(synk): at ConvNeXt shapes add a token-tile grid axis for the LN+MLP
    # stage, mark weight specs pipeline_mode=pl.Buffered(1), and present a
    # lane-dense (C>=128) token layout; not needed at these demo shapes.
    return pl.pallas_call(
        _fused_kernel,
        out_shape=jax.ShapeDtypeStruct((B, T, C), jnp.float32),
        grid=(B,),
        in_specs=[
            pl.BlockSpec((1, H, W, C), lambda b: (b, 0, 0, 0)),  # x (post-PE), NHWC
            pl.BlockSpec((1, T, C),    lambda b: (b, 0, 0)),     # residual tokens
            pl.BlockSpec((1, H, C),    lambda b: (b, 0, 0)),     # H-conv weight rows
            pl.BlockSpec((1, W, C),    lambda b: (b, 0, 0)),     # W-conv weight rows
            pl.BlockSpec((1, C),       lambda b: (0, 0)),        # channel bias
            pl.BlockSpec((C, C4),      lambda b: (0, 0)),        # pwconv1 (LN folded), bf16
            pl.BlockSpec((1, C4),      lambda b: (0, 0)),
            pl.BlockSpec((C4, C),      lambda b: (0, 0)),        # pwconv2 (gamma,0.5 folded), bf16
            pl.BlockSpec((1, C),       lambda b: (0, 0)),
        ],
        out_specs=pl.BlockSpec((1, T, C), lambda b: (b, 0, 0)),
        compiler_params=pltpu.CompilerParams(
            dimension_semantics=("parallel",),
            vmem_limit_bytes=32 * 1024 * 1024),   # <= physical on v5e/v6e/v7x
    )(x_nhwc, res_tok, hw_full, ww_full, cbias, w1p, b1p, w2p, b2p)


# ----------------------------- plain-JAX glue (tiny generator nets) ------------

def conv_nhwc(x, w_hwio, padding, bias=None):
    y = lax.conv_general_dilated(x, w_hwio, (1, 1), padding,
                                 dimension_numbers=('NHWC', 'HWIO', 'NHWC'))
    if bias is not None:
        y = y + bias
    return y


def conv_nchw(x, w_oihw, padding, bias=None):
    y = lax.conv_general_dilated(x, w_oihw, (1, 1), padding,
                                 dimension_numbers=('NCHW', 'OIHW', 'NCHW'))
    if bias is not None:
        y = y + bias[None, :, None, None]
    return y


def bn_eval_nhwc(x, gamma, beta, eps=1e-5):
    # running_mean=0, running_var=1 (PyTorch init defaults), eval mode.
    return x * (gamma / jnp.sqrt(1.0 + eps)) + beta


def bn_eval_nchw(x, gamma, beta, eps=1e-5):
    return (x * (gamma / jnp.sqrt(1.0 + eps))[None, :, None, None]
            + beta[None, :, None, None])


def gen_2d_apply_nhwc(x, p):
    h = conv_nhwc(x, p['w1_hwio'], ((1, 1), (1, 1)))
    h = bn_eval_nhwc(h, p['bn_g'], p['bn_b'])
    h = jax.nn.relu(h)
    return conv_nhwc(h, p['w2_hwio'], ((1, 1), (1, 1)), p['b2'])


def gen1d_sp_apply(x, p, typ):
    # x: (B, C2, H, 1) for 'H', (B, C2, 1, W) for 'W'   (tiny tensors)
    _, C, Hh, Wd = x.shape
    pad = ((1, 1), (0, 0)) if typ == 'H' else ((0, 0), (1, 1))
    h = conv_nchw(x, p['w1'], pad)
    h = bn_eval_nchw(h, p['bn_g'], p['bn_b'])
    h = jax.nn.relu(h)
    g = conv_nchw(h, p['w2'], pad, p['b2'])

    res = p['res']                                     # (C2, 3)
    n = Hh if typ == 'H' else Wd
    res_full = jnp.concatenate(
        [res[:, :2], jnp.zeros((C, n - 3), jnp.float32), res[:, 2:]], axis=1)
    if typ == 'H':
        res_full = res_full.reshape(1, C, n, 1)
        axis = 2
    else:
        res_full = res_full.reshape(1, C, 1, n)
        axis = 3
    g = g * (res_full == 0).astype(jnp.float32) + res_full

    # real part of ifft along `axis` (input is real) == cosine matmul / n
    k = jnp.arange(n, dtype=jnp.float32)
    cos_mat = jnp.cos(2.0 * jnp.pi * k[:, None] * k[None, :] / n) / n
    g = jnp.moveaxis(g, axis, -1)
    g = jnp.einsum('...k,mk->...m', g, cos_mat, precision=lax.Precision.HIGHEST)
    return jnp.moveaxis(g, -1, axis)


# ----------------------------- block forward ----------------------------------

def block_forward(x_nchw, params, use_pallas=True):
    B, C, H, W = x_nchw.shape
    C2 = C // 2
    p = params

    # single layout change at the block boundary: NCHW -> NHWC (TPU-native)
    x = jnp.transpose(x_nchw, (0, 2, 3, 1))
    res = x

    # positional-encoding generator (use_pe=True), small XLA convs in NHWC
    x = x + gen_2d_apply_nhwc(x, p['pe'])

    # dynamic 1-D kernel generators on mean-pooled (tiny) tensors
    m1 = jnp.transpose(jnp.mean(x[..., :C2], axis=2), (0, 2, 1))[..., None]      # (B,C2,H,1)
    m2 = jnp.transpose(jnp.mean(x[..., C2:], axis=1), (0, 2, 1))[:, :, None, :]  # (B,C2,1,W)
    Hw = gen1d_sp_apply(m1, p['genH'], 'H')[..., 0]        # (B, C2, H)
    Ww = gen1d_sp_apply(m2, p['genW'], 'W')[:, :, 0, :]    # (B, C2, W)

    if use_pallas:
        # zero-padded full-channel weight slabs: channels [0,C2) take the H-conv
        # weights, channels [C2,C) take the W-conv weights.  (Kept only because
        # C2 < 128 at demo size; see the TODO in _fused_kernel for production C.)
        hw_full = jnp.pad(jnp.transpose(Hw, (0, 2, 1)), ((0, 0), (0, 0), (0, C - C2)))
        ww_full = jnp.pad(jnp.transpose(Ww, (0, 2, 1)), ((0, 0), (0, 0), (C2, 0)))

        # fold LayerNorm affine into pwconv1, and layer-scale gamma + the GELU 0.5
        # into pwconv2 (one-time weight rewrite, bf16 for the MXU).
        w1p = (p['ln_w'][:, None] * p['w1']).astype(jnp.bfloat16)
        b1p = (p['ln_b'] @ p['w1'] + p['b1'])[None, :]
        w2p = (0.5 * p['w2'] * p['gamma'][None, :]).astype(jnp.bfloat16)
        b2p = (p['gamma'] * p['b2'])[None, :]

        out_tok = fused_block_pallas(x, res.reshape(B, H * W, C),
                                     hw_full, ww_full, p['cbias'][None, :],
                                     w1p, b1p, w2p, b2p)
        out = out_tok.reshape(B, H, W, C)
    else:
        # pure-JAX reference: explicit circulant matmuls, f32, exact erf GELU.
        idxH = (jnp.arange(H)[None, :] - jnp.arange(H)[:, None]) % H
        idxW = (jnp.arange(W)[:, None] - jnp.arange(W)[None, :]) % W
        CH = Hw[:, :, idxH]                                # (B,C2,H,H)
        CW = Ww[:, :, idxW]                                # (B,C2,W,W)
        y1 = jnp.einsum('bcnm,bmwc->bnwc', CH, x[..., :C2],
                        precision=lax.Precision.HIGHEST)
        y2 = jnp.einsum('bhmc,bcmn->bhnc', x[..., C2:], CW,
                        precision=lax.Precision.HIGHEST)
        t = (jnp.concatenate([y1, y2], axis=-1) + p['cbias']).reshape(B * H * W, C)
        mu = jnp.mean(t, axis=-1, keepdims=True)
        tc = t - mu
        var = jnp.mean(tc * tc, axis=-1, keepdims=True)
        tn = tc / jnp.sqrt(var + 1e-6) * p['ln_w'] + p['ln_b']
        h = jnp.dot(tn, p['w1'], precision=lax.Precision.HIGHEST) + p['b1']
        h = 0.5 * h * (1.0 + jax.scipy.special.erf(h * 0.7071067811865475))
        o = jnp.dot(h, p['w2'], precision=lax.Precision.HIGHEST) + p['b2']
        out = (res.reshape(B * H * W, C) + p['gamma'] * o).reshape(B, H, W, C)

    return jnp.transpose(out, (0, 3, 1, 2))


# ----------------------------- parameter init ---------------------------------

def init_params(key, dim, reduction=16, layer_scale_init_value=0.1):
    C2 = dim // 2
    hid_pe = dim // reduction
    hid_1d = max(C2 // reduction, 1)
    keys = jax.random.split(key, 16)

    def rn(k, shape, scale):
        return jax.random.normal(k, shape, jnp.float32) * scale

    return {
        'pe': {'w1_hwio': rn(keys[0], (3, 3, dim, hid_pe), 0.1),
               'bn_g': jnp.ones((hid_pe,), jnp.float32),
               'bn_b': jnp.zeros((hid_pe,), jnp.float32),
               'w2_hwio': rn(keys[1], (3, 3, hid_pe, dim), 0.1),
               'b2': rn(keys[2], (dim,), 0.02)},
        'genH': {'w1': rn(keys[3], (hid_1d, C2, 3, 1), 0.1),
                 'bn_g': jnp.ones((hid_1d,), jnp.float32),
                 'bn_b': jnp.zeros((hid_1d,), jnp.float32),
                 'w2': rn(keys[4], (C2, hid_1d, 3, 1), 0.1),
                 'b2': rn(keys[5], (C2,), 0.02),
                 'res': rn(keys[6], (C2, 3), 0.02)},
        'genW': {'w1': rn(keys[7], (hid_1d, C2, 1, 3), 0.1),
                 'bn_g': jnp.ones((hid_1d,), jnp.float32),
                 'bn_b': jnp.zeros((hid_1d,), jnp.float32),
                 'w2': rn(keys[8], (C2, hid_1d, 1, 3), 0.1),
                 'b2': rn(keys[9], (C2,), 0.02),
                 'res': rn(keys[10], (C2, 3), 0.02)},
        'cbias': jnp.zeros((dim,), jnp.float32),           # self.bias
        'ln_w': jnp.ones((dim,), jnp.float32),
        'ln_b': jnp.zeros((dim,), jnp.float32),
        'w1': rn(keys[11], (dim, 4 * dim), 0.05),           # pwconv1 (pre-transposed)
        'b1': rn(keys[12], (4 * dim,), 0.02),
        'w2': rn(keys[13], (4 * dim, dim), 0.05),           # pwconv2 (pre-transposed)
        'b2': rn(keys[14], (dim,), 0.02),
        'gamma': jnp.full((dim,), layer_scale_init_value, jnp.float32),
    }


# ----------------------------------- main --------------------------------------

if __name__ == "__main__":
    # TODO(synk): generator convnets / BN (eval-mode stats) / cosine-ifft stay in
    # XLA; channel padding to 128 lanes is not applied at this small demo dim.
    B, dim, H, W = 2, 32, 16, 16   # dim divisible by 32 (reduction=16 on dim//2)
    key = jax.random.PRNGKey(0)
    kx, kp = jax.random.split(key)
    x = jax.random.normal(kx, (B, dim, H, W), jnp.float32)
    params = init_params(kp, dim)

    fwd = jax.jit(functools.partial(block_forward, use_pallas=True))
    out = jax.block_until_ready(fwd(x, params))

    # pure-JAX reference (f32, unfused params, exact erf GELU) for a sanity check
    ref = jax.block_until_ready(block_forward(x, params, use_pallas=False))

    assert out.shape == x.shape and out.dtype == jnp.float32
    max_err = float(jnp.max(jnp.abs(out - ref)))
    assert max_err < 2e-3, f"mismatch vs reference, max abs err = {max_err}"
    print("KERNEL_OK")
</pallas_src>

<mosaic_0001>
module attributes {stable_mosaic.version = 11 : i64} {
  func.func @_fused_kernel(%arg0: i32, %arg1: memref<1x16x16x32xf32, #tpu.memory_space<vmem>>, %arg2: memref<1x256x32xf32, #tpu.memory_space<vmem>>, %arg3: memref<1x16x32xf32, #tpu.memory_space<vmem>>, %arg4: memref<1x16x32xf32, #tpu.memory_space<vmem>>, %arg5: memref<1x32xf32, #tpu.memory_space<vmem>>, %arg6: memref<32x128xbf16, #tpu.memory_space<vmem>>, %arg7: memref<1x128xf32, #tpu.memory_space<vmem>>, %arg8: memref<128x32xbf16, #tpu.memory_space<vmem>>, %arg9: memref<1x32xf32, #tpu.memory_space<vmem>>, %arg10: memref<1x256x32xf32, #tpu.memory_space<vmem>>) attributes {dimension_semantics = [#tpu.dimension_semantics<parallel>], iteration_bounds = array<i64: 2>, scalar_prefetch = 0 : i64, scratch_operands = 0 : i64, tpu.core_type = #tpu.core_type<tc>, window_params = [{transform_indices = @transform_0, window_bounds = array<i64: 1, 16, 16, 32>}, {transform_indices = @transform_1, window_bounds = array<i64: 1, 256, 32>}, {transform_indices = @transform_2, window_bounds = array<i64: 1, 16, 32>}, {transform_indices = @transform_3, window_bounds = array<i64: 1, 16, 32>}, {pipeline_mode = #tpu.pipeline_mode<synchronous>, transform_indices = @transform_4, window_bounds = array<i64: 1, 32>}, {pipeline_mode = #tpu.pipeline_mode<synchronous>, transform_indices = @transform_5, window_bounds = array<i64: 32, 128>}, {pipeline_mode = #tpu.pipeline_mode<synchronous>, transform_indices = @transform_6, window_bounds = array<i64: 1, 128>}, {pipeline_mode = #tpu.pipeline_mode<synchronous>, transform_indices = @transform_7, window_bounds = array<i64: 128, 32>}, {pipeline_mode = #tpu.pipeline_mode<synchronous>, transform_indices = @transform_8, window_bounds = array<i64: 1, 32>}, {transform_indices = @transform_9, window_bounds = array<i64: 1, 256, 32>}]} {
    %c0 = arith.constant 0 : index
    %c0_0 = arith.constant 0 : index
    %c0_1 = arith.constant 0 : index
    %c0_2 = arith.constant 0 : index
    %0 = vector.load %arg1[%c0, %c0_0, %c0_1, %c0_2] : memref<1x16x16x32xf32, #tpu.memory_space<vmem>>, vector<1x16x16x32xf32>
    %1 = vector.shape_cast %0 : vector<1x16x16x32xf32> to vector<16x16x32xf32>
    %c0_3 = arith.constant 0 : index
    %c0_4 = arith.constant 0 : index
    %c0_5 = arith.constant 0 : index
    %2 = vector.load %arg3[%c0_3, %c0_4, %c0_5] : memref<1x16x32xf32, #tpu.memory_space<vmem>>, vector<1x16x32xf32>
    %3 = vector.shape_cast %2 : vector<1x16x32xf32> to vector<16x32xf32>
    %c0_6 = arith.constant 0 : index
    %c0_7 = arith.constant 0 : index
    %c0_8 = arith.constant 0 : index
    %4 = vector.load %arg4[%c0_6, %c0_7, %c0_8] : memref<1x16x32xf32, #tpu.memory_space<vmem>>, vector<1x16x32xf32>
    %5 = vector.shape_cast %4 : vector<1x16x32xf32> to vector<16x32xf32>
    %6 = vector.extract_strided_slice %3 {offsets = [0, 0], sizes = [1, 32], strides = [1, 1]} : vector<16x32xf32> to vector<1x32xf32>
    %7 = vector.shape_cast %6 : vector<1x32xf32> to vector<32xf32>
    %8 = vector.shape_cast %7 : vector<32xf32> to vector<1x1x32xf32>
    %9 = vector.broadcast %8 : vector<1x1x32xf32> to vector<16x16x32xf32>
    %10 = arith.mulf %1, %9 : vector<16x16x32xf32>
    %11 = vector.extract_strided_slice %1 {offsets = [1, 0, 0], sizes = [15, 16, 32], strides = [1, 1, 1]} : vector<16x16x32xf32> to vector<15x16x32xf32>
    %12 = vector.extract_strided_slice %1 {offsets = [0, 0, 0], sizes = [1, 16, 32], strides = [1, 1, 1]} : vector<16x16x32xf32> to vector<1x16x32xf32>
    %13 = tpu.concatenate %11, %12 in 0 : vector<15x16x32xf32>, vector<1x16x32xf32> -> vector<16x16x32xf32>
    %14 = vector.extract_strided_slice %3 {offsets = [1, 0], sizes = [1, 32], strides = [1, 1]} : vector<16x32xf32> to vector<1x32xf32>
    %15 = vector.shape_cast %14 : vector<1x32xf32> to vector<32xf32>
    %16 = vector.shape_cast %15 : vector<32xf32> to vector<1x1x32xf32>
    %17 = vector.broadcast %16 : vector<1x1x32xf32> to vector<16x16x32xf32>
    %18 = arith.mulf %13, %17 : vector<16x16x32xf32>
    %19 = arith.addf %10, %18 : vector<16x16x32xf32>
    %20 = vector.extract_strided_slice %1 {offsets = [2, 0, 0], sizes = [14, 16, 32], strides = [1, 1, 1]} : vector<16x16x32xf32> to vector<14x16x32xf32>
    %21 = vector.extract_strided_slice %1 {offsets = [0, 0, 0], sizes = [2, 16, 32], strides = [1, 1, 1]} : vector<16x16x32xf32> to vector<2x16x32xf32>
    %22 = tpu.concatenate %20, %21 in 0 : vector<14x16x32xf32>, vector<2x16x32xf32> -> vector<16x16x32xf32>
    %23 = vector.extract_strided_slice %3 {offsets = [2, 0], sizes = [1, 32], strides = [1, 1]} : vector<16x32xf32> to vector<1x32xf32>
    %24 = vector.shape_cast %23 : vector<1x32xf32> to vector<32xf32>
    %25 = vector.shape_cast %24 : vector<32xf32> to vector<1x1x32xf32>
    %26 = vector.broadcast %25 : vector<1x1x32xf32> to vector<16x16x32xf32>
    %27 = arith.mulf %22, %26 : vector<16x16x32xf32>
    %28 = arith.addf %19, %27 : vector<16x16x32xf32>
    %29 = vector.extract_strided_slice %1 {offsets = [3, 0, 0], sizes = [13, 16, 32], strides = [1, 1, 1]} : vector<16x16x32xf32> to vector<13x16x32xf32>
    %30 = vector.extract_strided_slice %1 {offsets = [0, 0, 0], sizes = [3, 16, 32], strides = [1, 1, 1]} : vector<16x16x32xf32> to vector<3x16x32xf32>
    %31 = tpu.concatenate %29, %30 in 0 : vector<13x16x32xf32>, vector<3x16x32xf32> -> vector<16x16x32xf32>
    %32 = vector.extract_strided_slice %3 {offsets = [3, 0], sizes = [1, 32], strides = [1, 1]} : vector<16x32xf32> to vector<1x32xf32>
    %33 = vector.shape_cast %32 : vector<1x32xf32> to vector<32xf32>
    %34 = vector.shape_cast %33 : vector<32xf32> to vector<1x1x32xf32>
    %35 = vector.broadcast %34 : vector<1x1x32xf32> to vector<16x16x32xf32>
    %36 = arith.mulf %31, %35 : vector<16x16x32xf32>
    %37 = arith.addf %28, %36 : vector<16x16x32xf32>
    %38 = vector.extract_strided_slice %1 {offsets = [4, 0, 0], sizes = [12, 16, 32], strides = [1, 1, 1]} : vector<16x16x32xf32> to vector<12x16x32xf32>
    %39 = vector.extract_strided_slice %1 {offsets = [0, 0, 0], sizes = [4, 16, 32], strides = [1, 1, 1]} : vector<16x16x32xf32> to vector<4x16x32xf32>
    %40 = tpu.concatenate %38, %39 in 0 : vector<12x16x32xf32>, vector<4x16x32xf32> -> vector<16x16x32xf32>
    %41 = vector.extract_strided_slice %3 {offsets = [4, 0], sizes = [1, 32], strides = [1, 1]} : vector<16x32xf32> to vector<1x32xf32>
    %42 = vector.shape_cast %41 : vector<1x32xf32> to vector<32xf32>
    %43 = vector.shape_cast %42 : vector<32xf32> to vector<1x1x32xf32>
    %44 = vector.broadcast %43 : vector<1x1x32xf32> to vector<16x16x32xf32>
    %45 = arith.mulf %40, %44 : vector<16x16x32xf32>
    %46 = arith.addf %37, %45 : vector<16x16x32xf32>
    %47 = vector.extract_strided_slice %1 {offsets = [5, 0, 0], sizes = [11, 16, 32], strides = [1, 1, 1]} : vector<16x16x32xf32> to vector<11x16x32xf32>
    %48 = vector.extract_strided_slice %1 {offsets = [0, 0, 0], sizes = [5, 16, 32], strides = [1, 1, 1]} : vector<16x16x32xf32> to vector<5x16x32xf32>
    %49 = tpu.concatenate %47, %48 in 0 : vector<11x16x32xf32>, vector<5x16x32xf32> -> vector<16x16x32xf32>
    %50 = vector.extract_strided_slice %3 {offsets = [5, 0], sizes = [1, 32], strides = [1, 1]} : vector<16x32xf32> to vector<1x32xf32>
    %51 = vector.shape_cast %50 : vector<1x32xf32> to vector<32xf32>
    %52 = vector.shape_cast %51 : vector<32xf32> to vector<1x1x32xf32>
    %53 = vector.broadcast %52 : vector<1x1x32xf32> to vector<16x16x32xf32>
    %54 = arith.mulf %49, %53 : vector<16x16x32xf32>
    %55 = arith.addf %46, %54 : vector<16x16x32xf32>
    %56 = vector.extract_strided_slice %1 {offsets = [6, 0, 0], sizes = [10, 16, 32], strides = [1, 1, 1]} : vector<16x16x32xf32> to vector<10x16x32xf32>
    %57 = vector.extract_strided_slice %1 {offsets = [0, 0, 0], sizes = [6, 16, 32], strides = [1, 1, 1]} : vector<16x16x32xf32> to vector<6x16x32xf32>
    %58 = tpu.concatenate %56, %57 in 0 : vector<10x16x32xf32>, vector<6x16x32xf32> -> vector<16x16x32xf32>
    %59 = vector.extract_strided_slice %3 {offsets = [6, 0], sizes = [1, 32], strides = [1, 1]} : vector<16x32xf32> to vector<1x32xf32>
    %60 = vector.shape_cast %59 : vector<1x32xf32> to vector<32xf32>
    %61 = vector.shape_cast %60 : vector<32xf32> to vector<1x1x32xf32>
    %62 = vector.broadcast %61 : vector<1x1x32xf32> to vector<16x16x32xf32>
    %63 = arith.mulf %58, %62 : vector<16x16x32xf32>
    %64 = arith.addf %55, %63 : vector<16x16x32xf32>
    %65 = vector.extract_strided_slice %1 {offsets = [7, 0, 0], sizes = [9, 16, 32], strides = [1, 1, 1]} : vector<16x16x32xf32> to vector<9x16x32xf32>
    %66 = vector.extract_strided_slice %1 {offsets = [0, 0, 0], sizes = [7, 16, 32], strides = [1, 1, 1]} : vector<16x16x32xf32> to vector<7x16x32xf32>
    %67 = tpu.concatenate %65, %66 in 0 : vector<9x16x32xf32>, vector<7x16x32xf32> -> vector<16x16x32xf32>
    %68 = vector.extract_strided_slice %3 {offsets = [7, 0], sizes = [1, 32], strides = [1, 1]} : vector<16x32xf32> to vector<1x32xf32>
    %69 = vector.shape_cast %68 : vector<1x32xf32> to vector<32xf32>
    %70 = vector.shape_cast %69 : vector<32xf32> to vector<1x1x32xf32>
    %71 = vector.broadcast %70 : vector<1x1x32xf32> to vector<16x16x32xf32>
    %72 = arith.mulf %67, %71 : vector<16x16x32xf32>
    %73 = arith.addf %64, %72 : vector<16x16x32xf32>
    %74 = vector.extract_strided_slice %1 {offsets = [8, 0, 0], sizes = [8, 16, 32], strides = [1, 1, 1]} : vector<16x16x32xf32> to vector<8x16x32xf32>
    %75 = vector.extract_strided_slice %1 {offsets = [0, 0, 0], sizes = [8, 16, 32], strides = [1, 1, 1]} : vector<16x16x32xf32> to vector<8x16x32xf32>
    %76 = tpu.concatenate %74, %75 in 0 : vector<8x16x32xf32>, vector<8x16x32xf32> -> vector<16x16x32xf32>
    %77 = vector.extract_strided_slice %3 {offsets = [8, 0], sizes = [1, 32], strides = [1, 1]} : vector<16x32xf32> to vector<1x32xf32>
    %78 = vector.shape_cast %77 : vector<1x32xf32> to vector<32xf32>
    %79 = vector.shape_cast %78 : vector<32xf32> to vector<1x1x32xf32>
    %80 = vector.broadcast %79 : vector<1x1x32xf32> to vector<16x16x32xf32>
    %81 = arith.mulf %76, %80 : vector<16x16x32xf32>
    %82 = arith.addf %73, %81 : vector<16x16x32xf32>
    %83 = vector.extract_strided_slice %1 {offsets = [9, 0, 0], sizes = [7, 16, 32], strides = [1, 1, 1]} : vector<16x16x32xf32> to vector<7x16x32xf32>
    %84 = vector.extract_strided_slice %1 {offsets = [0, 0, 0], sizes = [9, 16, 32], strides = [1, 1, 1]} : vector<16x16x32xf32> to vector<9x16x32xf32>
    %85 = tpu.concatenate %83, %84 in 0 : vector<7x16x32xf32>, vector<9x16x32xf32> -> vector<16x16x32xf32>
    %86 = vector.extract_strided_slice %3 {offsets = [9, 0], sizes = [1, 32], strides = [1, 1]} : vector<16x32xf32> to vector<1x32xf32>
    %87 = vector.shape_cast %86 : vector<1x32xf32> to vector<32xf32>
    %88 = vector.shape_cast %87 : vector<32xf32> to vector<1x1x32xf32>
    %89 = vector.broadcast %88 : vector<1x1x32xf32> to vector<16x16x32xf32>
    %90 = arith.mulf %85, %89 : vector<16x16x32xf32>
    %91 = arith.addf %82, %90 : vector<16x16x32xf32>
    %92 = vector.extract_strided_slice %1 {offsets = [10, 0, 0], sizes = [6, 16, 32], strides = [1, 1, 1]} : vector<16x16x32xf32> to vector<6x16x32xf32>
    %93 = vector.extract_strided_slice %1 {offsets = [0, 0, 0], sizes = [10, 16, 32], strides = [1, 1, 1]} : vector<16x16x32xf32> to vector<10x16x32xf32>
    %94 = tpu.concatenate %92, %93 in 0 : vector<6x16x32xf32>, vector<10x16x32xf32> -> vector<16x16x32xf32>
    %95 = vector.extract_strided_slice %3 {offsets = [10, 0], sizes = [1, 32], strides = [1, 1]} : vector<16x32xf32> to vector<1x32xf32>
    %96 = vector.shape_cast %95 : vector<1x32xf32> to vector<32xf32>
    %97 = vector.shape_cast %96 : vector<32xf32> to vector<1x1x32xf32>
    %98 = vector.broadcast %97 : vector<1x1x32xf32> to vector<16x16x32xf32>
    %99 = arith.mulf %94, %98 : vector<16x16x32xf32>
    %100 = arith.addf %91, %99 : vector<16x16x32xf32>
    %101 = vector.extract_strided_slice %1 {offsets = [11, 0, 0], sizes = [5, 16, 32], strides = [1, 1, 1]} : vector<16x16x32xf32> to vector<5x16x32xf32>
    %102 = vector.extract_strided_slice %1 {offsets = [0, 0, 0], sizes = [11, 16, 32], strides = [1, 1, 1]} : vector<16x16x32xf32> to vector<11x16x32xf32>
    %103 = tpu.concatenate %101, %102 in 0 : vector<5x16x32xf32>, vector<11x16x32xf32> -> vector<16x16x32xf32>
    %104 = vector.extract_strided_slice %3 {offsets = [11, 0], sizes = [1, 32], strides = [1, 1]} : vector<16x32xf32> to vector<1x32xf32>
    %105 = vector.shape_cast %104 : vector<1x32xf32> to vector<32xf32>
    %106 = vector.shape_cast %105 : vector<32xf32> to vector<1x1x32xf32>
    %107 = vector.broadcast %106 : vector<1x1x32xf32> to vector<16x16x32xf32>
    %108 = arith.mulf %103, %107 : vector<16x16x32xf32>
    %109 = arith.addf %100, %108 : vector<16x16x32xf32>
    %110 = vector.extract_strided_slice %1 {offsets = [12, 0, 0], sizes = [4, 16, 32], strides = [1, 1, 1]} : vector<16x16x32xf32> to vector<4x16x32xf32>
    %111 = vector.extract_strided_slice %1 {offsets = [0, 0, 0], sizes = [12, 16, 32], strides = [1, 1, 1]} : vector<16x16x32xf32> to vector<12x16x32xf32>
    %112 = tpu.concatenate %110, %111 in 0 : vector<4x16x32xf32>, vector<12x16x32xf32> -> vector<16x16x32xf32>
    %113 = vector.extract_strided_slice %3 {offsets = [12, 0], sizes = [1, 32], strides = [1, 1]} : vector<16x32xf32> to vector<1x32xf32>
    %114 = vector.shape_cast %113 : vector<1x32xf32> to vector<32xf32>
    %115 = vector.shape_cast %114 : vector<32xf32> to vector<1x1x32xf32>
    %116 = vector.broadcast %115 : vector<1x1x32xf32> to vector<16x16x32xf32>
    %117 = arith.mulf %112, %116 : vector<16x16x32xf32>
    %118 = arith.addf %109, %117 : vector<16x16x32xf32>
    %119 = vector.extract_strided_slice %1 {offsets = [13, 0, 0], sizes = [3, 16, 32], strides = [1, 1, 1]} : vector<16x16x32xf32> to vector<3x16x32xf32>
    %120 = vector.extract_strided_slice %1 {offsets = [0, 0, 0], sizes = [13, 16, 32], strides = [1, 1, 1]} : vector<16x16x32xf32> to vector<13x16x32xf32>
    %121 = tpu.concatenate %119, %120 in 0 : vector<3x16x32xf32>, vector<13x16x32xf32> -> vector<16x16x32xf32>
    %122 = vector.extract_strided_slice %3 {offsets = [13, 0], sizes = [1, 32], strides = [1, 1]} : vector<16x32xf32> to vector<1x32xf32>
    %123 = vector.shape_cast %122 : vector<1x32xf32> to vector<32xf32>
    %124 = vector.shape_cast %123 : vector<32xf32> to vector<1x1x32xf32>
    %125 = vector.broadcast %124 : vector<1x1x32xf32> to vector<16x16x32xf32>
    %126 = arith.mulf %121, %125 : vector<16x16x32xf32>
    %127 = arith.addf %118, %126 : vector<16x16x32xf32>
    %128 = vector.extract_strided_slice %1 {offsets = [14, 0, 0], sizes = [2, 16, 32], strides = [1, 1, 1]} : vector<16x16x32xf32> to vector<2x16x32xf32>
    %129 = vector.extract_strided_slice %1 {offsets = [0, 0, 0], sizes = [14, 16, 32], strides = [1, 1, 1]} : vector<16x16x32xf32> to vector<14x16x32xf32>
    %130 = tpu.concatenate %128, %129 in 0 : vector<2x16x32xf32>, vector<14x16x32xf32> -> vector<16x16x32xf32>
    %131 = vector.extract_strided_slice %3 {offsets = [14, 0], sizes = [1, 32], strides = [1, 1]} : vector<16x32xf32> to vector<1x32xf32>
    %132 = vector.shape_cast %131 : vector<1x32xf32> to vector<32xf32>
    %133 = vector.shape_cast %132 : vector<32xf32> to vector<1x1x32xf32>
    %134 = vector.broadcast %133 : vector<1x1x32xf32> to vector<16x16x32xf32>
    %135 = arith.mulf %130, %134 : vector<16x16x32xf32>
    %136 = arith.addf %127, %135 : vector<16x16x32xf32>
    %137 = vector.extract_strided_slice %1 {offsets = [15, 0, 0], sizes = [1, 16, 32], strides = [1, 1, 1]} : vector<16x16x32xf32> to vector<1x16x32xf32>
    %138 = vector.extract_strided_slice %1 {offsets = [0, 0, 0], sizes = [15, 16, 32], strides = [1, 1, 1]} : vector<16x16x32xf32> to vector<15x16x32xf32>
    %139 = tpu.concatenate %137, %138 in 0 : vector<1x16x32xf32>, vector<15x16x32xf32> -> vector<16x16x32xf32>
    %140 = vector.extract_strided_slice %3 {offsets = [15, 0], sizes = [1, 32], strides = [1, 1]} : vector<16x32xf32> to vector<1x32xf32>
    %141 = vector.shape_cast %140 : vector<1x32xf32> to vector<32xf32>
    %142 = vector.shape_cast %141 : vector<32xf32> to vector<1x1x32xf32>
    %143 = vector.broadcast %142 : vector<1x1x32xf32> to vector<16x16x32xf32>
    %144 = arith.mulf %139, %143 : vector<16x16x32xf32>
    %145 = arith.addf %136, %144 : vector<16x16x32xf32>
    %146 = vector.extract_strided_slice %1 {offsets = [0, 8, 0], sizes = [16, 8, 32], strides = [1, 1, 1]} : vector<16x16x32xf32> to vector<16x8x32xf32>
    %147 = vector.extract_strided_slice %1 {offsets = [0, 0, 0], sizes = [16, 8, 32], strides = [1, 1, 1]} : vector<16x16x32xf32> to vector<16x8x32xf32>
    %148 = tpu.concatenate %146, %147 in 1 : vector<16x8x32xf32>, vector<16x8x32xf32> -> vector<16x16x32xf32>
    %149 = vector.extract_strided_slice %5 {offsets = [0, 0], sizes = [1, 32], strides = [1, 1]} : vector<16x32xf32> to vector<1x32xf32>
    %150 = vector.shape_cast %149 : vector<1x32xf32> to vector<32xf32>
    %151 = vector.shape_cast %150 : vector<32xf32> to vector<1x1x32xf32>
    %152 = vector.broadcast %151 : vector<1x1x32xf32> to vector<16x16x32xf32>
    %153 = arith.mulf %1, %152 : vector<16x16x32xf32>
    %154 = vector.extract_strided_slice %5 {offsets = [8, 0], sizes = [1, 32], strides = [1, 1]} : vector<16x32xf32> to vector<1x32xf32>
    %155 = vector.shape_cast %154 : vector<1x32xf32> to vector<32xf32>
    %156 = vector.shape_cast %155 : vector<32xf32> to vector<1x1x32xf32>
    %157 = vector.broadcast %156 : vector<1x1x32xf32> to vector<16x16x32xf32>
    %158 = arith.mulf %148, %157 : vector<16x16x32xf32>
    %159 = arith.addf %153, %158 : vector<16x16x32xf32>
    %160 = arith.addf %145, %159 : vector<16x16x32xf32>
    %161 = vector.extract_strided_slice %5 {offsets = [1, 0], sizes = [1, 32], strides = [1, 1]} : vector<16x32xf32> to vector<1x32xf32>
    %162 = vector.shape_cast %161 : vector<1x32xf32> to vector<32xf32>
    %163 = vector.shape_cast %162 : vector<32xf32> to vector<1x1x32xf32>
    %164 = vector.broadcast %163 : vector<1x1x32xf32> to vector<16x16x32xf32>
    %165 = arith.mulf %1, %164 : vector<16x16x32xf32>
    %166 = vector.extract_strided_slice %5 {offsets = [9, 0], sizes = [1, 32], strides = [1, 1]} : vector<16x32xf32> to vector<1x32xf32>
    %167 = vector.shape_cast %166 : vector<1x32xf32> to vector<32xf32>
    %168 = vector.shape_cast %167 : vector<32xf32> to vector<1x1x32xf32>
    %169 = vector.broadcast %168 : vector<1x1x32xf32> to vector<16x16x32xf32>
    %170 = arith.mulf %148, %169 : vector<16x16x32xf32>
    %171 = arith.addf %165, %170 : vector<16x16x32xf32>
    %172 = vector.extract_strided_slice %171 {offsets = [0, 1, 0], sizes = [16, 15, 32], strides = [1, 1, 1]} : vector<16x16x32xf32> to vector<16x15x32xf32>
    %173 = vector.extract_strided_slice %171 {offsets = [0, 0, 0], sizes = [16, 1, 32], strides = [1, 1, 1]} : vector<16x16x32xf32> to vector<16x1x32xf32>
    %174 = tpu.concatenate %172, %173 in 1 : vector<16x15x32xf32>, vector<16x1x32xf32> -> vector<16x16x32xf32>
    %175 = arith.addf %160, %174 : vector<16x16x32xf32>
    %176 = vector.extract_strided_slice %5 {offsets = [2, 0], sizes = [1, 32], strides = [1, 1]} : vector<16x32xf32> to vector<1x32xf32>
    %177 = vector.shape_cast %176 : vector<1x32xf32> to vector<32xf32>
    %178 = vector.shape_cast %177 : vector<32xf32> to vector<1x1x32xf32>
    %179 = vector.broadcast %178 : vector<1x1x32xf32> to vector<16x16x32xf32>
    %180 = arith.mulf %1, %179 : vector<16x16x32xf32>
    %181 = vector.extract_strided_slice %5 {offsets = [10, 0], sizes = [1, 32], strides = [1, 1]} : vector<16x32xf32> to vector<1x32xf32>
    %182 = vector.shape_cast %181 : vector<1x32xf32> to vector<32xf32>
    %183 = vector.shape_cast %182 : vector<32xf32> to vector<1x1x32xf32>
    %184 = vector.broadcast %183 : vector<1x1x32xf32> to vector<16x16x32xf32>
    %185 = arith.mulf %148, %184 : vector<16x16x32xf32>
    %186 = arith.addf %180, %185 : vector<16x16x32xf32>
    %187 = vector.extract_strided_slice %186 {offsets = [0, 2, 0], sizes = [16, 14, 32], strides = [1, 1, 1]} : vector<16x16x32xf32> to vector<16x14x32xf32>
    %188 = vector.extract_strided_slice %186 {offsets = [0, 0, 0], sizes = [16, 2, 32], strides = [1, 1, 1]} : vector<16x16x32xf32> to vector<16x2x32xf32>
    %189 = tpu.concatenate %187, %188 in 1 : vector<16x14x32xf32>, vector<16x2x32xf32> -> vector<16x16x32xf32>
    %190 = arith.addf %175, %189 : vector<16x16x32xf32>
    %191 = vector.extract_strided_slice %5 {offsets = [3, 0], sizes = [1, 32], strides = [1, 1]} : vector<16x32xf32> to vector<1x32xf32>
    %192 = vector.shape_cast %191 : vector<1x32xf32> to vector<32xf32>
    %193 = vector.shape_cast %192 : vector<32xf32> to vector<1x1x32xf32>
    %194 = vector.broadcast %193 : vector<1x1x32xf32> to vector<16x16x32xf32>
    %195 = arith.mulf %1, %194 : vector<16x16x32xf32>
    %196 = vector.extract_strided_slice %5 {offsets = [11, 0], sizes = [1, 32], strides = [1, 1]} : vector<16x32xf32> to vector<1x32xf32>
    %197 = vector.shape_cast %196 : vector<1x32xf32> to vector<32xf32>
    %198 = vector.shape_cast %197 : vector<32xf32> to vector<1x1x32xf32>
    %199 = vector.broadcast %198 : vector<1x1x32xf32> to vector<16x16x32xf32>
    %200 = arith.mulf %148, %199 : vector<16x16x32xf32>
    %201 = arith.addf %195, %200 : vector<16x16x32xf32>
    %202 = vector.extract_strided_slice %201 {offsets = [0, 3, 0], sizes = [16, 13, 32], strides = [1, 1, 1]} : vector<16x16x32xf32> to vector<16x13x32xf32>
    %203 = vector.extract_strided_slice %201 {offsets = [0, 0, 0], sizes = [16, 3, 32], strides = [1, 1, 1]} : vector<16x16x32xf32> to vector<16x3x32xf32>
    %204 = tpu.concatenate %202, %203 in 1 : vector<16x13x32xf32>, vector<16x3x32xf32> -> vector<16x16x32xf32>
    %205 = arith.addf %190, %204 : vector<16x16x32xf32>
    %206 = vector.extract_strided_slice %5 {offsets = [4, 0], sizes = [1, 32], strides = [1, 1]} : vector<16x32xf32> to vector<1x32xf32>
    %207 = vector.shape_cast %206 : vector<1x32xf32> to vector<32xf32>
    %208 = vector.shape_cast %207 : vector<32xf32> to vector<1x1x32xf32>
    %209 = vector.broadcast %208 : vector<1x1x32xf32> to vector<16x16x32xf32>
    %210 = arith.mulf %1, %209 : vector<16x16x32xf32>
    %211 = vector.extract_strided_slice %5 {offsets = [12, 0], sizes = [1, 32], strides = [1, 1]} : vector<16x32xf32> to vector<1x32xf32>
    %212 = vector.shape_cast %211 : vector<1x32xf32> to vector<32xf32>
    %213 = vector.shape_cast %212 : vector<32xf32> to vector<1x1x32xf32>
    %214 = vector.broadcast %213 : vector<1x1x32xf32> to vector<16x16x32xf32>
    %215 = arith.mulf %148, %214 : vector<16x16x32xf32>
    %216 = arith.addf %210, %215 : vector<16x16x32xf32>
    %217 = vector.extract_strided_slice %216 {offsets = [0, 4, 0], sizes = [16, 12, 32], strides = [1, 1, 1]} : vector<16x16x32xf32> to vector<16x12x32xf32>
    %218 = vector.extract_strided_slice %216 {offsets = [0, 0, 0], sizes = [16, 4, 32], strides = [1, 1, 1]} : vector<16x16x32xf32> to vector<16x4x32xf32>
    %219 = tpu.concatenate %217, %218 in 1 : vector<16x12x32xf32>, vector<16x4x32xf32> -> vector<16x16x32xf32>
    %220 = arith.addf %205, %219 : vector<16x16x32xf32>
    %221 = vector.extract_strided_slice %5 {offsets = [5, 0], sizes = [1, 32], strides = [1, 1]} : vector<16x32xf32> to vector<1x32xf32>
    %222 = vector.shape_cast %221 : vector<1x32xf32> to vector<32xf32>
    %223 = vector.shape_cast %222 : vector<32xf32> to vector<1x1x32xf32>
    %224 = vector.broadcast %223 : vector<1x1x32xf32> to vector<16x16x32xf32>
    %225 = arith.mulf %1, %224 : vector<16x16x32xf32>
    %226 = vector.extract_strided_slice %5 {offsets = [13, 0], sizes = [1, 32], strides = [1, 1]} : vector<16x32xf32> to vector<1x32xf32>
    %227 = vector.shape_cast %226 : vector<1x32xf32> to vector<32xf32>
    %228 = vector.shape_cast %227 : vector<32xf32> to vector<1x1x32xf32>
    %229 = vector.broadcast %228 : vector<1x1x32xf32> to vector<16x16x32xf32>
    %230 = arith.mulf %148, %229 : vector<16x16x32xf32>
    %231 = arith.addf %225, %230 : vector<16x16x32xf32>
    %232 = vector.extract_strided_slice %231 {offsets = [0, 5, 0], sizes = [16, 11, 32], strides = [1, 1, 1]} : vector<16x16x32xf32> to vector<16x11x32xf32>
    %233 = vector.extract_strided_slice %231 {offsets = [0, 0, 0], sizes = [16, 5, 32], strides = [1, 1, 1]} : vector<16x16x32xf32> to vector<16x5x32xf32>
    %234 = tpu.concatenate %232, %233 in 1 : vector<16x11x32xf32>, vector<16x5x32xf32> -> vector<16x16x32xf32>
    %235 = arith.addf %220, %234 : vector<16x16x32xf32>
    %236 = vector.extract_strided_slice %5 {offsets = [6, 0], sizes = [1, 32], strides = [1, 1]} : vector<16x32xf32> to vector<1x32xf32>
    %237 = vector.shape_cast %236 : vector<1x32xf32> to vector<32xf32>
    %238 = vector.shape_cast %237 : vector<32xf32> to vector<1x1x32xf32>
    %239 = vector.broadcast %238 : vector<1x1x32xf32> to vector<16x16x32xf32>
    %240 = arith.mulf %1, %239 : vector<16x16x32xf32>
    %241 = vector.extract_strided_slice %5 {offsets = [14, 0], sizes = [1, 32], strides = [1, 1]} : vector<16x32xf32> to vector<1x32xf32>
    %242 = vector.shape_cast %241 : vector<1x32xf32> to vector<32xf32>
    %243 = vector.shape_cast %242 : vector<32xf32> to vector<1x1x32xf32>
    %244 = vector.broadcast %243 : vector<1x1x32xf32> to vector<16x16x32xf32>
    %245 = arith.mulf %148, %244 : vector<16x16x32xf32>
    %246 = arith.addf %240, %245 : vector<16x16x32xf32>
    %247 = vector.extract_strided_slice %246 {offsets = [0, 6, 0], sizes = [16, 10, 32], strides = [1, 1, 1]} : vector<16x16x32xf32> to vector<16x10x32xf32>
    %248 = vector.extract_strided_slice %246 {offsets = [0, 0, 0], sizes = [16, 6, 32], strides = [1, 1, 1]} : vector<16x16x32xf32> to vector<16x6x32xf32>
    %249 = tpu.concatenate %247, %248 in 1 : vector<16x10x32xf32>, vector<16x6x32xf32> -> vector<16x16x32xf32>
    %250 = arith.addf %235, %249 : vector<16x16x32xf32>
    %251 = vector.extract_strided_slice %5 {offsets = [7, 0], sizes = [1, 32], strides = [1, 1]} : vector<16x32xf32> to vector<1x32xf32>
    %252 = vector.shape_cast %251 : vector<1x32xf32> to vector<32xf32>
    %253 = vector.shape_cast %252 : vector<32xf32> to vector<1x1x32xf32>
    %254 = vector.broadcast %253 : vector<1x1x32xf32> to vector<16x16x32xf32>
    %255 = arith.mulf %1, %254 : vector<16x16x32xf32>
    %256 = vector.extract_strided_slice %5 {offsets = [15, 0], sizes = [1, 32], strides = [1, 1]} : vector<16x32xf32> to vector<1x32xf32>
    %257 = vector.shape_cast %256 : vector<1x32xf32> to vector<32xf32>
    %258 = vector.shape_cast %257 : vector<32xf32> to vector<1x1x32xf32>
    %259 = vector.broadcast %258 : vector<1x1x32xf32> to vector<16x16x32xf32>
    %260 = arith.mulf %148, %259 : vector<16x16x32xf32>
    %261 = arith.addf %255, %260 : vector<16x16x32xf32>
    %262 = vector.extract_strided_slice %261 {offsets = [0, 7, 0], sizes = [16, 9, 32], strides = [1, 1, 1]} : vector<16x16x32xf32> to vector<16x9x32xf32>
    %263 = vector.extract_strided_slice %261 {offsets = [0, 0, 0], sizes = [16, 7, 32], strides = [1, 1, 1]} : vector<16x16x32xf32> to vector<16x7x32xf32>
    %264 = tpu.concatenate %262, %263 in 1 : vector<16x9x32xf32>, vector<16x7x32xf32> -> vector<16x16x32xf32>
    %265 = arith.addf %250, %264 : vector<16x16x32xf32>
    %266 = vector.shape_cast %265 : vector<16x16x32xf32> to vector<256x32xf32>
    %c0_9 = arith.constant 0 : index
    %c0_10 = arith.constant 0 : index
    %267 = vector.load %arg5[%c0_9, %c0_10] : memref<1x32xf32, #tpu.memory_space<vmem>>, vector<1x32xf32>
    %268 = vector.broadcast %267 : vector<1x32xf32> to vector<256x32xf32>
    %269 = arith.addf %266, %268 : vector<256x32xf32>
    %cst = arith.constant dense<0.000000e+00> : vector<256xf32>
    %270 = vector.multi_reduction <add>, %269, %cst [1] : vector<256x32xf32> to vector<256xf32>
    %271 = vector.shape_cast %270 : vector<256xf32> to vector<256x1xf32>
    %cst_11 = arith.constant 3.200000e+01 : f32
    %272 = vector.broadcast %cst_11 : f32 to vector<256x1xf32>
    %273 = arith.divf %271, %272 : vector<256x1xf32>
    %274 = vector.broadcast %273 : vector<256x1xf32> to vector<256x32xf32>
    %275 = arith.subf %269, %274 : vector<256x32xf32>
    %276 = arith.mulf %275, %275 : vector<256x32xf32>
    %cst_12 = arith.constant dense<0.000000e+00> : vector<256xf32>
    %277 = vector.multi_reduction <add>, %276, %cst_12 [1] : vector<256x32xf32> to vector<256xf32>
    %278 = vector.shape_cast %277 : vector<256xf32> to vector<256x1xf32>
    %cst_13 = arith.constant 3.200000e+01 : f32
    %279 = vector.broadcast %cst_13 : f32 to vector<256x1xf32>
    %280 = arith.divf %278, %279 : vector<256x1xf32>
    %cst_14 = arith.constant 9.99999997E-7 : f32
    %281 = vector.broadcast %cst_14 : f32 to vector<256x1xf32>
    %282 = arith.addf %280, %281 : vector<256x1xf32>
    %283 = math.rsqrt %282 : vector<256x1xf32>
    %284 = vector.broadcast %283 : vector<256x1xf32> to vector<256x32xf32>
    %285 = arith.mulf %275, %284 : vector<256x32xf32>
    %286 = arith.truncf %285 : vector<256x32xf32> to vector<256x32xbf16>
    %c0_15 = arith.constant 0 : index
    %c0_16 = arith.constant 0 : index
    %287 = vector.load %arg6[%c0_15, %c0_16] : memref<32x128xbf16, #tpu.memory_space<vmem>>, vector<32x128xbf16>
    %cst_17 = arith.constant dense<0.000000e+00> : vector<256x128xf32>
    %288 = tpu.matmul %286, %287, %cst_17 {dimension_numbers = #tpu.dot_dimension_numbers<[1], [0], [0], [1], [0, 0, 1, 1], [], []>} : vector<256x32xbf16>, vector<32x128xbf16>, vector<256x128xf32> -> vector<256x128xf32>
    %c0_18 = arith.constant 0 : index
    %c0_19 = arith.constant 0 : index
    %289 = vector.load %arg7[%c0_18, %c0_19] : memref<1x128xf32, #tpu.memory_space<vmem>>, vector<1x128xf32>
    %290 = vector.broadcast %289 : vector<1x128xf32> to vector<256x128xf32>
    %291 = arith.addf %288, %290 : vector<256x128xf32>
    %292 = arith.mulf %291, %291 : vector<256x128xf32>
    %293 = arith.mulf %292, %291 : vector<256x128xf32>
    %cst_20 = arith.constant 4.471500e-02 : f32
    %294 = vector.broadcast %cst_20 : f32 to vector<256x128xf32>
    %295 = arith.mulf %294, %293 : vector<256x128xf32>
    %296 = arith.addf %291, %295 : vector<256x128xf32>
    %cst_21 = arith.constant 0.797884583 : f32
    %297 = vector.broadcast %cst_21 : f32 to vector<256x128xf32>
    %298 = arith.mulf %297, %296 : vector<256x128xf32>
    %299 = math.tanh %298 : vector<256x128xf32>
    %cst_22 = arith.constant 1.000000e+00 : f32
    %300 = vector.broadcast %cst_22 : f32 to vector<256x128xf32>
    %301 = arith.addf %300, %299 : vector<256x128xf32>
    %302 = arith.mulf %291, %301 : vector<256x128xf32>
    %303 = arith.truncf %302 : vector<256x128xf32> to vector<256x128xbf16>
    %c0_23 = arith.constant 0 : index
    %c0_24 = arith.constant 0 : index
    %304 = vector.load %arg8[%c0_23, %c0_24] : memref<128x32xbf16, #tpu.memory_space<vmem>>, vector<128x32xbf16>
    %cst_25 = arith.constant dense<0.000000e+00> : vector<256x32xf32>
    %305 = tpu.matmul %303, %304, %cst_25 {dimension_numbers = #tpu.dot_dimension_numbers<[1], [0], [0], [1], [0, 0, 1, 1], [], []>} : vector<256x128xbf16>, vector<128x32xbf16>, vector<256x32xf32> -> vector<256x32xf32>
    %c0_26 = arith.constant 0 : index
    %c0_27 = arith.constant 0 : index
    %306 = vector.load %arg9[%c0_26, %c0_27] : memref<1x32xf32, #tpu.memory_space<vmem>>, vector<1x32xf32>
    %307 = vector.broadcast %306 : vector<1x32xf32> to vector<256x32xf32>
    %308 = arith.addf %305, %307 : vector<256x32xf32>
    %c0_28 = arith.constant 0 : index
    %c0_29 = arith.constant 0 : index
    %c0_30 = arith.constant 0 : index
    %309 = vector.load %arg2[%c0_28, %c0_29, %c0_30] : memref<1x256x32xf32, #tpu.memory_space<vmem>>, vector<1x256x32xf32>
    %310 = vector.shape_cast %309 : vector<1x256x32xf32> to vector<256x32xf32>
    %311 = arith.addf %310, %308 : vector<256x32xf32>
    %c0_31 = arith.constant 0 : index
    %c0_32 = arith.constant 0 : index
    %c0_33 = arith.constant 0 : index
    %312 = vector.load %arg10[%c0_31, %c0_32, %c0_33] : memref<1x256x32xf32, #tpu.memory_space<vmem>>, vector<1x256x32xf32>
    %313 = vector.shape_cast %312 : vector<1x256x32xf32> to vector<256x32xf32>
    %314 = vector.shape_cast %311 : vector<256x32xf32> to vector<1x256x32xf32>
    tpu.vector_store %arg10[%c0_31, %c0_32, %c0_33], %314 {strides = array<i32>} : memref<1x256x32xf32, #tpu.memory_space<vmem>>, vector<1x256x32xf32>,
    return
  }
  func.func @transform_0(%arg0: i32) -> (i32, i32, i32, i32) {
    %c0_i32 = arith.constant 0 : i32
    %c0_i32_0 = arith.constant 0 : i32
    %c0_i32_1 = arith.constant 0 : i32
    %c0_i32_2 = arith.constant 0 : i32
    return %arg0, %c0_i32, %c0_i32_0, %c0_i32_1 : i32, i32, i32, i32
  }
  func.func @transform_1(%arg0: i32) -> (i32, i32, i32) {
    %c0_i32 = arith.constant 0 : i32
    %c0_i32_0 = arith.constant 0 : i32
    %c0_i32_1 = arith.constant 0 : i32
    return %arg0, %c0_i32, %c0_i32_0 : i32, i32, i32
  }
  func.func @transform_2(%arg0: i32) -> (i32, i32, i32) {
    %c0_i32 = arith.constant 0 : i32
    %c0_i32_0 = arith.constant 0 : i32
    %c0_i32_1 = arith.constant 0 : i32
    return %arg0, %c0_i32, %c0_i32_0 : i32, i32, i32
  }
  func.func @transform_3(%arg0: i32) -> (i32, i32, i32) {
    %c0_i32 = arith.constant 0 : i32
    %c0_i32_0 = arith.constant 0 : i32
    %c0_i32_1 = arith.constant 0 : i32
    return %arg0, %c0_i32, %c0_i32_0 : i32, i32, i32
  }
  func.func @transform_4(%arg0: i32) -> (i32, i32) {
    %c0_i32 = arith.constant 0 : i32
    %c0_i32_0 = arith.constant 0 : i32
    %c0_i32_1 = arith.constant 0 : i32
    return %c0_i32, %c0_i32_0 : i32, i32
  }
  func.func @transform_5(%arg0: i32) -> (i32, i32) {
    %c0_i32 = arith.constant 0 : i32
    %c0_i32_0 = arith.constant 0 : i32
    %c0_i32_1 = arith.constant 0 : i32
    return %c0_i32, %c0_i32_0 : i32, i32
  }
  func.func @transform_6(%arg0: i32) -> (i32, i32) {
    %c0_i32 = arith.constant 0 : i32
    %c0_i32_0 = arith.constant 0 : i32
    %c0_i32_1 = arith.constant 0 : i32
    return %c0_i32, %c0_i32_0 : i32, i32
  }
  func.func @transform_7(%arg0: i32) -> (i32, i32) {
    %c0_i32 = arith.constant 0 : i32
    %c0_i32_0 = arith.constant 0 : i32
    %c0_i32_1 = arith.constant 0 : i32
    return %c0_i32, %c0_i32_0 : i32, i32
  }
  func.func @transform_8(%arg0: i32) -> (i32, i32) {
    %c0_i32 = arith.constant 0 : i32
    %c0_i32_0 = arith.constant 0 : i32
    %c0_i32_1 = arith.constant 0 : i32
    return %c0_i32, %c0_i32_0 : i32, i32
  }
  func.func @transform_9(%arg0: i32) -> (i32, i32, i32) {
    %c0_i32 = arith.constant 0 : i32
    %c0_i32_0 = arith.constant 0 : i32
    %c0_i32_1 = arith.constant 0 : i32
    return %arg0, %c0_i32, %c0_i32_0 : i32, i32, i32
  }
}

</mosaic_0001>

<bundles_post_ra>
// kernel: block_forward.1
= control target key start
LH: loop header
LB: loop body
LE: loop exit
PB: predicated region body
PF: predicated region fallthrough
CT: control target
= control target key end

     0   :  { %14 = vsyncpa [#allocation3], 0  ;;  %s11962_s0 = inlined_call_operand.vmem [shape: f32[2,16,16,32], index: 0, kind: input, shape index: {}]   ;;  %s11963_s1 = inlined_call_operand.vmem [shape: f32[2,256,32], index: 1, kind: input, shape index: {}]   ;;  %s11964_s2 = inlined_call_operand.vmem [shape: f32[2,16,32], index: 2, kind: input, shape index: {}]   ;;  %s11965_s3 = inlined_call_operand.vmem [shape: f32[2,16,32], index: 3, kind: input, shape index: {}]   ;;  %s11966_s4 = inlined_call_operand.vmem [shape: f32[1,32], index: 4, kind: input, shape index: {}]   ;;  %s11967_s5 = inlined_call_operand.vmem [shape: bf16[32,128], index: 5, kind: input, shape index: {}]   ;;  %s11968_s6 = inlined_call_operand.vmem [shape: f32[1,128], index: 6, kind: input, shape index: {}]   ;;  %s11969_s7 = inlined_call_operand.vmem [shape: bf16[128,32], index: 7, kind: input, shape index: {}]   ;;  %s11970_s8 = inlined_call_operand.vmem [shape: f32[1,32], index: 8, kind: input, shape index: {}]   ;;  %s11971_s9 = inlined_call_operand.hbm [shape: f32[2,256,32], index: 9, kind: output, shape index: {}]  }
   0x1   :  { %16 = vsyncpa [#allocation3 + $0x1], 0  ;;  %s5585_s30 = smov 0   ;;  %s5587_s10 = smov 0  }
   0x2   :  { %s5589_s11 = smov 0   ;;  %s5591_s12 = smov 0  }
   0x3 LB: > { %s5606_s13 = sadd.s32 4294967295, %s5530_s12   ;;  %s5051_s14 = sadd.s32 4294967294, %s5530_s12   ;;  %s5530_s12 = sphi %s5591_s12, %s14127_s12   ;;  %s5526_s11 = sphi %s5589_s11, %s14126_s11   ;;  %s5522_s10 = sphi %s5587_s10, %s14125_s10   ;;  %s5518_s30 = sphi %s5585_s30, %s14124_s30  }
   0x4   : > { %s5610_s15 = sadd.s32 1, %s5530_s12   ;;  %s238_s16 = sadd.s32 1, %s5526_s11 }
   0x5   : > { %s235_s17 = ssub.s32 %s5530_s12, %s5610_s15  ;;  %p248_p0 = scmp.ne.s32.totalorder %s5526_s11, %s5522_s10 }
   0x6   : > { %p236_p1 = scmp.eq.s32.totalorder %s235_s17, 0  ;;  %p249_p2 = scmp.eq.s32.totalorder %s5606_s13, 1 }
   0x7   : > { %p254_p3 = scmp.ne.s32.totalorder %s5522_s10, %s5518_s30  ;;  %p255_p4 = scmp.eq.s32.totalorder %s5051_s14, 1 }
   0x8   : > { %s5621_s18 = scalar_select %p236_p1, %s5526_s11, %s238_s16  }
   0x9   : > { %p5623_p5 = por %p249_p2, %p248_p0  ;;  %p5627_p6 = por %p255_p4, %p254_p3 }
   0xa   : > { %p5054_p7 = scmp.ge.s32.totalorder %s5530_s12, 1  ;;  %p320_p8 = scmp.lt.s32.totalorder %s5530_s12, 3 }
   0xc   : > { %p321_p9 = pnand %p5054_p7, %p320_p8 }
   0xe   : > { %324 = sbr.rel (%p321_p9) target bundleno = 1537 (0x601), region = 56 }
  0x13   : > { %p371_p10 = scmp.lt.s32.totalorder %s5606_s13, 1  ;;  %vm1696_vm0 = vcmask 1046528   ;;  %vm1971_vm1 = vcmask 1045504   ;;  %vm2246_vm2 = vcmask 1044480   ;;  %vm2521_vm3 = vcmask 1043456  }
  0x14   : > { %vm2796_vm4 = vcmask 1042432   ;;  %vm12758_vm5 = vcmask 1041408   ;;  %vm3346_vm6 = vcmask 1040384   ;;  %vm3527_vm7 = vcmask 261120  }
  0x15   : > { %s5635_s21 = scalar_select %p371_p10, %s5606_s13, 1 }
  0x17   : > { %s5125_s22 = sshll.u32 %s5635_s21, 8  ;;  %s5127_s23 = sshll.u32 %s5635_s21, 4 }
  0x18   : > { %s5644_s26 = scalar_lea.vmem %s11962_s0, %s5125_s22  ;;  %s385_s29 = scalar_lea.vmem %s11964_s2, %s5127_s23 }
  0x19   : > { %v5650_v0 = vld [vmem:[%s5644_s26 + $0x10] sm:$0xff]  ;;  %v5653_v1 = vld [vmem:[%s5644_s26 + $0x20] sm:$0xff]  ;;  %v5669_v9 = vld [vmem:[%s385_s29 + $0x8] sm:$0xff]  ;;  %s390_s17 = scalar_lea.vmem %s11965_s3, %s5127_s23  ;;  %s11492_s25 = scalar_lea.vmem %s11963_s1, %s5125_s22 }
  0x1a   : > { %12761 = vst [vmem:[#allocation5_spill] sm:$0xff] %v5650_v0  ;;  %v5656_v2 = vld [vmem:[%s5644_s26 + $0x30] sm:$0xff]  ;;  %v424_v3 = vld [vmem:[%s385_s29] sm:$0xff]  ;;  %v5706_v24 = vperm.slane %v5669_v9, 0  ;;  %v5709_v25 = vperm.slane %v5669_v9, 1  ;;  %v5716_v28 = vld [vmem:[%s390_s17 + $0x8] sm:$0xff] }
  0x1b   : > { %12762 = vst [vmem:[#allocation6_spill] sm:$0xff] %v5653_v1  ;;  %v5658_v4 = vperm.slane %v424_v3, 0  ;;  %v5660_v5 = vperm.slane %v424_v3, 1  ;;  %v5662_v6 = vperm.slane %v424_v3, 2  ;;  %v5665_v7 = vld [vmem:[%s5644_s26 + $0x40] sm:$0xff]  ;;  %v5667_v8 = vperm.slane %v424_v3, 3 }
  0x1c   : > { %12763 = vst [vmem:[#allocation7_spill] sm:$0xff] %v5656_v2  ;;  %v5677_v13 = vperm.slane %v424_v3, 4  ;;  %v5683_v14 = vld [vmem:[%s5644_s26 + $0x50] sm:$0xff]  ;;  %v5685_v15 = vperm.slane %v424_v3, 5  ;;  %v5687_v16 = vperm.slane %v424_v3, 6  ;;  %v5690_v17 = vld [vmem:[%s5644_s26 + $0x60] sm:$0xff] }
  0x1d   : > { %12764 = vst [vmem:[#allocation8_spill] sm:$0xff] %v5658_v4  ;;  %v431_v10 = vmul.f32 %v5658_v4, %v5650_v0  ;;  %v464_v11 = vmul.f32 %v5660_v5, %v5653_v1  ;;  %v529_v12 = vmul.f32 %v5662_v6, %v5656_v2  ;;  %v5693_v18 = vld [vmem:[%s5644_s26 + $0x70] sm:$0xff]  ;;  %v594_v20 = vmul.f32 %v5667_v8, %v5665_v7  ;;  %v5700_v22 = vld [vmem:[%s5644_s26 + $0x80] sm:$0xff]  ;;  %v5755_v45 = vld [vmem:[%s5644_s26 + $0x18] sm:$0xff] }
  0x1e   : > { %12765 = vst [vmem:[#allocation9_spill] sm:$0xff] %v5660_v5  ;;  %v5697_v21 = vperm.slane %v424_v3, 7  ;;  %v5703_v23 = vld [vmem:[%s5644_s26 + $0x90] sm:$0xff]  ;;  %v5712_v26 = vld [vmem:[%s5644_s26 + $0xa0] sm:$0xff]  ;;  %v659_v30 = vmul.f32 %v5677_v13, %v5683_v14  ;;  %v5721_v31 = vperm.slane %v5669_v9, 2  ;;  %v724_v33 = vmul.f32 %v5685_v15, %v5690_v17 }
  0x1f   : > { %12766 = vst [vmem:[#allocation10_spill] sm:$0xff] %v5662_v6  ;;  %v496_v19 = vadd.f32 %v464_v11, %v431_v10  ;;  %v5714_v27 = vld [vmem:[%s390_s17] sm:$0xff]  ;;  %v5724_v32 = vld [vmem:[%s5644_s26 + $0xb0] sm:$0xff]  ;;  %v789_v34 = vmul.f32 %v5687_v16, %v5693_v18  ;;  %v5731_v35 = vperm.slane %v5669_v9, 3  ;;  %v5739_v39 = vperm.slane %v5669_v9, 4 }
  0x20   : > { %12767 = vst [vmem:[#allocation11_spill] sm:$0xff] %v5665_v7  ;;  %v5734_v36 = vld [vmem:[%s5644_s26 + $0xc0] sm:$0xff]  ;;  %v854_v38 = vmul.f32 %v5697_v21, %v5700_v22  ;;  %v5742_v40 = vperm.slane %v5669_v9, 5  ;;  %v919_v41 = vmul.f32 %v5706_v24, %v5703_v23  ;;  %v984_v42 = vmul.f32 %v5709_v25, %v5712_v26  ;;  %v5758_v46 = vld [vmem:[%s5644_s26 + $0xd0] sm:$0xff] }
  0x21   : > { %12768 = vst [vmem:[#allocation12_spill] sm:$0xff] %v5667_v8  ;;  %v561_v29 = vadd.f32 %v529_v12, %v496_v19  ;;  %v5749_v43 = vperm.slane %v5714_v27, 1  ;;  %v5752_v44 = vperm.slane %v5716_v28, 1  ;;  %v1049_v48 = vmul.f32 %v5721_v31, %v5724_v32  ;;  %v5769_v51 = vld [vmem:[%s5644_s26 + $0xe0] sm:$0xff]  ;;  %v5805_v19 = vld [vmem:[%s5644_s26 + $0xf0] sm:$0xff] }
  0x22   : > { %12769 = vst [vmem:[#allocation13_spill] sm:$0xff] %v5677_v13  ;;  %v5763_v49 = vperm.slane %v5669_v9, 6  ;;  %v5766_v50 = vperm.slane %v5714_v27, 2  ;;  %v1114_v52 = vmul.f32 %v5731_v35, %v5734_v36  ;;  %v5780_v57 = vperm.slane %v5714_v27, 0 }
  0x23   : > { %12770 = vst [vmem:[#allocation14_spill] sm:$0xff] %v5683_v14  ;;  %v626_v37 = vadd.f32 %v594_v20, %v561_v29  ;;  %v1569_v53 = vmul.f32 %v5749_v43, %v5650_v0  ;;  %v1570_v54 = vmul.f32 %v5749_v43, %v5755_v45  ;;  %v1602_v55 = vmul.f32 %v5752_v44, %v5755_v45 }
  0x24   : > { %12771 = vst [vmem:[#allocation15_spill] sm:$0xff] %v5685_v15  ;;  %v5783_v58 = vperm.slane %v5716_v28, 0  ;;  %v1603_v59 = vmul.f32 %v5752_v44, %v5650_v0  ;;  %v1179_v60 = vmul.f32 %v5739_v39, %v5758_v46  ;;  %v1844_v61 = vmul.f32 %v5766_v50, %v5650_v0 }
  0x25   : > { %12772 = vst [vmem:[#allocation16_spill] sm:$0xff] %v5687_v16  ;;  %v691_v47 = vadd.f32 %v659_v30, %v626_v37  ;;  %v1845_v62 = vmul.f32 %v5766_v50, %v5755_v45  ;;  %v5794_v63 = vperm.slane %v5716_v28, 2  ;;  %v1244_v10 = vmul.f32 %v5742_v40, %v5769_v51 }
  0x26   : > { %12773 = vst [vmem:[#allocation17_spill] sm:$0xff] %v5690_v17  ;;  %v5799_v11 = vperm.slane %v5714_v27, 3  ;;  %v5802_v12 = vperm.slane %v5716_v28, 3  ;;  %v5807_v20 = vadd.f32 %v1602_v55, %v1569_v53  ;;  %v5809_v29 = vadd.f32 %v1603_v59, %v1570_v54 }
  0x27   : > { %12774 = vst [vmem:[#allocation18_spill] sm:$0xff] %v5693_v18  ;;  %v756_v56 = vadd.f32 %v724_v33, %v691_v47  ;;  %v1877_v30 = vmul.f32 %v5794_v63, %v5755_v45  ;;  %v1878_v33 = vmul.f32 %v5794_v63, %v5650_v0  ;;  %v5816_v37 = vperm.slane %v5669_v9, 7 }
  0x28   : > { %12775 = vst [vmem:[#allocation19_spill] sm:$0xff] %v5697_v21  ;;  %v1439_v47 = vmul.f32 %v5780_v57, %v5650_v0  ;;  %v1472_v53 = vmul.f32 %v5783_v58, %v5755_v45  ;;  %v1309_v9 = vmul.f32 %v5763_v49, %v5805_v19 }
  0x29   : > { %12776 = vst [vmem:[#allocation20_spill] sm:$0xff] %v5700_v22  ;;  %v821_v3 = vadd.f32 %v789_v34, %v756_v56  ;;  %v5822_v55 = vadd.f32 %v1877_v30, %v1844_v61  ;;  %v5824_v54 = vadd.f32 %v1878_v33, %v1845_v62  ;;  %v2119_v56 = vmul.f32 %v5799_v11, %v5650_v0  ;;  %v5843_v33 = vld [vmem:[%s5644_s26] sm:$0xff] }
  0x2a   : > { %12777 = vst [vmem:[#allocation21_spill] sm:$0xff] %v5703_v23  ;;  %v2120_v30 = vmul.f32 %v5799_v11, %v5755_v45 }
  0x2b   : > { %12778 = vst [vmem:[#allocation22_spill] sm:$0xff] %v5706_v24  ;;  %v886_v34 = vadd.f32 %v854_v38, %v821_v3  ;;  %v2152_v38 = vmul.f32 %v5802_v12, %v5755_v45  ;;  %v5833_v3 = vperm.slane %v5714_v27, 4 }
  0x2c   : > { %12779 = vst [vmem:[#allocation23_spill] sm:$0xff] %v5709_v25 }
  0x2d   : > { %12780 = vst [vmem:[#allocation24_spill] sm:$0xff] %v5712_v26  ;;  %v951_v59 = vadd.f32 %v919_v41, %v886_v34  ;;  %v5851_v61 = vadd.f32 %v2152_v38, %v2119_v56  ;;  %v12809_v34 = vrot.slane %v5809_v29, 1  ;;  %v12812_v38 = vrot.slane %v5824_v54, 2 }
  0x2e   : > { %12781 = vst [vmem:[#allocation25_spill] sm:$0xff] %v5721_v31 }
  0x2f   : > { %12782 = vst [vmem:[#allocation26_spill] sm:$0xff] %v5724_v32  ;;  %v1016_v41 = vadd.f32 %v984_v42, %v951_v59  ;;  %v5858_v59 = vperm.slane %v5714_v27, 5 }
  0x30   : > { %12783 = vst [vmem:[#allocation27_spill] sm:$0xff] %v5731_v35 }
  0x31   : > { %12784 = vst [vmem:[#allocation28_spill] sm:$0xff] %v5734_v36  ;;  %v1081_v62 = vadd.f32 %v1049_v48, %v1016_v41  ;;  %v12813_v41 = vrot.slane %v5822_v55, 2 }
  0x32   : > { %12785 = vst [vmem:[#allocation29_spill] sm:$0xff] %v5739_v39 }
  0x33   : > { %12786 = vst [vmem:[#allocation30_spill] sm:$0xff] %v5742_v40  ;;  %v1374_v40 = vmul.f32 %v5816_v37, %v5843_v33  ;;  %v1146_v56 = vadd.f32 %v1114_v52, %v1081_v62  ;;  %v5888_v62 = vperm.slane %v5714_v27, 6 }
  0x34   : > { %12787 = vst [vmem:[#allocation31_spill] sm:$0xff] %v5749_v43 }
  0x35   : > { %12788 = vst [vmem:[#allocation32_spill] sm:$0xff] %v5752_v44 }
  0x36   : > { %12789 = vst [vmem:[#allocation33_spill] sm:$0xff] %v5755_v45 }
  0x37   : > { %12790 = vst [vmem:[#allocation34_spill] sm:$0xff] %v5758_v46  ;;  %v1504_v46 = vadd.f32 %v1472_v53, %v1439_v47  ;;  %v2395_v47 = vmul.f32 %v5833_v3, %v5755_v45  ;;  %v5870_v53 = vperm.slane %v5716_v28, 5 }
  0x38   : > { %12791 = vst [vmem:[#allocation35_spill] sm:$0xff] %v5763_v49  ;;  %v2153_v49 = vmul.f32 %v5802_v12, %v5650_v0 }
  0x39   : > { %12792 = vst [vmem:[#allocation36_spill] sm:$0xff] %v5766_v50  ;;  %v2703_v52 = vmul.f32 %v5870_v53, %v5650_v0 }
  0x3a   : > { %12793 = vst [vmem:[#allocation37_spill] sm:$0xff] %v5769_v51  ;;  %v5836_v51 = vperm.slane %v5716_v28, 4 }
  0x3b   : > { %12794 = vst [vmem:[#allocation38_spill] sm:$0xff] %v5780_v57 }
  0x3c   : > { %12795 = vst [vmem:[#allocation39_spill] sm:$0xff] %v5783_v58  ;;  %v2427_v42 = vmul.f32 %v5836_v51, %v5755_v45  ;;  %v2428_v48 = vmul.f32 %v5836_v51, %v5650_v0 }
  0x3d   : > { %12796 = vst [vmem:[#allocation40_spill] sm:$0xff] %v5794_v63 }
  0x3e   : > { %12797 = vst [vmem:[#allocation41_spill] sm:$0xff] %v5799_v11  ;;  %v2394_v11 = vmul.f32 %v5833_v3, %v5650_v0 }
  0x3f   : > { %12798 = vst [vmem:[#allocation42_spill] sm:$0xff] %v5802_v12  ;;  %v5877_v12 = vadd.f32 %v2153_v49, %v2120_v30 }
  0x40   : > { %12799 = vst [vmem:[#allocation43_spill] sm:$0xff] %v5805_v19  ;;  %v12810_v19 = vrot.slane %v5807_v20, 1  ;;  %v5891_v30 = vadd.f32 %v2427_v42, %v2394_v11 }
  0x41   : > { %12800 = vst [vmem:[#allocation44_spill] sm:$0xff] %v5807_v20  ;;  %v2702_v20 = vmul.f32 %v5870_v53, %v5755_v45 }
  0x42   : > { %12801 = vst [vmem:[#allocation45_spill] sm:$0xff] %v5809_v29  ;;  %v1977_v29 = vsel %vm1971_vm1, %v12813_v41, %v12812_v38  ;;  %v5894_v38 = vperm.slane %v5716_v28, 6  ;;  %v5896_v41 = vadd.f32 %v2428_v48, %v2395_v47  ;;  %v592_v47 = vmul.f32 %v5667_v8, %v5656_v2 }
  0x43   : > { %12802 = vst [vmem:[#allocation46_spill] sm:$0xff] %v5816_v37  ;;  %v1702_v37 = vsel %vm1696_vm0, %v12810_v19, %v12809_v34  ;;  %v2669_v19 = vmul.f32 %v5858_v59, %v5650_v0  ;;  %v2670_v34 = vmul.f32 %v5858_v59, %v5755_v45 }
  0x44   : > { %12803 = vst [vmem:[#allocation47_spill] sm:$0xff] %v5822_v55  ;;  %v2977_v11 = vmul.f32 %v5894_v38, %v5755_v45  ;;  %v2978_v42 = vmul.f32 %v5894_v38, %v5650_v0 }
  0x45   : > { %12804 = vst [vmem:[#allocation48_spill] sm:$0xff] %v5824_v54  ;;  %v1211_v54 = vadd.f32 %v1179_v60, %v1146_v56  ;;  %v5898_v55 = vadd.f32 %v2702_v20, %v2669_v19  ;;  %v2945_v60 = vmul.f32 %v5888_v62, %v5755_v45  ;;  %v5912_v20 = vadd.f32 %v2703_v52, %v2670_v34 }
  0x46   : > { %12805 = vst [vmem:[#allocation49_spill] sm:$0xff] %v5833_v3  ;;  %v429_v34 = vmul.f32 %v5658_v4, %v5843_v33 }
  0x47   : > { %12806 = vst [vmem:[#allocation50_spill] sm:$0xff] %v5836_v51  ;;  %v1276_v51 = vadd.f32 %v1244_v10, %v1211_v54  ;;  %v5919_v10 = vperm.slane %v5716_v28, 7 }
  0x48   : > { %12807 = vst [vmem:[#allocation51_spill] sm:$0xff] %v5843_v33 }
  0x49   : > { %12808 = vst [vmem:[#allocation52_spill] sm:$0xff] %v5858_v59  ;;  %v2944_v59 = vmul.f32 %v5888_v62, %v5650_v0  ;;  %v1341_v48 = vadd.f32 %v1309_v9, %v1276_v51  ;;  %v3252_v28 = vmul.f32 %v5919_v10, %v5755_v45 }
  0x4a   : > { %12811 = vst [vmem:[#allocation53_spill] sm:$0xff] %v5870_v53  ;;  %v5903_v53 = vperm.slane %v5714_v27, 7  ;;  %v5916_v27 = vadd.f32 %v2978_v42, %v2945_v60  ;;  %v3253_v60 = vmul.f32 %v5919_v10, %v5650_v0  ;;  %v527_v42 = vmul.f32 %v5662_v6, %v5653_v1 }
  0x4b   : > { %12814 = vst [vmem:[#allocation54_spill] sm:$0xff] %v5888_v62  ;;  %v5914_v56 = vadd.f32 %v2977_v11, %v2944_v59  ;;  %v1406_v52 = vadd.f32 %v1374_v40, %v1341_v48  ;;  %v462_v11 = vmul.f32 %v5660_v5, %v5650_v0  ;;  %v12822_v1 = vrot.slane %v5851_v61, 3 }
  0x4c   : > { %12815 = vst [vmem:[#allocation55_spill] sm:$0xff] %v5894_v38  ;;  %v3219_v19 = vmul.f32 %v5903_v53, %v5650_v0  ;;  %v3220_v49 = vmul.f32 %v5903_v53, %v5755_v45  ;;  %v12004_v48 = vrot.slane %v5916_v27, 6  ;;  %v12821_v0 = vrot.slane %v5877_v12, 3 }
  0x4d   : > { %12816 = vst [vmem:[#allocation56_spill] sm:$0xff] %v5903_v53  ;;  %v1536_v54 = vadd.f32 %v1504_v46, %v1406_v52  ;;  %v494_v59 = vadd.f32 %v462_v11, %v429_v34  ;;  %v12823_v52 = vrot.slane %v5896_v41, 4  ;;  %v12824_v40 = vrot.slane %v5891_v30, 4 }
  0x4e   : > { %12817 = vst [vmem:[#allocation57_spill] sm:$0xff] %v5916_v27  ;;  %v5941_v9 = vadd.f32 %v3252_v28, %v3219_v19  ;;  %v5943_v51 = vadd.f32 %v3253_v60, %v3220_v49  ;;  %v2252_v46 = vsel %vm2246_vm2, %v12822_v1, %v12821_v0  ;;  %v12825_v49 = vrot.slane %v5912_v20, 5 }
  0x4f   : > { %12818 = vst [vmem:[#allocation58_spill] sm:$0xff] %v5919_v10  ;;  %v1811_v4 = vadd.f32 %v1702_v37, %v1536_v54  ;;  %v2527_v19 = vsel %vm2521_vm3, %v12824_v40, %v12823_v52  ;;  %v12826_v34 = vrot.slane %v5898_v55, 5  ;;  %v559_v60 = vadd.f32 %v527_v42, %v494_v59 }
  0x50   : > { %12819 = vst [vmem:[#allocation59_spill] sm:$0xff] %v5941_v9  ;;  %v657_v37 = vmul.f32 %v5677_v13, %v5665_v7  ;;  %v12827_v0 = vrot.slane %v5914_v56, 6  ;;  %v722_v11 = vmul.f32 %v5685_v15, %v5683_v14  ;;  %v787_v59 = vmul.f32 %v5687_v16, %v5690_v17 }
  0x51   : > { %12820 = vst [vmem:[#allocation60_spill] sm:$0xff] %v5943_v51  ;;  %v2802_v28 = vsel %vm2796_vm4, %v12826_v34, %v12825_v49  ;;  %v2086_v54 = vadd.f32 %v1977_v29, %v1811_v4  ;;  %v624_v49 = vadd.f32 %v592_v47, %v559_v60  ;;  %v5976_v4 = vld [vmem:[%s5644_s26 + $0x8] sm:$0xff]  ;;  %v852_v29 = vmul.f32 %v5697_v21, %v5693_v18 }
  0x52   : > { %v3077_v1 = vsel %vm12758_vm5, %v12827_v0, %v12004_v48  ;;  %12828 = vst [vmem:[#allocation61_spill] sm:$0xff] %v5976_v4  ;;  %v917_v34 = vmul.f32 %v5706_v24, %v5700_v22  ;;  %v1567_v0 = vmul.f32 %v5749_v43, %v5843_v33  ;;  %v1568_v47 = vmul.f32 %v5749_v43, %v5976_v4 }
  0x53   : > { %v2361_v42 = vadd.f32 %v2252_v46, %v2086_v54  ;;  %v689_v48 = vadd.f32 %v657_v37, %v624_v49  ;;  %v1600_v60 = vmul.f32 %v5752_v44, %v5976_v4  ;;  %v1601_v46 = vmul.f32 %v5752_v44, %v5843_v33 }
  0x54   : > { %v982_v40 = vmul.f32 %v5709_v25, %v5703_v23  ;;  %v1047_v52 = vmul.f32 %v5721_v31, %v5712_v26  ;;  %v1842_v22 = vmul.f32 %v5766_v50, %v5843_v33  ;;  %v12829_v37 = vrot.slane %v5943_v51, 7  ;;  %v12841_v51 = vld [vmem:[#allocation43_spill] sm:$0xff] }
  0x55   : > { %v2636_v54 = vadd.f32 %v2527_v19, %v2361_v42  ;;  %v12830_v49 = vrot.slane %v5941_v9, 7  ;;  %v754_v18 = vadd.f32 %v722_v11, %v689_v48  ;;  %v1112_v44 = vmul.f32 %v5731_v35, %v5724_v32  ;;  %v12835_v32 = vld [vmem:[#allocation30_spill] sm:$0xff] }
  0x56   : > { %v1875_v19 = vmul.f32 %v5794_v63, %v5976_v4  ;;  %v1437_v26 = vmul.f32 %v5780_v57, %v5843_v33  ;;  %v1470_v23 = vmul.f32 %v5783_v58, %v5976_v4  ;;  %v1843_v17 = vmul.f32 %v5766_v50, %v5976_v4  ;;  %v12842_v9 = vld [vmem:[#allocation46_spill] sm:$0xff] }
  0x57   : > { %v3352_v43 = vsel %vm3346_vm6, %v12830_v49, %v12829_v37  ;;  %v2911_v42 = vadd.f32 %v2802_v28, %v2636_v54  ;;  %v819_v14 = vadd.f32 %v787_v59, %v754_v18  ;;  %v6011_v7 = vadd.f32 %v1600_v60, %v1567_v0  ;;  %v6020_v28 = vld [vmem:[%s11966_s4] ss:$0 sm:$0xff]  ;;  %v12834_v49 = vld [vmem:[#allocation34_spill] sm:$0xff] }
  0x58   : > { %v6013_v48 = vadd.f32 %v1601_v46, %v1568_v47  ;;  %v1876_v11 = vmul.f32 %v5794_v63, %v5843_v33  ;;  %12833 = vst [vmem:[#allocation64_spill] sm:$0xff] %v6020_v28  ;;  %v1177_v54 = vmul.f32 %v5739_v39, %v5734_v36  ;;  %v1242_v50 = vmul.f32 %v12835_v32, %v12834_v49  ;;  %v12837_v0 = vld [vmem:[#allocation37_spill] sm:$0xff]  ;;  %v12838_v47 = vld [vmem:[#allocation35_spill] sm:$0xff] }
  0x59   : > { %12831 = vst [vmem:[#allocation62_spill] sm:$0xff] %v6011_v7  ;;  %v3186_v37 = vadd.f32 %v3077_v1, %v2911_v42  ;;  %v6026_v18 = vadd.f32 %v1875_v19, %v1842_v22  ;;  %v884_v59 = vadd.f32 %v852_v29, %v819_v14  ;;  %v1307_v60 = vmul.f32 %v12838_v47, %v12837_v0  ;;  %v12839_v46 = vld [vmem:[#allocation41_spill] sm:$0xff]  ;;  %v12840_v42 = vld [vmem:[#allocation42_spill] sm:$0xff] }
  0x5a   : > { %12832 = vst [vmem:[#allocation63_spill] sm:$0xff] %v6013_v48  ;;  %v2117_v1 = vmul.f32 %v12839_v46, %v5843_v33  ;;  %v2150_v63 = vmul.f32 %v12840_v42, %v5976_v4  ;;  %v6036_v27 = vmul.f32 %v12842_v9, %v12841_v51  ;;  %v6038_v36 = vadd.f32 %v1470_v23, %v1437_v26 }
  0x5b   : > { %12836 = vst [vmem:[#allocation65_spill] sm:$0xff] %v6026_v18  ;;  %v3461_v2 = vadd.f32 %v3352_v43, %v3186_v37  ;;  %v2118_v22 = vmul.f32 %v12839_v46, %v5976_v4  ;;  %v949_v14 = vadd.f32 %v917_v34, %v884_v59  ;;  %v6044_v0 = vadd.f32 %v1876_v11, %v1843_v17  ;;  %v12846_v17 = vld [vmem:[#allocation50_spill] sm:$0xff]  ;;  %v12847_v43 = vld [vmem:[#allocation52_spill] sm:$0xff] }
  0x5c   : > { %v2151_v37 = vmul.f32 %v12840_v42, %v5843_v33  ;;  %v2392_v23 = vmul.f32 %v5833_v3, %v5843_v33  ;;  %v6054_v46 = vadd.f32 %v2150_v63, %v2117_v1  ;;  %v2393_v34 = vmul.f32 %v5833_v3, %v5976_v4 }
  0x5d   : > { %12843 = vst [vmem:[#allocation66_spill] sm:$0xff] %v6044_v0  ;;  %v6047_v49 = vadd.f32 %v6020_v28, %v3461_v2  ;;  %v1014_v26 = vadd.f32 %v982_v40, %v949_v14  ;;  %v2425_v11 = vmul.f32 %v12846_v17, %v5976_v4  ;;  %v2426_v59 = vmul.f32 %v12846_v17, %v5843_v33  ;;  %v12848_v40 = vld [vmem:[#allocation53_spill] sm:$0xff] }
  0x5e   : > { %12845 = vst [vmem:[#allocation68_spill] sm:$0xff] %v6054_v46  ;;  %v2667_v29 = vmul.f32 %v12847_v43, %v5843_v33  ;;  %v2700_v63 = vmul.f32 %v12848_v40, %v5976_v4  ;;  %v2668_v19 = vmul.f32 %v12847_v43, %v5976_v4  ;;  %v6073_v3 = vadd.f32 %v2151_v37, %v2118_v22  ;;  %v6087_v37 = vld [vmem:[%s5644_s26 + $0x28] sm:$0xff] }
  0x5f   : > { %12844 = vst [vmem:[#allocation67_spill] sm:$0xff] %v6047_v49  ;;  %v3534_v2 = vsel %vm3527_vm7, %v6047_v49, 0.0  ;;  %v1079_v1 = vadd.f32 %v1047_v52, %v1014_v26  ;;  %v2701_v49 = vmul.f32 %v12848_v40, %v5843_v33  ;;  %v2942_v17 = vmul.f32 %v5888_v62, %v5843_v33 }
  0x60   : > { %3535 = vadd.xlane.f32.xlu1 %v3534_v2  ;;  %12849 = vst [vmem:[#allocation69_spill] sm:$0xff] %v6073_v3  ;;  %v2943_v42 = vmul.f32 %v5888_v62, %v5976_v4  ;;  %v2975_v52 = vmul.f32 %v5894_v38, %v5976_v4  ;;  %v6082_v14 = vadd.f32 %v2425_v11, %v2392_v23 }
  0x61   : > { %v1144_v26 = vadd.f32 %v1112_v44, %v1079_v1  ;;  %v2976_v22 = vmul.f32 %v5894_v38, %v5843_v33  ;;  %12851 = vst [vmem:[#allocation71_spill] sm:$0xff] %v6087_v37  ;;  %v6089_v40 = vadd.f32 %v2426_v59, %v2393_v34  ;;  %v6091_v43 = vadd.f32 %v2700_v63, %v2667_v29  ;;  %v6104_v38 = vld [vmem:[%s5644_s26 + $0x38] sm:$0xff]  ;;  %v6107_v34 = vld [vmem:[%s5644_s26 + $0x48] sm:$0xff] }
  0x62   : > { %12850 = vst [vmem:[#allocation70_spill] sm:$0xff] %v6082_v14  ;;  %v3217_v62 = vmul.f32 %v5903_v53, %v5843_v33  ;;  %v3218_v44 = vmul.f32 %v5903_v53, %v5976_v4  ;;  %v6097_v2 = vadd.f32 %v2701_v49, %v2668_v19  ;;  %v6099_v23 = vadd.f32 %v2975_v52, %v2942_v17  ;;  %v12858_v63 = vld [vmem:[#allocation8_spill] sm:$0xff] }
  0x63   : > { %12852 = vst [vmem:[#allocation72_spill] sm:$0xff] %v6089_v40  ;;  %v1209_v1 = vadd.f32 %v1177_v54, %v1144_v26  ;;  %v3250_v11 = vmul.f32 %v5919_v10, %v5976_v4  ;;  %v6109_v29 = vadd.f32 %v2976_v22, %v2943_v42  ;;  %v3251_v59 = vmul.f32 %v5919_v10, %v5843_v33  ;;  %v6122_v53 = vld [vmem:[%s5644_s26 + $0x58] sm:$0xff] }
  0x64   : > { %12853 = vst [vmem:[#allocation73_spill] sm:$0xff] %v6091_v43  ;;  %v432_v54 = vmul.f32 %v12858_v63, %v5755_v45  ;;  %v465_v49 = vmul.f32 %v5660_v5, %v6087_v37  ;;  %v530_v10 = vmul.f32 %v5662_v6, %v6104_v38  ;;  %v595_v51 = vmul.f32 %v5667_v8, %v6107_v34 }
  0x65   : > { %12854 = vst [vmem:[#allocation74_spill] sm:$0xff] %v6097_v2  ;;  %v1274_v19 = vadd.f32 %v1242_v50, %v1209_v1  ;;  %v6119_v26 = vadd.f32 %v3250_v11, %v3217_v62  ;;  %v6124_v42 = vadd.f32 %v3251_v59, %v3218_v44  ;;  %v6134_v44 = vld [vmem:[%s5644_s26 + $0x68] sm:$0xff]  ;;  %v660_v52 = vmul.f32 %v5677_v13, %v6122_v53  ;;  %v6144_v11 = vld [vmem:[%s5644_s26 + $0x78] sm:$0xff] }
  0x66   : > { %12855 = vst [vmem:[#allocation75_spill] sm:$0xff] %v6099_v23  ;;  %v497_v22 = vadd.f32 %v465_v49, %v432_v54  ;;  %v6147_v1 = vld [vmem:[%s5644_s26 + $0x88] sm:$0xff]  ;;  %v12865_v59 = vrot.slane %v6013_v48, 1  ;;  %v12867_v54 = vrot.slane %v6044_v0, 2  ;;  %v725_v33 = vmul.f32 %v5685_v15, %v6134_v44 }
  0x67   : > { %12856 = vst [vmem:[#allocation76_spill] sm:$0xff] %v6104_v38  ;;  %v1339_v50 = vadd.f32 %v1307_v60, %v1274_v19  ;;  %v6160_v19 = vld [vmem:[%s5644_s26 + $0x98] sm:$0xff]  ;;  %v6163_v62 = vld [vmem:[%s5644_s26 + $0xa8] sm:$0xff]  ;;  %v12873_v0 = vrot.slane %v6089_v40, 4 }
  0x68   : > { %12857 = vst [vmem:[#allocation77_spill] sm:$0xff] %v6109_v29  ;;  %v562_v49 = vadd.f32 %v530_v10, %v497_v22  ;;  %v12866_v10 = vrot.slane %v6011_v7, 1  ;;  %v12871_v7 = vrot.slane %v6073_v3, 3  ;;  %v6190_v3 = vld [vmem:[%s5644_s26 + $0xd8] sm:$0xff] }
  0x69   : > { %12859 = vst [vmem:[#allocation78_spill] sm:$0xff] %v6119_v26  ;;  %v1404_v60 = vadd.f32 %v6036_v27, %v1339_v50  ;;  %v12868_v27 = vrot.slane %v6026_v18, 2 }
  0x6a   : > { %12860 = vst [vmem:[#allocation79_spill] sm:$0xff] %v6122_v53  ;;  %v1699_v22 = vsel %vm1696_vm0, %v12866_v10, %v12865_v59  ;;  %v627_v17 = vadd.f32 %v595_v51, %v562_v49  ;;  %v12872_v59 = vrot.slane %v6054_v46, 3  ;;  %v12875_v51 = vrot.slane %v6097_v2, 5  ;;  %v12886_v46 = vld [vmem:[#allocation5_spill] sm:$0xff] }
  0x6b   : > { %12861 = vst [vmem:[#allocation80_spill] sm:$0xff] %v6124_v42  ;;  %v1974_v50 = vsel %vm1971_vm1, %v12868_v27, %v12867_v54  ;;  %v1534_v48 = vadd.f32 %v6038_v36, %v1404_v60  ;;  %v12874_v54 = vrot.slane %v6082_v14, 4  ;;  %v12876_v49 = vrot.slane %v6091_v43, 5  ;;  %v6184_v36 = vld [vmem:[%s5644_s26 + $0xb8] sm:$0xff]  ;;  %v6187_v60 = vld [vmem:[%s5644_s26 + $0xc8] sm:$0xff] }
  0x6c   : > { %12862 = vst [vmem:[#allocation81_spill] sm:$0xff] %v6134_v44  ;;  %v2249_v10 = vsel %vm2246_vm2, %v12872_v59, %v12871_v7  ;;  %v12880_v7 = vrot.slane %v6109_v29, 6  ;;  %v12881_v59 = vrot.slane %v6099_v23, 6  ;;  %v6198_v14 = vld [vmem:[%s5644_s26 + $0xe8] sm:$0xff]  ;;  %v12883_v2 = vrot.slane %v6124_v42, 7 }
  0x6d   : > { %12863 = vst [vmem:[#allocation82_spill] sm:$0xff] %v6144_v11  ;;  %v2524_v27 = vsel %vm2521_vm3, %v12874_v54, %v12873_v0  ;;  %v2799_v18 = vsel %vm2796_vm4, %v12876_v49, %v12875_v51  ;;  %v692_v0 = vadd.f32 %v660_v52, %v627_v17  ;;  %v790_v54 = vmul.f32 %v5687_v16, %v6144_v11  ;;  %v6214_v17 = vld [vmem:[%s5644_s26 + $0xf8] sm:$0xff] }
  0x6e   : > { %12864 = vst [vmem:[#allocation83_spill] sm:$0xff] %v6147_v1  ;;  %v3074_v40 = vsel %vm12758_vm5, %v12881_v59, %v12880_v7  ;;  %v855_v51 = vmul.f32 %v5697_v21, %v6147_v1  ;;  %v1809_v49 = vadd.f32 %v1699_v22, %v1534_v48  ;;  %v12884_v43 = vrot.slane %v6119_v26, 7 }
  0x6f   : > { %12869 = vst [vmem:[#allocation84_spill] sm:$0xff] %v6160_v19  ;;  %v920_v23 = vmul.f32 %v5706_v24, %v6160_v19  ;;  %v985_v7 = vmul.f32 %v5709_v25, %v6163_v62  ;;  %v757_v52 = vadd.f32 %v725_v33, %v692_v0  ;;  %v1050_v59 = vmul.f32 %v5721_v31, %v6184_v36 }
  0x70   : > { %12870 = vst [vmem:[#allocation85_spill] sm:$0xff] %v6163_v62  ;;  %v3349_v29 = vsel %vm3346_vm6, %v12884_v43, %v12883_v2  ;;  %v1115_v48 = vmul.f32 %v5731_v35, %v6187_v60  ;;  %v1180_v22 = vmul.f32 %v5739_v39, %v6190_v3  ;;  %v2084_v42 = vadd.f32 %v1974_v50, %v1809_v49 }
  0x71   : > { %12877 = vst [vmem:[#allocation86_spill] sm:$0xff] %v6184_v36  ;;  %v1245_v43 = vmul.f32 %v12835_v32, %v6198_v14  ;;  %v430_v2 = vmul.f32 %v12858_v63, %v5976_v4  ;;  %v463_v26 = vmul.f32 %v5660_v5, %v5755_v45  ;;  %v822_v33 = vadd.f32 %v790_v54, %v757_v52  ;;  %v12887_v52 = vld [vmem:[#allocation44_spill] sm:$0xff] }
  0x72   : > { %12878 = vst [vmem:[#allocation87_spill] sm:$0xff] %v6187_v60  ;;  %v1440_v0 = vmul.f32 %v5780_v57, %v5755_v45  ;;  %v1473_v28 = vmul.f32 %v5783_v58, %v12886_v46  ;;  %v2359_v50 = vadd.f32 %v2249_v10, %v2084_v42  ;;  %v1310_v49 = vmul.f32 %v12838_v47, %v6214_v17  ;;  %v12889_v57 = vld [vmem:[#allocation45_spill] sm:$0xff]  ;;  %v12891_v42 = vld [vmem:[#allocation47_spill] sm:$0xff] }
  0x73   : > { %12879 = vst [vmem:[#allocation88_spill] sm:$0xff] %v6190_v3  ;;  %v528_v3 = vmul.f32 %v5662_v6, %v6087_v37  ;;  %v593_v63 = vmul.f32 %v5667_v8, %v6104_v38  ;;  %v887_v32 = vadd.f32 %v855_v51, %v822_v33  ;;  %v6240_v54 = vmul.f32 %v12842_v9, %v5976_v4  ;;  %v12893_v37 = vld [vmem:[#allocation48_spill] sm:$0xff] }
  0x74   : > { %12882 = vst [vmem:[#allocation89_spill] sm:$0xff] %v6198_v14  ;;  %v495_v14 = vadd.f32 %v463_v26, %v430_v2  ;;  %v12888_v45 = vrot.slane %v12887_v52, 1  ;;  %v12890_v46 = vrot.slane %v12889_v57, 1  ;;  %v12892_v10 = vrot.slane %v12891_v42, 2  ;;  %v12904_v42 = vld [vmem:[#allocation59_spill] sm:$0xff] }
  0x75   : > { %12885 = vst [vmem:[#allocation90_spill] sm:$0xff] %v6214_v17  ;;  %v12894_v17 = vrot.slane %v12893_v37, 2  ;;  %v2634_v2 = vadd.f32 %v2524_v27, %v2359_v50  ;;  %v12895_v51 = vrot.slane %v5851_v61, 3  ;;  %v12896_v33 = vrot.slane %v5877_v12, 3 }
  0x76   : > { %v6247_v58 = vsel %vm1696_vm0, %v12890_v46, %v12888_v45  ;;  %v560_v52 = vadd.f32 %v528_v3, %v495_v14  ;;  %v658_v45 = vmul.f32 %v5677_v13, %v6107_v34  ;;  %v952_v57 = vadd.f32 %v920_v23, %v887_v32  ;;  %v12902_v32 = vld [vmem:[#allocation57_spill] sm:$0xff] }
  0x77   : > { %v6254_v26 = vsel %vm1971_vm1, %v12894_v17, %v12892_v10  ;;  %v6261_v38 = vsel %vm2246_vm2, %v12896_v33, %v12895_v51  ;;  %v6265_v46 = vadd.f32 %v1473_v28, %v1440_v0  ;;  %v12897_v37 = vrot.slane %v5891_v30, 4  ;;  %v12906_v10 = vld [vmem:[#allocation60_spill] sm:$0xff] }
  0x78   : > { %v12898_v17 = vrot.slane %v5896_v41, 4  ;;  %v12899_v61 = vrot.slane %v5898_v55, 5  ;;  %v12900_v12 = vrot.slane %v5912_v20, 5  ;;  %v2909_v3 = vadd.f32 %v2799_v18, %v2634_v2 }
  0x79   : > { %v12901_v14 = vrot.slane %v5914_v56, 6  ;;  %v12903_v28 = vrot.slane %v12902_v32, 6  ;;  %v625_v30 = vadd.f32 %v593_v63, %v560_v52  ;;  %v723_v41 = vmul.f32 %v5685_v15, %v6122_v53  ;;  %v12911_v32 = vld [vmem:[#allocation8_spill] sm:$0xff]  ;;  %v12928_v53 = vld [vmem:[#allocation66_spill] sm:$0xff] }
  0x7a   : > { %v6272_v27 = vsel %vm2521_vm3, %v12898_v17, %v12897_v37  ;;  %v6279_v50 = vsel %vm2796_vm4, %v12900_v12, %v12899_v61  ;;  %v1017_v0 = vadd.f32 %v985_v7, %v952_v57  ;;  %v12905_v55 = vrot.slane %v12904_v42, 7  ;;  %v12913_v42 = vld [vmem:[#allocation7_spill] sm:$0xff] }
  0x7b   : > { %v6286_v23 = vsel %vm12758_vm5, %v12903_v28, %v12901_v14  ;;  %v12907_v20 = vrot.slane %v12906_v10, 7  ;;  %v788_v56 = vmul.f32 %v5687_v16, %v6134_v44  ;;  %v853_v18 = vmul.f32 %v5697_v21, %v6144_v11  ;;  %v12910_v14 = vld [vmem:[#allocation6_spill] sm:$0xff]  ;;  %v12914_v10 = vld [vmem:[#allocation11_spill] sm:$0xff] }
  0x7c   : > { %v3184_v2 = vadd.f32 %v3074_v40, %v2909_v3  ;;  %v690_v33 = vadd.f32 %v658_v45, %v625_v30  ;;  %v918_v63 = vmul.f32 %v5706_v24, %v6147_v1  ;;  %v983_v7 = vmul.f32 %v5709_v25, %v6160_v19  ;;  %v12908_v40 = vld [vmem:[#allocation88_spill] sm:$0xff]  ;;  %v12909_v45 = vld [vmem:[#allocation30_spill] sm:$0xff]  ;;  %v12924_v11 = vld [vmem:[#allocation63_spill] sm:$0xff] }
  0x7d   : > { %v6295_v51 = vsel %vm3346_vm6, %v12907_v20, %v12905_v55  ;;  %v1082_v52 = vadd.f32 %v1050_v59, %v1017_v0  ;;  %v1048_v57 = vmul.f32 %v5721_v31, %v6163_v62  ;;  %v1113_v37 = vmul.f32 %v5731_v35, %v6184_v36  ;;  %v12912_v59 = vld [vmem:[#allocation89_spill] sm:$0xff]  ;;  %v12919_v36 = vld [vmem:[#allocation39_spill] sm:$0xff]  ;;  %v12920_v62 = vld [vmem:[#allocation90_spill] sm:$0xff] }
  0x7e   : > { %v1178_v17 = vmul.f32 %v5739_v39, %v6187_v60  ;;  %v3459_v61 = vadd.f32 %v3349_v29, %v3184_v2  ;;  %v755_v12 = vadd.f32 %v723_v41, %v690_v33  ;;  %v6313_v3 = vmul.f32 %v12909_v45, %v12908_v40  ;;  %v12915_v29 = vld [vmem:[#allocation64_spill] sm:$0xff]  ;;  %v12917_v33 = vld [vmem:[#allocation38_spill] sm:$0xff]  ;;  %v12918_v60 = vld [vmem:[#allocation51_spill] sm:$0xff] }
  0x7f   : > { %v433_v28 = vmul.f32 %v12911_v32, %v12910_v14  ;;  %v1147_v30 = vadd.f32 %v1115_v48, %v1082_v52  ;;  %v6319_v0 = vmul.f32 %v12838_v47, %v12912_v59  ;;  %v466_v55 = vmul.f32 %v5660_v5, %v12913_v42  ;;  %v12921_v42 = vld [vmem:[#allocation14_spill] sm:$0xff] }
  0x80   : > { %v531_v20 = vmul.f32 %v5662_v6, %v12914_v10  ;;  %v6326_v41 = vadd.f32 %v12915_v29, %v3459_v61  ;;  %v820_v2 = vadd.f32 %v788_v56, %v755_v12  ;;  %v1438_v40 = vmul.f32 %v12917_v33, %v5976_v4  ;;  %v12922_v56 = vld [vmem:[#allocation62_spill] sm:$0xff] }
  0x81   : > { %v1471_v48 = vmul.f32 %v12919_v36, %v12918_v60  ;;  %v1212_v52 = vadd.f32 %v1180_v22, %v1147_v30  ;;  %v6334_v59 = vmul.f32 %v12842_v9, %v12920_v62  ;;  %v498_v19 = vadd.f32 %v466_v55, %v433_v28  ;;  %v12926_v22 = vld [vmem:[#allocation65_spill] sm:$0xff] }
  0x82   : > { %12916 = vst [vmem:[#allocation44_spill] sm:$0xff] %v6326_v41  ;;  %v596_v1 = vmul.f32 %v5667_v8, %v12921_v42  ;;  %v3528_v61 = vsel %vm3527_vm7, %v6326_v41, 0.0  ;;  %v885_v10 = vadd.f32 %v853_v18, %v820_v2  ;;  %v12923_v12 = vrot.slane %v12922_v56, 1  ;;  %v12930_v42 = vld [vmem:[#allocation68_spill] sm:$0xff]  ;;  %v12932_v41 = vld [vmem:[#allocation69_spill] sm:$0xff] }
  0x83   : > { %v12925_v4 = vrot.slane %v12924_v11, 1  ;;  %v12927_v30 = vrot.slane %v12926_v22, 2  ;;  %v12929_v62 = vrot.slane %v12928_v53, 2  ;;  %3529 = vadd.xlane.f32.xlu0 %v3528_v61  ;;  %v1277_v55 = vadd.f32 %v1245_v43, %v1212_v52  ;;  %v12934_v56 = vld [vmem:[#allocation17_spill] sm:$0xff]  ;;  %v12935_v53 = vld [vmem:[#allocation70_spill] sm:$0xff] }
  0x84   : > { %v12931_v8 = vrot.slane %v12930_v42, 3  ;;  %v12933_v18 = vrot.slane %v12932_v41, 3  ;;  %v563_v11 = vadd.f32 %v531_v20, %v498_v19  ;;  %v6363_v22 = vadd.f32 %v1471_v48, %v1438_v40  ;;  %v12939_v52 = vld [vmem:[#allocation73_spill] sm:$0xff]  ;;  %v12941_v41 = vld [vmem:[#allocation74_spill] sm:$0xff]  ;;  %v12943_v20 = vld [vmem:[#allocation75_spill] sm:$0xff] }
  0x85   : > { %v6345_v44 = vsel %vm1696_vm0, %v12925_v4, %v12923_v12  ;;  %v6352_v28 = vsel %vm1971_vm1, %v12929_v62, %v12927_v30  ;;  %v661_v4 = vmul.f32 %v5677_v13, %v12934_v56  ;;  %v950_v12 = vadd.f32 %v918_v63, %v885_v10  ;;  %v12937_v62 = vld [vmem:[#allocation72_spill] sm:$0xff]  ;;  %v12945_v63 = vld [vmem:[#allocation77_spill] sm:$0xff] }
  0x86   : > { %v6359_v2 = vsel %vm2246_vm2, %v12933_v18, %v12931_v8  ;;  %v12936_v6 = vrot.slane %v12935_v53, 4  ;;  %v12938_v30 = vrot.slane %v12937_v62, 4  ;;  %v12940_v42 = vrot.slane %v12939_v52, 5  ;;  %v12947_v53 = vld [vmem:[#allocation18_spill] sm:$0xff]  ;;  %v12950_v56 = vld [vmem:[#allocation80_spill] sm:$0xff] }
  0x87   : > { %v12942_v61 = vrot.slane %v12941_v41, 5  ;;  %v1342_v19 = vadd.f32 %v1310_v49, %v1277_v55  ;;  %v12944_v18 = vrot.slane %v12943_v20, 6  ;;  %v12946_v40 = vrot.slane %v12945_v63, 6  ;;  %v12952_v49 = vld [vmem:[#allocation20_spill] sm:$0xff] }
  0x88   : > { %v6370_v43 = vsel %vm2521_vm3, %v12938_v30, %v12936_v6  ;;  %v628_v48 = vadd.f32 %v596_v1, %v563_v11  ;;  %v726_v6 = vmul.f32 %v5685_v15, %v12947_v53  ;;  %v1015_v62 = vadd.f32 %v983_v7, %v950_v12  ;;  %v12948_v30 = vld [vmem:[#allocation78_spill] sm:$0xff]  ;;  %v12954_v11 = vld [vmem:[#allocation24_spill] sm:$0xff] }
  0x89   : > { %v6377_v8 = vsel %vm2796_vm4, %v12942_v61, %v12940_v42  ;;  %v6384_v10 = vsel %vm12758_vm5, %v12946_v40, %v12944_v18  ;;  %v12949_v52 = vrot.slane %v12948_v30, 7  ;;  %v12951_v41 = vrot.slane %v12950_v56, 7  ;;  %v12953_v61 = vld [vmem:[#allocation21_spill] sm:$0xff]  ;;  %v12955_v7 = vld [vmem:[#allocation26_spill] sm:$0xff]  ;;  %v12956_v56 = vld [vmem:[#allocation28_spill] sm:$0xff] }
  0x8a   : > { %v791_v55 = vmul.f32 %v5687_v16, %v12952_v49  ;;  %v856_v20 = vmul.f32 %v5697_v21, %v12953_v61  ;;  %v1407_v18 = vadd.f32 %v6240_v54, %v1342_v19  ;;  %v693_v1 = vadd.f32 %v661_v4, %v628_v48  ;;  %v12958_v49 = vld [vmem:[#allocation37_spill] sm:$0xff]  ;;  %v12959_v4 = vld [vmem:[#allocation31_spill] sm:$0xff] }
  0x8b   : > { %v6393_v42 = vsel %vm3346_vm6, %v12951_v41, %v12949_v52  ;;  %v921_v63 = vmul.f32 %v5706_v24, %v12954_v11  ;;  %v986_v12 = vmul.f32 %v5709_v25, %v12955_v7  ;;  %v1080_v40 = vadd.f32 %v1048_v57, %v1015_v62  ;;  %v12957_v52 = vld [vmem:[#allocation34_spill] sm:$0xff]  ;;  %v12960_v48 = vld [vmem:[#allocation71_spill] sm:$0xff]  ;;  %v12961_v11 = vld [vmem:[#allocation32_spill] sm:$0xff] }
  0x8c   : > { %v1051_v30 = vmul.f32 %v5721_v31, %v12956_v56  ;;  %v1116_v41 = vmul.f32 %v5731_v35, %v12957_v52  ;;  %v1181_v53 = vmul.f32 %v5739_v39, %v12958_v49  ;;  %v1537_v61 = vadd.f32 %v6265_v46, %v1407_v18  ;;  %v12962_v57 = vld [vmem:[#allocation43_spill] sm:$0xff] }
  0x8d   : > { %v758_v54 = vadd.f32 %v726_v6, %v693_v1  ;;  %v1571_v19 = vmul.f32 %v12959_v4, %v12910_v14  ;;  %v1604_v24 = vmul.f32 %v12961_v11, %v12960_v48  ;;  %v1145_v7 = vadd.f32 %v1113_v37, %v1080_v40  ;;  %v12963_v6 = vld [vmem:[#allocation36_spill] sm:$0xff] }
  0x8e   : > { %v1246_v62 = vmul.f32 %v12909_v45, %v12962_v57  ;;  %v1572_v56 = vmul.f32 %v12959_v4, %v12960_v48  ;;  %v1605_v52 = vmul.f32 %v12961_v11, %v12910_v14  ;;  %v1812_v49 = vadd.f32 %v6247_v58, %v1537_v61  ;;  %v12964_v1 = vld [vmem:[#allocation40_spill] sm:$0xff]  ;;  %v12965_v57 = vld [vmem:[#allocation41_spill] sm:$0xff]  ;;  %v12966_v61 = vld [vmem:[#allocation42_spill] sm:$0xff] }
  0x8f   : > { %v823_v46 = vadd.f32 %v791_v55, %v758_v54  ;;  %v1846_v18 = vmul.f32 %v12963_v6, %v12910_v14  ;;  %v1879_v39 = vmul.f32 %v12964_v1, %v12960_v48  ;;  %v1210_v35 = vadd.f32 %v1178_v17, %v1145_v7 }
  0x90   : > { %v1847_v37 = vmul.f32 %v12963_v6, %v12960_v48  ;;  %v1880_v40 = vmul.f32 %v12964_v1, %v12910_v14  ;;  %v2121_v4 = vmul.f32 %v12965_v57, %v12910_v14  ;;  %v2087_v11 = vadd.f32 %v6254_v26, %v1812_v49  ;;  %v12968_v49 = vld [vmem:[#allocation50_spill] sm:$0xff] }
  0x91   : > { %v888_v58 = vadd.f32 %v856_v20, %v823_v46  ;;  %v6433_v55 = vadd.f32 %v1604_v24, %v1571_v19  ;;  %v2154_v54 = vmul.f32 %v12966_v61, %v12960_v48  ;;  %v1275_v45 = vadd.f32 %v6313_v3, %v1210_v35 }
  0x92   : > { %v1311_v17 = vmul.f32 %v12838_v47, %v12918_v60  ;;  %v6440_v7 = vadd.f32 %v1605_v52, %v1572_v56  ;;  %v2122_v1 = vmul.f32 %v12965_v57, %v12960_v48  ;;  %v2362_v6 = vadd.f32 %v6261_v38, %v2087_v11 }
  0x93   : > { %v953_v31 = vadd.f32 %v921_v63, %v888_v58  ;;  %v6445_v26 = vadd.f32 %v1879_v39, %v1846_v18  ;;  %v2155_v24 = vmul.f32 %v12966_v61, %v12910_v14  ;;  %v1340_v20 = vadd.f32 %v6319_v0, %v1275_v45  ;;  %v12967_v45 = vld [vmem:[#allocation49_spill] sm:$0xff] }
  0x94   : > { %v1441_v35 = vmul.f32 %v12917_v33, %v12910_v14  ;;  %v6452_v3 = vadd.f32 %v1880_v40, %v1847_v37  ;;  %v6454_v19 = vadd.f32 %v2154_v54, %v2121_v4  ;;  %v2637_v56 = vadd.f32 %v6272_v27, %v2362_v6 }
  0x95   : > { %v1018_v52 = vadd.f32 %v986_v12, %v953_v31  ;;  %v1474_v38 = vmul.f32 %v12919_v36, %v12960_v48  ;;  %v12122_v39 = vrot.slane %v6433_v55, 1  ;;  %v1405_v63 = vadd.f32 %v6334_v59, %v1340_v20  ;;  %v12970_v20 = vld [vmem:[#allocation53_spill] sm:$0xff] }
  0x96   : > { %v6461_v11 = vadd.f32 %v2155_v24, %v2122_v1  ;;  %v2396_v0 = vmul.f32 %v12967_v45, %v12910_v14  ;;  %v2429_v46 = vmul.f32 %v12968_v49, %v12960_v48  ;;  %v2912_v4 = vadd.f32 %v6279_v50, %v2637_v56 }
  0x97   : > { %v1083_v18 = vadd.f32 %v1051_v30, %v1018_v52  ;;  %v12121_v31 = vrot.slane %v6440_v7, 1  ;;  %v12120_v27 = vrot.slane %v6445_v26, 2  ;;  %v1535_v12 = vadd.f32 %v6363_v22, %v1405_v63  ;;  %v12969_v30 = vld [vmem:[#allocation52_spill] sm:$0xff] }
  0x98   : > { %v12119_v6 = vrot.slane %v6452_v3, 2  ;;  %v12118_v59 = vrot.slane %v6454_v19, 3  ;;  %v2397_v1 = vmul.f32 %v12967_v45, %v12960_v48  ;;  %v3187_v37 = vadd.f32 %v6286_v23, %v2912_v4 }
  0x99   : > { %v1148_v40 = vadd.f32 %v1116_v41, %v1083_v18  ;;  %v2430_v50 = vmul.f32 %v12968_v49, %v12910_v14  ;;  %v2671_v58 = vmul.f32 %v12969_v30, %v12910_v14  ;;  %v1810_v54 = vadd.f32 %v6345_v44, %v1535_v12  ;;  %v12971_v18 = vld [vmem:[#allocation5_spill] sm:$0xff] }
  0x9a   : > { %v12117_v22 = vrot.slane %v6461_v11, 3  ;;  %v6482_v24 = vadd.f32 %v2429_v46, %v2396_v0  ;;  %v2704_v56 = vmul.f32 %v12970_v20, %v12960_v48  ;;  %v3462_v52 = vadd.f32 %v6295_v51, %v3187_v37  ;;  %v12980_v37 = vld [vmem:[#allocation12_spill] sm:$0xff] }
  0x9b   : > { %v1213_v63 = vadd.f32 %v1181_v53, %v1148_v40  ;;  %v2672_v23 = vmul.f32 %v12969_v30, %v12960_v48  ;;  %v2705_v41 = vmul.f32 %v12970_v20, %v12910_v14  ;;  %v2085_v4 = vadd.f32 %v6352_v28, %v1810_v54 }
  0x9c   : > { %v1376_v44 = vmul.f32 %v12842_v9, %v12971_v18  ;;  %v1506_v12 = vadd.f32 %v1474_v38, %v1441_v35  ;;  %v1705_v0 = vsel %vm1696_vm0, %v12122_v39, %v12121_v31  ;;  %v6500_v51 = vadd.f32 %v12915_v29, %v3462_v52  ;;  %v12979_v39 = vld [vmem:[#allocation79_spill] sm:$0xff] }
  0x9d   : > { %v1278_v53 = vadd.f32 %v1246_v62, %v1213_v63  ;;  %v1980_v28 = vsel %vm1971_vm1, %v12120_v27, %v12119_v6  ;;  %v6507_v46 = vadd.f32 %v2430_v50, %v2397_v1  ;;  %v2360_v35 = vadd.f32 %v6359_v2, %v2085_v4  ;;  %v12973_v1 = vld [vmem:[#allocation54_spill] sm:$0xff]  ;;  %v12974_v4 = vld [vmem:[#allocation55_spill] sm:$0xff] }
  0x9e   : > { %12972 = vst [vmem:[#allocation45_spill] sm:$0xff] %v6500_v51  ;;  %v2255_v38 = vsel %vm2246_vm2, %v12118_v59, %v12117_v22  ;;  %v6516_v40 = vadd.f32 %v2704_v56, %v2671_v58  ;;  %v3537_v62 = vsel %vm3527_vm7, %v6500_v51, 0.0  ;;  %v6520_v52 = vadd.f32 %v2705_v41, %v2672_v23  ;;  %v12977_v22 = vld [vmem:[#allocation58_spill] sm:$0xff] }
  0x9f   : > { %v1343_v54 = vadd.f32 %v1311_v17, %v1278_v53  ;;  %v2946_v50 = vmul.f32 %v12973_v1, %v12910_v14  ;;  %3538 = vadd.xlane.f32.xlu1 %v3537_v62  ;;  %v2635_v2 = vadd.f32 %v6370_v43, %v2360_v35  ;;  %v2947_v63 = vmul.f32 %v12973_v1, %v12960_v48  ;;  %v12975_v17 = vld [vmem:[#allocation56_spill] sm:$0xff]  ;;  %v12978_v27 = vld [vmem:[#allocation10_spill] sm:$0xff] }
  0xa0   : > { %v2979_v18 = vmul.f32 %v12974_v4, %v12960_v48  ;;  %v2980_v58 = vmul.f32 %v12974_v4, %v12910_v14  ;;  %v3221_v23 = vmul.f32 %v12975_v17, %v12910_v14  ;;  %v434_v41 = vmul.f32 %v12911_v32, %v12960_v48  ;;  %v12976_v53 = vld [vmem:[#allocation76_spill] sm:$0xff] }
  0xa1   : > { %v1408_v56 = vadd.f32 %v1376_v44, %v1343_v54  ;;  %v467_v62 = vmul.f32 %v5660_v5, %v12976_v53  ;;  %v2910_v43 = vadd.f32 %v6377_v8, %v2635_v2  ;;  %v3222_v35 = vmul.f32 %v12975_v17, %v12960_v48 }
  0xa2   : > { %v3254_v59 = vmul.f32 %v12977_v22, %v12960_v48  ;;  %v3255_v44 = vmul.f32 %v12977_v22, %v12910_v14  ;;  %v532_v31 = vmul.f32 %v12978_v27, %v6107_v34  ;;  %v597_v51 = vmul.f32 %v12980_v37, %v12979_v39 }
  0xa3   : > { %v1538_v54 = vadd.f32 %v1506_v12, %v1408_v56  ;;  %v499_v6 = vadd.f32 %v467_v62, %v434_v41  ;;  %v3185_v4 = vadd.f32 %v6384_v10, %v2910_v43  ;;  %v12132_v8 = vrot.slane %v6507_v46, 4  ;;  %v12981_v12 = vld [vmem:[#allocation81_spill] sm:$0xff] }
  0xa4   : > { %v6550_v2 = vadd.f32 %v2979_v18, %v2946_v50  ;;  %v6552_v17 = vadd.f32 %v2980_v58, %v2947_v63  ;;  %v12129_v20 = vrot.slane %v6516_v40, 5  ;;  %v662_v56 = vmul.f32 %v5677_v13, %v12981_v12  ;;  %v12982_v18 = vld [vmem:[#allocation82_spill] sm:$0xff] }
  0xa5   : > { %v1813_v1 = vadd.f32 %v1705_v0, %v1538_v54  ;;  %v564_v14 = vadd.f32 %v532_v31, %v499_v6  ;;  %v3460_v41 = vadd.f32 %v6393_v42, %v3185_v4  ;;  %v12128_v62 = vrot.slane %v6520_v52, 5  ;;  %v12995_v12 = vld [vmem:[#allocation18_spill] sm:$0xff] }
  0xa6   : > { %v6559_v39 = vadd.f32 %v3254_v59, %v3221_v23  ;;  %v6561_v10 = vadd.f32 %v3255_v44, %v3222_v35  ;;  %v727_v63 = vmul.f32 %v5685_v15, %v12982_v18  ;;  %v12984_v31 = vrot.slane %v6482_v24, 4 }
  0xa7   : > { %v2088_v43 = vadd.f32 %v1980_v28, %v1813_v1  ;;  %v629_v50 = vadd.f32 %v597_v51, %v564_v14  ;;  %v6566_v0 = vadd.f32 %v12915_v29, %v3460_v41  ;;  %v12131_v6 = vrot.slane %v6550_v2, 6  ;;  %v12985_v51 = vld [vmem:[#allocation83_spill] sm:$0xff]  ;;  %v12986_v14 = vld [vmem:[#allocation84_spill] sm:$0xff] }
  0xa8   : > { %v2530_v42 = vsel %vm2521_vm3, %v12984_v31, %v12132_v8  ;;  %v12130_v59 = vrot.slane %v6552_v17, 6  ;;  %v792_v1 = vmul.f32 %v5687_v16, %v12985_v51  ;;  %v2805_v23 = vsel %vm2796_vm4, %v12129_v20, %v12128_v62  ;;  %v12987_v31 = vld [vmem:[#allocation85_spill] sm:$0xff]  ;;  %v12988_v62 = vld [vmem:[#allocation22_spill] sm:$0xff] }
  0xa9   : > { %12983 = vst [vmem:[#allocation47_spill] sm:$0xff] %v6566_v0  ;;  %v2363_v4 = vadd.f32 %v2255_v38, %v2088_v43  ;;  %v694_v28 = vadd.f32 %v662_v56, %v629_v50  ;;  %v3531_v58 = vsel %vm3527_vm7, %v6566_v0, 0.0  ;;  %v12135_v35 = vrot.slane %v6559_v39, 7  ;;  %v12992_v0 = vld [vmem:[#allocation17_spill] sm:$0xff] }
  0xaa   : > { %v12134_v44 = vrot.slane %v6561_v10, 7  ;;  %3532 = vadd.xlane.f32.xlu0 %v3531_v58  ;;  %v857_v56 = vmul.f32 %v5697_v21, %v12986_v14  ;;  %v3080_v41 = vsel %vm12758_vm5, %v12131_v6, %v12130_v59  ;;  %v922_v20 = vmul.f32 %v12988_v62, %v12987_v31  ;;  %v12990_v59 = vld [vmem:[#allocation14_spill] sm:$0xff]  ;;  %v12993_v14 = vld [vmem:[#allocation87_spill] sm:$0xff]  ;;  %v12994_v51 = vld [vmem:[#allocation25_spill] sm:$0xff] }
  0xab   : > { %v2638_v38 = vadd.f32 %v2530_v42, %v2363_v4  ;;  %v759_v54 = vadd.f32 %v727_v63, %v694_v28  ;;  %v6601_v42 = vld [vmem:[%s5644_s26 + $0x30] sm:$0xff]  ;;  %v1052_v18 = vmul.f32 %v12994_v51, %v12993_v14  ;;  %v13008_v14 = vrot.slane %v6433_v55, 1 }
  0xac   : > { %v3355_v63 = vsel %vm3346_vm6, %v12135_v35, %v12134_v44  ;;  %v435_v4 = vmul.f32 %v6601_v42, %v12911_v32  ;;  %v12989_v28 = vld [vmem:[#allocation11_spill] sm:$0xff]  ;;  %v598_v44 = vmul.f32 %v12980_v37, %v12992_v0  ;;  %v13013_v55 = vrot.slane %v6454_v19, 3 }
  0xad   : > { %v2913_v43 = vadd.f32 %v2805_v23, %v2638_v38  ;;  %v824_v50 = vadd.f32 %v792_v1, %v759_v54  ;;  %v468_v58 = vmul.f32 %v5660_v5, %v12989_v28  ;;  %v533_v1 = vmul.f32 %v12978_v27, %v12990_v59  ;;  %v12991_v54 = vld [vmem:[#allocation86_spill] sm:$0xff]  ;;  %v13018_v19 = vld [vmem:[#allocation31_spill] sm:$0xff] }
  0xae   : > { %v987_v6 = vmul.f32 %v5709_v25, %v12991_v54  ;;  %v663_v59 = vmul.f32 %v5677_v13, %v12995_v12  ;;  %v13000_v54 = vld [vmem:[#allocation29_spill] sm:$0xff]  ;;  %v1442_v12 = vmul.f32 %v12917_v33, %v12960_v48 }
  0xaf   : > { %v3188_v23 = vadd.f32 %v3080_v41, %v2913_v43  ;;  %v889_v38 = vadd.f32 %v857_v56, %v824_v50  ;;  %v500_v8 = vadd.f32 %v468_v58, %v435_v4  ;;  %v12997_v43 = vld [vmem:[#allocation88_spill] sm:$0xff]  ;;  %v12998_v50 = vld [vmem:[#allocation27_spill] sm:$0xff]  ;;  %v12999_v58 = vld [vmem:[#allocation89_spill] sm:$0xff] }
  0xb0   : > { %v1117_v4 = vmul.f32 %v12998_v50, %v12997_v43  ;;  %v1182_v0 = vmul.f32 %v13000_v54, %v12999_v58  ;;  %v13007_v58 = vld [vmem:[#allocation33_spill] sm:$0xff] }
  0xb1   : > { %v3463_v35 = vadd.f32 %v3355_v63, %v3188_v23  ;;  %v954_v31 = vadd.f32 %v922_v20, %v889_v38  ;;  %v565_v28 = vadd.f32 %v533_v1, %v500_v8  ;;  %v13001_v20 = vld [vmem:[#allocation20_spill] sm:$0xff]  ;;  %v6636_v38 = vld [vmem:[%s5644_s26 + $0x90] sm:$0xff]  ;;  %v1377_v43 = vmul.f32 %v12842_v9, %v13007_v58 }
  0xb2   : > { %v728_v23 = vmul.f32 %v5685_v15, %v13001_v20  ;;  %13003 = vst [vmem:[#allocation59_spill] sm:$0xff] %v6636_v38  ;;  %v13004_v20 = vld [vmem:[#allocation90_spill] sm:$0xff]  ;;  %v6652_v15 = vld [vmem:[%s5644_s26 + $0xa0] sm:$0xff] }
  0xb3   : > { %v6618_v56 = vadd.f32 %v12915_v29, %v3463_v35  ;;  %v1019_v41 = vadd.f32 %v987_v6, %v954_v31  ;;  %v630_v63 = vadd.f32 %v598_v44, %v565_v28  ;;  %v6631_v35 = vld [vmem:[%s5644_s26 + $0x20] sm:$0xff]  ;;  %v793_v44 = vmul.f32 %v6636_v38, %v5687_v16  ;;  %13010 = vst [vmem:[#allocation60_spill] sm:$0xff] %v6652_v15 }
  0xb4   : > { %13002 = vst [vmem:[#allocation57_spill] sm:$0xff] %v6631_v35  ;;  %v1475_v6 = vmul.f32 %v6631_v35, %v12919_v36  ;;  %v13012_v38 = vrot.slane %v6452_v3, 2 }
  0xb5   : > { %12996 = vst [vmem:[#allocation48_spill] sm:$0xff] %v6618_v56  ;;  %v3540_v8 = vsel %vm3527_vm7, %v6618_v56, 0.0  ;;  %v1084_v1 = vadd.f32 %v1052_v18, %v1019_v41  ;;  %v695_v31 = vadd.f32 %v663_v59, %v630_v63  ;;  %v13005_v56 = vld [vmem:[#allocation30_spill] sm:$0xff]  ;;  %v13006_v41 = vld [vmem:[#allocation61_spill] sm:$0xff]  ;;  %v13009_v59 = vrot.slane %v6440_v7, 1 }
  0xb6   : > { %3541 = vadd.xlane.f32.xlu2 %v3540_v8  ;;  %v1247_v18 = vmul.f32 %v13005_v56, %v13004_v20  ;;  %v1312_v48 = vmul.f32 %v12838_v47, %v13006_v41  ;;  %v1507_v20 = vadd.f32 %v1475_v6, %v1442_v12  ;;  %v13011_v41 = vrot.slane %v6445_v26, 2  ;;  %v6674_v26 = vld [vmem:[%s5644_s26 + $0xb0] sm:$0xff] }
  0xb7   : > { %v1149_v28 = vadd.f32 %v1117_v4, %v1084_v1  ;;  %v1795_v63 = vsel %vm1696_vm0, %v13009_v59, %v13008_v14  ;;  %v760_v8 = vadd.f32 %v728_v23, %v695_v31  ;;  %v858_v4 = vmul.f32 %v6652_v15, %v5697_v21  ;;  %13017 = vst [vmem:[#allocation6_spill] sm:$0xff] %v6674_v26 }
  0xb8   : > { %v2070_v58 = vsel %vm1971_vm1, %v13012_v38, %v13011_v41  ;;  %v13014_v7 = vrot.slane %v6461_v11, 3  ;;  %v13015_v23 = vrot.slane %v6482_v24, 4  ;;  %v13016_v31 = vrot.slane %v6507_v46, 4  ;;  %v13019_v46 = vld [vmem:[#allocation32_spill] sm:$0xff] }
  0xb9   : > { %v1214_v1 = vadd.f32 %v1182_v0, %v1149_v28  ;;  %v825_v12 = vadd.f32 %v793_v44, %v760_v8  ;;  %v923_v3 = vmul.f32 %v6674_v26, %v12988_v62  ;;  %v1573_v11 = vmul.f32 %v6601_v42, %v13018_v19 }
  0xba   : > { %v2345_v14 = vsel %vm2246_vm2, %v13014_v7, %v13013_v55  ;;  %v6671_v0 = vsel %vm2521_vm3, %v13016_v31, %v13015_v23  ;;  %v1574_v24 = vmul.f32 %v13018_v19, %v12976_v53  ;;  %v1606_v38 = vmul.f32 %v13019_v46, %v12976_v53  ;;  %v6701_v7 = vld [vmem:[%s5644_s26 + $0xc0] sm:$0xff] }
  0xbb   : > { %v1279_v6 = vadd.f32 %v1247_v18, %v1214_v1  ;;  %v1607_v28 = vmul.f32 %v6601_v42, %v13019_v46  ;;  %v13020_v44 = vrot.slane %v6516_v40, 5  ;;  %v13021_v59 = vrot.slane %v6520_v52, 5  ;;  %13024 = vst [vmem:[#allocation7_spill] sm:$0xff] %v6701_v7 }
  0xbc   : > { %v13022_v41 = vrot.slane %v6550_v2, 6  ;;  %v13023_v18 = vrot.slane %v6552_v17, 6  ;;  %v890_v55 = vadd.f32 %v858_v4, %v825_v12  ;;  %v988_v23 = vmul.f32 %v6701_v7, %v5709_v25  ;;  %v6713_v2 = vld [vmem:[%s5644_s26 + $0xd0] sm:$0xff] }
  0xbd   : > { %v6691_v8 = vsel %vm2796_vm4, %v13021_v59, %v13020_v44  ;;  %v1344_v31 = vadd.f32 %v1312_v48, %v1279_v6  ;;  %v13025_v40 = vrot.slane %v6559_v39, 7  ;;  %v13026_v52 = vrot.slane %v6561_v10, 7  ;;  %13027 = vst [vmem:[#allocation64_spill] sm:$0xff] %v6713_v2  ;;  %v6718_v59 = vld [vmem:[%s5644_s26 + $0xe0] sm:$0xff]  ;;  %v13029_v10 = vld [vmem:[#allocation36_spill] sm:$0xff] }
  0xbe   : > { %v6698_v1 = vsel %vm12758_vm5, %v13023_v18, %v13022_v41  ;;  %v1053_v17 = vmul.f32 %v6713_v2, %v12994_v51  ;;  %13028 = vst [vmem:[#allocation51_spill] sm:$0xff] %v6718_v59  ;;  %v1118_v4 = vmul.f32 %v6718_v59, %v12998_v50  ;;  %v955_v12 = vadd.f32 %v923_v3, %v890_v55 }
  0xbf   : > { %v6710_v44 = vsel %vm3346_vm6, %v13026_v52, %v13025_v40  ;;  %v1443_v48 = vmul.f32 %v6601_v42, %v12917_v33  ;;  %v1476_v39 = vmul.f32 %v12919_v36, %v12976_v53  ;;  %v1848_v6 = vmul.f32 %v6601_v42, %v13029_v10  ;;  %v13030_v52 = vld [vmem:[#allocation40_spill] sm:$0xff] }
  0xc0   : > { %v1409_v41 = vadd.f32 %v1377_v43, %v1344_v31  ;;  %v6728_v18 = vadd.f32 %v1606_v38, %v1573_v11  ;;  %v6730_v40 = vadd.f32 %v1607_v28, %v1574_v24  ;;  %v1881_v46 = vmul.f32 %v13030_v52, %v12976_v53  ;;  %v6747_v28 = vld [vmem:[%s5644_s26 + $0xf0] sm:$0xff] }
  0xc1   : > { %v1020_v3 = vadd.f32 %v988_v23, %v955_v12  ;;  %v1849_v55 = vmul.f32 %v13029_v10, %v12976_v53  ;;  %v1882_v19 = vmul.f32 %v6601_v42, %v13030_v52  ;;  %v2123_v36 = vmul.f32 %v6601_v42, %v12965_v57  ;;  %13031 = vst [vmem:[#allocation62_spill] sm:$0xff] %v6747_v28  ;;  %v6754_v12 = vld [vmem:[%s5644_s26 + $0x10] sm:$0xff] }
  0xc2   : > { %v1539_v33 = vadd.f32 %v1507_v20, %v1409_v41  ;;  %v2124_v43 = vmul.f32 %v12965_v57, %v12976_v53  ;;  %v2156_v11 = vmul.f32 %v12966_v61, %v12976_v53  ;;  %v2157_v24 = vmul.f32 %v6601_v42, %v12966_v61  ;;  %13032 = vst [vmem:[#allocation63_spill] sm:$0xff] %v6754_v12 }
  0xc3   : > { %v1085_v38 = vadd.f32 %v1053_v17, %v1020_v3  ;;  %v1183_v23 = vmul.f32 %v6747_v28, %v13000_v54  ;;  %v1248_v31 = vmul.f32 %v13005_v56, %v12918_v60  ;;  %v1313_v20 = vmul.f32 %v6754_v12, %v12838_v47 }
  0xc4   : > { %v1814_v41 = vadd.f32 %v1795_v63, %v1539_v33  ;;  %v12156_v57 = vrot.slane %v6728_v18, 1  ;;  %v12155_v52 = vrot.slane %v6730_v40, 1  ;;  %v6760_v61 = vadd.f32 %v1881_v46, %v1848_v6 }
  0xc5   : > { %v1150_v17 = vadd.f32 %v1118_v4, %v1085_v38  ;;  %v1378_v3 = vmul.f32 %v6631_v35, %v12842_v9  ;;  %v1508_v10 = vadd.f32 %v1476_v39, %v1443_v48  ;;  %v6764_v28 = vadd.f32 %v1882_v19, %v1849_v55 }
  0xc6   : > { %v2089_v60 = vadd.f32 %v2070_v58, %v1814_v41  ;;  %v6766_v59 = vadd.f32 %v2156_v11, %v2123_v36  ;;  %v6768_v2 = vadd.f32 %v2157_v24, %v2124_v43  ;;  %v2398_v33 = vmul.f32 %v6601_v42, %v12967_v45  ;;  %v13033_v43 = vld [vmem:[#allocation53_spill] sm:$0xff] }
  0xc7   : > { %v1215_v63 = vadd.f32 %v1183_v23, %v1150_v17  ;;  %v2399_v46 = vmul.f32 %v12967_v45, %v12976_v53  ;;  %v2431_v4 = vmul.f32 %v12968_v49, %v12976_v53  ;;  %v2432_v48 = vmul.f32 %v6601_v42, %v12968_v49  ;;  %v13057_v49 = vld [vmem:[#allocation86_spill] sm:$0xff] }
  0xc8   : > { %v2364_v19 = vadd.f32 %v2345_v14, %v2089_v60  ;;  %v1708_v36 = vsel %vm1696_vm0, %v12156_v57, %v12155_v52  ;;  %v2673_v39 = vmul.f32 %v6601_v42, %v12969_v30  ;;  %v2674_v55 = vmul.f32 %v12969_v30, %v12976_v53  ;;  %v6917_v30 = vld [vmem:[%s5644_s26 + $0x70] sm:$0xff] }
  0xc9   : > { %v1280_v6 = vadd.f32 %v1248_v31, %v1215_v63  ;;  %v2706_v11 = vmul.f32 %v13033_v43, %v12976_v53  ;;  %v2707_v14 = vmul.f32 %v6601_v42, %v13033_v43  ;;  %v6796_v60 = vadd.f32 %v2431_v4, %v2398_v33  ;;  %v13034_v63 = vld [vmem:[#allocation54_spill] sm:$0xff]  ;;  %v13055_v43 = vld [vmem:[#allocation85_spill] sm:$0xff]  ;;  %13056 = vst [vmem:[#allocation74_spill] sm:$0xff] %v6917_v30 }
  0xca   : > { %v2639_v24 = vadd.f32 %v6671_v0, %v2364_v19  ;;  %v6798_v31 = vadd.f32 %v2432_v48, %v2399_v46  ;;  %v2948_v52 = vmul.f32 %v6601_v42, %v13034_v63  ;;  %v2949_v58 = vmul.f32 %v13034_v63, %v12976_v53  ;;  %v13035_v0 = vld [vmem:[#allocation55_spill] sm:$0xff]  ;;  %v13036_v46 = vld [vmem:[#allocation56_spill] sm:$0xff] }
  0xcb   : > { %v1345_v17 = vadd.f32 %v1313_v20, %v1280_v6  ;;  %v2981_v19 = vmul.f32 %v13035_v0, %v12976_v53  ;;  %v2982_v23 = vmul.f32 %v6601_v42, %v13035_v0  ;;  %v6809_v20 = vadd.f32 %v2706_v11, %v2673_v39 }
  0xcc   : > { %v2914_v57 = vadd.f32 %v6691_v8, %v2639_v24  ;;  %v6811_v33 = vadd.f32 %v2707_v14, %v2674_v55  ;;  %v3223_v4 = vmul.f32 %v6601_v42, %v13036_v46  ;;  %v3224_v8 = vmul.f32 %v13036_v46, %v12976_v53 }
  0xcd   : > { %v1410_v41 = vadd.f32 %v1378_v3, %v1345_v17  ;;  %v3256_v6 = vmul.f32 %v12977_v22, %v12976_v53  ;;  %v3257_v24 = vmul.f32 %v6601_v42, %v12977_v22  ;;  %v13037_v3 = vrot.slane %v6764_v28, 2 }
  0xce   : > { %v3189_v48 = vadd.f32 %v6698_v1, %v2914_v57  ;;  %v13038_v39 = vrot.slane %v6760_v61, 2  ;;  %v12167_v11 = vrot.slane %v6796_v60, 4  ;;  %v12166_v1 = vrot.slane %v6798_v31, 4 }
  0xcf   : > { %v1540_v38 = vadd.f32 %v1508_v10, %v1410_v41  ;;  %v6830_v14 = vadd.f32 %v2981_v19, %v2948_v52  ;;  %v6832_v17 = vadd.f32 %v2982_v23, %v2949_v58  ;;  %v13039_v22 = vrot.slane %v6768_v2, 3 }
  0xd0   : > { %v1983_v55 = vsel %vm1971_vm1, %v13038_v39, %v13037_v3  ;;  %v3464_v57 = vadd.f32 %v6710_v44, %v3189_v48  ;;  %v13040_v10 = vrot.slane %v6766_v59, 3  ;;  %v12165_v0 = vrot.slane %v6809_v20, 5 }
  0xd1   : > { %v1815_v46 = vadd.f32 %v1708_v36, %v1540_v38  ;;  %v12164_v44 = vrot.slane %v6811_v33, 5  ;;  %v6844_v48 = vadd.f32 %v3256_v6, %v3223_v4  ;;  %v6846_v52 = vadd.f32 %v3257_v24, %v3224_v8 }
  0xd2   : > { %v2258_v41 = vsel %vm2246_vm2, %v13040_v10, %v13039_v22  ;;  %v6841_v3 = vadd.f32 %v12915_v29, %v3464_v57  ;;  %v2533_v22 = vsel %vm2521_vm3, %v12167_v11, %v12166_v1  ;;  %v12163_v38 = vrot.slane %v6830_v14, 6  ;;  %v6907_v1 = vld [vmem:[%s5644_s26 + $0x60] sm:$0xff] }
  0xd3   : > { %v2090_v58 = vadd.f32 %v1983_v55, %v1815_v46  ;;  %v12162_v23 = vrot.slane %v6832_v17, 6  ;;  %v2808_v46 = vsel %vm2796_vm4, %v12165_v0, %v12164_v44  ;;  %v12161_v4 = vrot.slane %v6844_v48, 7  ;;  %v13047_v44 = vld [vmem:[#allocation83_spill] sm:$0xff]  ;;  %13052 = vst [vmem:[#allocation72_spill] sm:$0xff] %v6907_v1 }
  0xd4   : > { %13041 = vst [vmem:[#allocation65_spill] sm:$0xff] %v6841_v3  ;;  %v3543_v36 = vsel %vm3527_vm7, %v6841_v3, 0.0  ;;  %v12160_v8 = vrot.slane %v6846_v52, 7  ;;  %v13048_v0 = vld [vmem:[#allocation15_spill] sm:$0xff]  ;;  %v535_v11 = vmul.f32 %v6907_v1, %v12978_v27  ;;  %v924_v1 = vmul.f32 %v12988_v62, %v13057_v49 }
  0xd5   : > { %3544 = vadd.xlane.f32.xlu2 %v3543_v36  ;;  %v2365_v19 = vadd.f32 %v2258_v41, %v2090_v58  ;;  %v3083_v24 = vsel %vm12758_vm5, %v12163_v38, %v12162_v23  ;;  %v5532_v58 = vmov 32.0  }
  0xd6   : > { %v3358_v55 = vsel %vm3346_vm6, %v12161_v4, %v12160_v8  ;;  %5195 = vrcp.f32 %v5532_v58  ;;  %v436_v8 = vmul.f32 %v12911_v32, %v12976_v53  ;;  %v13044_v58 = vld [vmem:[#allocation81_spill] sm:$0xff] }
  0xd7   : > { %v2640_v6 = vadd.f32 %v2533_v22, %v2365_v19 }
  0xd9   : > { %v2915_v39 = vadd.f32 %v2808_v46, %v2640_v6 }
  0xdb   : > { %v3190_v57 = vadd.f32 %v3083_v24, %v2915_v39  ;;  %v469_v24 = vmul.f32 %v5660_v5, %v6107_v34  ;;  %v13043_v39 = vld [vmem:[#allocation79_spill] sm:$0xff] }
  0xdc   : > { %v5196_v22 = vpop.eup %5195 }
  0xdd   : > { %v3465_v10 = vadd.f32 %v3358_v55, %v3190_v57  ;;  %v3625_v19 = vmul.f32 32.0, %v5196_v22  ;;  %v534_v55 = vmul.f32 %v12978_v27, %v13043_v39  ;;  %vm3629_vm8 = vweird.f32 %v5196_v22 }
  0xdf   : > { %v6875_v41 = vadd.f32 %v12915_v29, %v3465_v10  ;;  %v3626_v46 = vsub.f32 1.0, %v3625_v19  ;;  %v501_v29 = vadd.f32 %v469_v24, %v436_v8  ;;  %v729_v8 = vmul.f32 %v13048_v0, %v13047_v44  ;;  %v6894_v24 = vld [vmem:[%s5644_s26 + $0x40] sm:$0xff] }
  0xe0   : > { %13049 = vst [vmem:[#allocation69_spill] sm:$0xff] %v6894_v24 }
  0xe1   : > { %13042 = vst [vmem:[#allocation66_spill] sm:$0xff] %v6875_v41  ;;  %v3546_v36 = vsel %vm3527_vm7, %v6875_v41, 0.0  ;;  %v3627_v6 = vmul.f32 %v5196_v22, %v3626_v46  ;;  %v566_v10 = vadd.f32 %v534_v55, %v501_v29  ;;  %v13045_v46 = vld [vmem:[#allocation82_spill] sm:$0xff]  ;;  %v6899_v29 = vld [vmem:[%s5644_s26 + $0x50] sm:$0xff]  ;;  %v13053_v41 = vld [vmem:[#allocation44_spill] sm:$0xff] }
  0xe2   : > { %3547 = vadd.xlane.f32.xlu2 %v3546_v36  ;;  %v599_v36 = vmul.f32 %v12980_v37, %v13044_v58  ;;  %v664_v4 = vmul.f32 %v5677_v13, %v13045_v46  ;;  %13050 = vst [vmem:[#allocation70_spill] sm:$0xff] %v6899_v29  ;;  %v470_v55 = vmul.f32 %v6899_v29, %v5660_v5 }
  0xe3   : > { %v3628_v57 = vadd.f32 %v5196_v22, %v3627_v6  ;;  %v437_v6 = vmul.f32 %v6894_v24, %v12911_v32  ;;  %v859_v29 = vmul.f32 %v5697_v21, %v13055_v43  ;;  %v440_v24 = vmul.f32 %v12911_v32, %v13043_v39 }
  0xe4   : > { %v631_v19 = vadd.f32 %v599_v36, %v566_v10 }
  0xe5   : > { %v6889_v23 = vsel %vm3629_vm8, %v5196_v22, %v3628_v57 }
  0xe6   : > { %13046 = vst [vmem:[#allocation68_spill] sm:$0xff] %v6889_v23  ;;  %v696_v38 = vadd.f32 %v664_v4, %v631_v19  ;;  %v13051_v4 = vld [vmem:[#allocation84_spill] sm:$0xff]  ;;  %v502_v19 = vadd.f32 %v470_v55, %v437_v6 }
  0xe7   : > { %v794_v57 = vmul.f32 %v5687_v16, %v13051_v4 }
  0xe8   : > { %v761_v22 = vadd.f32 %v729_v8, %v696_v38  ;;  %v600_v38 = vmul.f32 %v6917_v30, %v12980_v37  ;;  %v567_v8 = vadd.f32 %v535_v11, %v502_v19  ;;  %v13059_v11 = vld [vmem:[#allocation87_spill] sm:$0xff] }
  0xe9   : > { %v989_v19 = vmul.f32 %v5709_v25, %v13059_v11 }
  0xea   : > { %v826_v63 = vadd.f32 %v794_v57, %v761_v22  ;;  %v632_v57 = vadd.f32 %v600_v38, %v567_v8  ;;  %v438_v38 = vmul.f32 %v12911_v32, %v6107_v34  ;;  %v13062_v34 = vld [vmem:[#allocation89_spill] sm:$0xff] }
  0xec   : > { %v891_v55 = vadd.f32 %v859_v29, %v826_v63 }
  0xee   : > { %v956_v30 = vadd.f32 %v924_v1, %v891_v55 }
  0xf0   : > { %v1021_v8 = vadd.f32 %v989_v19, %v956_v30  ;;  %v1119_v30 = vmul.f32 %v12998_v50, %v13062_v34  ;;  %v860_v19 = vmul.f32 %v6674_v26, %v5697_v21  ;;  %v13064_v26 = vld [vmem:[#allocation67_spill] sm:$0xff] }
  0xf6   : > { %v3530_v10 = vpop.xlane.xlu0 %3529 }
  0xf7   : > { %v3631_v36 = vmul.f32 %v6889_v23, %v3530_v10  ;;  %v3536_v10 = vpop.xlane.xlu1 %3535 }
  0xf8   : > { %v3633_v22 = vmul.f32 %v6889_v23, %v3536_v10  ;;  %v13061_v10 = vld [vmem:[#allocation88_spill] sm:$0xff] }
  0xf9   : > { %v6912_v3 = vsub.f32 %v13053_v41, %v3631_v36  ;;  %v6926_v41 = vld [vmem:[%s5644_s26 + $0x80] sm:$0xff]  ;;  %v1054_v1 = vmul.f32 %v12994_v51, %v13061_v10 }
  0xfa   : > { %13058 = vst [vmem:[#allocation75_spill] sm:$0xff] %v6926_v41  ;;  %v665_v36 = vmul.f32 %v6926_v41, %v5677_v13  ;;  %v473_v41 = vmul.f32 %v5660_v5, %v13044_v58 }
  0xfb   : > { %13054 = vst [vmem:[#allocation73_spill] sm:$0xff] %v6912_v3  ;;  %v3695_v6 = vmul.f32 %v6912_v3, %v6912_v3  ;;  %v13060_v3 = vld [vmem:[#allocation59_spill] sm:$0xff]  ;;  %v1086_v23 = vadd.f32 %v1054_v1, %v1021_v8  ;;  %v925_v8 = vmul.f32 %v6701_v7, %v12988_v62  ;;  %v668_v1 = vmul.f32 %v5677_v13, %v13051_v4 }
  0xfc   : > { %v730_v63 = vmul.f32 %v13060_v3, %v13048_v0  ;;  %v697_v29 = vadd.f32 %v665_v36, %v632_v57  ;;  %v505_v36 = vadd.f32 %v473_v41, %v440_v24  ;;  %v471_v57 = vmul.f32 %v5660_v5, %v13043_v39 }
  0xfd   : > { %v3727_v45 = vsel %vm3527_vm7, %v3695_v6, 0.0  ;;  %v795_v6 = vmul.f32 %v6652_v15, %v5687_v16  ;;  %v536_v3 = vmul.f32 %v12978_v27, %v13044_v58  ;;  %v603_v15 = vmul.f32 %v12980_v37, %v13047_v44 }
  0xfe   : > { %3728 = vadd.xlane.f32.xlu0 %v3727_v45  ;;  %v538_v45 = vmul.f32 %v12978_v27, %v13045_v46  ;;  %v762_v55 = vadd.f32 %v730_v63, %v697_v29  ;;  %v503_v24 = vadd.f32 %v471_v57, %v438_v38  ;;  %v601_v39 = vmul.f32 %v12980_v37, %v13045_v46  ;;  %v13063_v29 = vld [vmem:[#allocation90_spill] sm:$0xff] }
  0xff   : > { %v1151_v41 = vadd.f32 %v1119_v30, %v1086_v23  ;;  %v1184_v58 = vmul.f32 %v13000_v54, %v13063_v29  ;;  %v6967_v27 = vsub.f32 %v13064_v26, %v3633_v22  ;;  %v6970_v46 = vld [vmem:[%s5644_s26 + $0x8] sm:$0xff]  ;;  %v666_v30 = vmul.f32 %v5677_v13, %v13047_v44 }
 0x100   : > { %v827_v32 = vadd.f32 %v795_v6, %v762_v55  ;;  %v570_v63 = vadd.f32 %v538_v45, %v505_v36  ;;  %v568_v38 = vadd.f32 %v536_v3, %v503_v24  ;;  %13066 = vst [vmem:[#allocation78_spill] sm:$0xff] %v6970_v46  ;;  %v1249_v23 = vmul.f32 %v6970_v46, %v13005_v56  ;;  %v13067_v36 = vld [vmem:[#allocation64_spill] sm:$0xff] }
 0x101   : > { %13065 = vst [vmem:[#allocation77_spill] sm:$0xff] %v6967_v27  ;;  %v1216_v55 = vadd.f32 %v1184_v58, %v1151_v41  ;;  %v990_v57 = vmul.f32 %v13067_v36, %v5709_v25  ;;  %v6981_v3 = vld [vmem:[%s5644_s26 + $0x18] sm:$0xff]  ;;  %v731_v24 = vmul.f32 %v13048_v0, %v13051_v4  ;;  %v6990_v41 = vld [vmem:[%s5644_s26 + $0x28] sm:$0xff]  ;;  %v13074_v4 = vrot.slane %v6730_v40, 1 }
 0x102   : > { %v892_v6 = vadd.f32 %v860_v19, %v827_v32  ;;  %v635_v45 = vadd.f32 %v603_v15, %v570_v63  ;;  %v733_v32 = vmul.f32 %v13048_v0, %v13055_v43  ;;  %v633_v15 = vadd.f32 %v601_v39, %v568_v38  ;;  %13068 = vst [vmem:[#allocation80_spill] sm:$0xff] %v6981_v3  ;;  %v13069_v19 = vld [vmem:[#allocation51_spill] sm:$0xff]  ;;  %v13071_v58 = vld [vmem:[#allocation38_spill] sm:$0xff] }
 0x103   : > { %v1281_v26 = vadd.f32 %v1249_v23, %v1216_v55  ;;  %v1314_v22 = vmul.f32 %v6981_v3, %v12838_v47  ;;  %v1055_v63 = vmul.f32 %v13069_v19, %v12994_v51  ;;  %13070 = vst [vmem:[#allocation21_spill] sm:$0xff] %v6990_v41  ;;  %v1379_v44 = vmul.f32 %v6990_v41, %v12842_v9 }
 0x104   : > { %v957_v7 = vadd.f32 %v925_v8, %v892_v6  ;;  %v700_v37 = vadd.f32 %v668_v1, %v635_v45  ;;  %v1444_v39 = vmul.f32 %v13071_v58, %v12976_v53  ;;  %v13072_v8 = vld [vmem:[#allocation39_spill] sm:$0xff]  ;;  %v798_v6 = vmul.f32 %v5687_v16, %v13057_v49 }
 0x105   : > { %v1477_v1 = vmul.f32 %v6601_v42, %v13072_v8  ;;  %v1346_v45 = vadd.f32 %v1314_v22, %v1281_v26  ;;  %v13073_v38 = vrot.slane %v6728_v18, 1  ;;  %v13075_v23 = vrot.slane %v6760_v61, 2 }
 0x106   : > { %v13076_v19 = vrot.slane %v6764_v28, 2  ;;  %v13077_v53 = vrot.slane %v6766_v59, 3  ;;  %v13078_v0 = vrot.slane %v6768_v2, 3  ;;  %v13079_v26 = vrot.slane %v6796_v60, 4 }
 0x107   : > { %v1796_v55 = vsel %vm1696_vm0, %v13074_v4, %v13073_v38  ;;  %v1509_v49 = vadd.f32 %v1477_v1, %v1444_v39  ;;  %v13080_v18 = vrot.slane %v6798_v31, 4  ;;  %v13081_v22 = vrot.slane %v6809_v20, 5  ;;  %v13087_v20 = vld [vmem:[#allocation62_spill] sm:$0xff]  ;;  %v7040_v38 = vld [vmem:[%s5644_s26] sm:$0xff] }
 0x108   : > { %v2071_v36 = vsel %vm1971_vm1, %v13076_v19, %v13075_v23  ;;  %v2346_v13 = vsel %vm2246_vm2, %v13078_v0, %v13077_v53  ;;  %v13082_v61 = vrot.slane %v6811_v33, 5  ;;  %v13083_v19 = vrot.slane %v6830_v14, 6  ;;  %13088 = vst [vmem:[#allocation24_spill] sm:$0xff] %v7040_v38 }
 0x109   : > { %v2621_v40 = vsel %vm2521_vm3, %v13080_v18, %v13079_v26  ;;  %v13084_v59 = vrot.slane %v6832_v17, 6  ;;  %v1411_v0 = vadd.f32 %v1379_v44, %v1346_v45  ;;  %v13085_v39 = vrot.slane %v6844_v48, 7  ;;  %v7076_v26 = vld [vmem:[%s5644_s26 + $0x48] sm:$0xff]  ;;  %v13093_v18 = vld [vmem:[#allocation32_spill] sm:$0xff] }
 0x10a   : > { %v2896_v28 = vsel %vm2796_vm4, %v13082_v61, %v13081_v22  ;;  %v13086_v60 = vrot.slane %v6846_v52, 7  ;;  %v1022_v1 = vadd.f32 %v990_v57, %v957_v7  ;;  %v1120_v33 = vmul.f32 %v13087_v20, %v12998_v50  ;;  %13092 = vst [vmem:[#allocation26_spill] sm:$0xff] %v7076_v26 }
 0x10b   : > { %v3171_v2 = vsel %vm12758_vm5, %v13084_v59, %v13083_v19  ;;  %v1185_v14 = vmul.f32 %v7040_v38, %v13000_v54  ;;  %v765_v17 = vadd.f32 %v733_v32, %v700_v37  ;;  %v7046_v44 = vmul.f32 %v5697_v21, %v13059_v11  ;;  %v13094_v59 = vld [vmem:[#allocation45_spill] sm:$0xff] }
 0x10c   : > { %v7035_v31 = vsel %vm3346_vm6, %v13086_v60, %v13085_v39  ;;  %v698_v48 = vadd.f32 %v666_v30, %v633_v15  ;;  %v1541_v52 = vadd.f32 %v1509_v49, %v1411_v0  ;;  %v1087_v45 = vadd.f32 %v1055_v63, %v1022_v1  ;;  %v13091_v49 = vld [vmem:[#allocation69_spill] sm:$0xff] }
 0x10d   : > { %v1250_v7 = vmul.f32 %v6754_v12, %v13005_v56  ;;  %v7052_v57 = vmul.f32 %v12988_v62, %v13061_v10  ;;  %v7054_v4 = vadd.f32 %v798_v6, %v765_v17  ;;  %v7058_v37 = vmul.f32 %v5709_v25, %v13062_v34  ;;  %v13089_v6 = vld [vmem:[#allocation68_spill] sm:$0xff]  ;;  %v13090_v34 = vld [vmem:[#allocation31_spill] sm:$0xff] }
 0x10e   : > { %v7060_v32 = vadd.f32 %v731_v24, %v698_v48  ;;  %v7064_v11 = vmul.f32 %v5687_v16, %v13055_v43  ;;  %v1816_v15 = vadd.f32 %v1796_v55, %v1541_v52  ;;  %v1152_v63 = vadd.f32 %v1120_v33, %v1087_v45  ;;  %v13119_v16 = vld [vmem:[#allocation56_spill] sm:$0xff] }
 0x10f   : > { %v1315_v23 = vmul.f32 %v6631_v35, %v12838_v47  ;;  %v7070_v10 = vmul.f32 %v12994_v51, %v13063_v29  ;;  %v1575_v24 = vmul.f32 %v13091_v49, %v13090_v34  ;;  %v1576_v43 = vmul.f32 %v7076_v26, %v13090_v34 }
 0x110   : > { %v1608_v55 = vmul.f32 %v7076_v26, %v13093_v18  ;;  %v2091_v22 = vadd.f32 %v2071_v36, %v1816_v15  ;;  %v1217_v61 = vadd.f32 %v1185_v14, %v1152_v63  ;;  %v1380_v19 = vmul.f32 %v6601_v42, %v12842_v9  ;;  %v13096_v14 = vld [vmem:[#allocation36_spill] sm:$0xff] }
 0x111   : > { %v1445_v29 = vmul.f32 %v13091_v49, %v13071_v58  ;;  %v1478_v39 = vmul.f32 %v7076_v26, %v13072_v8  ;;  %v1609_v60 = vmul.f32 %v13091_v49, %v13093_v18  ;;  %v1850_v17 = vmul.f32 %v13091_v49, %v13096_v14 }
 0x112   : > { %v3539_v30 = vpop.xlane.xlu1 %3538  ;;  %v7093_v1 = vadd.f32 %v1608_v55, %v1575_v24  ;;  %v2366_v33 = vadd.f32 %v2346_v13, %v2091_v22  ;;  %v1282_v36 = vadd.f32 %v1250_v7, %v1217_v61  ;;  %v1851_v42 = vmul.f32 %v7076_v26, %v13096_v14  ;;  %v13098_v22 = vld [vmem:[#allocation41_spill] sm:$0xff] }
 0x113   : > { %v3634_v53 = vmul.f32 %v13089_v6, %v3539_v30  ;;  %v1510_v52 = vadd.f32 %v1478_v39, %v1445_v29  ;;  %v7101_v45 = vadd.f32 %v1609_v60, %v1576_v43  ;;  %v2125_v61 = vmul.f32 %v13091_v49, %v13098_v22  ;;  %v13101_v60 = vld [vmem:[#allocation42_spill] sm:$0xff] }
 0x114   : > { %v12198_v30 = vrot.slane %v7093_v1, 1  ;;  %v2641_v15 = vadd.f32 %v2621_v40, %v2366_v33  ;;  %v1347_v63 = vadd.f32 %v1315_v23, %v1282_v36  ;;  %v2126_v43 = vmul.f32 %v7076_v26, %v13098_v22 }
 0x115   : > { %v7087_v0 = vsub.f32 %v13094_v59, %v3634_v53  ;;  %v13097_v53 = vld [vmem:[#allocation40_spill] sm:$0xff]  ;;  %v12197_v55 = vrot.slane %v7101_v45, 1  ;;  %v2158_v33 = vmul.f32 %v7076_v26, %v13101_v60  ;;  %v2159_v36 = vmul.f32 %v13091_v49, %v13101_v60 }
 0x116   : > { %v1883_v13 = vmul.f32 %v7076_v26, %v13097_v53  ;;  %v1884_v7 = vmul.f32 %v13091_v49, %v13097_v53  ;;  %v2916_v29 = vadd.f32 %v2896_v28, %v2641_v15  ;;  %v1412_v40 = vadd.f32 %v1380_v19, %v1347_v63 }
 0x117   : > { %13095 = vst [vmem:[#allocation28_spill] sm:$0xff] %v7087_v0  ;;  %v3698_v48 = vmul.f32 %v7087_v0, %v7087_v0  ;;  %v1711_v39 = vsel %vm1696_vm0, %v12198_v30, %v12197_v55  ;;  %v13105_v55 = vld [vmem:[#allocation50_spill] sm:$0xff] }
 0x118   : > { %v7114_v23 = vadd.f32 %v1883_v13, %v1850_v17  ;;  %v7116_v59 = vadd.f32 %v1884_v7, %v1851_v42  ;;  %v3191_v19 = vadd.f32 %v3171_v2, %v2916_v29  ;;  %v1542_v17 = vadd.f32 %v1510_v52, %v1412_v40 }
 0x119   : > { %v3736_v24 = vsel %vm3527_vm7, %v3698_v48, 0.0  ;;  %v13102_v48 = vld [vmem:[#allocation49_spill] sm:$0xff]  ;;  %v7131_v13 = vadd.f32 %v2158_v33, %v2125_v61  ;;  %v7133_v7 = vadd.f32 %v2159_v36, %v2126_v43  ;;  %v2433_v30 = vmul.f32 %v7076_v26, %v13105_v55  ;;  %v13107_v36 = vld [vmem:[#allocation47_spill] sm:$0xff] }
 0x11a   : > { %3737 = vadd.xlane.f32.xlu2 %v3736_v24  ;;  %13099 = vst [vmem:[#allocation34_spill] sm:$0xff] %v7114_v23  ;;  %v2400_v28 = vmul.f32 %v13091_v49, %v13102_v48  ;;  %v12201_v42 = vrot.slane %v7114_v23, 2  ;;  %v12200_v15 = vrot.slane %v7116_v59, 2  ;;  %v2401_v24 = vmul.f32 %v7076_v26, %v13102_v48  ;;  %v13123_v23 = vld [vmem:[#allocation48_spill] sm:$0xff] }
 0x11b   : > { %13100 = vst [vmem:[#allocation37_spill] sm:$0xff] %v7116_v59  ;;  %v3466_v2 = vadd.f32 %v7035_v31, %v3191_v19  ;;  %v1817_v52 = vadd.f32 %v1711_v39, %v1542_v17  ;;  %v12204_v43 = vrot.slane %v7131_v13, 3  ;;  %v12203_v29 = vrot.slane %v7133_v7, 3  ;;  %v7158_v31 = vld [vmem:[%s11966_s4] ss:$0 sm:$0xff]  ;;  %v13111_v17 = vld [vmem:[#allocation52_spill] sm:$0xff] }
 0x11c   : > { %13103 = vst [vmem:[#allocation71_spill] sm:$0xff] %v7131_v13  ;;  %v1986_v61 = vsel %vm1971_vm1, %v12201_v42, %v12200_v15  ;;  %v2434_v40 = vmul.f32 %v13091_v49, %v13105_v55  ;;  %v7150_v33 = vadd.f32 %v2433_v30, %v2400_v28  ;;  %v2675_v15 = vmul.f32 %v13091_v49, %v13111_v17  ;;  %v13113_v42 = vld [vmem:[#allocation53_spill] sm:$0xff] }
 0x11d   : > { %v3533_v63 = vpop.xlane.xlu0 %3532  ;;  %13104 = vst [vmem:[#allocation43_spill] sm:$0xff] %v7133_v7  ;;  %v7161_v39 = vadd.f32 %v7158_v31, %v3466_v2  ;;  %v2092_v19 = vadd.f32 %v1986_v61, %v1817_v52  ;;  %v2261_v30 = vsel %vm2246_vm2, %v12204_v43, %v12203_v29  ;;  %v2708_v35 = vmul.f32 %v7076_v26, %v13113_v42 }
 0x11e   : > { %v3632_v0 = vmul.f32 %v13089_v6, %v3533_v63  ;;  %13106 = vst [vmem:[#allocation5_spill] sm:$0xff] %v7150_v33 }
 0x11f   : > { %13109 = vst [vmem:[#allocation22_spill] sm:$0xff] %v7158_v31  ;;  %v3549_v2 = vsel %vm3527_vm7, %v7161_v39, 0.0  ;;  %v2367_v61 = vadd.f32 %v2261_v30, %v2092_v19  ;;  %v7189_v12 = vadd.f32 %v2708_v35, %v2675_v15  ;;  %v13116_v19 = vld [vmem:[#allocation55_spill] sm:$0xff]  ;;  %v3226_v35 = vmul.f32 %v7076_v26, %v13119_v16 }
 0x120   : > { %v7153_v63 = vsub.f32 %v13107_v36, %v3632_v0  ;;  %13110 = vst [vmem:[#allocation11_spill] sm:$0xff] %v7161_v39  ;;  %v7170_v0 = vadd.f32 %v2434_v40, %v2401_v24  ;;  %v2676_v36 = vmul.f32 %v7076_v26, %v13111_v17  ;;  %3550 = vadd.xlane.f32.xlu0 %v3549_v2  ;;  %v13114_v40 = vld [vmem:[#allocation54_spill] sm:$0xff] }
 0x121   : > { %v2709_v24 = vmul.f32 %v13091_v49, %v13113_v42  ;;  %v2950_v43 = vmul.f32 %v13091_v49, %v13114_v40  ;;  %v2951_v28 = vmul.f32 %v7076_v26, %v13114_v40  ;;  %13115 = vst [vmem:[#allocation17_spill] sm:$0xff] %v7189_v12  ;;  %v2983_v30 = vmul.f32 %v7076_v26, %v13116_v19 }
 0x122   : > { %13108 = vst [vmem:[#allocation76_spill] sm:$0xff] %v7153_v63  ;;  %v3696_v52 = vmul.f32 %v7153_v63, %v7153_v63  ;;  %v12216_v29 = vrot.slane %v7170_v0, 4  ;;  %v2984_v2 = vmul.f32 %v13091_v49, %v13116_v19  ;;  %v13117_v63 = vrot.slane %v7150_v33, 4  ;;  %v13120_v33 = vld [vmem:[#allocation58_spill] sm:$0xff] }
 0x123   : > { %13112 = vst [vmem:[#allocation14_spill] sm:$0xff] %v7170_v0  ;;  %v7200_v20 = vadd.f32 %v2709_v24, %v2676_v36  ;;  %v12226_v7 = vrot.slane %v7189_v12, 5  ;;  %v7207_v13 = vadd.f32 %v2983_v30, %v2950_v43  ;;  %v3259_v36 = vmul.f32 %v13091_v49, %v13120_v33 }
 0x124   : > { %v3730_v39 = vsel %vm3527_vm7, %v3696_v52, 0.0  ;;  %v2536_v38 = vsel %vm2521_vm3, %v13117_v63, %v12216_v29  ;;  %v3225_v52 = vmul.f32 %v13091_v49, %v13119_v16  ;;  %v3258_v63 = vmul.f32 %v7076_v26, %v13120_v33 }
 0x125   : > { %3731 = vadd.xlane.f32.xlu1 %v3730_v39  ;;  %13118 = vst [vmem:[#allocation18_spill] sm:$0xff] %v7200_v20  ;;  %v2642_v15 = vadd.f32 %v2536_v38, %v2367_v61  ;;  %v7209_v39 = vadd.f32 %v2984_v2, %v2951_v28  ;;  %v12223_v0 = vrot.slane %v7200_v20, 5  ;;  %v895_v24 = vadd.f32 %v7046_v44, %v7054_v4 }
 0x126   : > { %v3697_v43 = vmul.f32 %v6967_v27, %v6967_v27  ;;  %v1123_v28 = vmul.f32 %v6970_v46, %v12998_v50  ;;  %v7230_v4 = vadd.f32 %v3258_v63, %v3225_v52  ;;  %v7232_v2 = vadd.f32 %v3259_v36, %v3226_v35 }
 0x127   : > { %v12222_v61 = vrot.slane %v7209_v39, 6  ;;  %v2811_v44 = vsel %vm2796_vm4, %v12226_v7, %v12223_v0  ;;  %v13122_v27 = vrot.slane %v7207_v13, 6  ;;  %v960_v20 = vadd.f32 %v7052_v57, %v895_v24 }
 0x128   : > { %13121 = vst [vmem:[#allocation20_spill] sm:$0xff] %v7232_v2  ;;  %v2917_v38 = vadd.f32 %v2811_v44, %v2642_v15  ;;  %v12225_v52 = vrot.slane %v7230_v4, 7  ;;  %v12224_v35 = vrot.slane %v7232_v2, 7  ;;  %v1188_v15 = vmul.f32 %v6981_v3, %v13000_v54  ;;  %v7252_v44 = vld [vmem:[%s5644_s26 + $0x38] sm:$0xff] }
 0x129   : > { %v3542_v29 = vpop.xlane.xlu2 %3541  ;;  %v3086_v59 = vsel %vm12758_vm5, %v13122_v27, %v12222_v61  ;;  %v1025_v36 = vadd.f32 %v7058_v37, %v960_v20  ;;  %v1253_v27 = vmul.f32 %v6990_v41, %v13005_v56  ;;  %13125 = vst [vmem:[#allocation33_spill] sm:$0xff] %v7252_v44  ;;  %v1318_v57 = vmul.f32 %v7252_v44, %v12838_v47  ;;  %v7266_v37 = vld [vmem:[%s5644_s26 + $0x58] sm:$0xff] }
 0x12a   : > { %v3635_v30 = vmul.f32 %v13089_v6, %v3542_v29  ;;  %v3733_v29 = vsel %vm3527_vm7, %v3697_v43, 0.0  ;;  %v3192_v63 = vadd.f32 %v3086_v59, %v2917_v38  ;;  %v3361_v24 = vsel %vm3346_vm6, %v12225_v52, %v12224_v35 }
 0x12b   : > { %v1383_v20 = vmul.f32 %v7076_v26, %v12842_v9  ;;  %v1448_v59 = vmul.f32 %v7266_v37, %v13071_v58  ;;  %v1090_v43 = vadd.f32 %v7070_v10, %v1025_v36  ;;  %v1610_v52 = vmul.f32 %v7266_v37, %v13093_v18 }
 0x12c   : > { %v7242_v12 = vsub.f32 %v13123_v23, %v3635_v30  ;;  %v3467_v38 = vadd.f32 %v3361_v24, %v3192_v63  ;;  %v13126_v30 = vld [vmem:[#allocation70_spill] sm:$0xff]  ;;  %v1885_v2 = vmul.f32 %v7266_v37, %v13097_v53 }
 0x12d   : > { %3734 = vadd.xlane.f32.xlu1 %v3733_v29  ;;  %v1481_v61 = vmul.f32 %v13126_v30, %v13072_v8  ;;  %v1577_v0 = vmul.f32 %v13126_v30, %v13090_v34  ;;  %v1578_v29 = vmul.f32 %v7266_v37, %v13090_v34  ;;  %v1611_v7 = vmul.f32 %v13126_v30, %v13093_v18 }
 0x12e   : > { %13124 = vst [vmem:[#allocation61_spill] sm:$0xff] %v7242_v12  ;;  %v3699_v23 = vmul.f32 %v7242_v12, %v7242_v12  ;;  %v7283_v10 = vadd.f32 %v7158_v31, %v3467_v38  ;;  %v1155_v63 = vadd.f32 %v1123_v28, %v1090_v43  ;;  %v1852_v24 = vmul.f32 %v13126_v30, %v13096_v14 }
 0x12f   : > { %v1513_v36 = vadd.f32 %v1481_v61, %v1448_v59  ;;  %v7287_v12 = vadd.f32 %v1610_v52, %v1577_v0  ;;  %v1853_v34 = vmul.f32 %v7266_v37, %v13096_v14  ;;  %v1886_v61 = vmul.f32 %v13126_v30, %v13097_v53  ;;  %v13146_v14 = vld [vmem:[#allocation12_spill] sm:$0xff] }
 0x130   : > { %v3739_v35 = vsel %vm3527_vm7, %v3699_v23, 0.0  ;;  %13127 = vst [vmem:[#allocation79_spill] sm:$0xff] %v7283_v10  ;;  %v7289_v23 = vadd.f32 %v1611_v7, %v1578_v29  ;;  %v1220_v38 = vadd.f32 %v1188_v15, %v1155_v63  ;;  %v2127_v28 = vmul.f32 %v13126_v30, %v13098_v22 }
 0x131   : > { %3740 = vadd.xlane.f32.xlu2 %v3739_v35  ;;  %v3552_v35 = vsel %vm3527_vm7, %v7283_v10, 0.0  ;;  %v12232_v7 = vrot.slane %v7287_v12, 1  ;;  %v7303_v52 = vadd.f32 %v1885_v2, %v1852_v24  ;;  %v2128_v59 = vmul.f32 %v7266_v37, %v13098_v22  ;;  %v7435_v22 = vld [vmem:[%s5644_s26 + $0xf8] sm:$0xff] }
 0x132   : > { %3553 = vadd.xlane.f32.xlu0 %v3552_v35  ;;  %v12233_v0 = vrot.slane %v7289_v23, 1  ;;  %v1285_v43 = vadd.f32 %v1253_v27, %v1220_v38  ;;  %v7307_v29 = vadd.f32 %v1886_v61, %v1853_v34  ;;  %v2160_v15 = vmul.f32 %v7266_v37, %v13101_v60  ;;  %13138 = vst [vmem:[#allocation88_spill] sm:$0xff] %v7435_v22 }
 0x133   : > { %v2161_v63 = vmul.f32 %v13126_v30, %v13101_v60  ;;  %v2402_v24 = vmul.f32 %v13126_v30, %v13102_v48  ;;  %v2403_v34 = vmul.f32 %v7266_v37, %v13102_v48  ;;  %v2435_v60 = vmul.f32 %v7266_v37, %v13105_v55 }
 0x134   : > { %v1798_v35 = vsel %vm1696_vm0, %v12233_v0, %v12232_v7  ;;  %v1350_v27 = vadd.f32 %v1318_v57, %v1285_v43  ;;  %v12236_v38 = vrot.slane %v7307_v29, 2  ;;  %v7324_v61 = vadd.f32 %v2160_v15, %v2127_v28 }
 0x135   : > { %v7326_v10 = vadd.f32 %v2161_v63, %v2128_v59  ;;  %v2436_v7 = vmul.f32 %v13126_v30, %v13105_v55  ;;  %v2677_v0 = vmul.f32 %v13126_v30, %v13111_v17  ;;  %v2678_v2 = vmul.f32 %v7266_v37, %v13111_v17 }
 0x136   : > { %v1415_v48 = vadd.f32 %v1383_v20, %v1350_v27  ;;  %v13128_v57 = vrot.slane %v7303_v52, 2  ;;  %v12238_v59 = vrot.slane %v7324_v61, 3  ;;  %v7343_v15 = vadd.f32 %v2435_v60, %v2402_v24 }
 0x137   : > { %v12239_v43 = vrot.slane %v7326_v10, 3  ;;  %v7345_v63 = vadd.f32 %v2436_v7, %v2403_v34  ;;  %v2710_v55 = vmul.f32 %v7266_v37, %v13113_v42  ;;  %v2711_v20 = vmul.f32 %v13126_v30, %v13113_v42 }
 0x138   : > { %v2073_v28 = vsel %vm1971_vm1, %v12236_v38, %v13128_v57  ;;  %v1545_v27 = vadd.f32 %v1513_v36, %v1415_v48  ;;  %v2952_v38 = vmul.f32 %v13126_v30, %v13114_v40  ;;  %v2953_v60 = vmul.f32 %v7266_v37, %v13114_v40 }
 0x139   : > { %v2348_v57 = vsel %vm2246_vm2, %v12239_v43, %v12238_v59  ;;  %v12242_v7 = vrot.slane %v7343_v15, 4  ;;  %v12243_v24 = vrot.slane %v7345_v63, 4  ;;  %v7362_v34 = vadd.f32 %v2710_v55, %v2677_v0 }
 0x13a   : > { %v7364_v42 = vadd.f32 %v2711_v20, %v2678_v2  ;;  %v1820_v48 = vadd.f32 %v1798_v35, %v1545_v27  ;;  %v2985_v36 = vmul.f32 %v7266_v37, %v13116_v19  ;;  %v2986_v59 = vmul.f32 %v13126_v30, %v13116_v19 }
 0x13b   : > { %v3227_v43 = vmul.f32 %v13126_v30, %v13119_v16  ;;  %v2623_v55 = vsel %vm2521_vm3, %v12243_v24, %v12242_v7  ;;  %v12245_v0 = vrot.slane %v7362_v34, 5  ;;  %v3228_v35 = vmul.f32 %v7266_v37, %v13119_v16 }
 0x13c   : > { %v12246_v2 = vrot.slane %v7364_v42, 5  ;;  %v2095_v20 = vadd.f32 %v2073_v28, %v1820_v48  ;;  %v7381_v27 = vadd.f32 %v2985_v36, %v2952_v38  ;;  %v7383_v19 = vadd.f32 %v2986_v59, %v2953_v60  ;;  %v7397_v38 = vld [vmem:[%s5644_s26 + $0xb8] sm:$0xff] }
 0x13d   : > { %v3260_v40 = vmul.f32 %v7266_v37, %v13120_v33  ;;  %v3261_v24 = vmul.f32 %v13126_v30, %v13120_v33  ;;  %v828_v28 = vadd.f32 %v7064_v11, %v7060_v32  ;;  %13131 = vst [vmem:[#allocation83_spill] sm:$0xff] %v7397_v38  ;;  %v861_v59 = vmul.f32 %v7397_v38, %v5697_v21  ;;  %v7408_v33 = vld [vmem:[%s5644_s26 + $0xc8] sm:$0xff]  ;;  %v7413_v11 = vld [vmem:[%s5644_s26 + $0xd8] sm:$0xff] }
 0x13e   : > { %13129 = vst [vmem:[#allocation81_spill] sm:$0xff] %v7381_v27  ;;  %v2898_v7 = vsel %vm2796_vm4, %v12246_v2, %v12245_v0  ;;  %v2370_v60 = vadd.f32 %v2348_v57, %v2095_v20  ;;  %v12250_v36 = vrot.slane %v7383_v19, 6  ;;  %v926_v32 = vmul.f32 %v7408_v33, %v12988_v62 }
 0x13f   : > { %13130 = vst [vmem:[#allocation82_spill] sm:$0xff] %v7383_v19  ;;  %v7403_v16 = vadd.f32 %v3260_v40, %v3227_v43  ;;  %v7405_v0 = vadd.f32 %v3261_v24, %v3228_v35  ;;  %v893_v2 = vadd.f32 %v861_v59, %v828_v28  ;;  %v991_v57 = vmul.f32 %v7413_v11, %v5709_v25  ;;  %v7425_v28 = vld [vmem:[%s5644_s26 + $0xe8] sm:$0xff] }
 0x140   : > { %13134 = vst [vmem:[#allocation85_spill] sm:$0xff] %v7408_v33  ;;  %v2645_v20 = vadd.f32 %v2623_v55, %v2370_v60  ;;  %v13136_v40 = vrot.slane %v7381_v27, 6  ;;  %v1056_v59 = vmul.f32 %v7425_v28, %v12994_v51  ;;  %v13159_v33 = vld [vmem:[#allocation59_spill] sm:$0xff]  ;;  %v13162_v27 = vld [vmem:[#allocation14_spill] sm:$0xff] }
 0x141   : > { %13132 = vst [vmem:[#allocation84_spill] sm:$0xff] %v7403_v16  ;;  %v12253_v48 = vrot.slane %v7403_v16, 7  ;;  %v12254_v24 = vrot.slane %v7405_v0, 7  ;;  %v958_v35 = vadd.f32 %v926_v32, %v893_v2  ;;  %v1251_v16 = vmul.f32 %v6981_v3, %v13005_v56  ;;  %v13147_v3 = vld [vmem:[#allocation75_spill] sm:$0xff]  ;;  %v13166_v19 = vld [vmem:[#allocation18_spill] sm:$0xff] }
 0x142   : > { %13133 = vst [vmem:[#allocation44_spill] sm:$0xff] %v7405_v0  ;;  %v3173_v43 = vsel %vm12758_vm5, %v12250_v36, %v13136_v40  ;;  %v2920_v17 = vadd.f32 %v2898_v7, %v2645_v20  ;;  %v1121_v40 = vmul.f32 %v7435_v22, %v12998_v50  ;;  %v1186_v7 = vmul.f32 %v6970_v46, %v13000_v54 }
 0x143   : > { %13135 = vst [vmem:[#allocation86_spill] sm:$0xff] %v7413_v11  ;;  %v3448_v55 = vsel %vm3346_vm6, %v12254_v24, %v12253_v48  ;;  %v1023_v60 = vadd.f32 %v991_v57, %v958_v35  ;;  %v1316_v57 = vmul.f32 %v6990_v41, %v12838_v47  ;;  %v1381_v35 = vmul.f32 %v7252_v44, %v12842_v9  ;;  %v13139_v48 = vld [vmem:[#allocation65_spill] sm:$0xff]  ;;  %v13144_v44 = vld [vmem:[#allocation10_spill] sm:$0xff] }
 0x144   : > { %13137 = vst [vmem:[#allocation87_spill] sm:$0xff] %v7425_v28  ;;  %v3195_v2 = vadd.f32 %v3173_v43, %v2920_v17  ;;  %v13141_v43 = vld [vmem:[#allocation8_spill] sm:$0xff]  ;;  %v1479_v0 = vmul.f32 %v13091_v49, %v13072_v8  ;;  %v13145_v41 = vld [vmem:[#allocation74_spill] sm:$0xff]  ;;  %v602_v46 = vmul.f32 %v13147_v3, %v13146_v14 }
 0x145   : > { %v1088_v53 = vadd.f32 %v1056_v59, %v1023_v60  ;;  %v13142_v59 = vld [vmem:[#allocation72_spill] sm:$0xff] }
 0x146   : > { %v3470_v20 = vadd.f32 %v3448_v55, %v3195_v2  ;;  %v472_v60 = vmul.f32 %v13142_v59, %v5660_v5  ;;  %v1446_v2 = vmul.f32 %v7076_v26, %v13071_v58  ;;  %v13149_v26 = vrot.slane %v7101_v45, 1  ;;  %v13150_v59 = vld [vmem:[#allocation34_spill] sm:$0xff]  ;;  %v13158_v45 = vld [vmem:[#allocation13_spill] sm:$0xff] }
 0x147   : > { %v1153_v17 = vadd.f32 %v1121_v40, %v1088_v53  ;;  %v13151_v22 = vrot.slane %v13150_v59, 2  ;;  %v13160_v59 = vld [vmem:[#allocation5_spill] sm:$0xff] }
 0x148   : > { %v3545_v36 = vpop.xlane.xlu2 %3544  ;;  %v7456_v55 = vadd.f32 %v7158_v31, %v3470_v20  ;;  %v13148_v31 = vrot.slane %v7093_v1, 1 }
 0x149   : > { %v3636_v32 = vmul.f32 %v13089_v6, %v3545_v36  ;;  %v439_v36 = vmul.f32 %v13126_v30, %v13141_v43  ;;  %v1218_v40 = vadd.f32 %v1186_v7, %v1153_v17  ;;  %v13154_v7 = vld [vmem:[#allocation71_spill] sm:$0xff] }
 0x14a   : > { %13143 = vst [vmem:[#allocation90_spill] sm:$0xff] %v7456_v55  ;;  %v3561_v20 = vsel %vm3527_vm7, %v7456_v55, 0.0  ;;  %v1797_v18 = vsel %vm1696_vm0, %v13149_v26, %v13148_v31  ;;  %v13155_v17 = vrot.slane %v13154_v7, 3  ;;  %v667_v26 = vmul.f32 %v13159_v33, %v13158_v45  ;;  %v13164_v7 = vld [vmem:[#allocation17_spill] sm:$0xff] }
 0x14b   : > { %v7449_v24 = vsub.f32 %v13139_v48, %v3636_v32  ;;  %v537_v48 = vmul.f32 %v13145_v41, %v13144_v44  ;;  %v504_v32 = vadd.f32 %v472_v60, %v439_v36  ;;  %v13152_v41 = vld [vmem:[#allocation37_spill] sm:$0xff]  ;;  %v13156_v36 = vld [vmem:[#allocation43_spill] sm:$0xff]  ;;  %3562 = vadd.xlane.f32.xlu2 %v3561_v20  ;;  %v1283_v1 = vadd.f32 %v1251_v16, %v1218_v40 }
 0x14c   : > { %v13153_v28 = vrot.slane %v13152_v41, 2  ;;  %v13157_v60 = vrot.slane %v13156_v36, 3  ;;  %v1511_v31 = vadd.f32 %v1479_v0, %v1446_v2  ;;  %v13161_v41 = vrot.slane %v13160_v59, 4  ;;  %v13173_v40 = vld [vmem:[#allocation15_spill] sm:$0xff]  ;;  %v13176_v59 = vld [vmem:[#allocation6_spill] sm:$0xff] }
 0x14d   : > { %13140 = vst [vmem:[#allocation89_spill] sm:$0xff] %v7449_v24  ;;  %v3700_v53 = vmul.f32 %v7449_v24, %v7449_v24  ;;  %v569_v11 = vadd.f32 %v537_v48, %v504_v32  ;;  %v13165_v36 = vrot.slane %v13164_v7, 5  ;;  %v13168_v16 = vrot.slane %v7207_v13, 6  ;;  %v13174_v32 = vld [vmem:[#allocation60_spill] sm:$0xff] }
 0x14e   : > { %v2072_v24 = vsel %vm1971_vm1, %v13153_v28, %v13151_v22  ;;  %v2347_v3 = vsel %vm2246_vm2, %v13157_v60, %v13155_v17  ;;  %v13163_v22 = vrot.slane %v13162_v27, 4  ;;  %v13167_v17 = vrot.slane %v13166_v19, 5  ;;  %v13175_v13 = vld [vmem:[#allocation16_spill] sm:$0xff] }
 0x14f   : > { %v3742_v55 = vsel %vm3527_vm7, %v3700_v53, 0.0  ;;  %v13169_v48 = vrot.slane %v7209_v39, 6  ;;  %v1348_v0 = vadd.f32 %v1316_v57, %v1283_v1  ;;  %v13170_v27 = vrot.slane %v7230_v4, 7  ;;  %v13178_v57 = vld [vmem:[#allocation64_spill] sm:$0xff]  ;;  %v13179_v1 = vld [vmem:[#allocation51_spill] sm:$0xff] }
 0x150   : > { %3743 = vadd.xlane.f32.xlu0 %v3742_v55  ;;  %v2622_v28 = vsel %vm2521_vm3, %v13163_v22, %v13161_v41  ;;  %v7498_v20 = vsel %vm2796_vm4, %v13167_v17, %v13165_v36  ;;  %v13171_v55 = vld [vmem:[#allocation20_spill] sm:$0xff]  ;;  %v634_v19 = vadd.f32 %v602_v46, %v569_v11  ;;  %v732_v60 = vmul.f32 %v13174_v32, %v13173_v40  ;;  %v13177_v41 = vld [vmem:[#allocation7_spill] sm:$0xff]  ;;  %v13180_v46 = vld [vmem:[#allocation62_spill] sm:$0xff] }
 0x151   : > { %v7505_v33 = vsel %vm12758_vm5, %v13169_v48, %v13168_v16  ;;  %v13172_v2 = vrot.slane %v13171_v55, 7  ;;  %v797_v39 = vmul.f32 %v13176_v59, %v13175_v13  ;;  %v862_v22 = vmul.f32 %v13177_v41, %v5697_v21  ;;  %v13181_v16 = vld [vmem:[#allocation24_spill] sm:$0xff]  ;;  %v7537_v59 = vld [vmem:[%s5644_s26 + $0x68] sm:$0xff] }
 0x152   : > { %v927_v4 = vmul.f32 %v13178_v57, %v12988_v62  ;;  %v992_v7 = vmul.f32 %v13179_v1, %v5709_v25  ;;  %v1413_v36 = vadd.f32 %v1381_v35, %v1348_v0  ;;  %v699_v17 = vadd.f32 %v667_v26, %v634_v19  ;;  %13184 = vst [vmem:[#allocation67_spill] sm:$0xff] %v7537_v59  ;;  %v7542_v26 = vld [vmem:[%s5644_s26 + $0x78] sm:$0xff]  ;;  %v7547_v1 = vld [vmem:[%s5644_s26 + $0x30] sm:$0xff] }
 0x153   : > { %v7512_v53 = vsel %vm3346_vm6, %v13172_v2, %v13170_v27  ;;  %v1057_v11 = vmul.f32 %v13180_v46, %v12994_v51  ;;  %v1122_v48 = vmul.f32 %v13181_v16, %v12998_v50  ;;  %v13182_v27 = vld [vmem:[#allocation63_spill] sm:$0xff]  ;;  %v13183_v2 = vld [vmem:[#allocation57_spill] sm:$0xff]  ;;  %v442_v35 = vmul.f32 %v7537_v59, %v13141_v43  ;;  %13185 = vst [vmem:[#allocation69_spill] sm:$0xff] %v7542_v26 }
 0x154   : > { %v7530_v55 = vmul.f32 %v13182_v27, %v13000_v54  ;;  %v7534_v32 = vmul.f32 %v13183_v2, %v13005_v56  ;;  %v475_v0 = vmul.f32 %v7542_v26, %v5660_v5  ;;  %v1543_v41 = vadd.f32 %v1511_v31, %v1413_v36  ;;  %13186 = vst [vmem:[#allocation45_spill] sm:$0xff] %v7547_v1  ;;  %v7554_v27 = vld [vmem:[%s5644_s26 + $0x88] sm:$0xff] }
 0x155   : > { %v3548_v19 = vpop.xlane.xlu2 %3547  ;;  %v764_v57 = vadd.f32 %v732_v60, %v699_v17  ;;  %v7551_v46 = vmul.f32 %v7547_v1, %v12838_v47  ;;  %13187 = vst [vmem:[#allocation47_spill] sm:$0xff] %v7554_v27  ;;  %v540_v2 = vmul.f32 %v7554_v27, %v13144_v44  ;;  %v7561_v26 = vmul.f32 %v13091_v49, %v12842_v9  ;;  %v7564_v60 = vld [vmem:[%s5644_s26 + $0x98] sm:$0xff]  ;;  %v13189_v44 = vld [vmem:[#allocation66_spill] sm:$0xff] }
 0x156   : > { %v3637_v16 = vmul.f32 %v13089_v6, %v3548_v19  ;;  %v507_v31 = vadd.f32 %v475_v0, %v442_v35  ;;  %13188 = vst [vmem:[#allocation48_spill] sm:$0xff] %v7564_v60  ;;  %v605_v36 = vmul.f32 %v7564_v60, %v13146_v14  ;;  %v1818_v17 = vadd.f32 %v1797_v18, %v1543_v41  ;;  %v7583_v60 = vld [vmem:[%s5644_s26 + $0xa8] sm:$0xff] }
 0x157   : > { %v829_v1 = vadd.f32 %v797_v39, %v764_v57  ;;  %v1447_v5 = vmul.f32 %v13126_v30, %v13071_v58  ;;  %v1480_v27 = vmul.f32 %v7266_v37, %v13072_v8  ;;  %v13191_v49 = vrot.slane %v7289_v23, 1  ;;  %13193 = vst [vmem:[#allocation65_spill] sm:$0xff] %v7583_v60 }
 0x158   : > { %v7573_v19 = vsub.f32 %v13189_v44, %v3637_v16  ;;  %v13192_v35 = vrot.slane %v7287_v12, 1  ;;  %v572_v6 = vadd.f32 %v540_v2, %v507_v31  ;;  %v670_v18 = vmul.f32 %v7583_v60, %v13158_v45 }
 0x159   : > { %v2093_v30 = vadd.f32 %v2072_v24, %v1818_v17  ;;  %v894_v39 = vadd.f32 %v862_v22, %v829_v1  ;;  %v13194_v41 = vrot.slane %v7307_v29, 2  ;;  %v13195_v44 = vrot.slane %v7303_v52, 2 }
 0x15a   : > { %13190 = vst [vmem:[#allocation70_spill] sm:$0xff] %v7573_v19  ;;  %v7580_v0 = vsel %vm1696_vm0, %v13192_v35, %v13191_v49  ;;  %v13196_v12 = vrot.slane %v7326_v10, 3  ;;  %v13197_v23 = vrot.slane %v7324_v61, 3  ;;  %v3701_v2 = vmul.f32 %v7573_v19, %v7573_v19 }
 0x15b   : > { %v7592_v16 = vsel %vm1971_vm1, %v13195_v44, %v13194_v41  ;;  %v13198_v24 = vrot.slane %v7345_v63, 4  ;;  %v13199_v22 = vrot.slane %v7343_v15, 4  ;;  %v637_v52 = vadd.f32 %v605_v36, %v572_v6  ;;  %v13202_v63 = vld [vmem:[#allocation82_spill] sm:$0xff]  ;;  %v13204_v44 = vld [vmem:[#allocation81_spill] sm:$0xff] }
 0x15c   : > { %v7599_v57 = vsel %vm2246_vm2, %v13197_v23, %v13196_v12  ;;  %v735_v1 = vmul.f32 %v7397_v38, %v13173_v40  ;;  %v2368_v10 = vadd.f32 %v2347_v3, %v2093_v30  ;;  %v959_v31 = vadd.f32 %v927_v4, %v894_v39  ;;  %v13208_v39 = vld [vmem:[#allocation87_spill] sm:$0xff]  ;;  %v13220_v38 = vld [vmem:[#allocation22_spill] sm:$0xff] }
 0x15d   : > { %v7608_v29 = vsel %vm2521_vm3, %v13199_v22, %v13198_v24  ;;  %v7612_v61 = vadd.f32 %v1480_v27, %v1447_v5  ;;  %v13200_v17 = vrot.slane %v7364_v42, 5  ;;  %v13201_v49 = vrot.slane %v7362_v34, 5  ;;  %v13206_v5 = vld [vmem:[#allocation85_spill] sm:$0xff]  ;;  %v13207_v34 = vld [vmem:[#allocation86_spill] sm:$0xff]  ;;  %v13210_v22 = vld [vmem:[#allocation31_spill] sm:$0xff] }
 0x15e   : > { %v3745_v15 = vsel %vm3527_vm7, %v3701_v2, 0.0  ;;  %v13203_v41 = vrot.slane %v13202_v63, 6  ;;  %v13205_v6 = vrot.slane %v13204_v44, 6  ;;  %v702_v3 = vadd.f32 %v670_v18, %v637_v52  ;;  %v13209_v2 = vld [vmem:[#allocation88_spill] sm:$0xff] }
 0x15f   : > { %v7619_v35 = vsel %vm2796_vm4, %v13201_v49, %v13200_v17  ;;  %v800_v4 = vmul.f32 %v13206_v5, %v13175_v13  ;;  %v2643_v27 = vadd.f32 %v2622_v28, %v2368_v10  ;;  %3746 = vadd.xlane.f32.xlu0 %v3745_v15  ;;  %v1024_v42 = vadd.f32 %v992_v7, %v959_v31  ;;  %v13211_v17 = vld [vmem:[#allocation72_spill] sm:$0xff] }
 0x160   : > { %v7627_v36 = vsel %vm12758_vm5, %v13205_v6, %v13203_v41  ;;  %v865_v30 = vmul.f32 %v13207_v34, %v5697_v21  ;;  %v930_v12 = vmul.f32 %v13208_v39, %v12988_v62  ;;  %v767_v23 = vadd.f32 %v735_v1, %v702_v3  ;;  %v13212_v7 = vld [vmem:[#allocation32_spill] sm:$0xff]  ;;  %v13213_v1 = vld [vmem:[#allocation78_spill] sm:$0xff] }
 0x161   : > { %v995_v24 = vmul.f32 %v13209_v2, %v5709_v25  ;;  %v1579_v49 = vmul.f32 %v13211_v17, %v13210_v22  ;;  %v1580_v18 = vmul.f32 %v7537_v59, %v13210_v22  ;;  %v2918_v28 = vadd.f32 %v7498_v20, %v2643_v27  ;;  %v13214_v41 = vld [vmem:[#allocation80_spill] sm:$0xff] }
 0x162   : > { %v1089_v52 = vadd.f32 %v1057_v11, %v1024_v42  ;;  %v1612_v10 = vmul.f32 %v7537_v59, %v13212_v7  ;;  %v1613_v31 = vmul.f32 %v13211_v17, %v13212_v7  ;;  %v832_v15 = vadd.f32 %v800_v4, %v767_v23  ;;  %v13215_v6 = vld [vmem:[#allocation36_spill] sm:$0xff]  ;;  %v13217_v4 = vld [vmem:[#allocation21_spill] sm:$0xff] }
 0x163   : > { %v1060_v63 = vmul.f32 %v13213_v1, %v12994_v51  ;;  %v1125_v44 = vmul.f32 %v13214_v41, %v12998_v50  ;;  %v1854_v3 = vmul.f32 %v13211_v17, %v13215_v6  ;;  %v3193_v19 = vadd.f32 %v7505_v33, %v2918_v28  ;;  %v13216_v27 = vld [vmem:[#allocation40_spill] sm:$0xff]  ;;  %v13218_v41 = vld [vmem:[#allocation41_spill] sm:$0xff] }
 0x164   : > { %v1154_v20 = vadd.f32 %v1122_v48, %v1089_v52  ;;  %v1855_v11 = vmul.f32 %v7537_v59, %v13215_v6  ;;  %v1887_v42 = vmul.f32 %v7537_v59, %v13216_v27  ;;  %v897_v2 = vadd.f32 %v865_v30, %v832_v15  ;;  %v13219_v15 = vld [vmem:[#allocation42_spill] sm:$0xff] }
 0x165   : > { %v1190_v23 = vmul.f32 %v13217_v4, %v13000_v54  ;;  %v1888_v1 = vmul.f32 %v13211_v17, %v13216_v27  ;;  %v2129_v39 = vmul.f32 %v13211_v17, %v13218_v41  ;;  %v3468_v34 = vadd.f32 %v7512_v53, %v3193_v19 }
 0x166   : > { %v1219_v33 = vadd.f32 %v7530_v55, %v1154_v20  ;;  %v7665_v48 = vadd.f32 %v1612_v10, %v1579_v49  ;;  %v7667_v28 = vadd.f32 %v1613_v31, %v1580_v18  ;;  %v962_v52 = vadd.f32 %v930_v12, %v897_v2  ;;  %v13222_v55 = vld [vmem:[#allocation33_spill] sm:$0xff] }
 0x167   : > { %v7669_v5 = vadd.f32 %v1887_v42, %v1854_v3  ;;  %v2130_v30 = vmul.f32 %v7537_v59, %v13218_v41  ;;  %v2162_v4 = vmul.f32 %v7537_v59, %v13219_v15  ;;  %v7676_v60 = vadd.f32 %v13220_v38, %v3468_v34  ;;  %v13244_v41 = vld [vmem:[#allocation10_spill] sm:$0xff] }
 0x168   : > { %v1284_v53 = vadd.f32 %v7534_v32, %v1219_v33  ;;  %v1255_v19 = vmul.f32 %v13222_v55, %v13005_v56  ;;  %v7681_v49 = vadd.f32 %v1888_v1, %v1855_v11  ;;  %v1027_v18 = vadd.f32 %v995_v24, %v962_v52  ;;  %v13223_v33 = vld [vmem:[#allocation49_spill] sm:$0xff]  ;;  %v13227_v11 = vld [vmem:[#allocation44_spill] sm:$0xff] }
 0x169   : > { %13221 = vst [vmem:[#allocation34_spill] sm:$0xff] %v7676_v60  ;;  %v1450_v12 = vmul.f32 %v7537_v59, %v13071_v58  ;;  %v2163_v2 = vmul.f32 %v13211_v17, %v13219_v15  ;;  %v7687_v10 = vadd.f32 %v2162_v4, %v2129_v39  ;;  %v3555_v34 = vsel %vm3527_vm7, %v7676_v60, 0.0  ;;  %v13231_v60 = vld [vmem:[#allocation26_spill] sm:$0xff] }
 0x16a   : > { %v1349_v31 = vadd.f32 %v7551_v46, %v1284_v53  ;;  %v1483_v32 = vmul.f32 %v13211_v17, %v13072_v8  ;;  %3556 = vadd.xlane.f32.xlu1 %v3555_v34  ;;  %v1092_v24 = vadd.f32 %v1060_v63, %v1027_v18  ;;  %v2404_v46 = vmul.f32 %v13211_v17, %v13223_v33  ;;  %v13224_v63 = vld [vmem:[#allocation50_spill] sm:$0xff] }
 0x16b   : > { %v7697_v42 = vadd.f32 %v2163_v2, %v2130_v30  ;;  %v2405_v52 = vmul.f32 %v7537_v59, %v13223_v33  ;;  %v2437_v55 = vmul.f32 %v7537_v59, %v13224_v63  ;;  %v2438_v30 = vmul.f32 %v13211_v17, %v13224_v63  ;;  %v13225_v2 = vld [vmem:[#allocation52_spill] sm:$0xff] }
 0x16c   : > { %v1414_v39 = vadd.f32 %v7561_v26, %v1349_v31  ;;  %v1157_v4 = vadd.f32 %v1125_v44, %v1092_v24  ;;  %v2679_v34 = vmul.f32 %v13211_v17, %v13225_v2  ;;  %v13226_v31 = vld [vmem:[#allocation53_spill] sm:$0xff]  ;;  %v13228_v44 = vrot.slane %v13227_v11, 7  ;;  %v13229_v24 = vld [vmem:[#allocation84_spill] sm:$0xff] }
 0x16d   : > { %v2712_v1 = vmul.f32 %v7537_v59, %v13226_v31  ;;  %v13230_v53 = vrot.slane %v13229_v24, 7  ;;  %v1320_v63 = vmul.f32 %v13231_v60, %v12838_v47  ;;  %v1515_v26 = vadd.f32 %v1483_v32, %v1450_v12 }
 0x16e   : > { %v1544_v18 = vadd.f32 %v7612_v61, %v1414_v39  ;;  %v1222_v3 = vadd.f32 %v1190_v23, %v1157_v4  ;;  %v1385_v61 = vmul.f32 %v7266_v37, %v12842_v9  ;;  %v13232_v33 = vrot.slane %v7665_v48, 1 }
 0x16f   : > { %v3364_v20 = vsel %vm3346_vm6, %v13230_v53, %v13228_v44  ;;  %v13233_v15 = vrot.slane %v7667_v28, 1  ;;  %v13234_v24 = vrot.slane %v7669_v5, 2  ;;  %v13235_v53 = vrot.slane %v7681_v49, 2 }
 0x170   : > { %v1819_v39 = vadd.f32 %v7580_v0, %v1544_v18  ;;  %v1287_v4 = vadd.f32 %v1255_v19, %v1222_v3  ;;  %v7736_v60 = vadd.f32 %v2437_v55, %v2404_v46  ;;  %v7738_v44 = vadd.f32 %v2438_v30, %v2405_v52  ;;  %v13238_v3 = vld [vmem:[#allocation54_spill] sm:$0xff]  ;;  %v13239_v55 = vld [vmem:[#allocation55_spill] sm:$0xff] }
 0x171   : > { %v1799_v11 = vsel %vm1696_vm0, %v13233_v15, %v13232_v33  ;;  %v2074_v23 = vsel %vm1971_vm1, %v13235_v53, %v13234_v24  ;;  %v2680_v37 = vmul.f32 %v7537_v59, %v13225_v2  ;;  %v13236_v12 = vrot.slane %v7687_v10, 3  ;;  %v13240_v24 = vld [vmem:[#allocation56_spill] sm:$0xff] }
 0x172   : > { %v2094_v0 = vadd.f32 %v7592_v16, %v1819_v39  ;;  %v13237_v15 = vrot.slane %v7697_v42, 3  ;;  %v2713_v33 = vmul.f32 %v13211_v17, %v13226_v31  ;;  %v7750_v18 = vadd.f32 %v2712_v1, %v2679_v34  ;;  %v13241_v34 = vld [vmem:[#allocation58_spill] sm:$0xff] }
 0x173   : > { %v1352_v19 = vadd.f32 %v1320_v63, %v1287_v4  ;;  %v2954_v46 = vmul.f32 %v13211_v17, %v13238_v3  ;;  %v2955_v52 = vmul.f32 %v7537_v59, %v13238_v3  ;;  %v2987_v16 = vmul.f32 %v7537_v59, %v13239_v55  ;;  %v13242_v3 = vld [vmem:[#allocation9_spill] sm:$0xff]  ;;  %v13243_v31 = vld [vmem:[#allocation74_spill] sm:$0xff] }
 0x174   : > { %v2349_v32 = vsel %vm2246_vm2, %v13237_v15, %v13236_v12  ;;  %v2369_v30 = vadd.f32 %v7599_v57, %v2094_v0  ;;  %v2988_v39 = vmul.f32 %v13211_v17, %v13239_v55  ;;  %v3229_v53 = vmul.f32 %v13211_v17, %v13240_v24 }
 0x175   : > { %v3230_v1 = vmul.f32 %v7537_v59, %v13240_v24  ;;  %v1417_v63 = vadd.f32 %v1385_v61, %v1352_v19  ;;  %v3262_v4 = vmul.f32 %v7537_v59, %v13241_v34  ;;  %v3263_v12 = vmul.f32 %v13211_v17, %v13241_v34  ;;  %v13245_v34 = vld [vmem:[#allocation75_spill] sm:$0xff] }
 0x176   : > { %v441_v57 = vmul.f32 %v13211_v17, %v13141_v43  ;;  %v2644_v0 = vadd.f32 %v7608_v29, %v2369_v30  ;;  %v12310_v15 = vrot.slane %v7736_v60, 4  ;;  %v7773_v55 = vadd.f32 %v2713_v33, %v2680_v37  ;;  %v7786_v30 = vld [vmem:[%s5644_s26 + $0x90] sm:$0xff] }
 0x177   : > { %v474_v24 = vmul.f32 %v13243_v31, %v13242_v3  ;;  %v1547_v2 = vadd.f32 %v1515_v26, %v1417_v63  ;;  %v12311_v61 = vrot.slane %v7738_v44, 4  ;;  %v7778_v19 = vadd.f32 %v2987_v16, %v2954_v46  ;;  %13246 = vst [vmem:[#allocation37_spill] sm:$0xff] %v7786_v30 }
 0x178   : > { %v539_v27 = vmul.f32 %v13245_v34, %v13244_v41  ;;  %v2919_v17 = vadd.f32 %v7619_v35, %v2644_v0  ;;  %v7783_v6 = vadd.f32 %v2988_v39, %v2955_v52  ;;  %v604_v37 = vmul.f32 %v7786_v30, %v13146_v14  ;;  %v7798_v39 = vld [vmem:[%s5644_s26 + $0xa0] sm:$0xff] }
 0x179   : > { %v506_v29 = vadd.f32 %v474_v24, %v441_v57  ;;  %v1822_v26 = vadd.f32 %v1799_v11, %v1547_v2  ;;  %v12304_v33 = vrot.slane %v7750_v18, 5  ;;  %v7791_v63 = vadd.f32 %v3262_v4, %v3229_v53  ;;  %13247 = vst [vmem:[#allocation71_spill] sm:$0xff] %v7798_v39 }
 0x17a   : > { %v7793_v46 = vadd.f32 %v3263_v12, %v3230_v1  ;;  %v3194_v16 = vadd.f32 %v7627_v36, %v2919_v17  ;;  %v12309_v35 = vrot.slane %v7773_v55, 5  ;;  %v669_v24 = vmul.f32 %v7798_v39, %v13158_v45  ;;  %v7810_v1 = vld [vmem:[%s5644_s26 + $0xb0] sm:$0xff] }
 0x17b   : > { %v571_v52 = vadd.f32 %v539_v27, %v506_v29  ;;  %v2097_v57 = vadd.f32 %v2074_v23, %v1822_v26  ;;  %v2624_v2 = vsel %vm2521_vm3, %v12311_v61, %v12310_v15  ;;  %v12305_v11 = vrot.slane %v7778_v19, 6  ;;  %13248 = vst [vmem:[#allocation43_spill] sm:$0xff] %v7810_v1  ;;  %v7872_v15 = vld [vmem:[%s5644_s26 + $0x10] sm:$0xff] }
 0x17c   : > { %v3469_v53 = vadd.f32 %v3364_v20, %v3194_v16  ;;  %v12306_v36 = vrot.slane %v7783_v6, 6  ;;  %v734_v4 = vmul.f32 %v7810_v1, %v13173_v40  ;;  %v12307_v23 = vrot.slane %v7791_v63, 7 }
 0x17d   : > { %v636_v27 = vadd.f32 %v604_v37, %v571_v52  ;;  %v2372_v12 = vadd.f32 %v2349_v32, %v2097_v57  ;;  %v12308_v0 = vrot.slane %v7793_v46, 7  ;;  %v2899_v20 = vsel %vm2796_vm4, %v12309_v35, %v12304_v33  ;;  %v7825_v37 = vld [vmem:[%s5644_s26 + $0xc0] sm:$0xff] }
 0x17e   : > { %v7817_v17 = vadd.f32 %v13220_v38, %v3469_v53  ;;  %13250 = vst [vmem:[#allocation5_spill] sm:$0xff] %v7825_v37  ;;  %v799_v32 = vmul.f32 %v7825_v37, %v13175_v13  ;;  %v3174_v52 = vsel %vm12758_vm5, %v12306_v36, %v12305_v11  ;;  %v7837_v53 = vld [vmem:[%s5644_s26 + $0xd0] sm:$0xff]  ;;  %v7847_v33 = vld [vmem:[%s5644_s26 + $0xe0] sm:$0xff] }
 0x17f   : > { %v701_v29 = vadd.f32 %v669_v24, %v636_v27  ;;  %v2647_v26 = vadd.f32 %v2624_v2, %v2372_v12  ;;  %13251 = vst [vmem:[#allocation14_spill] sm:$0xff] %v7837_v53  ;;  %v864_v24 = vmul.f32 %v7837_v53, %v5697_v21  ;;  %v3449_v2 = vsel %vm3346_vm6, %v12308_v0, %v12307_v23  ;;  %v7858_v36 = vld [vmem:[%s5644_s26 + $0xf0] sm:$0xff] }
 0x180   : > { %13249 = vst [vmem:[#allocation59_spill] sm:$0xff] %v7817_v17  ;;  %v3558_v16 = vsel %vm3527_vm7, %v7817_v17, 0.0  ;;  %v929_v11 = vmul.f32 %v7847_v33, %v12988_v62 }
 0x181   : > { %v766_v57 = vadd.f32 %v734_v4, %v701_v29  ;;  %3559 = vadd.xlane.f32.xlu1 %v3558_v16  ;;  %v2922_v27 = vadd.f32 %v2899_v20, %v2647_v26  ;;  %v443_v4 = vmul.f32 %v13243_v31, %v13141_v43  ;;  %v476_v29 = vmul.f32 %v13245_v34, %v13242_v3  ;;  %v13252_v34 = vld [vmem:[#allocation24_spill] sm:$0xff] }
 0x182   : > { %v541_v26 = vmul.f32 %v7786_v30, %v13244_v41  ;;  %v606_v31 = vmul.f32 %v7798_v39, %v13146_v14  ;;  %v13264_v39 = vrot.slane %v7687_v10, 3 }
 0x183   : > { %v831_v12 = vadd.f32 %v799_v32, %v766_v57  ;;  %v3197_v20 = vadd.f32 %v3174_v52, %v2922_v27  ;;  %v994_v32 = vmul.f32 %v7858_v36, %v5709_v25  ;;  %v508_v57 = vadd.f32 %v476_v29, %v443_v4 }
 0x184   : > { %v1059_v52 = vmul.f32 %v13252_v34, %v12994_v51  ;;  %v1124_v4 = vmul.f32 %v7872_v15, %v12998_v50 }
 0x185   : > { %v896_v16 = vadd.f32 %v864_v24, %v831_v12  ;;  %v3472_v23 = vadd.f32 %v3449_v2, %v3197_v20  ;;  %v573_v27 = vadd.f32 %v541_v26, %v508_v57  ;;  %v671_v24 = vmul.f32 %v7810_v1, %v13158_v45  ;;  %v7881_v20 = vld [vmem:[%s5644_s26 + $0x20] sm:$0xff]  ;;  %v7902_v1 = vld [vmem:[%s5644_s26 + $0x50] sm:$0xff] }
 0x186   : > { %13254 = vst [vmem:[#allocation18_spill] sm:$0xff] %v7881_v20 }
 0x187   : > { %v961_v0 = vadd.f32 %v929_v11, %v896_v16  ;;  %v7869_v12 = vadd.f32 %v13220_v38, %v3472_v23  ;;  %v638_v29 = vadd.f32 %v606_v31, %v573_v27  ;;  %v736_v11 = vmul.f32 %v7825_v37, %v13173_v40  ;;  %v13256_v27 = vld [vmem:[#allocation45_spill] sm:$0xff]  ;;  %13258 = vst [vmem:[#allocation6_spill] sm:$0xff] %v7902_v1 }
 0x188   : > { %v1189_v23 = vmul.f32 %v7881_v20, %v13000_v54  ;;  %v801_v31 = vmul.f32 %v7837_v53, %v13175_v13  ;;  %v1254_v61 = vmul.f32 %v13256_v27, %v13005_v56  ;;  %v13261_v53 = vrot.slane %v7681_v49, 2 }
 0x189   : > { %13253 = vst [vmem:[#allocation17_spill] sm:$0xff] %v7869_v12  ;;  %v1026_v35 = vadd.f32 %v994_v32, %v961_v0  ;;  %v3567_v2 = vsel %vm3527_vm7, %v7869_v12, 0.0  ;;  %v7886_v0 = vld [vmem:[%s5644_s26 + $0x60] sm:$0xff]  ;;  %v1482_v32 = vmul.f32 %v7537_v59, %v13072_v8  ;;  %v703_v57 = vadd.f32 %v671_v24, %v638_v29 }
 0x18a   : > { %13255 = vst [vmem:[#allocation20_spill] sm:$0xff] %v7886_v0  ;;  %v1449_v26 = vmul.f32 %v7886_v0, %v13071_v58  ;;  %3568 = vadd.xlane.f32.xlu0 %v3567_v2  ;;  %v7897_v12 = vld [vmem:[%s5644_s26 + $0x40] sm:$0xff]  ;;  %v866_v24 = vmul.f32 %v7847_v33, %v5697_v21  ;;  %v13259_v29 = vrot.slane %v7667_v28, 1  ;;  %v13260_v2 = vrot.slane %v7665_v48, 1 }
 0x18b   : > { %v1091_v16 = vadd.f32 %v1059_v52, %v1026_v35  ;;  %13257 = vst [vmem:[#allocation60_spill] sm:$0xff] %v7897_v12  ;;  %v1319_v17 = vmul.f32 %v7897_v12, %v12838_v47  ;;  %v1384_v35 = vmul.f32 %v7902_v1, %v12842_v9  ;;  %v768_v52 = vadd.f32 %v736_v11, %v703_v57 }
 0x18c   : > { %v1717_v59 = vsel %vm1696_vm0, %v13260_v2, %v13259_v29  ;;  %v13262_v13 = vrot.slane %v7669_v5, 2  ;;  %v13265_v57 = vrot.slane %v7738_v44, 4  ;;  %v13266_v28 = vrot.slane %v7736_v60, 4  ;;  %v7942_v60 = vld [vmem:[%s5644_s26 + $0x70] sm:$0xff] }
 0x18d   : > { %v1156_v37 = vadd.f32 %v1124_v4, %v1091_v16  ;;  %v13263_v16 = vrot.slane %v7697_v42, 3  ;;  %v1514_v2 = vadd.f32 %v1482_v32, %v1449_v26  ;;  %v833_v49 = vadd.f32 %v801_v31, %v768_v52 }
 0x18e   : > { %v1992_v4 = vsel %vm1971_vm1, %v13262_v13, %v13261_v53  ;;  %v7928_v48 = vsel %vm2521_vm3, %v13266_v28, %v13265_v57  ;;  %v931_v5 = vmul.f32 %v7858_v36, %v12988_v62  ;;  %v13267_v13 = vrot.slane %v7773_v55, 5 }
 0x18f   : > { %v2267_v11 = vsel %vm2246_vm2, %v13264_v39, %v13263_v16  ;;  %v1221_v29 = vadd.f32 %v1189_v23, %v1156_v37  ;;  %v13268_v42 = vrot.slane %v7750_v18, 5  ;;  %v996_v44 = vmul.f32 %v13252_v34, %v5709_v25  ;;  %v13269_v37 = vld [vmem:[#allocation69_spill] sm:$0xff] }
 0x190   : > { %v1581_v39 = vmul.f32 %v7942_v60, %v13210_v22  ;;  %v1614_v53 = vmul.f32 %v13269_v37, %v13212_v7  ;;  %v898_v26 = vadd.f32 %v866_v24, %v833_v49  ;;  %v1582_v55 = vmul.f32 %v13269_v37, %v13210_v22 }
 0x191   : > { %v7937_v10 = vsel %vm2796_vm4, %v13268_v42, %v13267_v13  ;;  %v1286_v23 = vadd.f32 %v1254_v61, %v1221_v29  ;;  %v1615_v18 = vmul.f32 %v7942_v60, %v13212_v7  ;;  %v13270_v32 = vrot.slane %v7783_v6, 6  ;;  %v13275_v42 = vld [vmem:[#allocation40_spill] sm:$0xff]  ;;  %v7994_v7 = vpop.xlane.xlu0 %3728 }
 0x192   : > { %v13271_v34 = vrot.slane %v7778_v19, 6  ;;  %v13272_v52 = vrot.slane %v7793_v46, 7  ;;  %v13273_v16 = vrot.slane %v7791_v63, 7  ;;  %v1061_v24 = vmul.f32 %v7872_v15, %v12994_v51  ;;  %v13274_v63 = vld [vmem:[#allocation36_spill] sm:$0xff] }
 0x193   : > { %v1126_v57 = vmul.f32 %v7881_v20, %v12998_v50  ;;  %v1351_v28 = vadd.f32 %v1319_v17, %v1286_v23  ;;  %v963_v6 = vadd.f32 %v931_v5, %v898_v26  ;;  %v1191_v19 = vmul.f32 %v13256_v27, %v13000_v54  ;;  %v13276_v26 = vld [vmem:[#allocation41_spill] sm:$0xff] }
 0x194   : > { %v7957_v31 = vsel %vm12758_vm5, %v13271_v34, %v13270_v32  ;;  %v7964_v61 = vsel %vm3346_vm6, %v13273_v16, %v13272_v52  ;;  %v1256_v29 = vmul.f32 %v7897_v12, %v13005_v56  ;;  %v7974_v46 = vadd.f32 %v1614_v53, %v1581_v39  ;;  %v13277_v52 = vld [vmem:[#allocation42_spill] sm:$0xff] }
 0x195   : > { %v1856_v49 = vmul.f32 %v7942_v60, %v13274_v63  ;;  %v1857_v13 = vmul.f32 %v13269_v37, %v13274_v63  ;;  %v1889_v32 = vmul.f32 %v13269_v37, %v13275_v42  ;;  %v1416_v34 = vadd.f32 %v1384_v35, %v1351_v28 }
 0x196   : > { %v1028_v17 = vadd.f32 %v996_v44, %v963_v6  ;;  %v7982_v5 = vadd.f32 %v1615_v18, %v1582_v55  ;;  %v1890_v23 = vmul.f32 %v7942_v60, %v13275_v42  ;;  %v2131_v39 = vmul.f32 %v7942_v60, %v13276_v26 }
 0x197   : > { %v2132_v53 = vmul.f32 %v13269_v37, %v13276_v26  ;;  %v2164_v16 = vmul.f32 %v13269_v37, %v13277_v52  ;;  %v2165_v63 = vmul.f32 %v7942_v60, %v13277_v52  ;;  %v1546_v35 = vadd.f32 %v1514_v2, %v1416_v34 }
 0x198   : > { %v1093_v44 = vadd.f32 %v1061_v24, %v1028_v17  ;;  %v1321_v55 = vmul.f32 %v7902_v1, %v12838_v47  ;;  %v1386_v18 = vmul.f32 %v7886_v0, %v12842_v9  ;;  %v1451_v28 = vmul.f32 %v7942_v60, %v13071_v58  ;;  %v13280_v0 = vld [vmem:[#allocation49_spill] sm:$0xff] }
 0x199   : > { %v1484_v6 = vmul.f32 %v13269_v37, %v13072_v8  ;;  %v8005_v42 = vadd.f32 %v1889_v32, %v1856_v49  ;;  %v1821_v52 = vadd.f32 %v1717_v59, %v1546_v35  ;;  %v12339_v2 = vrot.slane %v7982_v5, 1  ;;  %v13281_v49 = vld [vmem:[#allocation50_spill] sm:$0xff]  ;;  %v13283_v35 = vld [vmem:[#allocation53_spill] sm:$0xff] }
 0x19a   : > { %v1158_v22 = vadd.f32 %v1126_v57, %v1093_v44  ;;  %v8008_v24 = vadd.f32 %v1890_v23, %v1857_v13  ;;  %v8010_v34 = vadd.f32 %v2164_v16, %v2131_v39  ;;  %v8012_v17 = vadd.f32 %v2165_v63, %v2132_v53  ;;  %v13282_v23 = vld [vmem:[#allocation52_spill] sm:$0xff]  ;;  %v13287_v32 = vld [vmem:[#allocation54_spill] sm:$0xff] }
 0x19b   : > { %v2406_v1 = vmul.f32 %v7942_v60, %v13280_v0  ;;  %v2407_v12 = vmul.f32 %v13269_v37, %v13280_v0  ;;  %v2096_v27 = vadd.f32 %v1992_v4, %v1821_v52  ;;  %v2439_v59 = vmul.f32 %v13269_v37, %v13281_v49 }
 0x19c   : > { %13278 = vst [vmem:[#allocation7_spill] sm:$0xff] %v8010_v34  ;;  %v1223_v26 = vadd.f32 %v1191_v19, %v1158_v22  ;;  %v2440_v57 = vmul.f32 %v7942_v60, %v13281_v49  ;;  %v1516_v13 = vadd.f32 %v1484_v6, %v1451_v28  ;;  %v2681_v63 = vmul.f32 %v7942_v60, %v13282_v23  ;;  %v3551_v6 = vpop.xlane.xlu0 %3550 }
 0x19d   : > { %13279 = vst [vmem:[#allocation64_spill] sm:$0xff] %v8012_v17  ;;  %v2682_v39 = vmul.f32 %v13269_v37, %v13282_v23  ;;  %v2371_v53 = vadd.f32 %v2267_v11, %v2096_v27  ;;  %v2714_v22 = vmul.f32 %v13269_v37, %v13283_v35  ;;  %v2715_v4 = vmul.f32 %v7942_v60, %v13283_v35 }
 0x19e   : > { %v1288_v16 = vadd.f32 %v1256_v29, %v1223_v26  ;;  %v13284_v19 = vrot.slane %v7974_v46, 1  ;;  %v8040_v29 = vadd.f32 %v2439_v59, %v2406_v1  ;;  %v8042_v26 = vadd.f32 %v2440_v57, %v2407_v12  ;;  %v13289_v59 = vld [vmem:[#allocation56_spill] sm:$0xff] }
 0x19f   : > { %v2646_v27 = vadd.f32 %v7928_v48, %v2371_v53  ;;  %v2956_v35 = vmul.f32 %v7942_v60, %v13287_v32  ;;  %v2957_v23 = vmul.f32 %v13269_v37, %v13287_v32  ;;  %v8053_v1 = vadd.f32 %v2714_v22, %v2681_v63  ;;  %v13293_v22 = vld [vmem:[#allocation68_spill] sm:$0xff] }
 0x1a0   : > { %v1720_v52 = vsel %vm1696_vm0, %v13284_v19, %v12339_v2  ;;  %v1353_v11 = vadd.f32 %v1321_v55, %v1288_v16  ;;  %13285 = vst [vmem:[#allocation51_spill] sm:$0xff] %v8040_v29  ;;  %v13288_v19 = vld [vmem:[#allocation55_spill] sm:$0xff]  ;;  %v8055_v12 = vadd.f32 %v2715_v4, %v2682_v39  ;;  %v3231_v57 = vmul.f32 %v7942_v60, %v13289_v59  ;;  %v13290_v16 = vld [vmem:[#allocation58_spill] sm:$0xff] }
 0x1a1   : > { %13286 = vst [vmem:[#allocation62_spill] sm:$0xff] %v8042_v26  ;;  %v2989_v2 = vmul.f32 %v13269_v37, %v13288_v19  ;;  %v2990_v28 = vmul.f32 %v7942_v60, %v13288_v19  ;;  %v2921_v48 = vadd.f32 %v7937_v10, %v2646_v27  ;;  %v3232_v53 = vmul.f32 %v13269_v37, %v13289_v59 }
 0x1a2   : > { %v1418_v55 = vadd.f32 %v1386_v18, %v1353_v11  ;;  %v3264_v44 = vmul.f32 %v13269_v37, %v13290_v16  ;;  %v3265_v19 = vmul.f32 %v7942_v60, %v13290_v16  ;;  %v13291_v18 = vrot.slane %v8008_v24, 2 }
 0x1a3   : > { %v3196_v32 = vadd.f32 %v7957_v31, %v2921_v48  ;;  %v13292_v63 = vrot.slane %v8005_v42, 2  ;;  %v3638_v4 = vmul.f32 %v13293_v22, %v3551_v6  ;;  %v12345_v11 = vrot.slane %v8042_v26, 4  ;;  %v13320_v26 = vld [vmem:[#allocation43_spill] sm:$0xff] }
 0x1a4   : > { %v1548_v10 = vadd.f32 %v1516_v13, %v1418_v55  ;;  %v8074_v59 = vadd.f32 %v2989_v2, %v2956_v35  ;;  %v8076_v49 = vadd.f32 %v2990_v28, %v2957_v23  ;;  %v13294_v13 = vrot.slane %v8012_v17, 3 }
 0x1a5   : > { %v1995_v39 = vsel %vm1971_vm1, %v13292_v63, %v13291_v18  ;;  %v3471_v16 = vadd.f32 %v7964_v61, %v3196_v32  ;;  %v13295_v48 = vrot.slane %v8010_v34, 3  ;;  %v13296_v18 = vld [vmem:[#allocation11_spill] sm:$0xff]  ;;  %v12351_v6 = vrot.slane %v8053_v1, 5 }
 0x1a6   : > { %v1823_v31 = vadd.f32 %v1720_v52, %v1548_v10  ;;  %v8085_v63 = vsub.f32 %v13296_v18, %v3638_v4  ;;  %v12350_v27 = vrot.slane %v8055_v12, 5  ;;  %v8089_v2 = vadd.f32 %v3264_v44, %v3231_v57 }
 0x1a7   : > { %v2270_v55 = vsel %vm2246_vm2, %v13295_v48, %v13294_v13  ;;  %v8091_v23 = vadd.f32 %v3265_v19, %v3232_v53  ;;  %v8094_v61 = vadd.f32 %v13220_v38, %v3471_v16  ;;  %v13299_v52 = vrot.slane %v8040_v29, 4 }
 0x1a8   : > { %13297 = vst [vmem:[#allocation63_spill] sm:$0xff] %v8085_v63  ;;  %v2098_v32 = vadd.f32 %v1995_v39, %v1823_v31  ;;  %v3702_v35 = vmul.f32 %v8085_v63, %v8085_v63  ;;  %v12349_v10 = vrot.slane %v8074_v59, 6  ;;  %v12348_v44 = vrot.slane %v8076_v49, 6  ;;  %v13310_v63 = vld [vmem:[#allocation90_spill] sm:$0xff] }
 0x1a9   : > { %13298 = vst [vmem:[#allocation57_spill] sm:$0xff] %v8094_v61  ;;  %v2545_v28 = vsel %vm2521_vm3, %v13299_v52, %v12345_v11  ;;  %v3564_v19 = vsel %vm3527_vm7, %v8094_v61, 0.0  ;;  %v2820_v38 = vsel %vm2796_vm4, %v12351_v6, %v12350_v27  ;;  %v12347_v53 = vrot.slane %v8089_v2, 7 }
 0x1aa   : > { %v2373_v57 = vadd.f32 %v2270_v55, %v2098_v32  ;;  %3565 = vadd.xlane.f32.xlu2 %v3564_v19  ;;  %v12346_v16 = vrot.slane %v8091_v23, 7  ;;  %v3748_v39 = vsel %vm3527_vm7, %v3702_v35, 0.0  ;;  %v3095_v31 = vsel %vm12758_vm5, %v12349_v10, %v12348_v44  ;;  %v3738_v32 = vpop.xlane.xlu2 %3737  ;;  %v8128_v35 = vld [vmem:[%s11966_s4] ss:$0 sm:$0xff]  ;;  %v13307_v10 = vld [vmem:[#allocation47_spill] sm:$0xff] }
 0x1ab   : > { %3749 = vadd.xlane.f32.xlu1 %v3748_v39  ;;  %13300 = vst [vmem:[#allocation66_spill] sm:$0xff] %v8128_v35  ;;  %v3554_v39 = vpop.xlane.xlu0 %3553  ;;  %v444_v44 = vmul.f32 %v13269_v37, %v13141_v43  ;;  %v545_v29 = vmul.f32 %v13320_v26, %v13244_v41 }
 0x1ac   : > { %v2648_v4 = vadd.f32 %v2545_v28, %v2373_v57  ;;  %v3370_v48 = vsel %vm3346_vm6, %v12347_v53, %v12346_v16  ;;  %v3732_v28 = vpop.xlane.xlu1 %3731  ;;  %v3823_v57 = vmul.f32 %v7994_v7, %v13293_v22  ;;  %v13303_v7 = vld [vmem:[#allocation79_spill] sm:$0xff] }
 0x1ae   : > { %v2923_v13 = vadd.f32 %v2820_v38, %v2648_v4  ;;  %v3826_v38 = vmul.f32 %v3738_v32, %v13293_v22  ;;  %v3824_v4 = vmul.f32 %v3732_v28, %v13293_v22 }
 0x1b0   : > { %v3198_v55 = vadd.f32 %v3095_v31, %v2923_v13  ;;  %v8139_v31 = vadd.f32 1e-06, %v3823_v57  ;;  %v8141_v13 = vadd.f32 1e-06, %v3826_v38  ;;  %v5130_v57 = vld [vmem:[%s11967_s5 + $0x8] sm:$0xff] }
 0x1b1   : > { %4329 = vmatpush.bf16.msra.mxu0 %v5130_v57  ;;  %5140 = vmatpush.bf16.msra.mxu3 %v5130_v57 }
 0x1b2   : > { %v3473_v18 = vadd.f32 %v3370_v48, %v3198_v55  ;;  %13302 = vst [vmem:[#allocation81_spill] sm:$0xff] %v8141_v13  ;;  %v3639_v48 = vmul.f32 %v13293_v22, %v3554_v39  ;;  %v8144_v55 = vadd.f32 1e-06, %v3824_v4  ;;  %5197 = vrsqrt.f32 %v8139_v31 }
 0x1b3   : > { %5199 = vrsqrt.f32 %v8141_v13  ;;  %vm3893_vm9 = vweird.f32 %v8139_v31 }
 0x1b4   : > { %v8131_v52 = vadd.f32 %v8128_v35, %v3473_v18  ;;  %v3741_v18 = vpop.xlane.xlu2 %3740  ;;  %v3735_v11 = vpop.xlane.xlu1 %3734  ;;  %5201 = vrsqrt.f32 %v8144_v55  ;;  %vm3903_vm10 = vweird.f32 %v8144_v55 }
 0x1b5   : > { %v3825_v32 = vmul.f32 %v3735_v11, %v13293_v22  ;;  %v3827_v4 = vmul.f32 %v3741_v18, %v13293_v22  ;;  %v5129_v11 = vld [vmem:[%s11967_s5] sm:$0xff]  ;;  %v477_v18 = vmul.f32 %v13307_v10, %v13242_v3 }
 0x1b6   : > { %13301 = vst [vmem:[#allocation82_spill] sm:$0xff] %v8131_v52  ;;  %v3570_v19 = vsel %vm3527_vm7, %v8131_v52, 0.0  ;;  %4330 = vmatpush.bf16.msra.mxu0 %v5129_v11  ;;  %5141 = vmatpush.bf16.msra.mxu3 %v5129_v11 }
 0x1b7   : > { %3571 = vadd.xlane.f32.xlu0 %v3570_v19  ;;  %v8149_v19 = vsub.f32 %v13303_v7, %v3639_v48  ;;  %v8163_v16 = vadd.f32 1e-06, %v3825_v32  ;;  %v8180_v6 = vadd.f32 1e-06, %v3827_v4  ;;  %v509_v57 = vadd.f32 %v477_v18, %v444_v44  ;;  %v13313_v18 = vld [vmem:[#allocation83_spill] sm:$0xff] }
 0x1b8   : > { %v8158_v38 = vpop.eup %5197  ;;  %v672_v0 = vmul.f32 %v13313_v18, %v13158_v45  ;;  %v8210_v18 = vld [vmem:[%s5644_s26 + $0x80] sm:$0xff] }
 0x1b9   : > { %13304 = vst [vmem:[#allocation72_spill] sm:$0xff] %v8149_v19  ;;  %v3703_v28 = vmul.f32 %v8149_v19, %v8149_v19  ;;  %v8160_v39 = vpop.eup %5199  ;;  %v3888_v32 = vmul.f32 %v8158_v38, %v8139_v31  ;;  %5203 = vrsqrt.f32 %v8163_v16  ;;  %vm3894_vm11 = vweird.f32 %v8158_v38 }
 0x1ba   : > { %13305 = vst [vmem:[#allocation78_spill] sm:$0xff] %v8160_v39  ;;  %v8169_v7 = vpop.eup %5201  ;;  %5205 = vrsqrt.f32 %v8180_v6  ;;  %vm8282_vm13 = vmor %vm3893_vm9, %vm3894_vm11 }
 0x1bb   : > { %13306 = vst [vmem:[#allocation80_spill] sm:$0xff] %v8163_v16  ;;  %v3751_v48 = vsel %vm3527_vm7, %v3703_v28, 0.0  ;;  %v3918_v28 = vmul.f32 %v8160_v39, %v8141_v13  ;;  %v3898_v10 = vmul.f32 %v8169_v7, %v8144_v55  ;;  %v13312_v13 = vld [vmem:[#allocation65_spill] sm:$0xff]  ;;  %v3889_v4 = vmul.f32 %v8158_v38, %v3888_v32 }
 0x1bc   : > { %3752 = vadd.xlane.f32.xlu1 %v3751_v48  ;;  %13308 = vst [vmem:[#allocation21_spill] sm:$0xff] %v8180_v6  ;;  %v13309_v48 = vld [vmem:[#allocation48_spill] sm:$0xff]  ;;  %v13315_v32 = vld [vmem:[#allocation85_spill] sm:$0xff]  ;;  %vm3904_vm12 = vweird.f32 %v8169_v7  ;;  %v1485_v55 = vmul.f32 %v7942_v60, %v13072_v8 }
 0x1bd   : > { %v542_v19 = vmul.f32 %v13309_v48, %v13244_v41  ;;  %v3919_v35 = vmul.f32 %v8160_v39, %v3918_v28  ;;  %v737_v28 = vmul.f32 %v13315_v32, %v13173_v40  ;;  %13317 = vst [vmem:[#allocation44_spill] sm:$0xff] %v8210_v18  ;;  %vm3905_vm14 = vmor %vm3903_vm10, %vm3904_vm12 }
 0x1be   : > { %v3563_v53 = vpop.xlane.xlu2 %3562 }
 0x1bf   : > { %v3642_v27 = vmul.f32 %v13293_v22, %v3563_v53  ;;  %v574_v61 = vadd.f32 %v542_v19, %v509_v57  ;;  %v607_v53 = vmul.f32 %v13312_v13, %v13146_v14  ;;  %v8201_v19 = vpop.eup %5203  ;;  %v447_v57 = vmul.f32 %v7786_v30, %v13141_v43 }
 0x1c0   : > { %13314 = vst [vmem:[#allocation33_spill] sm:$0xff] %v8201_v19  ;;  %v3920_v48 = vmul.f32 0.5, %v3919_v35  ;;  %v3908_v35 = vmul.f32 %v8201_v19, %v8163_v16 }
 0x1c1   : > { %v8188_v52 = vsub.f32 %v13310_v63, %v3642_v27  ;;  %v639_v11 = vadd.f32 %v607_v53, %v574_v61  ;;  %v3899_v27 = vmul.f32 %v8169_v7, %v3898_v10  ;;  %v3890_v53 = vmul.f32 0.5, %v3889_v4  ;;  %v8222_v4 = vpop.eup %5205 }
 0x1c2   : > { %v445_v10 = vmul.f32 %v8210_v18, %v13141_v43  ;;  %13321 = vst [vmem:[#allocation84_spill] sm:$0xff] %v8222_v4 }
 0x1c3   : > { %13311 = vst [vmem:[#allocation22_spill] sm:$0xff] %v8188_v52  ;;  %v3706_v44 = vmul.f32 %v8188_v52, %v8188_v52  ;;  %v704_v13 = vadd.f32 %v672_v0, %v639_v11  ;;  %v13316_v52 = vld [vmem:[#allocation71_spill] sm:$0xff]  ;;  %v13318_v11 = vld [vmem:[#allocation16_spill] sm:$0xff]  ;;  %v3900_v17 = vmul.f32 0.5, %v3899_v27  ;;  %v3744_v43 = vpop.xlane.xlu0 %3743 }
 0x1c4   : > { %v480_v61 = vmul.f32 %v13316_v52, %v13242_v3  ;;  %v543_v16 = vmul.f32 %v13316_v52, %v13244_v41 }
 0x1c5   : > { %v3760_v63 = vsel %vm3527_vm7, %v3706_v44, 0.0  ;;  %v478_v44 = vmul.f32 %v7786_v30, %v13242_v3  ;;  %v769_v0 = vadd.f32 %v737_v28, %v704_v13  ;;  %v13322_v3 = vld [vmem:[#allocation87_spill] sm:$0xff]  ;;  %v3921_v30 = vsub.f32 1.5, %v3920_v48 }
 0x1c6   : > { %3761 = vadd.xlane.f32.xlu0 %v3760_v63  ;;  %v13319_v63 = vld [vmem:[#allocation86_spill] sm:$0xff]  ;;  %v512_v20 = vadd.f32 %v480_v61, %v447_v57  ;;  %v867_v13 = vmul.f32 %v13322_v3, %v5697_v21  ;;  %v13323_v57 = vld [vmem:[#allocation5_spill] sm:$0xff]  ;;  %v3901_v3 = vsub.f32 1.5, %v3900_v17 }
 0x1c7   : > { %v802_v32 = vmul.f32 %v13319_v63, %v13318_v11  ;;  %v610_v61 = vmul.f32 %v13323_v57, %v13146_v14  ;;  %v3891_v63 = vsub.f32 1.5, %v3890_v53  ;;  %v510_v27 = vadd.f32 %v478_v44, %v445_v10  ;;  %v8240_v44 = vld [vmem:[%s5644_s26 + $0x8] sm:$0xff] }
 0x1c8   : > { %v577_v28 = vadd.f32 %v545_v29, %v512_v20  ;;  %v3928_v20 = vmul.f32 %v8222_v4, %v8180_v6  ;;  %v3909_v29 = vmul.f32 %v8201_v19, %v3908_v35  ;;  %v3828_v53 = vmul.f32 %v3744_v43, %v13293_v22  ;;  %13325 = vst [vmem:[#allocation26_spill] sm:$0xff] %v8240_v44 }
 0x1c9   : > { %v834_v18 = vadd.f32 %v802_v32, %v769_v0  ;;  %v13324_v0 = vld [vmem:[#allocation88_spill] sm:$0xff]  ;;  %v997_v52 = vmul.f32 %v8240_v44, %v5709_v25  ;;  %v3892_v17 = vmul.f32 %v8158_v38, %v3891_v63  ;;  %v608_v35 = vmul.f32 %v13320_v26, %v13146_v14 }
 0x1ca   : > { %v932_v32 = vmul.f32 %v13324_v0, %v12988_v62  ;;  %v642_v48 = vadd.f32 %v610_v61, %v577_v28  ;;  %v575_v0 = vadd.f32 %v543_v16, %v510_v27  ;;  %v8251_v43 = vmul.f32 %v8160_v39, %v3921_v30  ;;  %v8259_v61 = vld [vmem:[%s5644_s26 + $0x28] sm:$0xff] }
 0x1cb   : > { %v899_v34 = vadd.f32 %v867_v13, %v834_v18  ;;  %v13326_v18 = vld [vmem:[#allocation14_spill] sm:$0xff]  ;;  %13329 = vst [vmem:[#allocation24_spill] sm:$0xff] %v8259_v61  ;;  %v1127_v63 = vmul.f32 %v8259_v61, %v12998_v50  ;;  %v3902_v16 = vmul.f32 %v8169_v7, %v3901_v3  ;;  %v8265_v26 = vmul.f32 %v8222_v4, %v3928_v20 }
 0x1cc   : > { %v675_v13 = vmul.f32 %v13326_v18, %v13158_v45  ;;  %13327 = vst [vmem:[#allocation74_spill] sm:$0xff] %v8251_v43  ;;  %v8267_v30 = vmul.f32 0.5, %v3909_v29  ;;  %v8269_v27 = vadd.f32 1e-06, %v3828_v53  ;;  %v8287_v20 = vld [vmem:[%s5644_s26 + $0x48] sm:$0xff]  ;;  %v8292_v53 = vld [vmem:[%s5644_s26 + $0x58] sm:$0xff] }
 0x1cd   : > { %v964_v10 = vadd.f32 %v932_v32, %v899_v34  ;;  %v8254_v32 = vld [vmem:[%s5644_s26 + $0x18] sm:$0xff]  ;;  %13330 = vst [vmem:[#allocation69_spill] sm:$0xff] %v8265_v26  ;;  %v1257_v29 = vmul.f32 %v8287_v20, %v13005_v56  ;;  %v13337_v4 = vrot.slane %v8053_v1, 5 }
 0x1ce   : > { %13328 = vst [vmem:[#allocation75_spill] sm:$0xff] %v8254_v32  ;;  %v1062_v28 = vmul.f32 %v8254_v32, %v12994_v51  ;;  %v707_v43 = vadd.f32 %v675_v13, %v642_v48  ;;  %v740_v32 = vmul.f32 %v7847_v33, %v13173_v40  ;;  %v1322_v48 = vmul.f32 %v8292_v53, %v12838_v47 }
 0x1cf   : > { %v1029_v34 = vadd.f32 %v997_v52, %v964_v10  ;;  %13331 = vst [vmem:[#allocation11_spill] sm:$0xff] %v8269_v27  ;;  %v8272_v52 = vld [vmem:[%s5644_s26 + $0x38] sm:$0xff]  ;;  %v640_v13 = vadd.f32 %v608_v35, %v575_v0  ;;  %v13339_v0 = vrot.slane %v8074_v59, 6  ;;  %v3906_v59 = vsel %vm3905_vm14, %v8169_v7, %v3902_v16 }
 0x1d0   : > { %13332 = vst [vmem:[#allocation79_spill] sm:$0xff] %v8272_v52  ;;  %v1192_v6 = vmul.f32 %v8272_v52, %v13000_v54  ;;  %5207 = vrsqrt.f32 %v8269_v27 }
 0x1d1   : > { %v1094_v10 = vadd.f32 %v1062_v28, %v1029_v34  ;;  %13335 = vst [vmem:[#allocation47_spill] sm:$0xff] %v8287_v20  ;;  %v673_v34 = vmul.f32 %v13323_v57, %v13158_v45  ;;  %v1452_v28 = vmul.f32 %v13269_v37, %v13071_v58  ;;  %v13338_v20 = vrot.slane %v8055_v12, 5  ;;  %v13375_v45 = vld [vmem:[#allocation41_spill] sm:$0xff] }
 0x1d2   : > { %13336 = vst [vmem:[#allocation90_spill] sm:$0xff] %v8292_v53  ;;  %v13340_v57 = vrot.slane %v8076_v49, 6  ;;  %v13342_v37 = vrot.slane %v8091_v23, 7  ;;  %v3896_v12 = vsel %vm8282_vm13, %v8158_v38, %v3892_v17  ;;  %v8337_v23 = vld [vmem:[%s5644_s26] sm:$0xff]  ;;  %v13346_v17 = vld [vmem:[#allocation67_spill] sm:$0xff] }
 0x1d3   : > { %v1159_v31 = vadd.f32 %v1127_v63, %v1094_v10  ;;  %v8309_v53 = vsel %vm2796_vm4, %v13338_v20, %v13337_v4  ;;  %v13341_v63 = vrot.slane %v8089_v2, 7  ;;  %v13343_v4 = vld [vmem:[#allocation73_spill] sm:$0xff]  ;;  %v13344_v20 = vld [vmem:[#allocation76_spill] sm:$0xff]  ;;  %v805_v2 = vmul.f32 %v7858_v36, %v13318_v11  ;;  %13345 = vst [vmem:[#allocation65_spill] sm:$0xff] %v8337_v23 }
 0x1d4   : > { %v8316_v35 = vsel %vm12758_vm5, %v13340_v57, %v13339_v0  ;;  %v4207_v10 = vmul.f32 %v3896_v12, %v13343_v4  ;;  %v4208_v0 = vmul.f32 %v3906_v59, %v13344_v20  ;;  %v772_v57 = vadd.f32 %v740_v32, %v707_v43  ;;  %v13353_v4 = vld [vmem:[#allocation7_spill] sm:$0xff]  ;;  %v13355_v20 = vld [vmem:[#allocation64_spill] sm:$0xff] }
 0x1d5   : > { %v8325_v1 = vsel %vm3346_vm6, %v13342_v37, %v13341_v63  ;;  %v1224_v49 = vadd.f32 %v1192_v6, %v1159_v31  ;;  %v870_v3 = vmul.f32 %v8337_v23, %v5697_v21  ;;  %v8341_v38 = vadd.f32 %v673_v34, %v640_v13 }
 0x1d6   : > { %v1387_v16 = vmul.f32 %v13346_v17, %v12842_v9  ;;  %v4239_v43 = vpack.c.bf16 %v4208_v0, %v4207_v10  ;;  %v13347_v32 = vrot.slane %v7974_v46, 1  ;;  %v13348_v31 = vrot.slane %v7982_v5, 1 }
 0x1d7   : > { %v1289_v7 = vadd.f32 %v1257_v29, %v1224_v49  ;;  %v837_v37 = vadd.f32 %v805_v2, %v772_v57  ;;  %v935_v12 = vmul.f32 %v7872_v15, %v12988_v62  ;;  %v8355_v13 = vmul.f32 %v13326_v18, %v13173_v40  ;;  %v13357_v57 = vld [vmem:[#allocation51_spill] sm:$0xff] }
 0x1d8   : > { %v1800_v63 = vsel %vm1696_vm0, %v13348_v31, %v13347_v32  ;;  %v1517_v59 = vadd.f32 %v1485_v55, %v1452_v28  ;;  %v13351_v49 = vrot.slane %v8005_v42, 2  ;;  %v13352_v46 = vrot.slane %v8008_v24, 2  ;;  %5072 = vmatmul.msk.bf16.vlgmr.msra.gmra.mxu0 %vm3527_vm7, %v4239_v43  ;;  %v13361_v42 = vld [vmem:[#allocation18_spill] sm:$0xff]  ;;  %v13362_v43 = vld [vmem:[#allocation45_spill] sm:$0xff]  ;;  %v13363_v31 = vld [vmem:[#allocation60_spill] sm:$0xff] }
 0x1d9   : > { %v1354_v34 = vadd.f32 %v1322_v48, %v1289_v7  ;;  %v13354_v10 = vrot.slane %v13353_v4, 3  ;;  %v13356_v0 = vrot.slane %v13355_v20, 3  ;;  %v13358_v2 = vrot.slane %v13357_v57, 4  ;;  %v13365_v4 = vld [vmem:[#allocation31_spill] sm:$0xff] }
 0x1da   : > { %v2075_v5 = vsel %vm1971_vm1, %v13352_v46, %v13351_v49  ;;  %v902_v28 = vadd.f32 %v870_v3, %v837_v37  ;;  %v1000_v24 = vmul.f32 %v13361_v42, %v5709_v25  ;;  %v1065_v32 = vmul.f32 %v13362_v43, %v12994_v51  ;;  %v8384_v49 = vpop.eup %5207  ;;  %v13367_v3 = vld [vmem:[#allocation48_spill] sm:$0xff] }
 0x1db   : > { %v2350_v18 = vsel %vm2246_vm2, %v13356_v0, %v13354_v10  ;;  %v1419_v7 = vadd.f32 %v1387_v16, %v1354_v34  ;;  %13364 = vst [vmem:[#allocation85_spill] sm:$0xff] %v8384_v49  ;;  %v13366_v10 = vld [vmem:[#allocation37_spill] sm:$0xff]  ;;  %v1586_v37 = vmul.f32 %v13367_v3, %v13365_v4  ;;  %v13368_v0 = vld [vmem:[#allocation32_spill] sm:$0xff] }
 0x1dc   : > { %v967_v46 = vadd.f32 %v935_v12, %v902_v28  ;;  %v1585_v20 = vmul.f32 %v13366_v10, %v13365_v4  ;;  %v1618_v57 = vmul.f32 %v13367_v3, %v13368_v0  ;;  %v13371_v43 = vld [vmem:[#allocation36_spill] sm:$0xff]  ;;  %v2135_v19 = vmul.f32 %v13366_v10, %v13375_v45 }
 0x1dd   : > { %v3557_v52 = vpop.xlane.xlu1 %3556  ;;  %v1549_v34 = vadd.f32 %v1517_v59, %v1419_v7  ;;  %v1861_v61 = vmul.f32 %v13367_v3, %v13371_v43  ;;  %v1455_v7 = vmul.f32 %v13366_v10, %v13071_v58 }
 0x1de   : > { %v3640_v6 = vmul.f32 %v13293_v22, %v3557_v52  ;;  %v13349_v52 = vld [vmem:[#allocation34_spill] sm:$0xff]  ;;  %v1032_v12 = vadd.f32 %v1000_v24, %v967_v46  ;;  %v8397_v28 = vadd.f32 %v1618_v57, %v1585_v20  ;;  %v1488_v24 = vmul.f32 %v13367_v3, %v13072_v8  ;;  %v13374_v46 = vld [vmem:[#allocation40_spill] sm:$0xff] }
 0x1df   : > { %v1824_v44 = vadd.f32 %v1800_v63, %v1549_v34  ;;  %v1893_v20 = vmul.f32 %v13367_v3, %v13374_v46  ;;  %v1894_v57 = vmul.f32 %v13366_v10, %v13374_v46  ;;  %v13379_v34 = vld [vmem:[#allocation42_spill] sm:$0xff] }
 0x1e0   : > { %v8358_v29 = vsub.f32 %v13349_v52, %v3640_v6  ;;  %v13359_v6 = vld [vmem:[#allocation62_spill] sm:$0xff]  ;;  %v1130_v52 = vmul.f32 %v13363_v31, %v12998_v50  ;;  %13370 = vst [vmem:[#allocation71_spill] sm:$0xff] %v8397_v28  ;;  %v1097_v40 = vadd.f32 %v1065_v32, %v1032_v12  ;;  %v2136_v12 = vmul.f32 %v13367_v3, %v13375_v45 }
 0x1e1   : > { %v13360_v17 = vrot.slane %v13359_v6, 4  ;;  %v8421_v32 = vadd.f32 %v1894_v57, %v1861_v61  ;;  %v2168_v41 = vmul.f32 %v13367_v3, %v13379_v34  ;;  %v13381_v57 = vld [vmem:[#allocation49_spill] sm:$0xff]  ;;  %v13383_v3 = vrot.slane %v8397_v28, 1 }
 0x1e2   : > { %13350 = vst [vmem:[#allocation83_spill] sm:$0xff] %v8358_v29  ;;  %v3704_v55 = vmul.f32 %v8358_v29, %v8358_v29  ;;  %v1860_v29 = vmul.f32 %v13366_v10, %v13371_v43 }
 0x1e3   : > { %v2625_v48 = vsel %vm2521_vm3, %v13360_v17, %v13358_v2  ;;  %v13369_v2 = vld [vmem:[#allocation6_spill] sm:$0xff]  ;;  %v1619_v17 = vmul.f32 %v13366_v10, %v13368_v0  ;;  %13377 = vst [vmem:[#allocation87_spill] sm:$0xff] %v8421_v32  ;;  %v12403_v61 = vrot.slane %v8421_v32, 2 }
 0x1e4   : > { %v3754_v16 = vsel %vm3527_vm7, %v3704_v55, 0.0  ;;  %v1195_v6 = vmul.f32 %v13369_v2, %v13000_v54  ;;  %v13372_v55 = vld [vmem:[#allocation20_spill] sm:$0xff] }
 0x1e5   : > { %3755 = vadd.xlane.f32.xlu2 %v3754_v16  ;;  %v1260_v59 = vmul.f32 %v13372_v55, %v13005_v56  ;;  %v8407_v39 = vadd.f32 %v1619_v17, %v1586_v37  ;;  %v2099_v16 = vadd.f32 %v2075_v5, %v1824_v44  ;;  %v1162_v37 = vadd.f32 %v1130_v52, %v1097_v40  ;;  %v13378_v5 = vld [vmem:[#allocation44_spill] sm:$0xff] }
 0x1e6   : > { %v8419_v17 = vadd.f32 %v1893_v20, %v1860_v29  ;;  %v1325_v44 = vmul.f32 %v7942_v60, %v12838_v47  ;;  %v1390_v63 = vmul.f32 %v13378_v5, %v12842_v9  ;;  %v2169_v29 = vmul.f32 %v13366_v10, %v13379_v34  ;;  %v8447_v40 = vld [vmem:[%s5644_s26 + $0x98] sm:$0xff] }
 0x1e7   : > { %13373 = vst [vmem:[#allocation86_spill] sm:$0xff] %v8407_v39  ;;  %v2374_v14 = vadd.f32 %v2350_v18, %v2099_v16  ;;  %v1227_v26 = vadd.f32 %v1195_v6, %v1162_v37  ;;  %v1520_v20 = vadd.f32 %v1488_v24, %v1455_v7  ;;  %v8435_v18 = vadd.f32 %v2168_v41, %v2135_v19 }
 0x1e8   : > { %13376 = vst [vmem:[#allocation43_spill] sm:$0xff] %v8419_v17  ;;  %v2410_v16 = vmul.f32 %v13366_v10, %v13381_v57  ;;  %v13382_v45 = vrot.slane %v8407_v39, 1  ;;  %v8444_v37 = vadd.f32 %v2169_v29, %v2136_v12  ;;  %v13386_v19 = vrot.slane %v8419_v17, 2  ;;  %v13388_v29 = vld [vmem:[#allocation52_spill] sm:$0xff]  ;;  %v13394_v39 = vld [vmem:[#allocation54_spill] sm:$0xff] }
 0x1e9   : > { %v2649_v52 = vadd.f32 %v2625_v48, %v2374_v14  ;;  %13380 = vst [vmem:[#allocation5_spill] sm:$0xff] %v8435_v18  ;;  %v1292_v8 = vadd.f32 %v1260_v59, %v1227_v26  ;;  %v2411_v14 = vmul.f32 %v8447_v40, %v13381_v57  ;;  %v13387_v59 = vld [vmem:[#allocation50_spill] sm:$0xff] }
 0x1ea   : > { %v1726_v6 = vsel %vm1696_vm0, %v13383_v3, %v13382_v45  ;;  %13384 = vst [vmem:[#allocation88_spill] sm:$0xff] %v8444_v37  ;;  %v2001_v26 = vsel %vm1971_vm1, %v13386_v19, %v12403_v61  ;;  %v2443_v45 = vmul.f32 %v8447_v40, %v13387_v59  ;;  %v12410_v24 = vrot.slane %v8444_v37, 3  ;;  %v13390_v61 = vld [vmem:[#allocation53_spill] sm:$0xff] }
 0x1eb   : > { %13385 = vst [vmem:[#allocation14_spill] sm:$0xff] %v8447_v40  ;;  %v2924_v41 = vadd.f32 %v8309_v53, %v2649_v52  ;;  %v1357_v7 = vadd.f32 %v1325_v44, %v1292_v8  ;;  %v2444_v12 = vmul.f32 %v13366_v10, %v13387_v59  ;;  %v2685_v53 = vmul.f32 %v13366_v10, %v13388_v29 }
 0x1ec   : > { %v8466_v3 = vadd.f32 %v2443_v45, %v2410_v16  ;;  %v2686_v19 = vmul.f32 %v8447_v40, %v13388_v29  ;;  %v2718_v48 = vmul.f32 %v8447_v40, %v13390_v61  ;;  %v13391_v8 = vrot.slane %v8435_v18, 3 }
 0x1ed   : > { %v3199_v52 = vadd.f32 %v8316_v35, %v2924_v41  ;;  %v1422_v32 = vadd.f32 %v1390_v63, %v1357_v7  ;;  %v8477_v17 = vadd.f32 %v2444_v12, %v2411_v14  ;;  %v2719_v35 = vmul.f32 %v13366_v10, %v13390_v61 }
 0x1ee   : > { %13389 = vst [vmem:[#allocation73_spill] sm:$0xff] %v8466_v3  ;;  %v2276_v44 = vsel %vm2246_vm2, %v13391_v8, %v12410_v24  ;;  %v12413_v41 = vrot.slane %v8466_v3, 4  ;;  %v8483_v45 = vadd.f32 %v2718_v48, %v2685_v53  ;;  %v2960_v63 = vmul.f32 %v13366_v10, %v13394_v39  ;;  %v13396_v8 = vld [vmem:[#allocation66_spill] sm:$0xff]  ;;  %v13398_v53 = vld [vmem:[#allocation55_spill] sm:$0xff] }
 0x1ef   : > { %13392 = vst [vmem:[#allocation76_spill] sm:$0xff] %v8477_v17  ;;  %v3474_v16 = vadd.f32 %v8325_v1, %v3199_v52  ;;  %v1552_v37 = vadd.f32 %v1520_v20, %v1422_v32  ;;  %v12412_v18 = vrot.slane %v8477_v17, 4  ;;  %v8488_v28 = vadd.f32 %v2719_v35, %v2686_v19  ;;  %v13399_v35 = vld [vmem:[#allocation59_spill] sm:$0xff] }
 0x1f0   : > { %13393 = vst [vmem:[#allocation67_spill] sm:$0xff] %v8483_v45  ;;  %v2961_v14 = vmul.f32 %v8447_v40, %v13394_v39  ;;  %v2993_v52 = vmul.f32 %v8447_v40, %v13398_v53  ;;  %v2994_v19 = vmul.f32 %v13366_v10, %v13398_v53 }
 0x1f1   : > { %13395 = vst [vmem:[#allocation34_spill] sm:$0xff] %v8488_v28  ;;  %v8494_v1 = vadd.f32 %v13396_v8, %v3474_v16  ;;  %v1827_v24 = vadd.f32 %v1726_v6, %v1552_v37  ;;  %v2551_v32 = vsel %vm2521_vm3, %v12413_v41, %v12412_v18  ;;  %v12416_v20 = vrot.slane %v8488_v28, 5  ;;  %v13402_v6 = vld [vmem:[#allocation56_spill] sm:$0xff] }
 0x1f2   : > { %v8512_v48 = vadd.f32 %v2993_v52, %v2960_v63  ;;  %v3235_v37 = vmul.f32 %v13366_v10, %v13402_v6  ;;  %v13403_v18 = vrot.slane %v8483_v45, 5  ;;  %v8521_v3 = vadd.f32 %v2994_v19, %v2961_v14  ;;  %v13405_v63 = vld [vmem:[#allocation58_spill] sm:$0xff] }
 0x1f3   : > { %13397 = vst [vmem:[#allocation7_spill] sm:$0xff] %v8494_v1  ;;  %v2102_v17 = vadd.f32 %v2001_v26, %v1827_v24  ;;  %v3268_v52 = vmul.f32 %v8447_v40, %v13405_v63  ;;  %v803_v14 = vmul.f32 %v7847_v33, %v13318_v11  ;;  %v8549_v33 = vmul.f32 %v8384_v49, %v8269_v27 }
 0x1f4   : > { %v3560_v7 = vpop.xlane.xlu1 %3559  ;;  %13401 = vst [vmem:[#allocation51_spill] sm:$0xff] %v8512_v48  ;;  %v2826_v41 = vsel %vm2796_vm4, %v13403_v18, %v12416_v20  ;;  %v770_v18 = vadd.f32 %v8355_v13, %v8341_v38  ;;  %v933_v38 = vmul.f32 %v8337_v23, %v12988_v62  ;;  %v13408_v13 = vrot.slane %v8521_v3, 6  ;;  %v13439_v23 = vld [vmem:[#allocation17_spill] sm:$0xff] }
 0x1f5   : > { %v3641_v12 = vmul.f32 %v13293_v22, %v3560_v7  ;;  %v3573_v7 = vsel %vm3527_vm7, %v8494_v1, 0.0  ;;  %13404 = vst [vmem:[#allocation62_spill] sm:$0xff] %v8521_v3  ;;  %v2377_v24 = vadd.f32 %v2276_v44, %v2102_v17  ;;  %v8537_v19 = vadd.f32 %v3268_v52, %v3235_v37  ;;  %v13451_v3 = vld [vmem:[#allocation26_spill] sm:$0xff] }
 0x1f6   : > { %3574 = vadd.xlane.f32.xlu1 %v3573_v7  ;;  %v3269_v7 = vmul.f32 %v13366_v10, %v13405_v63  ;;  %v868_v10 = vmul.f32 %v7858_v36, %v5697_v21  ;;  %v835_v1 = vadd.f32 %v803_v14, %v770_v18  ;;  %v13409_v37 = vrot.slane %v8512_v48, 6  ;;  %v8568_v18 = vld [vmem:[%s5644_s26 + $0x30] sm:$0xff] }
 0x1f7   : > { %v8508_v16 = vsub.f32 %v13399_v35, %v3641_v12  ;;  %v3236_v12 = vmul.f32 %v8447_v40, %v13402_v6  ;;  %13406 = vst [vmem:[#allocation18_spill] sm:$0xff] %v8537_v19  ;;  %v2652_v44 = vadd.f32 %v2551_v32, %v2377_v24  ;;  %v12418_v36 = vrot.slane %v8537_v19, 7  ;;  %v13444_v19 = vld [vmem:[#allocation15_spill] sm:$0xff] }
 0x1f8   : > { %v900_v52 = vadd.f32 %v868_v10, %v835_v1  ;;  %13410 = vst [vmem:[#allocation60_spill] sm:$0xff] %v8568_v18  ;;  %v1128_v14 = vmul.f32 %v8568_v18, %v12998_v50  ;;  %v934_v48 = vmul.f32 %v13451_v3, %v12988_v62 }
 0x1f9   : > { %13400 = vst [vmem:[#allocation64_spill] sm:$0xff] %v8508_v16  ;;  %v3705_v26 = vmul.f32 %v8508_v16, %v8508_v16  ;;  %v8539_v20 = vadd.f32 %v3269_v7, %v3236_v12  ;;  %v3101_v12 = vsel %vm12758_vm5, %v13409_v37, %v13408_v13  ;;  %v998_v7 = vmul.f32 %v7872_v15, %v5709_v25  ;;  %v8583_v37 = vld [vmem:[%s5644_s26 + $0x88] sm:$0xff] }
 0x1fa   : > { %v1258_v15 = vmul.f32 %v13369_v2, %v13005_v56  ;;  %v965_v10 = vadd.f32 %v933_v38, %v900_v52  ;;  %v1583_v13 = vmul.f32 %v13378_v5, %v13365_v4  ;;  %13411 = vst [vmem:[#allocation37_spill] sm:$0xff] %v8583_v37  ;;  %v1617_v2 = vmul.f32 %v13378_v5, %v13368_v0 }
 0x1fb   : > { %13407 = vst [vmem:[#allocation45_spill] sm:$0xff] %v8539_v20  ;;  %v3757_v35 = vsel %vm3527_vm7, %v3705_v26, 0.0  ;;  %v12417_v32 = vrot.slane %v8539_v20, 7  ;;  %v1063_v26 = vmul.f32 %v13361_v42, %v12994_v51  ;;  %v1323_v42 = vmul.f32 %v13372_v55, %v12838_v47  ;;  %v8753_v20 = vld [vmem:[%s5644_s26 + $0xc8] sm:$0xff] }
 0x1fc   : > { %3758 = vadd.xlane.f32.xlu2 %v3757_v35  ;;  %v2927_v35 = vadd.f32 %v2826_v41, %v2652_v44  ;;  %v1193_v41 = vmul.f32 %v13363_v31, %v13000_v54  ;;  %v1388_v44 = vmul.f32 %v7942_v60, %v12842_v9  ;;  %v1616_v31 = vmul.f32 %v8583_v37, %v13368_v0 }
 0x1fd   : > { %v3376_v24 = vsel %vm3346_vm6, %v12418_v36, %v12417_v32  ;;  %v1584_v32 = vmul.f32 %v8583_v37, %v13365_v4  ;;  %v1453_v55 = vmul.f32 %v13378_v5, %v13071_v58  ;;  %v1858_v60 = vmul.f32 %v13378_v5, %v13371_v43  ;;  %13441 = vst [vmem:[#allocation17_spill] sm:$0xff] %v8753_v20 }
 0x1fe   : > { %v3202_v1 = vadd.f32 %v3101_v12, %v2927_v35  ;;  %v1030_v12 = vadd.f32 %v998_v7, %v965_v10  ;;  %v8595_v35 = vadd.f32 %v1616_v31, %v1583_v13  ;;  %v1859_v36 = vmul.f32 %v8583_v37, %v13371_v43  ;;  %v8610_v13 = vpop.xlane.xlu0 %3746 }
 0x1ff   : > { %v8597_v52 = vadd.f32 %v1617_v2, %v1584_v32  ;;  %v1891_v17 = vmul.f32 %v8583_v37, %v13374_v46  ;;  %13414 = vst [vmem:[#allocation6_spill] sm:$0xff] %v8610_v13  ;;  %v13415_v32 = vld [vmem:[#allocation39_spill] sm:$0xff]  ;;  %v2166_v43 = vmul.f32 %v8583_v37, %v13379_v34  ;;  %v2683_v0 = vmul.f32 %v13378_v5, %v13388_v29 }
 0x200   : > { %v3477_v38 = vadd.f32 %v3376_v24, %v3202_v1  ;;  %v1095_v7 = vadd.f32 %v1063_v26, %v1030_v12  ;;  %v1892_v24 = vmul.f32 %v13378_v5, %v13374_v46  ;;  %v13413_v1 = vld [vmem:[#allocation41_spill] sm:$0xff]  ;;  %v1486_v31 = vmul.f32 %v8583_v37, %v13415_v32 }
 0x201   : > { %v2133_v10 = vmul.f32 %v13378_v5, %v13413_v1  ;;  %v8615_v27 = vadd.f32 %v1891_v17, %v1858_v60  ;;  %v2167_v17 = vmul.f32 %v13378_v5, %v13379_v34  ;;  %v2408_v60 = vmul.f32 %v13378_v5, %v13381_v57 }
 0x202   : > { %v8604_v16 = vadd.f32 %v13396_v8, %v3477_v38  ;;  %v2134_v38 = vmul.f32 %v8583_v37, %v13413_v1  ;;  %v1160_v12 = vadd.f32 %v1128_v14, %v1095_v7  ;;  %v8621_v46 = vadd.f32 %v1892_v24, %v1859_v36 }
 0x203   : > { %v8632_v14 = vadd.f32 %v2166_v43, %v2133_v10  ;;  %v2409_v36 = vmul.f32 %v8583_v37, %v13381_v57  ;;  %v2441_v24 = vmul.f32 %v8583_v37, %v13387_v59  ;;  %v2684_v43 = vmul.f32 %v8583_v37, %v13388_v29 }
 0x204   : > { %13412 = vst [vmem:[#allocation48_spill] sm:$0xff] %v8604_v16  ;;  %v3582_v26 = vsel %vm3527_vm7, %v8604_v16, 0.0  ;;  %v1225_v2 = vadd.f32 %v1193_v41, %v1160_v12  ;;  %v8636_v7 = vadd.f32 %v2167_v17, %v2134_v38  ;;  %v1518_v41 = vadd.f32 %v1486_v31, %v1453_v55 }
 0x205   : > { %3583 = vadd.xlane.f32.xlu0 %v3582_v26  ;;  %v2442_v26 = vmul.f32 %v13378_v5, %v13387_v59  ;;  %v8648_v38 = vadd.f32 %v2441_v24, %v2408_v60  ;;  %v2716_v16 = vmul.f32 %v8583_v37, %v13390_v61  ;;  %v2717_v57 = vmul.f32 %v13378_v5, %v13390_v61  ;;  %v13422_v61 = vld [vmem:[#allocation8_spill] sm:$0xff] }
 0x206   : > { %v1290_v13 = vadd.f32 %v1258_v15, %v1225_v2  ;;  %v2958_v15 = vmul.f32 %v13378_v5, %v13394_v39  ;;  %v2959_v55 = vmul.f32 %v8583_v37, %v13394_v39  ;;  %v3939_v31 = vmul.f32 %v8384_v49, %v8549_v33 }
 0x207   : > { %v8650_v17 = vadd.f32 %v2442_v26, %v2409_v36  ;;  %v13416_v2 = vrot.slane %v8597_v52, 1  ;;  %v13417_v60 = vrot.slane %v8595_v35, 1  ;;  %v8672_v26 = vadd.f32 %v2716_v16, %v2683_v0 }
 0x208   : > { %v1355_v59 = vadd.f32 %v1323_v42, %v1290_v13  ;;  %v13418_v42 = vrot.slane %v8621_v46, 2  ;;  %v13419_v13 = vrot.slane %v8615_v27, 2  ;;  %v8674_v10 = vadd.f32 %v2717_v57, %v2684_v43 }
 0x209   : > { %v1723_v36 = vsel %vm1696_vm0, %v13417_v60, %v13416_v2  ;;  %v2991_v33 = vmul.f32 %v8583_v37, %v13398_v53  ;;  %v2992_v49 = vmul.f32 %v13378_v5, %v13398_v53  ;;  %v13420_v39 = vrot.slane %v8636_v7, 3 }
 0x20a   : > { %v1998_v24 = vsel %vm1971_vm1, %v13419_v13, %v13418_v42  ;;  %v1420_v12 = vadd.f32 %v1388_v44, %v1355_v59  ;;  %v13421_v2 = vrot.slane %v8632_v14, 3  ;;  %v3233_v0 = vmul.f32 %v13378_v5, %v13402_v6  ;;  %v3569_v59 = vpop.xlane.xlu0 %3568  ;;  %v13423_v13 = vld [vmem:[#allocation9_spill] sm:$0xff] }
 0x20b   : > { %v3234_v57 = vmul.f32 %v8583_v37, %v13402_v6  ;;  %v8691_v43 = vadd.f32 %v2991_v33, %v2958_v15  ;;  %v8693_v42 = vadd.f32 %v2992_v49, %v2959_v55  ;;  %v446_v6 = vmul.f32 %v8583_v37, %v13422_v61 }
 0x20c   : > { %v2273_v60 = vsel %vm2246_vm2, %v13421_v2, %v13420_v39  ;;  %v1550_v16 = vadd.f32 %v1518_v41, %v1420_v12  ;;  %v3266_v39 = vmul.f32 %v8583_v37, %v13405_v63  ;;  %v3267_v2 = vmul.f32 %v13378_v5, %v13405_v63  ;;  %v13424_v63 = vld [vmem:[#allocation69_spill] sm:$0xff]  ;;  %v8721_v12 = vld [vmem:[%s5644_s26 + $0xa8] sm:$0xff] }
 0x20d   : > { %v3644_v49 = vmul.f32 %v13293_v22, %v3569_v59  ;;  %v479_v44 = vmul.f32 %v8447_v40, %v13423_v13  ;;  %v8713_v29 = vmul.f32 0.5, %v13424_v63  ;;  %v13427_v41 = vrot.slane %v8648_v38, 4  ;;  %13428 = vst [vmem:[#allocation66_spill] sm:$0xff] %v8721_v12 }
 0x20e   : > { %v1825_v53 = vadd.f32 %v1723_v36, %v1550_v16  ;;  %v8706_v55 = vadd.f32 %v3266_v39, %v3233_v0  ;;  %v8708_v33 = vadd.f32 %v3267_v2, %v3234_v57  ;;  %v13426_v16 = vrot.slane %v8650_v17, 4  ;;  %v13429_v0 = vld [vmem:[#allocation10_spill] sm:$0xff] }
 0x20f   : > { %13425 = vst [vmem:[#allocation20_spill] sm:$0xff] %v8713_v29  ;;  %v544_v57 = vmul.f32 %v8721_v12, %v13429_v0  ;;  %v511_v63 = vadd.f32 %v479_v44, %v446_v6  ;;  %v8737_v34 = vmul.f32 0.5, %v3939_v31  ;;  %v13435_v39 = vrot.slane %v8674_v10, 5  ;;  %v13442_v31 = vld [vmem:[#allocation13_spill] sm:$0xff] }
 0x210   : > { %v2100_v36 = vadd.f32 %v1998_v24, %v1825_v53  ;;  %v2548_v59 = vsel %vm2521_vm3, %v13427_v41, %v13426_v16  ;;  %v8728_v53 = vld [vmem:[%s5644_s26 + $0xb8] sm:$0xff]  ;;  %v13431_v41 = vsub.f32 1.5, %v8267_v30  ;;  %v13432_v16 = vld [vmem:[#allocation33_spill] sm:$0xff]  ;;  %v13436_v2 = vrot.slane %v8672_v26, 5 }
 0x211   : > { %v13430_v24 = vld [vmem:[#allocation12_spill] sm:$0xff]  ;;  %13434 = vst [vmem:[#allocation69_spill] sm:$0xff] %v8737_v34  ;;  %v13437_v44 = vrot.slane %v8693_v42, 6  ;;  %v13438_v4 = vrot.slane %v8691_v43, 6  ;;  %v8750_v30 = vsub.f32 %v13439_v23, %v3644_v49  ;;  %vm3914_vm9 = vweird.f32 %v13432_v16 }
 0x212   : > { %v609_v15 = vmul.f32 %v8728_v53, %v13430_v24  ;;  %v8735_v29 = vmul.f32 %v13432_v16, %v13431_v41  ;;  %v2375_v1 = vadd.f32 %v2273_v60, %v2100_v36  ;;  %v2823_v6 = vsel %vm2796_vm4, %v13436_v2, %v13435_v39  ;;  %v8758_v34 = vld [vmem:[%s5644_s26 + $0xd8] sm:$0xff]  ;;  %v8763_v2 = vld [vmem:[%s5644_s26 + $0xe8] sm:$0xff] }
 0x213   : > { %v3098_v18 = vsel %vm12758_vm5, %v13438_v4, %v13437_v44  ;;  %13440 = vst [vmem:[#allocation33_spill] sm:$0xff] %v8750_v30  ;;  %v576_v41 = vadd.f32 %v544_v57, %v511_v63  ;;  %v674_v60 = vmul.f32 %v8753_v20, %v13442_v31  ;;  %v739_v39 = vmul.f32 %v8758_v34, %v13444_v19  ;;  %v8768_v23 = vld [vmem:[%s5644_s26 + $0xf8] sm:$0xff]  ;;  %v13447_v57 = vld [vmem:[#allocation81_spill] sm:$0xff] }
 0x214   : > { %13433 = vst [vmem:[#allocation59_spill] sm:$0xff] %v8735_v29  ;;  %v2650_v36 = vadd.f32 %v2548_v59, %v2375_v1  ;;  %v804_v4 = vmul.f32 %v8763_v2, %v13318_v11  ;;  %v869_v49 = vmul.f32 %v8768_v23, %v5697_v21  ;;  %vm3923_vm15 = vweird.f32 %v13447_v57  ;;  %v13448_v1 = vld [vmem:[#allocation78_spill] sm:$0xff]  ;;  %v13452_v29 = vld [vmem:[#allocation75_spill] sm:$0xff]  ;;  %v13453_v57 = vld [vmem:[#allocation24_spill] sm:$0xff] }
 0x215   : > { %13443 = vst [vmem:[#allocation91_spill] sm:$0xff] %v8758_v34  ;;  %vm3924_vm8 = vweird.f32 %v13448_v1  ;;  %v13449_v59 = vrot.slane %v8708_v33, 7  ;;  %v13450_v63 = vrot.slane %v8706_v55, 7  ;;  %v641_v30 = vadd.f32 %v609_v15, %v576_v41  ;;  %v13454_v1 = vld [vmem:[#allocation79_spill] sm:$0xff]  ;;  %v13457_v41 = vld [vmem:[#allocation90_spill] sm:$0xff] }
 0x216   : > { %13445 = vst [vmem:[#allocation15_spill] sm:$0xff] %v8763_v2  ;;  %v999_v28 = vmul.f32 %v13452_v29, %v5709_v25  ;;  %v2925_v45 = vadd.f32 %v2823_v6, %v2650_v36  ;;  %v1064_v21 = vmul.f32 %v13453_v57, %v12994_v51  ;;  %v13456_v11 = vld [vmem:[#allocation47_spill] sm:$0xff]  ;;  %v8799_v25 = vld [vmem:[%s5644_s26 + $0x68] sm:$0xff]  ;;  %v8806_v36 = vld [vmem:[%s5644_s26 + $0x78] sm:$0xff] }
 0x217   : > { %13446 = vst [vmem:[#allocation92_spill] sm:$0xff] %v8768_v23  ;;  %v3373_v44 = vsel %vm3346_vm6, %v13450_v63, %v13449_v59  ;;  %v8788_v23 = vmul.f32 %v13454_v1, %v12998_v50  ;;  %v8792_v59 = vmul.f32 %v13456_v11, %v13000_v54  ;;  %v706_v15 = vadd.f32 %v674_v60, %v641_v30  ;;  %vm8899_vm11 = vmor %vm3923_vm15, %vm3924_vm8 }
 0x218   : > { %v8796_v63 = vmul.f32 %v13457_v41, %v13005_v56  ;;  %13459 = vst [vmem:[#allocation24_spill] sm:$0xff] %v8799_v25  ;;  %v8803_v6 = vmul.f32 %v8799_v25, %v12838_v47  ;;  %v8810_v50 = vmul.f32 %v8806_v36, %v12842_v9  ;;  %v3200_v54 = vadd.f32 %v3098_v18, %v2925_v45 }
 0x219   : > { %13455 = vst [vmem:[#allocation26_spill] sm:$0xff] %v8788_v23  ;;  %v13463_v23 = vld [vmem:[#allocation80_spill] sm:$0xff]  ;;  %v1454_v60 = vmul.f32 %v8583_v37, %v13071_v58  ;;  %v448_v47 = vmul.f32 %v8447_v40, %v13422_v61  ;;  %v771_v25 = vadd.f32 %v739_v39, %v706_v15  ;;  %v13464_v56 = vrot.slane %v8595_v35, 1  ;;  %v13477_v15 = vld [vmem:[#allocation57_spill] sm:$0xff] }
 0x21a   : > { %13458 = vst [vmem:[#allocation75_spill] sm:$0xff] %v8796_v63  ;;  %vm3913_vm10 = vweird.f32 %v13463_v23  ;;  %v1487_v63 = vmul.f32 %v13378_v5, %v13415_v32  ;;  %v481_v45 = vmul.f32 %v8721_v12, %v13423_v13  ;;  %v3475_v18 = vadd.f32 %v3373_v44, %v3200_v54  ;;  %v8937_v23 = vld [vmem:[%s5644_s26 + $0x90] sm:$0xff] }
 0x21b   : > { %13460 = vst [vmem:[#allocation79_spill] sm:$0xff] %v8803_v6  ;;  %v13466_v37 = vrot.slane %v8615_v27, 2  ;;  %v13467_v5 = vrot.slane %v8621_v46, 2  ;;  %v13468_v39 = vrot.slane %v8632_v14, 3  ;;  %v13469_v35 = vrot.slane %v8636_v7, 3  ;;  %vm3915_vm12 = vmor %vm3913_vm10, %vm3914_vm9 }
 0x21c   : > { %13461 = vst [vmem:[#allocation47_spill] sm:$0xff] %v8806_v36  ;;  %v13470_v54 = vrot.slane %v8648_v38, 4  ;;  %v13471_v27 = vrot.slane %v8650_v17, 4  ;;  %v8855_v14 = vadd.f32 %v13396_v8, %v3475_v18  ;;  %v8857_v7 = vadd.f32 %v1487_v63, %v1454_v60 }
 0x21d   : > { %13462 = vst [vmem:[#allocation90_spill] sm:$0xff] %v8810_v50  ;;  %v3566_v30 = vpop.xlane.xlu2 %3565  ;;  %v13465_v50 = vrot.slane %v8597_v52, 1  ;;  %v8834_v36 = vsel %vm1971_vm1, %v13467_v5, %v13466_v37  ;;  %v8841_v52 = vsel %vm2246_vm2, %v13469_v35, %v13468_v39  ;;  %v513_v5 = vadd.f32 %v481_v45, %v448_v47 }
 0x21e   : > { %v3643_v6 = vmul.f32 %v13293_v22, %v3566_v30  ;;  %v8850_v46 = vsel %vm2521_vm3, %v13471_v27, %v13470_v54  ;;  %v611_v37 = vmul.f32 %v8753_v20, %v13430_v24  ;;  %13472 = vst [vmem:[#allocation80_spill] sm:$0xff] %v8855_v14  ;;  %v13473_v44 = vrot.slane %v8672_v26, 5  ;;  %v13482_v18 = vld [vmem:[#allocation92_spill] sm:$0xff]  ;;  %v13521_v27 = vld [vmem:[#allocation18_spill] sm:$0xff]  ;;  %v13531_v20 = vld [vmem:[#allocation35_spill] sm:$0xff] }
 0x21f   : > { %v8825_v9 = vsel %vm1696_vm0, %v13465_v50, %v13464_v56  ;;  %v546_v56 = vmul.f32 %v8728_v53, %v13429_v0  ;;  %v836_v50 = vadd.f32 %v804_v4, %v771_v25  ;;  %v13474_v25 = vrot.slane %v8674_v10, 5 }
 0x220   : > { %v13475_v17 = vrot.slane %v8691_v43, 6  ;;  %v13476_v4 = vrot.slane %v8693_v42, 6  ;;  %v8874_v30 = vsub.f32 %v13477_v15, %v3643_v6  ;;  %v676_v26 = vmul.f32 %v8758_v34, %v13442_v31  ;;  %v13481_v6 = vld [vmem:[#allocation16_spill] sm:$0xff] }
 0x221   : > { %v8864_v38 = vsel %vm2796_vm4, %v13474_v25, %v13473_v44  ;;  %v901_v8 = vadd.f32 %v869_v49, %v836_v50  ;;  %v578_v63 = vadd.f32 %v546_v56, %v513_v5  ;;  %v3576_v10 = vsel %vm3527_vm7, %v8855_v14, 0.0  ;;  %v13483_v56 = vld [vmem:[#allocation19_spill] sm:$0xff]  ;;  %v13491_v25 = vld [vmem:[#allocation86_spill] sm:$0xff] }
 0x222   : > { %v8871_v47 = vsel %vm12758_vm5, %v13476_v4, %v13475_v17  ;;  %13478 = vst [vmem:[#allocation57_spill] sm:$0xff] %v8874_v30  ;;  %v13479_v60 = vrot.slane %v8706_v55, 7  ;;  %v13480_v43 = vrot.slane %v8708_v33, 7  ;;  %v741_v45 = vmul.f32 %v8763_v2, %v13444_v19  ;;  %3577 = vadd.xlane.f32.xlu1 %v3576_v10  ;;  %v13484_v33 = vld [vmem:[#allocation78_spill] sm:$0xff]  ;;  %v13488_v5 = vld [vmem:[#allocation23_spill] sm:$0xff] }
 0x223   : > { %v806_v49 = vmul.f32 %v13482_v18, %v13481_v6  ;;  %v966_v39 = vadd.f32 %v934_v48, %v901_v8  ;;  %v643_v35 = vadd.f32 %v611_v37, %v578_v63  ;;  %v871_v50 = vmul.f32 %v13451_v3, %v13483_v56  ;;  %v13489_v37 = vld [vmem:[#allocation71_spill] sm:$0xff]  ;;  %13501 = vst [vmem:[#allocation19_spill] sm:$0xff] %v8937_v23  ;;  %v13513_v2 = vld [vmem:[#allocation62_spill] sm:$0xff] }
 0x224   : > { %v8885_v42 = vsel %vm3346_vm6, %v13480_v43, %v13479_v60  ;;  %v936_v55 = vmul.f32 %v13452_v29, %v12988_v62  ;;  %v1001_v44 = vmul.f32 %v13453_v57, %v13488_v5  ;;  %v8907_v48 = vmul.f32 %v13454_v1, %v12994_v51  ;;  %v13493_v1 = vld [vmem:[#allocation43_spill] sm:$0xff]  ;;  %v13497_v43 = vld [vmem:[#allocation5_spill] sm:$0xff] }
 0x225   : > { %v1456_v3 = vmul.f32 %v8447_v40, %v13071_v58  ;;  %v13490_v29 = vrot.slane %v13489_v37, 1  ;;  %v13492_v17 = vrot.slane %v13491_v25, 1  ;;  %v1031_v57 = vadd.f32 %v999_v28, %v966_v39  ;;  %v13495_v63 = vld [vmem:[#allocation87_spill] sm:$0xff]  ;;  %v13499_v37 = vld [vmem:[#allocation88_spill] sm:$0xff] }
 0x226   : > { %v708_v15 = vadd.f32 %v676_v26, %v643_v35  ;;  %v13494_v8 = vrot.slane %v13493_v1, 2  ;;  %v13496_v10 = vrot.slane %v13495_v63, 2  ;;  %v13498_v54 = vrot.slane %v13497_v43, 3  ;;  %v13502_v26 = vld [vmem:[#allocation73_spill] sm:$0xff]  ;;  %v13504_v35 = vld [vmem:[#allocation76_spill] sm:$0xff]  ;;  %v13511_v18 = vld [vmem:[#allocation51_spill] sm:$0xff] }
 0x227   : > { %v8916_v4 = vsel %vm1696_vm0, %v13492_v17, %v13490_v29  ;;  %v13500_v29 = vrot.slane %v13499_v37, 3  ;;  %v1489_v28 = vmul.f32 %v8937_v23, %v13415_v32  ;;  %v13503_v39 = vrot.slane %v13502_v26, 4  ;;  %v13510_v37 = vld [vmem:[#allocation59_spill] sm:$0xff] }
 0x228   : > { %v8927_v60 = vsel %vm1971_vm1, %v13496_v10, %v13494_v8  ;;  %v13505_v17 = vrot.slane %v13504_v35, 4  ;;  %v13506_v8 = vld [vmem:[#allocation67_spill] sm:$0xff]  ;;  %v13508_v10 = vld [vmem:[#allocation34_spill] sm:$0xff]  ;;  %v1096_v14 = vadd.f32 %v1064_v21, %v1031_v57  ;;  %v773_v40 = vadd.f32 %v741_v45, %v708_v15 }
 0x229   : > { %v8934_v25 = vsel %vm2246_vm2, %v13500_v29, %v13498_v54  ;;  %v13507_v63 = vrot.slane %v13506_v8, 5  ;;  %v13509_v43 = vrot.slane %v13508_v10, 5  ;;  %v3916_v29 = vsel %vm3915_vm12, %v13432_v16, %v13510_v37  ;;  %v8971_v16 = vld [vmem:[%s5644_s26 + $0xa0] sm:$0xff]  ;;  %v8976_v45 = vld [vmem:[%s5644_s26 + $0xb0] sm:$0xff] }
 0x22a   : > { %v8946_v1 = vsel %vm2521_vm3, %v13505_v17, %v13503_v39  ;;  %v13512_v26 = vrot.slane %v13511_v18, 6  ;;  %v13514_v35 = vrot.slane %v13513_v2, 6  ;;  %v13515_v17 = vld [vmem:[#allocation74_spill] sm:$0xff]  ;;  %13518 = vst [vmem:[#allocation78_spill] sm:$0xff] %v8971_v16  ;;  %v449_v21 = vmul.f32 %v8971_v16, %v13422_v61 }
 0x22b   : > { %v8953_v54 = vsel %vm2796_vm4, %v13509_v43, %v13507_v63  ;;  %v3926_v8 = vsel %vm8899_vm11, %v13484_v33, %v13515_v17  ;;  %v13516_v63 = vld [vmem:[#allocation77_spill] sm:$0xff]  ;;  %v13517_v43 = vld [vmem:[#allocation28_spill] sm:$0xff]  ;;  %13519 = vst [vmem:[#allocation81_spill] sm:$0xff] %v8976_v45  ;;  %v482_v2 = vmul.f32 %v8976_v45, %v13423_v13  ;;  %v13520_v18 = vld [vmem:[#allocation26_spill] sm:$0xff]  ;;  %v838_v15 = vadd.f32 %v806_v49, %v773_v40 }
 0x22c   : > { %v8962_v39 = vsel %vm12758_vm5, %v13514_v35, %v13512_v26  ;;  %v4209_v10 = vmul.f32 %v3916_v29, %v13516_v63  ;;  %v4210_v34 = vmul.f32 %v3926_v8, %v13517_v43  ;;  %v1161_v57 = vadd.f32 %v13520_v18, %v1096_v14  ;;  %v13523_v33 = vld [vmem:[#allocation45_spill] sm:$0xff]  ;;  %v13526_v8 = vld [vmem:[#allocation27_spill] sm:$0xff] }
 0x22d   : > { %v13522_v37 = vrot.slane %v13521_v27, 7  ;;  %v13524_v26 = vrot.slane %v13523_v33, 7  ;;  %v8989_v35 = vld [vmem:[%s5644_s26 + $0xc0] sm:$0xff]  ;;  %v1131_v63 = vmul.f32 %v13456_v11, %v13526_v8  ;;  %v514_v45 = vadd.f32 %v482_v2, %v449_v21  ;;  %v8996_v14 = vld [vmem:[%s5644_s26 + $0xd0] sm:$0xff]  ;;  %v13529_v33 = vld [vmem:[#allocation30_spill] sm:$0xff] }
 0x22e   : > { %13525 = vst [vmem:[#allocation23_spill] sm:$0xff] %v8989_v35  ;;  %v547_v17 = vmul.f32 %v8989_v35, %v13429_v0  ;;  %v4240_v43 = vpack.c.bf16 %v4210_v34, %v4209_v10  ;;  %v612_v40 = vmul.f32 %v8996_v14, %v13430_v24  ;;  %v1226_v49 = vadd.f32 %v8792_v59, %v1161_v57  ;;  %v13528_v27 = vld [vmem:[#allocation29_spill] sm:$0xff]  ;;  %v13532_v11 = vld [vmem:[#allocation47_spill] sm:$0xff]  ;;  %v13533_v10 = vld [vmem:[#allocation46_spill] sm:$0xff] }
 0x22f   : > { %v8986_v29 = vsel %vm3346_vm6, %v13524_v26, %v13522_v37  ;;  %13527 = vst [vmem:[#allocation71_spill] sm:$0xff] %v8996_v14  ;;  %v903_v18 = vadd.f32 %v871_v50, %v838_v15  ;;  %v1196_v37 = vmul.f32 %v13457_v41, %v13528_v27  ;;  %v13530_v26 = vld [vmem:[#allocation24_spill] sm:$0xff]  ;;  %v9007_v34 = vmul.f32 %v13532_v11, %v13531_v20  ;;  %v13534_v21 = vld [vmem:[#allocation37_spill] sm:$0xff]  ;;  %v13536_v50 = vld [vmem:[#allocation75_spill] sm:$0xff] }
 0x230   : > { %v1261_v35 = vmul.f32 %v13530_v26, %v13529_v33  ;;  %v9011_v2 = vmul.f32 %v13534_v21, %v13533_v10  ;;  %5073 = vmatmul.msk.bf16.gmra.mxu0 %vm3527_vm7, %v4240_v43  ;;  %v579_v14 = vadd.f32 %v547_v17, %v514_v45  ;;  %v9015_v59 = vld [vmem:[%s5644_s26 + $0xe0] sm:$0xff]  ;;  %v1291_v57 = vadd.f32 %v13536_v50, %v1226_v49  ;;  %v9025_v0 = vld [vmem:[%s5644_s26 + $0xf0] sm:$0xff]  ;;  %v3572_v50 = vpop.xlane.xlu0 %3571 }
 0x231   : > { %13535 = vst [vmem:[#allocation86_spill] sm:$0xff] %v9015_v59  ;;  %v677_v41 = vmul.f32 %v9015_v59, %v13442_v31  ;;  %v968_v15 = vadd.f32 %v936_v55, %v903_v18  ;;  %v9020_v26 = vadd.f32 %v1489_v28, %v1456_v3  ;;  %v13537_v11 = vld [vmem:[#allocation33_spill] sm:$0xff]  ;;  %v742_v45 = vmul.f32 %v9025_v0, %v13444_v19  ;;  %v9032_v59 = vld [vmem:[%s5644_s26 + $0x10] sm:$0xff] }
 0x232   : > { %v3708_v24 = vmul.f32 %v13537_v11, %v13537_v11  ;;  %v644_v21 = vadd.f32 %v612_v40, %v579_v14  ;;  %13538 = vst [vmem:[#allocation43_spill] sm:$0xff] %v9025_v0  ;;  %v13539_v17 = vld [vmem:[#allocation65_spill] sm:$0xff]  ;;  %v872_v55 = vmul.f32 %v9032_v59, %v13483_v56  ;;  %v13541_v3 = vld [vmem:[#allocation79_spill] sm:$0xff]  ;;  %v13543_v11 = vld [vmem:[#allocation60_spill] sm:$0xff] }
 0x233   : > { %v807_v43 = vmul.f32 %v13539_v17, %v13481_v6  ;;  %13540 = vst [vmem:[#allocation87_spill] sm:$0xff] %v9032_v59  ;;  %v1356_v28 = vadd.f32 %v13541_v3, %v1291_v57  ;;  %v1033_v49 = vadd.f32 %v1001_v44, %v968_v15  ;;  %v9039_v40 = vld [vmem:[%s5644_s26 + $0x20] sm:$0xff]  ;;  %v1002_v0 = vmul.f32 %v13543_v11, %v13488_v5  ;;  %v9051_v44 = vld [vmem:[%s5644_s26 + $0x50] sm:$0xff]  ;;  %v13546_v15 = vld [vmem:[#allocation90_spill] sm:$0xff] }
 0x234   : > { %v3766_v14 = vsel %vm3527_vm7, %v3708_v24, 0.0  ;;  %13542 = vst [vmem:[#allocation5_spill] sm:$0xff] %v9039_v40  ;;  %v937_v18 = vmul.f32 %v9039_v40, %v12988_v62  ;;  %v709_v17 = vadd.f32 %v677_v41, %v644_v21  ;;  %v9046_v6 = vld [vmem:[%s5644_s26 + $0x40] sm:$0xff]  ;;  %v1132_v24 = vmul.f32 %v9051_v44, %v13526_v8  ;;  %v9063_v11 = vld [vmem:[%s5644_s26 + $0x70] sm:$0xff]  ;;  %v13551_v8 = vld [vmem:[#allocation32_spill] sm:$0xff] }
 0x235   : > { %3767 = vadd.xlane.f32.xlu0 %v3766_v14  ;;  %13544 = vst [vmem:[#allocation88_spill] sm:$0xff] %v9046_v6  ;;  %v1067_v57 = vmul.f32 %v9046_v6, %v12994_v51  ;;  %v1421_v3 = vadd.f32 %v13546_v15, %v1356_v28  ;;  %v1098_v40 = vadd.f32 %v8907_v48, %v1033_v49  ;;  %v9058_v14 = vld [vmem:[%s5644_s26 + $0x60] sm:$0xff]  ;;  %v13549_v28 = vld [vmem:[#allocation44_spill] sm:$0xff] }
 0x236   : > { %13545 = vst [vmem:[#allocation73_spill] sm:$0xff] %v9051_v44  ;;  %v1197_v21 = vmul.f32 %v9058_v14, %v13528_v27  ;;  %v9067_v41 = vmul.f32 %v9063_v11, %v13529_v33  ;;  %v3645_v6 = vmul.f32 %v13293_v22, %v3572_v50  ;;  %v3707_v44 = vmul.f32 %v8874_v30, %v8874_v30 }
 0x237   : > { %13547 = vst [vmem:[#allocation76_spill] sm:$0xff] %v9058_v14  ;;  %v774_v59 = vadd.f32 %v742_v45, %v709_v17  ;;  %v9074_v48 = vmul.f32 %v13549_v28, %v13531_v20  ;;  %v1551_v49 = vadd.f32 %v8857_v7, %v1421_v3  ;;  %v1163_v15 = vadd.f32 %v1131_v63, %v1098_v40  ;;  %v13550_v14 = vld [vmem:[#allocation31_spill] sm:$0xff]  ;;  %v13552_v17 = vld [vmem:[#allocation36_spill] sm:$0xff] }
 0x238   : > { %13548 = vst [vmem:[#allocation67_spill] sm:$0xff] %v9063_v11  ;;  %v1587_v27 = vmul.f32 %v8971_v16, %v13550_v14  ;;  %v1588_v11 = vmul.f32 %v8721_v12, %v13550_v14  ;;  %v1620_v50 = vmul.f32 %v8721_v12, %v13551_v8  ;;  %v1621_v45 = vmul.f32 %v8971_v16, %v13551_v8  ;;  %v13553_v40 = vld [vmem:[#allocation40_spill] sm:$0xff] }
 0x239   : > { %v839_v33 = vadd.f32 %v807_v43, %v774_v59  ;;  %v1862_v28 = vmul.f32 %v8971_v16, %v13552_v17  ;;  %v1826_v30 = vadd.f32 %v8825_v9, %v1551_v49  ;;  %v1228_v7 = vadd.f32 %v1196_v37, %v1163_v15 }
 0x23a   : > { %v1863_v63 = vmul.f32 %v8721_v12, %v13552_v17  ;;  %v1895_v3 = vmul.f32 %v8721_v12, %v13553_v40  ;;  %v1457_v59 = vmul.f32 %v8971_v16, %v13071_v58  ;;  %v1490_v43 = vmul.f32 %v8721_v12, %v13415_v32 }
 0x23b   : > { %v904_v14 = vadd.f32 %v872_v55, %v839_v33  ;;  %v1896_v8 = vmul.f32 %v8971_v16, %v13553_v40  ;;  %v2101_v20 = vadd.f32 %v8834_v36, %v1826_v30  ;;  %v1293_v9 = vadd.f32 %v1261_v35, %v1228_v7  ;;  %v13554_v40 = vld [vmem:[#allocation82_spill] sm:$0xff] }
 0x23c   : > { %v9099_v37 = vadd.f32 %v1620_v50, %v1587_v27  ;;  %v9101_v49 = vadd.f32 %v1621_v45, %v1588_v11  ;;  %v1392_v33 = vmul.f32 %v8937_v23, %v13533_v10  ;;  %v9105_v55 = vadd.f32 %v1895_v3, %v1862_v28  ;;  %v13556_v27 = vld [vmem:[#allocation41_spill] sm:$0xff]  ;;  %v9280_v23 = vld [vmem:[%s5644_s26 + $0x8] sm:$0xff] }
 0x23d   : > { %v969_v15 = vadd.f32 %v937_v18, %v904_v14  ;;  %v9107_v17 = vadd.f32 %v1896_v8, %v1863_v63  ;;  %v2376_v32 = vadd.f32 %v8841_v52, %v2101_v20  ;;  %v1358_v58 = vadd.f32 %v9007_v34, %v1293_v9  ;;  %v13557_v14 = vld [vmem:[#allocation42_spill] sm:$0xff] }
 0x23e   : > { %v9112_v51 = vsub.f32 %v13554_v40, %v3645_v6  ;;  %v9115_v36 = vsel %vm3527_vm7, %v3707_v44, 0.0  ;;  %v1522_v35 = vadd.f32 %v1490_v43, %v1457_v59  ;;  %v2137_v18 = vmul.f32 %v8971_v16, %v13556_v27  ;;  %v13559_v63 = vld [vmem:[#allocation50_spill] sm:$0xff]  ;;  %v13560_v59 = vld [vmem:[#allocation52_spill] sm:$0xff] }
 0x23f   : > { %v1034_v30 = vadd.f32 %v1002_v0, %v969_v15  ;;  %v2170_v11 = vmul.f32 %v8721_v12, %v13557_v14  ;;  %v2651_v8 = vadd.f32 %v8850_v46, %v2376_v32  ;;  %v1423_v20 = vadd.f32 %v9011_v2, %v1358_v58  ;;  %v13558_v58 = vld [vmem:[#allocation49_spill] sm:$0xff] }
 0x240   : > { %13555 = vst [vmem:[#allocation34_spill] sm:$0xff] %v9112_v51  ;;  %v12505_v52 = vrot.slane %v9099_v37, 1  ;;  %v12504_v6 = vrot.slane %v9101_v49, 1  ;;  %v12503_v44 = vrot.slane %v9105_v55, 2  ;;  %v12502_v0 = vrot.slane %v9107_v17, 2 }
 0x241   : > { %v1099_v34 = vadd.f32 %v1067_v57, %v1034_v30  ;;  %v2138_v50 = vmul.f32 %v8721_v12, %v13556_v27  ;;  %v2926_v45 = vadd.f32 %v8864_v38, %v2651_v8  ;;  %v1553_v28 = vadd.f32 %v9020_v26, %v1423_v20  ;;  %v13561_v30 = vld [vmem:[#allocation53_spill] sm:$0xff] }
 0x242   : > { %v2171_v32 = vmul.f32 %v8971_v16, %v13557_v14  ;;  %v2412_v46 = vmul.f32 %v8971_v16, %v13558_v58  ;;  %v9135_v7 = vadd.f32 %v2170_v11, %v2137_v18  ;;  %v2413_v57 = vmul.f32 %v8721_v12, %v13558_v58 }
 0x243   : > { %v1164_v2 = vadd.f32 %v1132_v24, %v1099_v34  ;;  %v2445_v40 = vmul.f32 %v8721_v12, %v13559_v63  ;;  %v3201_v3 = vadd.f32 %v8871_v47, %v2926_v45  ;;  %v1828_v38 = vadd.f32 %v8916_v4, %v1553_v28 }
 0x244   : > { %v2446_v26 = vmul.f32 %v8971_v16, %v13559_v63  ;;  %v2687_v43 = vmul.f32 %v8971_v16, %v13560_v59  ;;  %v1729_v24 = vsel %vm1696_vm0, %v12505_v52, %v12504_v6  ;;  %v2688_v15 = vmul.f32 %v8721_v12, %v13560_v59  ;;  %v13601_v59 = vld [vmem:[#allocation30_spill] sm:$0xff]  ;;  %v13602_v63 = vld [vmem:[#allocation47_spill] sm:$0xff] }
 0x245   : > { %v1229_v9 = vadd.f32 %v1197_v21, %v1164_v2  ;;  %v2720_v47 = vmul.f32 %v8721_v12, %v13561_v30  ;;  %v3476_v4 = vadd.f32 %v8885_v42, %v3201_v3  ;;  %v2103_v18 = vadd.f32 %v8927_v60, %v1828_v38  ;;  %v9174_v42 = vld [vmem:[%s11966_s4] ss:$0 sm:$0xff]  ;;  %v13564_v2 = vld [vmem:[#allocation54_spill] sm:$0xff] }
 0x246   : > { %v2004_v21 = vsel %vm1971_vm1, %v12503_v44, %v12502_v0  ;;  %v9163_v11 = vadd.f32 %v2171_v32, %v2138_v50  ;;  %v12507_v20 = vrot.slane %v9135_v7, 3  ;;  %v9167_v34 = vadd.f32 %v2445_v40, %v2412_v46  ;;  %13562 = vst [vmem:[#allocation59_spill] sm:$0xff] %v9174_v42 }
 0x247   : > { %v1294_v8 = vadd.f32 %v9067_v41, %v1229_v9  ;;  %v2721_v45 = vmul.f32 %v8971_v16, %v13561_v30  ;;  %v9177_v60 = vadd.f32 %v9174_v42, %v3476_v4  ;;  %v2378_v50 = vadd.f32 %v8934_v25, %v2103_v18  ;;  %v13565_v25 = vld [vmem:[#allocation55_spill] sm:$0xff] }
 0x248   : > { %v9180_v28 = vadd.f32 %v2446_v26, %v2413_v57  ;;  %v9182_v41 = vadd.f32 %v2720_v47, %v2687_v43  ;;  %v2962_v40 = vmul.f32 %v8971_v16, %v13564_v2  ;;  %v2963_v3 = vmul.f32 %v8721_v12, %v13564_v2  ;;  %v13566_v47 = vld [vmem:[#allocation56_spill] sm:$0xff]  ;;  %v13600_v30 = vld [vmem:[#allocation39_spill] sm:$0xff] }
 0x249   : > { %13563 = vst [vmem:[#allocation51_spill] sm:$0xff] %v9177_v60  ;;  %v1359_v32 = vadd.f32 %v9074_v48, %v1294_v8  ;;  %v9185_v46 = vadd.f32 %v2721_v45, %v2688_v15  ;;  %v3579_v38 = vsel %vm3527_vm7, %v9177_v60, 0.0  ;;  %v2653_v9 = vadd.f32 %v8946_v1, %v2378_v50  ;;  %v13567_v45 = vld [vmem:[#allocation58_spill] sm:$0xff]  ;;  %v13581_v60 = vld [vmem:[#allocation84_spill] sm:$0xff] }
 0x24a   : > { %v2995_v57 = vmul.f32 %v8721_v12, %v13565_v25  ;;  %v2996_v26 = vmul.f32 %v8971_v16, %v13565_v25  ;;  %3580 = vadd.xlane.f32.xlu2 %v3579_v38  ;;  %v12506_v43 = vrot.slane %v9163_v11, 3  ;;  %v3237_v4 = vmul.f32 %v8971_v16, %v13566_v47 }
 0x24b   : > { %v1424_v48 = vadd.f32 %v1392_v33, %v1359_v32  ;;  %v2928_v18 = vadd.f32 %v8953_v54, %v2653_v9  ;;  %v12508_v8 = vrot.slane %v9180_v28, 4  ;;  %v3238_v1 = vmul.f32 %v8721_v12, %v13566_v47  ;;  %v13597_v47 = vld [vmem:[#allocation29_spill] sm:$0xff] }
 0x24c   : > { %v3270_v50 = vmul.f32 %v8721_v12, %v13567_v45  ;;  %v9208_v38 = vadd.f32 %v2995_v57, %v2962_v40  ;;  %v3271_v33 = vmul.f32 %v8971_v16, %v13567_v45  ;;  %v3709_v32 = vmul.f32 %v9112_v51, %v9112_v51 }
 0x24d   : > { %v1554_v0 = vadd.f32 %v1522_v35, %v1424_v48  ;;  %v3203_v44 = vadd.f32 %v8962_v39, %v2928_v18  ;;  %v12510_v54 = vrot.slane %v9182_v41, 5  ;;  %v12509_v9 = vrot.slane %v9185_v46, 5 }
 0x24e   : > { %v9217_v6 = vadd.f32 %v2996_v26, %v2963_v3  ;;  %v9219_v15 = vadd.f32 %v3270_v50, %v3237_v4  ;;  %v3769_v35 = vsel %vm3527_vm7, %v3709_v32, 0.0  ;;  %v450_v40 = vmul.f32 %v8721_v12, %v13422_v61  ;;  %v13570_v4 = vld [vmem:[#allocation17_spill] sm:$0xff]  ;;  %v13572_v32 = vld [vmem:[#allocation12_spill] sm:$0xff] }
 0x24f   : > { %v1829_v52 = vadd.f32 %v1729_v24, %v1554_v0  ;;  %v3478_v57 = vadd.f32 %v8986_v29, %v3203_v44  ;;  %v2279_v39 = vsel %vm2246_vm2, %v12507_v20, %v12506_v43  ;;  %v9230_v48 = vadd.f32 %v3271_v33, %v3238_v1  ;;  %3770 = vadd.xlane.f32.xlu0 %v3769_v35  ;;  %v13569_v44 = vld [vmem:[#allocation10_spill] sm:$0xff]  ;;  %v13573_v35 = vld [vmem:[#allocation91_spill] sm:$0xff] }
 0x250   : > { %v483_v0 = vmul.f32 %v8728_v53, %v13423_v13  ;;  %v13568_v3 = vrot.slane %v9167_v34, 4  ;;  %v548_v18 = vmul.f32 %v13570_v4, %v13569_v44  ;;  %v1263_v58 = vmul.f32 %v13602_v63, %v13601_v59 }
 0x251   : > { %v2104_v24 = vadd.f32 %v2004_v21, %v1829_v52  ;;  %v9243_v50 = vadd.f32 %v9174_v42, %v3478_v57  ;;  %v613_v52 = vmul.f32 %v13573_v35, %v13572_v32  ;;  %v13574_v21 = vld [vmem:[#allocation20_spill] sm:$0xff]  ;;  %v13579_v57 = vrot.slane %v9208_v38, 6 }
 0x252   : > { %v2554_v26 = vsel %vm2521_vm3, %v13568_v3, %v12508_v8  ;;  %v515_v33 = vadd.f32 %v483_v0, %v450_v40  ;;  %v3931_v43 = vsub.f32 1.5, %v13574_v21  ;;  %3764 = vadd.xlane.f32.xlu2 %v9115_v36  ;;  %v2829_v3 = vsel %vm2796_vm4, %v12510_v54, %v12509_v9  ;;  %v13575_v21 = vld [vmem:[#allocation15_spill] sm:$0xff]  ;;  %v13576_v36 = vld [vmem:[#allocation69_spill] sm:$0xff] }
 0x253   : > { %13571 = vst [vmem:[#allocation62_spill] sm:$0xff] %v9243_v50  ;;  %v2379_v20 = vadd.f32 %v2279_v39, %v2104_v24  ;;  %v3585_v40 = vsel %vm3527_vm7, %v9243_v50, 0.0  ;;  %v678_v29 = vmul.f32 %v13575_v21, %v13442_v31  ;;  %v3941_v39 = vsub.f32 1.5, %v13576_v36  ;;  %v13577_v24 = vld [vmem:[#allocation6_spill] sm:$0xff] }
 0x254   : > { %v580_v8 = vadd.f32 %v548_v18, %v515_v33  ;;  %v3829_v1 = vmul.f32 %v13577_v24, %v13293_v22  ;;  %3586 = vadd.xlane.f32.xlu1 %v3585_v40  ;;  %v13578_v54 = vrot.slane %v9217_v6, 6  ;;  %v13580_v18 = vld [vmem:[#allocation92_spill] sm:$0xff]  ;;  %v9272_v36 = vmul.f32 %v13581_v60, %v3931_v43 }
 0x255   : > { %v2654_v9 = vadd.f32 %v2554_v26, %v2379_v20  ;;  %v743_v33 = vmul.f32 %v13580_v18, %v13444_v19  ;;  %v13583_v24 = vrot.slane %v9230_v48, 7  ;;  %v13584_v40 = vrot.slane %v9219_v15, 7 }
 0x256   : > { %v3104_v51 = vsel %vm12758_vm5, %v13579_v57, %v13578_v54  ;;  %v645_v50 = vadd.f32 %v613_v52, %v580_v8  ;;  %13582 = vst [vmem:[#allocation74_spill] sm:$0xff] %v9272_v36  ;;  %v13585_v54 = vld [vmem:[#allocation16_spill] sm:$0xff]  ;;  %v13586_v52 = vld [vmem:[#allocation85_spill] sm:$0xff]  ;;  %v452_v57 = vmul.f32 %v8728_v53, %v13422_v61  ;;  %v13599_v36 = vld [vmem:[#allocation38_spill] sm:$0xff]  ;;  %vm3934_vm14 = vweird.f32 %v13581_v60 }
 0x257   : > { %v2929_v0 = vadd.f32 %v2829_v3, %v2654_v9  ;;  %v3379_v20 = vsel %vm3346_vm6, %v13584_v40, %v13583_v24  ;;  %v808_v8 = vmul.f32 %v9280_v23, %v13585_v54  ;;  %v9285_v9 = vmul.f32 %v13586_v52, %v3941_v39  ;;  %v9292_v24 = vld [vmem:[%s5644_s26 + $0x18] sm:$0xff] }
 0x258   : > { %v710_v26 = vadd.f32 %v678_v29, %v645_v50  ;;  %v9287_v3 = vadd.f32 1e-06, %v3829_v1  ;;  %13589 = vst [vmem:[#allocation26_spill] sm:$0xff] %v9292_v24  ;;  %v873_v29 = vmul.f32 %v9292_v24, %v13483_v56  ;;  %v485_v50 = vmul.f32 %v13570_v4, %v13423_v13  ;;  %v9301_v1 = vld [vmem:[%s5644_s26 + $0x28] sm:$0xff]  ;;  %v9316_v13 = vld [vmem:[%s5644_s26 + $0x58] sm:$0xff] }
 0x259   : > { %13587 = vst [vmem:[#allocation77_spill] sm:$0xff] %v9285_v9  ;;  %v3204_v43 = vadd.f32 %v3104_v51, %v2929_v0  ;;  %v550_v39 = vmul.f32 %v13573_v35, %v13569_v44  ;;  %v938_v51 = vmul.f32 %v9301_v1, %v12988_v62  ;;  %v9306_v0 = vld [vmem:[%s5644_s26 + $0x38] sm:$0xff]  ;;  %v13595_v35 = vld [vmem:[#allocation27_spill] sm:$0xff]  ;;  %v615_v44 = vmul.f32 %v13575_v21, %v13572_v32 }
 0x25a   : > { %13588 = vst [vmem:[#allocation28_spill] sm:$0xff] %v9287_v3  ;;  %v775_v22 = vadd.f32 %v743_v33, %v710_v26  ;;  %v1003_v33 = vmul.f32 %v9306_v0, %v13488_v5  ;;  %v9311_v26 = vld [vmem:[%s5644_s26 + $0x48] sm:$0xff]  ;;  %v13593_v3 = vld [vmem:[#allocation25_spill] sm:$0xff]  ;;  %v13598_v9 = vld [vmem:[#allocation24_spill] sm:$0xff]  ;;  %v1458_v2 = vmul.f32 %v8721_v12, %v13599_v36  ;;  %v680_v21 = vmul.f32 %v13580_v18, %v13442_v31 }
 0x25b   : > { %v3479_v40 = vadd.f32 %v3379_v20, %v3204_v43  ;;  %13590 = vst [vmem:[#allocation18_spill] sm:$0xff] %v9301_v1  ;;  %v1068_v45 = vmul.f32 %v9311_v26, %v13593_v3  ;;  %v1133_v20 = vmul.f32 %v9316_v13, %v13595_v35  ;;  %v517_v43 = vadd.f32 %v485_v50, %v452_v57 }
 0x25c   : > { %13591 = vst [vmem:[#allocation45_spill] sm:$0xff] %v9306_v0  ;;  %v840_v4 = vadd.f32 %v808_v8, %v775_v22  ;;  %v1198_v25 = vmul.f32 %v13598_v9, %v13597_v47  ;;  %v1491_v22 = vmul.f32 %v8971_v16, %v13600_v30  ;;  %v13605_v47 = vld [vmem:[#allocation14_spill] sm:$0xff]  ;;  %v13606_v16 = vrot.slane %v9099_v37, 1 }
 0x25d   : > { %13592 = vst [vmem:[#allocation75_spill] sm:$0xff] %v9311_v26  ;;  %v9323_v61 = vadd.f32 %v9174_v42, %v3479_v40  ;;  %v582_v57 = vadd.f32 %v550_v39, %v517_v43  ;;  %v13603_v40 = vld [vmem:[#allocation35_spill] sm:$0xff]  ;;  %v13604_v42 = vld [vmem:[#allocation37_spill] sm:$0xff]  ;;  %v9341_v12 = vmul.f32 %v13605_v47, %v13533_v10  ;;  %v13608_v18 = vrot.slane %v9105_v55, 2 }
 0x25e   : > { %13594 = vst [vmem:[#allocation65_spill] sm:$0xff] %v9316_v13  ;;  %v905_v8 = vadd.f32 %v873_v29, %v840_v4  ;;  %v1328_v32 = vmul.f32 %v13604_v42, %v13603_v40  ;;  %v13607_v29 = vrot.slane %v9101_v49, 1  ;;  %v13609_v43 = vrot.slane %v9107_v17, 2 }
 0x25f   : > { %13596 = vst [vmem:[#allocation79_spill] sm:$0xff] %v9323_v61  ;;  %v3588_v50 = vsel %vm3527_vm7, %v9323_v61, 0.0  ;;  %v647_v31 = vadd.f32 %v615_v44, %v582_v57  ;;  %v745_v47 = vmul.f32 %v9280_v23, %v13444_v19  ;;  %v9359_v10 = vadd.f32 %v1491_v22, %v1458_v2 }
 0x260   : > { %v9348_v4 = vsel %vm1696_vm0, %v13607_v29, %v13606_v16  ;;  %3589 = vadd.xlane.f32.xlu1 %v3588_v50  ;;  %v970_v39 = vadd.f32 %v938_v51, %v905_v8  ;;  %v9355_v61 = vsel %vm1971_vm1, %v13609_v43, %v13608_v18  ;;  %v13610_v37 = vrot.slane %v9135_v7, 3  ;;  %v13621_v29 = vld [vmem:[#allocation81_spill] sm:$0xff]  ;;  %v13622_v18 = vld [vmem:[#allocation32_spill] sm:$0xff] }
 0x261   : > { %v13611_v16 = vrot.slane %v9163_v11, 3  ;;  %v13612_v55 = vrot.slane %v9167_v34, 4  ;;  %v13613_v17 = vrot.slane %v9180_v28, 4  ;;  %v13614_v44 = vrot.slane %v9182_v41, 5 }
 0x262   : > { %v13615_v8 = vrot.slane %v9185_v46, 5  ;;  %v1035_v7 = vadd.f32 %v1003_v33, %v970_v39  ;;  %v13616_v11 = vrot.slane %v9208_v38, 6  ;;  %v13617_v22 = vrot.slane %v9217_v6, 6  ;;  %v13620_v38 = vld [vmem:[#allocation31_spill] sm:$0xff] }
 0x263   : > { %v9366_v49 = vsel %vm2246_vm2, %v13611_v16, %v13610_v37  ;;  %v9373_v51 = vsel %vm2521_vm3, %v13613_v17, %v13612_v55  ;;  %v712_v34 = vadd.f32 %v680_v21, %v647_v31  ;;  %v810_v28 = vmul.f32 %v9292_v24, %v13585_v54  ;;  %v13624_v55 = vld [vmem:[#allocation40_spill] sm:$0xff] }
 0x264   : > { %v9380_v2 = vsel %vm2796_vm4, %v13615_v8, %v13614_v44  ;;  %v9387_v57 = vsel %vm12758_vm5, %v13617_v22, %v13616_v11  ;;  %v13618_v50 = vrot.slane %v9219_v15, 7  ;;  %v13619_v41 = vrot.slane %v9230_v48, 7  ;;  %v13623_v48 = vld [vmem:[#allocation36_spill] sm:$0xff]  ;;  %v13626_v22 = vld [vmem:[#allocation11_spill] sm:$0xff] }
 0x265   : > { %v875_v33 = vmul.f32 %v9301_v1, %v13483_v56  ;;  %v1589_v6 = vmul.f32 %v13621_v29, %v13620_v38  ;;  %v1590_v39 = vmul.f32 %v8728_v53, %v13620_v38  ;;  %v1100_v31 = vadd.f32 %v1068_v45, %v1035_v7  ;;  %v13625_v45 = vld [vmem:[#allocation21_spill] sm:$0xff] }
 0x266   : > { %v9396_v46 = vsel %vm3346_vm6, %v13619_v41, %v13618_v50  ;;  %v777_v21 = vadd.f32 %v745_v47, %v712_v34  ;;  %v1622_v43 = vmul.f32 %v8728_v53, %v13622_v18  ;;  %v1623_v15 = vmul.f32 %v13621_v29, %v13622_v18  ;;  %v13627_v1 = vld [vmem:[#allocation29_spill] sm:$0xff] }
 0x267   : > { %v1864_v37 = vmul.f32 %v13621_v29, %v13623_v48  ;;  %v1865_v16 = vmul.f32 %v8728_v53, %v13623_v48  ;;  %v1897_v17 = vmul.f32 %v8728_v53, %v13624_v55  ;;  %v1898_v44 = vmul.f32 %v13621_v29, %v13624_v55 }
 0x268   : > { %vm3933_vm13 = vweird.f32 %v13625_v45  ;;  %v1165_v47 = vadd.f32 %v1133_v20, %v1100_v31  ;;  %v842_v8 = vadd.f32 %v810_v28, %v777_v21  ;;  %v940_v7 = vmul.f32 %v9306_v0, %v12988_v62 }
 0x269   : > { %v1005_v11 = vmul.f32 %v9311_v26, %v13488_v5  ;;  %vm3943_vm15 = vweird.f32 %v13626_v22  ;;  %vm3944_vm8 = vweird.f32 %v13586_v52  ;;  %v2139_v34 = vmul.f32 %v13621_v29, %v13556_v27  ;;  %vm9484_vm9 = vmor %vm3933_vm13, %vm3934_vm14 }
 0x26a   : > { %v2140_v50 = vmul.f32 %v8728_v53, %v13556_v27  ;;  %v2172_v20 = vmul.f32 %v8728_v53, %v13557_v14  ;;  %v2173_v28 = vmul.f32 %v13621_v29, %v13557_v14  ;;  %v1230_v41 = vadd.f32 %v1198_v25, %v1165_v47  ;;  %vm9504_vm10 = vmor %vm3943_vm15, %vm3944_vm8 }
 0x26b   : > { %v907_v31 = vadd.f32 %v875_v33, %v842_v8  ;;  %v9432_v21 = vadd.f32 %v1622_v43, %v1589_v6  ;;  %v9434_v26 = vadd.f32 %v1623_v15, %v1590_v39  ;;  %v1070_v55 = vmul.f32 %v9316_v13, %v13593_v3 }
 0x26c   : > { %v1135_v48 = vmul.f32 %v13598_v9, %v13595_v35  ;;  %v9440_v18 = vadd.f32 %v1897_v17, %v1864_v37  ;;  %v9442_v27 = vadd.f32 %v1898_v44, %v1865_v16  ;;  %v1295_v38 = vadd.f32 %v1263_v58, %v1230_v41  ;;  %v13628_v17 = vld [vmem:[#allocation49_spill] sm:$0xff] }
 0x26d   : > { %v972_v0 = vadd.f32 %v940_v7, %v907_v31  ;;  %v1200_v25 = vmul.f32 %v13602_v63, %v13627_v1  ;;  %v1265_v33 = vmul.f32 %v13604_v42, %v13601_v59  ;;  %v1460_v6 = vmul.f32 %v8728_v53, %v13599_v36 }
 0x26e   : > { %v1493_v39 = vmul.f32 %v13621_v29, %v13600_v30  ;;  %v9452_v43 = vadd.f32 %v2172_v20, %v2139_v34  ;;  %v9454_v9 = vadd.f32 %v2173_v28, %v2140_v50  ;;  %v1360_v15 = vadd.f32 %v1328_v32, %v1295_v38  ;;  %v13629_v32 = vld [vmem:[#allocation50_spill] sm:$0xff]  ;;  %v13630_v50 = vld [vmem:[#allocation52_spill] sm:$0xff]  ;;  %v13631_v28 = vld [vmem:[#allocation53_spill] sm:$0xff] }
 0x26f   : > { %v1037_v37 = vadd.f32 %v1005_v11, %v972_v0  ;;  %v12546_v58 = vrot.slane %v9432_v21, 1  ;;  %v12547_v16 = vrot.slane %v9434_v26, 1  ;;  %v2414_v44 = vmul.f32 %v13621_v29, %v13628_v17  ;;  %v9489_v34 = vld [vmem:[%s5644_s26 + $0x98] sm:$0xff] }
 0x270   : > { %v2415_v47 = vmul.f32 %v8728_v53, %v13628_v17  ;;  %v1425_v8 = vadd.f32 %v9341_v12, %v1360_v15  ;;  %v2447_v0 = vmul.f32 %v8728_v53, %v13629_v32  ;;  %v2448_v38 = vmul.f32 %v13621_v29, %v13629_v32  ;;  %13634 = vst [vmem:[#allocation60_spill] sm:$0xff] %v9489_v34 }
 0x271   : > { %v1102_v7 = vadd.f32 %v1070_v55, %v1037_v37  ;;  %v2689_v20 = vmul.f32 %v13621_v29, %v13630_v50  ;;  %v2722_v41 = vmul.f32 %v8728_v53, %v13631_v28  ;;  %v2690_v55 = vmul.f32 %v8728_v53, %v13630_v50 }
 0x272   : > { %v1555_v31 = vadd.f32 %v9359_v10, %v1425_v8  ;;  %v2723_v15 = vmul.f32 %v13621_v29, %v13631_v28  ;;  %v1330_v10 = vmul.f32 %v9489_v34, %v13603_v40  ;;  %v13636_v8 = vld [vmem:[#allocation66_spill] sm:$0xff]  ;;  %v1525_v11 = vadd.f32 %v1493_v39, %v1460_v6 }
 0x273   : > { %v1167_v12 = vadd.f32 %v1135_v48, %v1102_v7  ;;  %v13635_v48 = vld [vmem:[#allocation46_spill] sm:$0xff]  ;;  %v1804_v42 = vsel %vm1696_vm0, %v12547_v16, %v12546_v58  ;;  %v13640_v6 = vrot.slane %v9442_v27, 2  ;;  %v9514_v50 = vadd.f32 %v2447_v0, %v2414_v44 }
 0x274   : > { %v1395_v7 = vmul.f32 %v13636_v8, %v13635_v48  ;;  %v1830_v63 = vadd.f32 %v9348_v4, %v1555_v31  ;;  %v13639_v8 = vrot.slane %v9440_v18, 2  ;;  %v13641_v58 = vrot.slane %v9452_v43, 3  ;;  %v13643_v4 = vld [vmem:[#allocation54_spill] sm:$0xff] }
 0x275   : > { %v1232_v28 = vadd.f32 %v1200_v25, %v1167_v12  ;;  %v13642_v16 = vrot.slane %v9454_v9, 3  ;;  %v9521_v32 = vadd.f32 %v2448_v38, %v2415_v47  ;;  %v9523_v17 = vadd.f32 %v2722_v41, %v2689_v20  ;;  %v13644_v44 = vld [vmem:[#allocation74_spill] sm:$0xff]  ;;  %v13646_v20 = vld [vmem:[#allocation77_spill] sm:$0xff] }
 0x276   : > { %v2079_v39 = vsel %vm1971_vm1, %v13640_v6, %v13639_v8  ;;  %v2964_v25 = vmul.f32 %v13621_v29, %v13643_v4  ;;  %v2105_v31 = vadd.f32 %v9355_v61, %v1830_v63  ;;  %v9528_v14 = vadd.f32 %v2723_v15, %v2690_v55  ;;  %v13649_v15 = vld [vmem:[#allocation56_spill] sm:$0xff]  ;;  %v13657_v34 = vld [vmem:[#allocation86_spill] sm:$0xff] }
 0x277   : > { %v2354_v22 = vsel %vm2246_vm2, %v13642_v16, %v13641_v58  ;;  %v1297_v12 = vadd.f32 %v1265_v33, %v1232_v28  ;;  %v3936_v0 = vsel %vm9484_vm9, %v13581_v60, %v13644_v44  ;;  %v2965_v58 = vmul.f32 %v8728_v53, %v13643_v4  ;;  %v13645_v16 = vld [vmem:[#allocation55_spill] sm:$0xff]  ;;  %v13647_v28 = vld [vmem:[#allocation61_spill] sm:$0xff]  ;;  %v13650_v6 = vld [vmem:[#allocation8_spill] sm:$0xff] }
 0x278   : > { %v2997_v47 = vmul.f32 %v8728_v53, %v13645_v16  ;;  %v2998_v38 = vmul.f32 %v13621_v29, %v13645_v16  ;;  %v3946_v61 = vsel %vm9504_vm10, %v13586_v52, %v13646_v20  ;;  %v2380_v33 = vadd.f32 %v9366_v49, %v2105_v31  ;;  %v13648_v60 = vld [vmem:[#allocation89_spill] sm:$0xff]  ;;  %v13652_v4 = vld [vmem:[#allocation23_spill] sm:$0xff]  ;;  %v13653_v31 = vld [vmem:[#allocation10_spill] sm:$0xff] }
 0x279   : > { %v1362_v63 = vadd.f32 %v1330_v10, %v1297_v12  ;;  %v4211_v41 = vmul.f32 %v3936_v0, %v13647_v28  ;;  %v4212_v55 = vmul.f32 %v3946_v61, %v13648_v60  ;;  %v3239_v37 = vmul.f32 %v13621_v29, %v13649_v15  ;;  %v13651_v16 = vld [vmem:[#allocation9_spill] sm:$0xff]  ;;  %v13654_v12 = vld [vmem:[#allocation71_spill] sm:$0xff]  ;;  %v13655_v20 = vld [vmem:[#allocation58_spill] sm:$0xff] }
 0x27a   : > { %v3240_v8 = vmul.f32 %v8728_v53, %v13649_v15  ;;  %v451_v44 = vmul.f32 %v13621_v29, %v13650_v6  ;;  %v484_v45 = vmul.f32 %v13652_v4, %v13651_v16  ;;  %v2655_v52 = vadd.f32 %v9373_v51, %v2380_v33  ;;  %v13656_v15 = vld [vmem:[#allocation12_spill] sm:$0xff] }
 0x27b   : > { %v1427_v49 = vadd.f32 %v1395_v7, %v1362_v63  ;;  %v4241_v10 = vpack.c.bf16 %v4212_v55, %v4211_v41  ;;  %v549_v0 = vmul.f32 %v13654_v12, %v13653_v31  ;;  %v3272_v61 = vmul.f32 %v8728_v53, %v13655_v20  ;;  %v13658_v55 = vld [vmem:[#allocation13_spill] sm:$0xff] }
 0x27c   : > { %v3273_v28 = vmul.f32 %v13621_v29, %v13655_v20  ;;  %v516_v60 = vadd.f32 %v484_v45, %v451_v44  ;;  %v614_v13 = vmul.f32 %v13657_v34, %v13656_v15  ;;  %v2930_v24 = vadd.f32 %v9380_v2, %v2655_v52  ;;  %v13659_v44 = vld [vmem:[#allocation43_spill] sm:$0xff] }
 0x27d   : > { %v1557_v4 = vadd.f32 %v1525_v11, %v1427_v49  ;;  %v12563_v51 = vrot.slane %v9514_v50, 4  ;;  %v12564_v7 = vrot.slane %v9521_v32, 4  ;;  %5074 = vmatmul.msk.bf16.gmra.mxu0 %vm3527_vm7, %v4241_v10  ;;  %v9568_v33 = vadd.f32 %v2997_v47, %v2964_v25  ;;  %v9582_v25 = vld [vmem:[%s5644_s26] sm:$0xff] }
 0x27e   : > { %v9570_v63 = vadd.f32 %v2998_v38, %v2965_v58  ;;  %v581_v41 = vadd.f32 %v549_v0, %v516_v60  ;;  %v679_v45 = vmul.f32 %v13659_v44, %v13658_v55  ;;  %v3205_v34 = vadd.f32 %v9387_v57, %v2930_v24  ;;  %v13661_v0 = vld [vmem:[#allocation28_spill] sm:$0xff]  ;;  %v13664_v44 = vld [vmem:[#allocation5_spill] sm:$0xff] }
 0x27f   : > { %v1832_v12 = vadd.f32 %v1804_v42, %v1557_v4  ;;  %v12559_v2 = vrot.slane %v9523_v17, 5  ;;  %v12562_v11 = vrot.slane %v9528_v14, 5  ;;  %v9577_v52 = vadd.f32 %v3272_v61, %v3239_v37  ;;  %v13660_v37 = vld [vmem:[#allocation87_spill] sm:$0xff] }
 0x280   : > { %v9579_v49 = vadd.f32 %v3273_v28, %v3240_v8  ;;  %v646_v10 = vadd.f32 %v614_v13, %v581_v41  ;;  %v744_v58 = vmul.f32 %v9582_v25, %v13444_v19  ;;  %v3480_v47 = vadd.f32 %v9396_v46, %v3205_v34  ;;  %v13662_v61 = vld [vmem:[#allocation59_spill] sm:$0xff] }
 0x281   : > { %v2107_v38 = vadd.f32 %v2079_v39, %v1832_v12  ;;  %v2629_v24 = vsel %vm2521_vm3, %v12564_v7, %v12563_v51  ;;  %v12557_v57 = vrot.slane %v9568_v33, 6  ;;  %v12558_v42 = vrot.slane %v9570_v63, 6 }
 0x282   : > { %v711_v13 = vadd.f32 %v679_v45, %v646_v10  ;;  %v809_v8 = vmul.f32 %v13660_v37, %v13585_v54  ;;  %5209 = vrsqrt.f32 %v13661_v0  ;;  %v9598_v46 = vadd.f32 %v13662_v61, %v3480_v47  ;;  %v9617_v47 = vld [vmem:[%s5644_s26 + $0x30] sm:$0xff]  ;;  %v13665_v37 = vld [vmem:[#allocation88_spill] sm:$0xff] }
 0x283   : > { %v2382_v39 = vadd.f32 %v2354_v22, %v2107_v38  ;;  %v2904_v28 = vsel %vm2796_vm4, %v12562_v11, %v12559_v2  ;;  %v12560_v60 = vrot.slane %v9577_v52, 7  ;;  %v12561_v4 = vrot.slane %v9579_v49, 7 }
 0x284   : > { %13663 = vst [vmem:[#allocation90_spill] sm:$0xff] %v9598_v46  ;;  %v776_v41 = vadd.f32 %v744_v58, %v711_v13  ;;  %v874_v45 = vmul.f32 %v13664_v44, %v13483_v56  ;;  %v3591_v34 = vsel %vm3527_vm7, %v9598_v46, 0.0  ;;  %v3179_v22 = vsel %vm12758_vm5, %v12558_v42, %v12557_v57  ;;  %v3762_v46 = vpop.xlane.xlu0 %3761 }
 0x285   : > { %v2657_v12 = vadd.f32 %v2629_v24, %v2382_v39  ;;  %3592 = vadd.xlane.f32.xlu2 %v3591_v34  ;;  %v939_v58 = vmul.f32 %v9617_v47, %v12988_v62  ;;  %v3454_v24 = vsel %vm3346_vm6, %v12561_v4, %v12560_v60  ;;  %v1004_v39 = vmul.f32 %v13665_v37, %v13488_v5 }
 0x286   : > { %v841_v10 = vadd.f32 %v809_v8, %v776_v41  ;;  %v13666_v41 = vld [vmem:[#allocation73_spill] sm:$0xff]  ;;  %vm3953_vm11 = vweird.f32 %v13661_v0 }
 0x287   : > { %v2932_v38 = vadd.f32 %v2904_v28, %v2657_v12  ;;  %v1069_v57 = vmul.f32 %v13666_v41, %v13593_v3  ;;  %v13667_v12 = vld [vmem:[#allocation76_spill] sm:$0xff] }
 0x288   : > { %v906_v13 = vadd.f32 %v874_v45, %v841_v10  ;;  %v9628_v44 = vpop.eup %5209  ;;  %v1134_v2 = vmul.f32 %v13667_v12, %v13595_v35  ;;  %v3750_v10 = vpop.xlane.xlu1 %3749 }
 0x289   : > { %v3207_v34 = vadd.f32 %v3179_v22, %v2932_v38  ;;  %v3948_v60 = vmul.f32 %v9628_v44, %v13661_v0  ;;  %v5138_v22 = vld [vmem:[%s11969_s7 + $0x38] sm:$0xff]  ;;  %v13669_v38 = vld [vmem:[#allocation67_spill] sm:$0xff]  ;;  %vm3954_vm12 = vweird.f32 %v9628_v44 }
 0x28a   : > { %v971_v8 = vadd.f32 %v939_v58, %v906_v13  ;;  %v1199_v13 = vmul.f32 %v13669_v38, %v13627_v1  ;;  %4752 = vmatpush.bf16.msra.mxu1 %v5138_v22  ;;  %5142 = vmatpush.bf16.msra.mxu2 %v5138_v22  ;;  %v1492_v22 = vmul.f32 %v8728_v53, %v13600_v30  ;;  %vm9680_vm15 = vmor %vm3953_vm11, %vm3954_vm12 }
 0x28b   : > { %v3482_v42 = vadd.f32 %v3454_v24, %v3207_v34  ;;  %v13670_v24 = vld [vmem:[#allocation68_spill] sm:$0xff] }
 0x28c   : > { %v1036_v28 = vadd.f32 %v1004_v39, %v971_v8  ;;  %v3830_v37 = vmul.f32 %v3750_v10, %v13670_v24  ;;  %v1459_v10 = vmul.f32 %v13621_v29, %v13599_v36  ;;  %v13675_v29 = vrot.slane %v9432_v21, 1 }
 0x28d   : > { %v9637_v45 = vadd.f32 %v13662_v61, %v3482_v42  ;;  %v9648_v42 = vld [vmem:[%s5644_s26 + $0x80] sm:$0xff]  ;;  %v13678_v21 = vrot.slane %v9454_v9, 3 }
 0x28e   : > { %v1101_v58 = vadd.f32 %v1069_v57, %v1036_v28  ;;  %13671 = vst [vmem:[#allocation82_spill] sm:$0xff] %v9648_v42  ;;  %v1264_v8 = vmul.f32 %v9648_v42, %v13601_v59  ;;  %v3862_v41 = vadd.f32 1e-06, %v3830_v37  ;;  %v3949_v57 = vmul.f32 %v9628_v44, %v3948_v60  ;;  %v13672_v28 = vld [vmem:[#allocation19_spill] sm:$0xff] }
 0x28f   : > { %13668 = vst [vmem:[#allocation44_spill] sm:$0xff] %v9637_v45  ;;  %v3597_v39 = vsel %vm3527_vm7, %v9637_v45, 0.0  ;;  %v1329_v12 = vmul.f32 %v13672_v28, %v13603_v40  ;;  %v1524_v51 = vadd.f32 %v1492_v22, %v1459_v10  ;;  %v3756_v45 = vpop.xlane.xlu2 %3755  ;;  %v13679_v22 = vrot.slane %v9452_v43, 3 }
 0x290   : > { %3598 = vadd.xlane.f32.xlu0 %v3597_v39  ;;  %v1166_v34 = vadd.f32 %v1134_v2, %v1101_v58  ;;  %5211 = vrsqrt.f32 %v3862_v41  ;;  %v13673_v58 = vld [vmem:[#allocation78_spill] sm:$0xff]  ;;  %v3950_v4 = vmul.f32 0.5, %v3949_v57  ;;  %v3753_v11 = vpop.xlane.xlu1 %3752  ;;  %v13677_v57 = vrot.slane %v9440_v18, 2 }
 0x291   : > { %v1394_v39 = vmul.f32 %v13673_v58, %v13635_v48  ;;  %vm3963_vm13 = vweird.f32 %v3862_v41  ;;  %v13682_v58 = vrot.slane %v9521_v32, 4 }
 0x292   : > { %v1231_v38 = vadd.f32 %v1199_v13, %v1166_v34  ;;  %v3951_v28 = vsub.f32 1.5, %v3950_v4  ;;  %v13674_v13 = vrot.slane %v9434_v26, 1 }
 0x294   : > { %v1296_v2 = vadd.f32 %v1264_v8, %v1231_v38  ;;  %v1732_v34 = vsel %vm1696_vm0, %v13675_v29, %v13674_v13  ;;  %v13676_v38 = vrot.slane %v9442_v27, 2  ;;  %v3952_v26 = vmul.f32 %v9628_v44, %v3951_v28  ;;  %v13684_v13 = vld [vmem:[#allocation7_spill] sm:$0xff] }
 0x295   : > { %v3832_v28 = vmul.f32 %v3756_v45, %v13670_v24 }
 0x296   : > { %v1361_v37 = vadd.f32 %v1329_v12, %v1296_v2  ;;  %v5212_v60 = vpop.eup %5211  ;;  %v2007_v12 = vsel %vm1971_vm1, %v13677_v57, %v13676_v38  ;;  %v3831_v57 = vmul.f32 %v3753_v11, %v13670_v24 }
 0x297   : > { %v3958_v53 = vmul.f32 %v5212_v60, %v3862_v41  ;;  %vm3964_vm14 = vweird.f32 %v5212_v60  ;;  %v13686_v41 = vrot.slane %v9528_v14, 5  ;;  %v3759_v45 = vpop.xlane.xlu2 %3758  ;;  %v3956_v14 = vsel %vm9680_vm15, %v9628_v44, %v3952_v26 }
 0x298   : > { %v1426_v7 = vadd.f32 %v1394_v39, %v1361_v37  ;;  %v3575_v27 = vpop.xlane.xlu1 %3574  ;;  %v13683_v39 = vrot.slane %v9514_v50, 4  ;;  %vm9698_vm8 = vmor %vm3963_vm13, %vm3964_vm14  ;;  %v3834_v50 = vmul.f32 %v3762_v46, %v13670_v24  ;;  %v13693_v46 = vrot.slane %v9577_v52, 7  ;;  %v13696_v52 = vld [vmem:[#allocation63_spill] sm:$0xff] }
 0x299   : > { %v3959_v10 = vmul.f32 %v5212_v60, %v3958_v53  ;;  %v3646_v18 = vmul.f32 %v13670_v24, %v3575_v27 }
 0x29a   : > { %v1556_v8 = vadd.f32 %v1524_v51, %v1426_v7  ;;  %v2282_v51 = vsel %vm2246_vm2, %v13679_v22, %v13678_v21  ;;  %v2557_v9 = vsel %vm2521_vm3, %v13683_v39, %v13682_v58  ;;  %v13692_v21 = vrot.slane %v9579_v49, 7  ;;  %v3584_v22 = vpop.xlane.xlu0 %3583  ;;  %v13695_v49 = vld [vmem:[#allocation70_spill] sm:$0xff] }
 0x29b   : > { %v3960_v7 = vmul.f32 0.5, %v3959_v10  ;;  %v9691_v29 = vsub.f32 %v13684_v13, %v3646_v18  ;;  %v13691_v10 = vrot.slane %v9568_v33, 6  ;;  %v3833_v33 = vmul.f32 %v3759_v45, %v13670_v24  ;;  %v5137_v45 = vld [vmem:[%s11969_s7 + $0x30] sm:$0xff] }
 0x29c   : > { %v1831_v4 = vadd.f32 %v1732_v34, %v1556_v8  ;;  %v13687_v34 = vrot.slane %v9523_v17, 5  ;;  %v13690_v17 = vrot.slane %v9570_v63, 6  ;;  %v3382_v11 = vsel %vm3346_vm6, %v13693_v46, %v13692_v21  ;;  %4753 = vmatpush.bf16.msra.mxu1 %v5137_v45  ;;  %v5136_v21 = vld [vmem:[%s11969_s7 + $0x28] sm:$0xff]  ;;  %5143 = vmatpush.bf16.msra.mxu2 %v5137_v45 }
 0x29d   : > { %v3961_v43 = vsub.f32 1.5, %v3960_v7  ;;  %13685 = vst [vmem:[#allocation17_spill] sm:$0xff] %v9691_v29  ;;  %v9719_v7 = vadd.f32 1e-06, %v3832_v28  ;;  %v9724_v63 = vadd.f32 1e-06, %v3834_v50 }
 0x29e   : > { %v2106_v2 = vadd.f32 %v2007_v12, %v1831_v4  ;;  %v2832_v53 = vsel %vm2796_vm4, %v13687_v34, %v13686_v41  ;;  %v3710_v12 = vmul.f32 %v9691_v29, %v9691_v29  ;;  %v3107_v4 = vsel %vm12758_vm5, %v13691_v10, %v13690_v17  ;;  %v13701_v34 = vld [vmem:[#allocation48_spill] sm:$0xff]  ;;  %v13720_v29 = vld [vmem:[#allocation45_spill] sm:$0xff] }
 0x29f   : > { %v3962_v8 = vmul.f32 %v5212_v60, %v3961_v43  ;;  %13694 = vst [vmem:[#allocation91_spill] sm:$0xff] %v9724_v63  ;;  %v9729_v58 = vadd.f32 1e-06, %v3831_v57  ;;  %5213 = vrsqrt.f32 %v9719_v7  ;;  %v9738_v13 = vadd.f32 1e-06, %v3833_v33 }
 0x2a0   : > { %v2381_v37 = vadd.f32 %v2282_v51, %v2106_v2  ;;  %v3772_v27 = vsel %vm3527_vm7, %v3710_v12, 0.0  ;;  %v3578_v26 = vpop.xlane.xlu1 %3577  ;;  %v4213_v2 = vmul.f32 %v3956_v14, %v13695_v49  ;;  %5215 = vrsqrt.f32 %v9724_v63  ;;  %v4332_v14 = vpop.f32.mrf.mxu0  ;;  %4754 = vmatpush.bf16.msra.mxu1 %v5136_v21  ;;  %5144 = vmatpush.bf16.msra.mxu2 %v5136_v21 }
 0x2a1   : > { %v3966_v44 = vsel %vm9698_vm8, %v5212_v60, %v3962_v8  ;;  %3773 = vadd.xlane.f32.xlu1 %v3772_v27  ;;  %v3647_v39 = vmul.f32 %v13670_v24, %v3578_v26  ;;  %v13697_v60 = vld [vmem:[#allocation80_spill] sm:$0xff]  ;;  %13699 = vst [vmem:[#allocation15_spill] sm:$0xff] %v9738_v13  ;;  %5217 = vrsqrt.f32 %v9729_v58  ;;  %vm3973_vm9 = vweird.f32 %v9729_v58 }
 0x2a2   : > { %v2656_v38 = vadd.f32 %v2557_v9, %v2381_v37  ;;  %v4214_v18 = vmul.f32 %v3966_v44, %v13696_v52  ;;  %v3649_v9 = vmul.f32 %v13670_v24, %v3584_v22  ;;  %5219 = vrsqrt.f32 %v9738_v13  ;;  %v9777_v22 = vld [vmem:[%s11968_s6] ss:$0 sm:$0xff] }
 0x2a3   : > { %v9735_v28 = vsub.f32 %v13697_v60, %v3647_v39  ;;  %13704 = vst [vmem:[#allocation84_spill] sm:$0xff] %v9777_v22  ;;  %v9788_v49 = vadd.f32 %v9777_v22, %v4332_v14  ;;  %vm3983_vm12 = vweird.f32 %v9719_v7 }
 0x2a4   : > { %v2931_v51 = vadd.f32 %v2832_v53, %v2656_v38  ;;  %v4242_v43 = vpack.c.bf16 %v4214_v18, %v4213_v2  ;;  %v9746_v53 = vsub.f32 %v13701_v34, %v3649_v9 }
 0x2a5   : > { %13698 = vst [vmem:[#allocation20_spill] sm:$0xff] %v9735_v28  ;;  %v3711_v8 = vmul.f32 %v9735_v28, %v9735_v28  ;;  %v9753_v38 = vpop.eup %5213  ;;  %v4412_v9 = vmul.f32 %v9788_v49, %v9788_v49 }
 0x2a6   : > { %v3206_v0 = vadd.f32 %v3107_v4, %v2931_v51  ;;  %5075 = vmatmul.msk.bf16.gmra.mxu0 %vm3527_vm7, %v4242_v43  ;;  %13702 = vst [vmem:[#allocation6_spill] sm:$0xff] %v9746_v53  ;;  %v9761_v12 = vpop.eup %5215  ;;  %v3978_v46 = vmul.f32 %v9753_v38, %v9719_v7  ;;  %vm3984_vm11 = vweird.f32 %v9753_v38 }
 0x2a7   : > { %v3775_v50 = vsel %vm3527_vm7, %v3711_v8, 0.0  ;;  %13703 = vst [vmem:[#allocation92_spill] sm:$0xff] %v9761_v12  ;;  %v9764_v10 = vpop.eup %5217  ;;  %v9803_v8 = vld [vmem:[%s5644_s26 + $0xc8] sm:$0xff]  ;;  %vm3985_vm14 = vmor %vm3983_vm12, %vm3984_vm11 }
 0x2a8   : > { %v3481_v37 = vadd.f32 %v3382_v11, %v3206_v0  ;;  %v3768_v57 = vpop.xlane.xlu0 %3767  ;;  %v3998_v11 = vmul.f32 %v9761_v12, %v9724_v63  ;;  %v3968_v51 = vmul.f32 %v9764_v10, %v9729_v58  ;;  %v9783_v44 = vpop.eup %5219  ;;  %v3979_v33 = vmul.f32 %v9753_v38, %v3978_v46  ;;  %13707 = vst [vmem:[#allocation25_spill] sm:$0xff] %v9788_v49  ;;  %v9896_v63 = vld [vmem:[%s5644_s26 + $0x88] sm:$0xff]  ;;  %v13753_v58 = vld [vmem:[#allocation55_spill] sm:$0xff] }
 0x2a9   : > { %3776 = vadd.xlane.f32.xlu1 %v3775_v50  ;;  %v3836_v17 = vmul.f32 %v3768_v57, %v13670_v24  ;;  %13706 = vst [vmem:[#allocation85_spill] sm:$0xff] %v9783_v44  ;;  %v3988_v52 = vmul.f32 %v9783_v44, %v9738_v13  ;;  %v4334_v18 = vpop.f32.mrf.mxu0  ;;  %v9808_v50 = vld [vmem:[%s5644_s26 + $0xd8] sm:$0xff]  ;;  %v9813_v57 = vld [vmem:[%s5644_s26 + $0xe8] sm:$0xff]  ;;  %vm3974_vm10 = vweird.f32 %v9764_v10 }
 0x2aa   : > { %v9742_v41 = vadd.f32 %v13662_v61, %v3481_v37  ;;  %v3713_v61 = vmul.f32 %v9746_v53, %v9746_v53  ;;  %v3999_v26 = vmul.f32 %v9761_v12, %v3998_v11  ;;  %v3969_v2 = vmul.f32 %v9764_v10, %v3968_v51  ;;  %13710 = vst [vmem:[#allocation39_spill] sm:$0xff] %v9803_v8  ;;  %v9821_v51 = vld [vmem:[%s5644_s26 + $0xf8] sm:$0xff]  ;;  %vm10003_vm13 = vmor %vm3973_vm9, %vm3974_vm10 }
 0x2ab   : > { %v9781_v27 = vadd.f32 1e-06, %v3836_v17  ;;  %v3980_v0 = vmul.f32 0.5, %v3979_v33  ;;  %v3989_v37 = vmul.f32 %v9783_v44, %v3988_v52  ;;  %v9798_v60 = vadd.f32 %v9777_v22, %v4334_v18  ;;  %13711 = vst [vmem:[#allocation47_spill] sm:$0xff] %v9808_v50 }
 0x2ac   : > { %13700 = vst [vmem:[#allocation69_spill] sm:$0xff] %v9742_v41  ;;  %v3594_v32 = vsel %vm3527_vm7, %v9742_v41, 0.0  ;;  %v3781_v4 = vsel %vm3527_vm7, %v3713_v61, 0.0  ;;  %v4000_v39 = vmul.f32 0.5, %v3999_v26  ;;  %v3970_v43 = vmul.f32 0.5, %v3969_v2 }
 0x2ad   : > { %3595 = vadd.xlane.f32.xlu2 %v3594_v32  ;;  %3782 = vadd.xlane.f32.xlu0 %v3781_v4  ;;  %13705 = vst [vmem:[#allocation16_spill] sm:$0xff] %v9781_v27  ;;  %5221 = vrsqrt.f32 %v9781_v27  ;;  %v454_v32 = vmul.f32 %v9803_v8, %v13650_v6  ;;  %v487_v61 = vmul.f32 %v9808_v50, %v13651_v16  ;;  %v3981_v14 = vsub.f32 1.5, %v3980_v0  ;;  %v13733_v50 = vld [vmem:[#allocation41_spill] sm:$0xff] }
 0x2ae   : > { %13708 = vst [vmem:[#allocation24_spill] sm:$0xff] %v9798_v60  ;;  %v552_v45 = vmul.f32 %v9813_v57, %v13653_v31  ;;  %v4001_v17 = vsub.f32 1.5, %v4000_v39  ;;  %v4444_v4 = vmul.f32 %v4412_v9, %v9788_v49  ;;  %v3971_v21 = vsub.f32 1.5, %v3970_v43 }
 0x2af   : > { %13712 = vst [vmem:[#allocation37_spill] sm:$0xff] %v9813_v57  ;;  %v9818_v46 = vmul.f32 0.5, %v3989_v37  ;;  %v519_v11 = vadd.f32 %v487_v61, %v454_v32  ;;  %v617_v33 = vmul.f32 %v9821_v51, %v13656_v15  ;;  %v4413_v2 = vmul.f32 %v9798_v60, %v9798_v60  ;;  %v9886_v57 = vld [vmem:[%s5644_s26 + $0x68] sm:$0xff] }
 0x2b0   : > { %13713 = vst [vmem:[#allocation14_spill] sm:$0xff] %v9821_v51  ;;  %v682_v0 = vmul.f32 %v9280_v23, %v13658_v55  ;;  %v9832_v39 = vmul.f32 %v9753_v38, %v3981_v14  ;;  %v9835_v9 = vmul.f32 %v9761_v12, %v4001_v17  ;;  %v9837_v43 = vmul.f32 0.044715, %v4444_v4  ;;  %v13717_v23 = vld [vmem:[#allocation51_spill] sm:$0xff]  ;;  %v13719_v4 = vld [vmem:[#allocation18_spill] sm:$0xff]  ;;  %v9891_v12 = vld [vmem:[%s5644_s26 + $0x78] sm:$0xff] }
 0x2b1   : > { %v584_v18 = vadd.f32 %v552_v45, %v519_v11  ;;  %v9841_v32 = vmul.f32 %v9764_v10, %v3971_v21  ;;  %v13716_v11 = vld [vmem:[#allocation26_spill] sm:$0xff]  ;;  %v9853_v17 = vmul.f32 %v4413_v2, %v9798_v60  ;;  %13728 = vst [vmem:[#allocation74_spill] sm:$0xff] %v9886_v57 }
 0x2b2   : > { %13714 = vst [vmem:[#allocation81_spill] sm:$0xff] %v9835_v9  ;;  %v747_v53 = vmul.f32 %v13716_v11, %v13444_v19  ;;  %v13722_v11 = vld [vmem:[#allocation31_spill] sm:$0xff]  ;;  %v13727_v9 = vld [vmem:[#allocation65_spill] sm:$0xff]  ;;  %v3986_v7 = vsel %vm3985_vm14, %v9753_v38, %v9832_v39 }
 0x2b3   : > { %v9800_v34 = vpop.eup %5221  ;;  %13715 = vst [vmem:[#allocation21_spill] sm:$0xff] %v9837_v43  ;;  %v649_v45 = vadd.f32 %v617_v33, %v584_v18  ;;  %v877_v33 = vmul.f32 %v13720_v29, %v13483_v56  ;;  %v9860_v18 = vld [vmem:[%s5644_s26 + $0xc0] sm:$0xff]  ;;  %v13726_v43 = vld [vmem:[#allocation75_spill] sm:$0xff]  ;;  %v1007_v51 = vmul.f32 %v13727_v9, %v13488_v5  ;;  %v13731_v9 = vld [vmem:[#allocation60_spill] sm:$0xff] }
 0x2b4   : > { %13709 = vst [vmem:[#allocation38_spill] sm:$0xff] %v9800_v34  ;;  %v4018_v26 = vmul.f32 %v9800_v34, %v9781_v27  ;;  %v13725_v27 = vld [vmem:[#allocation40_spill] sm:$0xff]  ;;  %v942_v49 = vmul.f32 %v13726_v43, %v12988_v62  ;;  %v1202_v43 = vmul.f32 %v9896_v63, %v13627_v1 }
 0x2b5   : > { %v714_v21 = vadd.f32 %v682_v0, %v649_v45  ;;  %13721 = vst [vmem:[#allocation66_spill] sm:$0xff] %v9860_v18  ;;  %v13724_v45 = vld [vmem:[#allocation36_spill] sm:$0xff]  ;;  %v1899_v41 = vmul.f32 %v9803_v8, %v13725_v27 }
 0x2b6   : > { %v9850_v14 = vmul.f32 %v9800_v34, %v4018_v26  ;;  %v1592_v26 = vmul.f32 %v9803_v8, %v13722_v11  ;;  %v1866_v29 = vmul.f32 %v9860_v18, %v13724_v45  ;;  %v1867_v34 = vmul.f32 %v9803_v8, %v13724_v45  ;;  %13729 = vst [vmem:[#allocation77_spill] sm:$0xff] %v9891_v12 }
 0x2b7   : > { %v779_v61 = vadd.f32 %v747_v53, %v714_v21  ;;  %v1072_v53 = vmul.f32 %v9886_v57, %v13593_v3  ;;  %13730 = vst [vmem:[#allocation61_spill] sm:$0xff] %v9896_v63 }
 0x2b8   : > { %v9918_v45 = vadd.f32 %v1899_v41, %v1866_v29  ;;  %v9934_v41 = vld [vmem:[%s5644_s26 + $0xb8] sm:$0xff]  ;;  %v13742_v29 = vld [vmem:[#allocation50_spill] sm:$0xff] }
 0x2b9   : > { %13736 = vst [vmem:[#allocation71_spill] sm:$0xff] %v9934_v41 }
 0x2ba   : > { %v13747_v42 = vrot.slane %v9918_v45, 2 }
 0x2bd   : > { %v3581_v52 = vpop.xlane.xlu2 %3580 }
 0x2be   : > { %v3648_v37 = vmul.f32 %v13670_v24, %v3581_v52  ;;  %v812_v52 = vmul.f32 %v13719_v4, %v13585_v54 }
 0x2c0   : > { %v9847_v28 = vsub.f32 %v13717_v23, %v3648_v37  ;;  %v1591_v37 = vmul.f32 %v9860_v18, %v13722_v11  ;;  %v13723_v23 = vld [vmem:[#allocation32_spill] sm:$0xff]  ;;  %v844_v13 = vadd.f32 %v812_v52, %v779_v61  ;;  %v9908_v61 = vld [vmem:[%s5644_s26 + $0xa8] sm:$0xff] }
 0x2c1   : > { %v1624_v4 = vmul.f32 %v9803_v8, %v13723_v23  ;;  %v1625_v0 = vmul.f32 %v9860_v18, %v13723_v23  ;;  %13732 = vst [vmem:[#allocation89_spill] sm:$0xff] %v9908_v61  ;;  %v9912_v52 = vmul.f32 %v9908_v61, %v13603_v40  ;;  %v13734_v61 = vld [vmem:[#allocation42_spill] sm:$0xff] }
 0x2c2   : > { %13718 = vst [vmem:[#allocation11_spill] sm:$0xff] %v9847_v28  ;;  %v3712_v2 = vmul.f32 %v9847_v28, %v9847_v28  ;;  %v1900_v28 = vmul.f32 %v9860_v18, %v13725_v27  ;;  %v9902_v27 = vmul.f32 %v13731_v9, %v13601_v59  ;;  %v909_v9 = vadd.f32 %v877_v33, %v844_v13 }
 0x2c3   : > { %v9916_v63 = vadd.f32 %v1625_v0, %v1592_v26  ;;  %v2142_v59 = vmul.f32 %v9803_v8, %v13733_v50  ;;  %v2175_v26 = vmul.f32 %v9860_v18, %v13734_v61  ;;  %v1495_v0 = vmul.f32 %v9860_v18, %v13600_v30 }
 0x2c4   : > { %v3778_v60 = vsel %vm3527_vm7, %v3712_v2, 0.0  ;;  %v1137_v2 = vmul.f32 %v9891_v12, %v13595_v35  ;;  %v9914_v12 = vadd.f32 %v1624_v4, %v1591_v37  ;;  %v9920_v23 = vadd.f32 %v1900_v28, %v1867_v34 }
 0x2c5   : > { %3779 = vadd.xlane.f32.xlu2 %v3778_v60  ;;  %v3765_v21 = vpop.xlane.xlu2 %3764  ;;  %v2174_v37 = vmul.f32 %v9803_v8, %v13734_v61  ;;  %v974_v13 = vadd.f32 %v942_v49, %v909_v9  ;;  %v9938_v28 = vmul.f32 %v9934_v41, %v13635_v48  ;;  %v1462_v34 = vmul.f32 %v9803_v8, %v13599_v36  ;;  %v13739_v61 = vld [vmem:[#allocation49_spill] sm:$0xff] }
 0x2c6   : > { %v3835_v60 = vmul.f32 %v3765_v21, %v13670_v24  ;;  %v2141_v21 = vmul.f32 %v9860_v18, %v13733_v50  ;;  %v2416_v50 = vmul.f32 %v9860_v18, %v13739_v61  ;;  %v9959_v48 = vadd.f32 %v2175_v26, %v2142_v59 }
 0x2c7   : > { %v3587_v57 = vpop.xlane.xlu1 %3586  ;;  %v2449_v49 = vmul.f32 %v9803_v8, %v13742_v29  ;;  %v2417_v41 = vmul.f32 %v9803_v8, %v13739_v61  ;;  %v2450_v9 = vmul.f32 %v9860_v18, %v13742_v29  ;;  %v1527_v59 = vadd.f32 %v1495_v0, %v1462_v34 }
 0x2c8   : > { %v3650_v11 = vmul.f32 %v13670_v24, %v3587_v57  ;;  %v9931_v4 = vadd.f32 1e-06, %v3835_v60  ;;  %v13737_v57 = vld [vmem:[#allocation62_spill] sm:$0xff]  ;;  %v1039_v60 = vadd.f32 %v1007_v51, %v974_v13  ;;  %13741 = vst [vmem:[#allocation43_spill] sm:$0xff] %v9959_v48  ;;  %v5135_v51 = vld [vmem:[%s11969_s7 + $0x20] sm:$0xff]  ;;  %v13745_v61 = vrot.slane %v9914_v12, 1 }
 0x2c9   : > { %4755 = vmatpush.bf16.msra.mxu1 %v5135_v51  ;;  %5145 = vmatpush.bf16.msra.mxu2 %v5135_v51  ;;  %v13746_v29 = vrot.slane %v9916_v63, 1  ;;  %v13748_v1 = vrot.slane %v9920_v23, 2 }
 0x2ca   : > { %13735 = vst [vmem:[#allocation23_spill] sm:$0xff] %v9931_v4  ;;  %v9944_v33 = vsub.f32 %v13737_v57, %v3650_v11  ;;  %v9957_v57 = vadd.f32 %v2174_v37, %v2141_v21  ;;  %5223 = vrsqrt.f32 %v9931_v4  ;;  %v1104_v13 = vadd.f32 %v1072_v53, %v1039_v60  ;;  %v13743_v37 = vld [vmem:[#allocation52_spill] sm:$0xff] }
 0x2cb   : > { %v2691_v26 = vmul.f32 %v9860_v18, %v13743_v37  ;;  %v5134_v53 = vld [vmem:[%s11969_s7 + $0x18] sm:$0xff]  ;;  %v1805_v34 = vsel %vm1696_vm0, %v13746_v29, %v13745_v61  ;;  %v2692_v0 = vmul.f32 %v9803_v8, %v13743_v37  ;;  %v9993_v51 = vsel %vm1971_vm1, %v13748_v1, %v13747_v42  ;;  %v13751_v37 = vld [vmem:[#allocation54_spill] sm:$0xff] }
 0x2cc   : > { %13738 = vst [vmem:[#allocation86_spill] sm:$0xff] %v9944_v33  ;;  %v3714_v11 = vmul.f32 %v9944_v33, %v9944_v33  ;;  %v13744_v33 = vld [vmem:[#allocation53_spill] sm:$0xff]  ;;  %v1169_v60 = vadd.f32 %v1137_v2, %v1104_v13  ;;  %v2966_v1 = vmul.f32 %v9860_v18, %v13751_v37  ;;  %v2967_v42 = vmul.f32 %v9803_v8, %v13751_v37  ;;  %v3771_v13 = vpop.xlane.xlu0 %3770  ;;  %v13755_v37 = vld [vmem:[#allocation56_spill] sm:$0xff] }
 0x2cd   : > { %13740 = vst [vmem:[#allocation13_spill] sm:$0xff] %v9957_v57  ;;  %v2724_v40 = vmul.f32 %v9803_v8, %v13744_v33  ;;  %v2999_v2 = vmul.f32 %v9803_v8, %v13753_v58  ;;  %4756 = vmatpush.bf16.msra.mxu1 %v5134_v53  ;;  %5146 = vmatpush.bf16.msra.mxu2 %v5134_v53 }
 0x2ce   : > { %v3784_v21 = vsel %vm3527_vm7, %v3714_v11, 0.0  ;;  %v2725_v11 = vmul.f32 %v9860_v18, %v13744_v33  ;;  %v1234_v29 = vadd.f32 %v1202_v43, %v1169_v60  ;;  %v10007_v33 = vadd.f32 %v2450_v9, %v2417_v41 }
 0x2cf   : > { %3785 = vadd.xlane.f32.xlu1 %v3784_v21  ;;  %v9997_v21 = vadd.f32 %v2449_v49, %v2416_v50  ;;  %v10014_v50 = vmul.f32 0.5, %v9850_v14  ;;  %v10016_v49 = vadd.f32 %v2724_v40, %v2691_v26  ;;  %v3000_v43 = vmul.f32 %v9860_v18, %v13753_v58 }
 0x2d0   : > { %v10022_v41 = vpop.eup %5223  ;;  %v1299_v9 = vadd.f32 %v9902_v27, %v1234_v29  ;;  %v10025_v60 = vadd.f32 %v2725_v11, %v2692_v0  ;;  %v3241_v14 = vmul.f32 %v9860_v18, %v13755_v37  ;;  %v3274_v40 = vmul.f32 %v9803_v8, %v13655_v20 }
 0x2d1   : > { %13752 = vst [vmem:[#allocation87_spill] sm:$0xff] %v10014_v50  ;;  %v3242_v26 = vmul.f32 %v9803_v8, %v13755_v37  ;;  %v3275_v58 = vmul.f32 %v9860_v18, %v13655_v20  ;;  %v3837_v53 = vmul.f32 %v3771_v13, %v13670_v24  ;;  %v3976_v27 = vsel %vm10003_vm13, %v9764_v10, %v9841_v32  ;;  %v13759_v37 = vld [vmem:[#allocation83_spill] sm:$0xff] }
 0x2d2   : > { %13754 = vst [vmem:[#allocation28_spill] sm:$0xff] %v10022_v41  ;;  %v1364_v0 = vadd.f32 %v9912_v52, %v1299_v9  ;;  %v13756_v11 = vrot.slane %v9957_v57, 3  ;;  %v13757_v29 = vrot.slane %v9959_v48, 3  ;;  %v4008_v10 = vmul.f32 %v10022_v41, %v9931_v4  ;;  %v4337_v52 = vpop.f32.mrf.mxu0  ;;  %v10171_v50 = vld [vmem:[%s5644_s26 + $0x70] sm:$0xff] }
 0x2d3   : > { %v10054_v32 = vadd.f32 %v2999_v2, %v2966_v1  ;;  %v10056_v61 = vadd.f32 %v3000_v43, %v2967_v42  ;;  %v10061_v57 = vadd.f32 %v3274_v40, %v3241_v14  ;;  %v4216_v13 = vmul.f32 %v3986_v7, %v13759_v37  ;;  %v3590_v48 = vpop.xlane.xlu1 %3589  ;;  %13781 = vst [vmem:[#allocation51_spill] sm:$0xff] %v10171_v50 }
 0x2d4   : > { %v2355_v20 = vsel %vm2246_vm2, %v13757_v29, %v13756_v11  ;;  %v1429_v9 = vadd.f32 %v9938_v28, %v1364_v0  ;;  %v13758_v11 = vld [vmem:[#allocation72_spill] sm:$0xff]  ;;  %v12619_v2 = vrot.slane %v10016_v49, 5  ;;  %v12620_v1 = vrot.slane %v10025_v60, 5 }
 0x2d5   : > { %v4215_v29 = vmul.f32 %v3976_v27, %v13758_v11  ;;  %v10067_v42 = vadd.f32 %v3275_v58, %v3242_v26  ;;  %v10069_v43 = vadd.f32 1e-06, %v3837_v53  ;;  %v10072_v28 = vadd.f32 %v9777_v22, %v4337_v52  ;;  %v10079_v27 = vld [vmem:[%s5644_s26 + $0xd0] sm:$0xff]  ;;  %v10084_v26 = vld [vmem:[%s5644_s26 + $0xe0] sm:$0xff] }
 0x2d6   : > { %v1559_v38 = vadd.f32 %v1527_v59, %v1429_v9  ;;  %v453_v14 = vmul.f32 %v9860_v18, %v13650_v6  ;;  %v4009_v37 = vmul.f32 %v10022_v41, %v4008_v10  ;;  %v12621_v40 = vrot.slane %v10054_v32, 6  ;;  %13762 = vst [vmem:[#allocation88_spill] sm:$0xff] %v10084_v26  ;;  %v10095_v9 = vld [vmem:[%s5644_s26 + $0xf0] sm:$0xff] }
 0x2d7   : > { %13760 = vst [vmem:[#allocation59_spill] sm:$0xff] %v10069_v43  ;;  %v4243_v39 = vpack.c.bf16 %v4216_v13, %v4215_v29  ;;  %v486_v58 = vmul.f32 %v10079_v27, %v13651_v16  ;;  %v551_v59 = vmul.f32 %v10084_v26, %v13653_v31  ;;  %v3651_v53 = vmul.f32 %v13670_v24, %v3590_v48  ;;  %v13770_v13 = vld [vmem:[#allocation79_spill] sm:$0xff]  ;;  %v13784_v24 = vld [vmem:[#allocation82_spill] sm:$0xff] }
 0x2d8   : > { %13761 = vst [vmem:[#allocation5_spill] sm:$0xff] %v10072_v28  ;;  %v1834_v0 = vadd.f32 %v1805_v34, %v1559_v38  ;;  %5225 = vrsqrt.f32 %v10069_v43  ;;  %v616_v11 = vmul.f32 %v10095_v9, %v13656_v15  ;;  %v13764_v29 = vsub.f32 1.5, %v9818_v46 }
 0x2d9   : > { %5076 = vmatmul.msk.bf16.gmra.mxu0 %vm3527_vm7, %v4243_v39  ;;  %v518_v52 = vadd.f32 %v486_v58, %v453_v14  ;;  %13763 = vst [vmem:[#allocation73_spill] sm:$0xff] %v10095_v9  ;;  %v10105_v34 = vmul.f32 0.044715, %v9853_v17  ;;  %v4414_v39 = vmul.f32 %v10072_v28, %v10072_v28  ;;  %v13767_v58 = vrot.slane %v9997_v21, 4 }
 0x2da   : > { %v10102_v48 = vmul.f32 %v9783_v44, %v13764_v29  ;;  %v2109_v38 = vadd.f32 %v9993_v51, %v1834_v0  ;;  %v13768_v10 = vrot.slane %v10007_v33, 4  ;;  %v681_v29 = vmul.f32 %v9582_v25, %v13658_v55  ;;  %v13783_v44 = vld [vmem:[#allocation29_spill] sm:$0xff] }
 0x2db   : > { %13766 = vst [vmem:[#allocation67_spill] sm:$0xff] %v10105_v34  ;;  %v583_v7 = vadd.f32 %v551_v59, %v518_v52  ;;  %v10118_v17 = vmul.f32 0.5, %v4009_v37  ;;  %v10121_v51 = vsub.f32 %v13770_v13, %v3651_v53  ;;  %v2905_v14 = vsel %vm2796_vm4, %v12620_v1, %v12619_v2  ;;  %v10139_v13 = vld [vmem:[%s5644_s26 + $0x10] sm:$0xff]  ;;  %v10147_v1 = vld [vmem:[%s5644_s26 + $0x20] sm:$0xff] }
 0x2dc   : > { %13765 = vst [vmem:[#allocation76_spill] sm:$0xff] %v10102_v48  ;;  %v2630_v46 = vsel %vm2521_vm3, %v13768_v10, %v13767_v58  ;;  %v2384_v0 = vadd.f32 %v2355_v20, %v2109_v38  ;;  %v13772_v59 = vrot.slane %v10056_v61, 6  ;;  %v13773_v37 = vrot.slane %v10061_v57, 7 }
 0x2dd   : > { %13769 = vst [vmem:[#allocation19_spill] sm:$0xff] %v10118_v17  ;;  %v13774_v52 = vrot.slane %v10067_v42, 7  ;;  %v648_v53 = vadd.f32 %v616_v11, %v583_v7  ;;  %v746_v38 = vmul.f32 %v10139_v13, %v13444_v19  ;;  %v10144_v2 = vmul.f32 %v4414_v39, %v10072_v28  ;;  %v10156_v11 = vld [vmem:[%s5644_s26 + $0x40] sm:$0xff] }
 0x2de   : > { %13771 = vst [vmem:[#allocation78_spill] sm:$0xff] %v10121_v51  ;;  %v3180_v10 = vsel %vm12758_vm5, %v13772_v59, %v12621_v40  ;;  %v2659_v58 = vadd.f32 %v2630_v46, %v2384_v0  ;;  %v811_v59 = vmul.f32 %v10147_v1, %v13585_v54  ;;  %v876_v40 = vmul.f32 %v9617_v47, %v13483_v56  ;;  %v10161_v46 = vld [vmem:[%s5644_s26 + $0x50] sm:$0xff]  ;;  %v10166_v0 = vld [vmem:[%s5644_s26 + $0x60] sm:$0xff] }
 0x2df   : > { %v3455_v20 = vsel %vm3346_vm6, %v13774_v52, %v13773_v37  ;;  %13775 = vst [vmem:[#allocation7_spill] sm:$0xff] %v10144_v2  ;;  %v10153_v37 = vpop.eup %5225  ;;  %v713_v7 = vadd.f32 %v681_v29, %v648_v53  ;;  %v941_v52 = vmul.f32 %v10156_v11, %v12988_v62  ;;  %v1006_v39 = vmul.f32 %v10161_v46, %v13488_v5 }
 0x2e0   : > { %13776 = vst [vmem:[#allocation70_spill] sm:$0xff] %v10147_v1  ;;  %v1071_v28 = vmul.f32 %v10166_v0, %v13593_v3  ;;  %v2934_v2 = vadd.f32 %v2905_v14, %v2659_v58  ;;  %v1136_v29 = vmul.f32 %v10171_v50, %v13595_v35  ;;  %v1461_v53 = vmul.f32 %v9860_v18, %v13599_v36  ;;  %v10197_v18 = vld [vmem:[%s5644_s26 + $0xa0] sm:$0xff] }
 0x2e1   : > { %13777 = vst [vmem:[#allocation63_spill] sm:$0xff] %v10153_v37  ;;  %v455_v41 = vmul.f32 %v10079_v27, %v13650_v6  ;;  %v778_v4 = vadd.f32 %v746_v38, %v713_v7  ;;  %v1494_v34 = vmul.f32 %v9803_v8, %v13600_v30  ;;  %v488_v48 = vmul.f32 %v10084_v26, %v13651_v16  ;;  %v10192_v6 = vld [vmem:[%s5644_s26 + $0x90] sm:$0xff]  ;;  %v13786_v38 = vld [vmem:[#allocation30_spill] sm:$0xff] }
 0x2e2   : > { %13778 = vst [vmem:[#allocation80_spill] sm:$0xff] %v10156_v11  ;;  %v553_v14 = vmul.f32 %v10095_v9, %v13653_v31  ;;  %v3209_v58 = vadd.f32 %v3180_v10, %v2934_v2  ;;  %v10187_v22 = vmul.f32 %v10153_v37, %v10069_v43  ;;  %v1201_v17 = vmul.f32 %v13784_v24, %v13783_v44  ;;  %v13788_v26 = vld [vmem:[#allocation35_spill] sm:$0xff] }
 0x2e3   : > { %13779 = vst [vmem:[#allocation48_spill] sm:$0xff] %v10161_v46  ;;  %v1266_v7 = vmul.f32 %v10192_v6, %v13786_v38  ;;  %v843_v8 = vadd.f32 %v811_v59, %v778_v4  ;;  %v10201_v16 = vmul.f32 %v10197_v18, %v13788_v26  ;;  %v520_v2 = vadd.f32 %v488_v48, %v455_v41  ;;  %v10206_v37 = vld [vmem:[%s5644_s26 + $0xb0] sm:$0xff] }
 0x2e4   : > { %13780 = vst [vmem:[#allocation26_spill] sm:$0xff] %v10166_v0  ;;  %v618_v10 = vmul.f32 %v9582_v25, %v13656_v15  ;;  %v3484_v43 = vadd.f32 %v3455_v20, %v3209_v58  ;;  %v13792_v31 = vrot.slane %v9916_v63, 1  ;;  %v13793_v4 = vrot.slane %v9914_v12, 1  ;;  %v10233_v63 = vld [vmem:[%s11966_s4] ss:$0 sm:$0xff]  ;;  %v13797_v12 = vld [vmem:[#allocation43_spill] sm:$0xff] }
 0x2e5   : > { %13782 = vst [vmem:[#allocation18_spill] sm:$0xff] %v10187_v22  ;;  %v13791_v22 = vld [vmem:[#allocation46_spill] sm:$0xff]  ;;  %v13795_v41 = vrot.slane %v9918_v45, 2  ;;  %v908_v48 = vadd.f32 %v876_v40, %v843_v8  ;;  %v10226_v20 = vadd.f32 %v1494_v34, %v1461_v53  ;;  %v585_v58 = vadd.f32 %v553_v14, %v520_v2  ;;  %v13799_v45 = vld [vmem:[#allocation13_spill] sm:$0xff] }
 0x2e6   : > { %13785 = vst [vmem:[#allocation45_spill] sm:$0xff] %v10192_v6  ;;  %v10210_v9 = vmul.f32 %v10206_v37, %v13791_v22  ;;  %v10217_v59 = vsel %vm1696_vm0, %v13793_v4, %v13792_v31  ;;  %v683_v15 = vmul.f32 %v10139_v13, %v13658_v55  ;;  %v10236_v31 = vadd.f32 %v10233_v63, %v3484_v43 }
 0x2e7   : > { %13787 = vst [vmem:[#allocation75_spill] sm:$0xff] %v10197_v18  ;;  %v13801_v40 = vrot.slane %v10007_v33, 4  ;;  %v13802_v34 = vrot.slane %v9997_v21, 4  ;;  %v13803_v14 = vrot.slane %v10025_v60, 5  ;;  %v13804_v2 = vrot.slane %v10016_v49, 5 }
 0x2e8   : > { %13789 = vst [vmem:[#allocation65_spill] sm:$0xff] %v10201_v16  ;;  %v13794_v16 = vrot.slane %v9920_v23, 2  ;;  %v13798_v23 = vrot.slane %v13797_v12, 3  ;;  %v973_v4 = vadd.f32 %v941_v52, %v908_v48  ;;  %v13806_v12 = vrot.slane %v10054_v32, 6 }
 0x2e9   : > { %13790 = vst [vmem:[#allocation60_spill] sm:$0xff] %v10206_v37  ;;  %v10250_v53 = vsel %vm2521_vm3, %v13802_v34, %v13801_v40  ;;  %v10257_v43 = vsel %vm2796_vm4, %v13804_v2, %v13803_v14  ;;  %v650_v33 = vadd.f32 %v618_v10, %v585_v58  ;;  %v748_v21 = vmul.f32 %v10147_v1, %v13444_v19  ;;  %v13809_v58 = vld [vmem:[#allocation31_spill] sm:$0xff]  ;;  %v13811_v14 = vld [vmem:[#allocation32_spill] sm:$0xff] }
 0x2ea   : > { %v10224_v25 = vsel %vm1971_vm1, %v13795_v41, %v13794_v16  ;;  %13796 = vst [vmem:[#allocation62_spill] sm:$0xff] %v10236_v31  ;;  %v13800_v16 = vrot.slane %v13799_v45, 3  ;;  %v13805_v41 = vrot.slane %v10056_v61, 6  ;;  %v3603_v60 = vsel %vm3527_vm7, %v10236_v31, 0.0  ;;  %v13810_v40 = vld [vmem:[#allocation47_spill] sm:$0xff] }
 0x2eb   : > { %v13807_v49 = vrot.slane %v10067_v42, 7  ;;  %v13808_v45 = vrot.slane %v10061_v57, 7  ;;  %v813_v32 = vmul.f32 %v9617_v47, %v13585_v54  ;;  %v878_v61 = vmul.f32 %v10156_v11, %v13483_v56  ;;  %3604 = vadd.xlane.f32.xlu0 %v3603_v60 }
 0x2ec   : > { %v10243_v8 = vsel %vm2246_vm2, %v13800_v16, %v13798_v23  ;;  %v10264_v23 = vsel %vm12758_vm5, %v13806_v12, %v13805_v41  ;;  %v1038_v10 = vadd.f32 %v1006_v39, %v973_v4  ;;  %v715_v48 = vadd.f32 %v683_v15, %v650_v33  ;;  %v13812_v4 = vld [vmem:[#allocation36_spill] sm:$0xff] }
 0x2ed   : > { %v10275_v52 = vsel %vm3346_vm6, %v13808_v45, %v13807_v49  ;;  %v1593_v16 = vmul.f32 %v10079_v27, %v13809_v58  ;;  %v1594_v42 = vmul.f32 %v13810_v40, %v13809_v58  ;;  %v3715_v57 = vmul.f32 %v10121_v51, %v10121_v51  ;;  %v13814_v45 = vld [vmem:[#allocation40_spill] sm:$0xff] }
 0x2ee   : > { %v943_v34 = vmul.f32 %v10161_v46, %v12988_v62  ;;  %v1626_v47 = vmul.f32 %v13810_v40, %v13811_v14  ;;  %v1627_v2 = vmul.f32 %v10079_v27, %v13811_v14  ;;  %v1103_v39 = vadd.f32 %v1071_v28, %v1038_v10 }
 0x2ef   : > { %v780_v15 = vadd.f32 %v748_v21, %v715_v48  ;;  %v1868_v41 = vmul.f32 %v10079_v27, %v13812_v4  ;;  %v1869_v12 = vmul.f32 %v13810_v40, %v13812_v4  ;;  %v3787_v33 = vsel %vm3527_vm7, %v3715_v57, 0.0 }
 0x2f0   : > { %v10298_v60 = vadd.f32 %v1626_v47, %v1593_v16  ;;  %v10300_v49 = vadd.f32 %v1627_v2, %v1594_v42  ;;  %v1901_v51 = vmul.f32 %v13810_v40, %v13814_v45  ;;  %v1168_v31 = vadd.f32 %v1136_v29, %v1103_v39  ;;  %3788 = vadd.xlane.f32.xlu1 %v3787_v33 }
 0x2f1   : > { %v845_v14 = vadd.f32 %v813_v32, %v780_v15  ;;  %v1008_v28 = vmul.f32 %v10166_v0, %v13488_v5  ;;  %v1902_v21 = vmul.f32 %v10079_v27, %v13814_v45  ;;  %v1073_v10 = vmul.f32 %v10171_v50, %v13593_v3  ;;  %v13815_v15 = vld [vmem:[#allocation41_spill] sm:$0xff]  ;;  %v13826_v0 = vld [vmem:[#allocation55_spill] sm:$0xff] }
 0x2f2   : > { %13813 = vst [vmem:[#allocation72_spill] sm:$0xff] %v10300_v49  ;;  %v1138_v48 = vmul.f32 %v13784_v24, %v13595_v35  ;;  %v1463_v16 = vmul.f32 %v10079_v27, %v13599_v36  ;;  %v1496_v29 = vmul.f32 %v13810_v40, %v13600_v30  ;;  %v1233_v42 = vadd.f32 %v1201_v17, %v1168_v31  ;;  %v13816_v24 = vld [vmem:[#allocation42_spill] sm:$0xff] }
 0x2f3   : > { %v910_v32 = vadd.f32 %v878_v61, %v845_v14  ;;  %v12662_v57 = vrot.slane %v10298_v60, 1  ;;  %v12661_v47 = vrot.slane %v10300_v49, 1  ;;  %v10318_v2 = vadd.f32 %v1901_v51, %v1868_v41  ;;  %v13817_v41 = vld [vmem:[#allocation66_spill] sm:$0xff] }
 0x2f4   : > { %v10320_v39 = vadd.f32 %v1902_v21, %v1869_v12  ;;  %v2143_v33 = vmul.f32 %v10079_v27, %v13815_v15  ;;  %v2176_v45 = vmul.f32 %v13810_v40, %v13816_v24  ;;  %v1298_v4 = vadd.f32 %v1266_v7, %v1233_v42  ;;  %v13818_v7 = vld [vmem:[#allocation65_spill] sm:$0xff] }
 0x2f5   : > { %v975_v58 = vadd.f32 %v943_v34, %v910_v32  ;;  %v2144_v17 = vmul.f32 %v13810_v40, %v13815_v15  ;;  %v2177_v31 = vmul.f32 %v10079_v27, %v13816_v24  ;;  %v1203_v51 = vmul.f32 %v10192_v6, %v13783_v44 }
 0x2f6   : > { %v1268_v61 = vmul.f32 %v10197_v18, %v13786_v38  ;;  %v1333_v14 = vmul.f32 %v10206_v37, %v13788_v26  ;;  %v1398_v12 = vmul.f32 %v13817_v41, %v13791_v22  ;;  %v1363_v34 = vadd.f32 %v13818_v7, %v1298_v4  ;;  %v13819_v41 = vld [vmem:[#allocation49_spill] sm:$0xff]  ;;  %v13820_v7 = vld [vmem:[#allocation50_spill] sm:$0xff]  ;;  %v13822_v37 = vld [vmem:[#allocation52_spill] sm:$0xff] }
 0x2f7   : > { %v1040_v21 = vadd.f32 %v1008_v28, %v975_v58  ;;  %v10339_v42 = vadd.f32 %v1496_v29, %v1463_v16  ;;  %v10346_v32 = vsel %vm1696_vm0, %v12662_v57, %v12661_v47  ;;  %v10350_v18 = vadd.f32 %v2176_v45, %v2143_v33  ;;  %v5133_v58 = vld [vmem:[%s11969_s7 + $0x10] sm:$0xff] }
 0x2f8   : > { %v3593_v24 = vpop.xlane.xlu2 %3592  ;;  %v2418_v4 = vmul.f32 %v10079_v27, %v13819_v41  ;;  %v1428_v28 = vadd.f32 %v10210_v9, %v1363_v34  ;;  %v10358_v29 = vadd.f32 %v2177_v31, %v2144_v17  ;;  %v2451_v47 = vmul.f32 %v13810_v40, %v13820_v7  ;;  %4757 = vmatpush.bf16.msra.mxu1 %v5133_v58  ;;  %v5132_v9 = vld [vmem:[%s11969_s7 + $0x8] sm:$0xff]  ;;  %v13823_v17 = vld [vmem:[#allocation68_spill] sm:$0xff] }
 0x2f9   : > { %v1105_v16 = vadd.f32 %v1073_v10, %v1040_v21  ;;  %v2419_v45 = vmul.f32 %v13810_v40, %v13819_v41  ;;  %v2452_v33 = vmul.f32 %v10079_v27, %v13820_v7  ;;  %v2693_v6 = vmul.f32 %v10079_v27, %v13822_v37  ;;  %5147 = vmatpush.bf16.msra.mxu2 %v5133_v58  ;;  %v13824_v21 = vld [vmem:[#allocation53_spill] sm:$0xff]  ;;  %v13825_v41 = vld [vmem:[#allocation54_spill] sm:$0xff] }
 0x2fa   : > { %v1558_v10 = vadd.f32 %v10226_v20, %v1428_v28  ;;  %v3652_v31 = vmul.f32 %v13823_v17, %v3593_v24  ;;  %v2726_v15 = vmul.f32 %v13810_v40, %v13824_v21  ;;  %v2694_v57 = vmul.f32 %v13810_v40, %v13822_v37 }
 0x2fb   : > { %v1170_v34 = vadd.f32 %v1138_v48, %v1105_v16  ;;  %v2727_v7 = vmul.f32 %v10079_v27, %v13824_v21  ;;  %v2968_v50 = vmul.f32 %v10079_v27, %v13825_v41  ;;  %v3001_v58 = vmul.f32 %v13810_v40, %v13826_v0 }
 0x2fc   : > { %v1833_v20 = vadd.f32 %v10217_v59, %v1558_v10  ;;  %v13827_v48 = vrot.slane %v10320_v39, 2  ;;  %v13828_v24 = vrot.slane %v10318_v2, 2  ;;  %v10390_v46 = vadd.f32 %v2451_v47, %v2418_v4  ;;  %4758 = vmatpush.bf16.msra.mxu1 %v5132_v9  ;;  %v13829_v10 = vld [vmem:[#allocation56_spill] sm:$0xff] }
 0x2fd   : > { %v1235_v28 = vadd.f32 %v1203_v51, %v1170_v34  ;;  %v10392_v37 = vadd.f32 %v2452_v33, %v2419_v45  ;;  %v10394_v21 = vadd.f32 %v2726_v15, %v2693_v6  ;;  %v2969_v11 = vmul.f32 %v13810_v40, %v13825_v41  ;;  %5148 = vmatpush.bf16.msra.mxu2 %v5132_v9  ;;  %v13830_v15 = vld [vmem:[#allocation58_spill] sm:$0xff]  ;;  %v13836_v9 = vld [vmem:[#allocation84_spill] sm:$0xff] }
 0x2fe   : > { %v2013_v16 = vsel %vm1971_vm1, %v13828_v24, %v13827_v48  ;;  %v3002_v49 = vmul.f32 %v10079_v27, %v13826_v0  ;;  %v2108_v59 = vadd.f32 %v10224_v25, %v1833_v20  ;;  %v3243_v34 = vmul.f32 %v10079_v27, %v13829_v10  ;;  %v4339_v48 = vpop.f32.mrf.mxu0  ;;  %v13831_v24 = vld [vmem:[#allocation91_spill] sm:$0xff] }
 0x2ff   : > { %v1300_v51 = vadd.f32 %v1268_v61, %v1235_v28  ;;  %v3244_v47 = vmul.f32 %v13810_v40, %v13829_v10  ;;  %v10405_v4 = vadd.f32 %v2727_v7, %v2694_v57  ;;  %v10407_v6 = vadd.f32 %v3001_v58, %v2968_v50  ;;  %v13832_v57 = vld [vmem:[#allocation92_spill] sm:$0xff]  ;;  %v13833_v50 = vld [vmem:[#allocation90_spill] sm:$0xff] }
 0x300   : > { %v3276_v45 = vmul.f32 %v13810_v40, %v13830_v15  ;;  %v3277_v33 = vmul.f32 %v10079_v27, %v13830_v15  ;;  %v2383_v25 = vadd.f32 %v10243_v8, %v2108_v59  ;;  %vm4003_vm15 = vweird.f32 %v13831_v24  ;;  %v13843_v10 = vld [vmem:[#allocation14_spill] sm:$0xff] }
 0x301   : > { %v1365_v61 = vadd.f32 %v1333_v14, %v1300_v51  ;;  %vm4004_vm8 = vweird.f32 %v13832_v57  ;;  %v10419_v7 = vsub.f32 %v13833_v50, %v3652_v31  ;;  %v10423_v15 = vadd.f32 %v3002_v49, %v2969_v11  ;;  %v13835_v14 = vld [vmem:[#allocation85_spill] sm:$0xff]  ;;  %v13838_v11 = vld [vmem:[#allocation15_spill] sm:$0xff]  ;;  %v13842_v50 = vld [vmem:[#allocation10_spill] sm:$0xff] }
 0x302   : > { %vm3994_vm9 = vweird.f32 %v13835_v14  ;;  %v2658_v59 = vadd.f32 %v10250_v53, %v2383_v25  ;;  %v10427_v20 = vadd.f32 %v3276_v45, %v3243_v34  ;;  %v10429_v28 = vadd.f32 %v3277_v33, %v3244_v47  ;;  %v13839_v34 = vld [vmem:[#allocation8_spill] sm:$0xff]  ;;  %v13840_v25 = vld [vmem:[#allocation9_spill] sm:$0xff]  ;;  %vm10516_vm11 = vmor %vm4003_vm15, %vm4004_vm8 }
 0x303   : > { %13834 = vst [vmem:[#allocation83_spill] sm:$0xff] %v10419_v7  ;;  %v3599_v8 = vpop.xlane.xlu0 %3598  ;;  %v1430_v51 = vadd.f32 %v1398_v12, %v1365_v61  ;;  %v10435_v58 = vadd.f32 %v13836_v9, %v4339_v48  ;;  %vm3993_vm10 = vweird.f32 %v13838_v11  ;;  %v456_v47 = vmul.f32 %v13810_v40, %v13839_v34  ;;  %v13841_v61 = vld [vmem:[#allocation37_spill] sm:$0xff] }
 0x304   : > { %v2933_v49 = vadd.f32 %v10257_v43, %v2658_v59  ;;  %v3654_v12 = vmul.f32 %v13823_v17, %v3599_v8  ;;  %v3716_v33 = vmul.f32 %v10419_v7, %v10419_v7  ;;  %v489_v48 = vmul.f32 %v13841_v61, %v13840_v25  ;;  %v10486_v17 = vld [vmem:[%s5644_s26 + $0x18] sm:$0xff]  ;;  %vm3995_vm12 = vmor %vm3993_vm10, %vm3994_vm9  ;;  %v13872_v11 = vld [vmem:[#allocation89_spill] sm:$0xff] }
 0x305   : > { %13837 = vst [vmem:[#allocation79_spill] sm:$0xff] %v10435_v58  ;;  %v1560_v53 = vadd.f32 %v10339_v42, %v1430_v51  ;;  %v554_v31 = vmul.f32 %v13843_v10, %v13842_v50  ;;  %v13844_v51 = vrot.slane %v10358_v29, 3  ;;  %v13845_v45 = vrot.slane %v10350_v18, 3  ;;  %v10462_v10 = vld [vmem:[%s5644_s26 + $0x8] sm:$0xff] }
 0x306   : > { %v3208_v43 = vadd.f32 %v10264_v23, %v2933_v49  ;;  %v4415_v0 = vmul.f32 %v10435_v58, %v10435_v58  ;;  %v521_v41 = vadd.f32 %v489_v48, %v456_v47  ;;  %13846 = vst [vmem:[#allocation82_spill] sm:$0xff] %v10462_v10  ;;  %v13847_v23 = vld [vmem:[#allocation12_spill] sm:$0xff]  ;;  %v13848_v8 = vrot.slane %v10392_v37, 4 }
 0x307   : > { %v1835_v42 = vadd.f32 %v10346_v32, %v1560_v53  ;;  %v2288_v7 = vsel %vm2246_vm2, %v13845_v45, %v13844_v51  ;;  %v619_v49 = vmul.f32 %v10462_v10, %v13847_v23  ;;  %v13849_v59 = vrot.slane %v10390_v46, 4  ;;  %13856 = vst [vmem:[#allocation43_spill] sm:$0xff] %v10486_v17 }
 0x308   : > { %v3483_v32 = vadd.f32 %v10275_v52, %v3208_v43  ;;  %v13850_v51 = vrot.slane %v10405_v4, 5  ;;  %v13851_v47 = vrot.slane %v10394_v21, 5  ;;  %v13852_v9 = vrot.slane %v10423_v15, 6 }
 0x309   : > { %v2110_v53 = vadd.f32 %v2013_v16, %v1835_v42  ;;  %v2563_v45 = vsel %vm2521_vm3, %v13849_v59, %v13848_v8  ;;  %v13853_v10 = vrot.slane %v10407_v6, 6  ;;  %v13854_v16 = vld [vmem:[#allocation44_spill] sm:$0xff]  ;;  %v586_v42 = vadd.f32 %v554_v31, %v521_v41 }
 0x30a   : > { %v2838_v48 = vsel %vm2796_vm4, %v13851_v47, %v13850_v51  ;;  %v10483_v43 = vsub.f32 %v13854_v16, %v3654_v12  ;;  %v684_v8 = vmul.f32 %v10486_v17, %v13658_v55  ;;  %v10491_v59 = vadd.f32 %v10233_v63, %v3483_v32  ;;  %v10508_v32 = vld [vmem:[%s5644_s26 + $0x38] sm:$0xff] }
 0x30b   : > { %v3113_v52 = vsel %vm12758_vm5, %v13853_v10, %v13852_v9  ;;  %v2385_v51 = vadd.f32 %v2288_v7, %v2110_v53  ;;  %v13858_v47 = vrot.slane %v10429_v28, 7  ;;  %v13859_v61 = vrot.slane %v10427_v20, 7  ;;  %v10503_v10 = vld [vmem:[%s5644_s26 + $0x28] sm:$0xff]  ;;  %13862 = vst [vmem:[#allocation91_spill] sm:$0xff] %v10508_v32 }
 0x30c   : > { %13855 = vst [vmem:[#allocation46_spill] sm:$0xff] %v10483_v43  ;;  %v3790_v12 = vsel %vm3527_vm7, %v3716_v33, 0.0  ;;  %v10500_v41 = vmul.f32 %v4415_v0, %v10435_v58  ;;  %v651_v31 = vadd.f32 %v619_v49, %v586_v42  ;;  %v749_v16 = vmul.f32 %v10503_v10, %v13444_v19  ;;  %v10523_v49 = vld [vmem:[%s5644_s26 + $0x48] sm:$0xff]  ;;  %v10528_v42 = vld [vmem:[%s5644_s26 + $0x58] sm:$0xff] }
 0x30d   : > { %13857 = vst [vmem:[#allocation13_spill] sm:$0xff] %v10491_v59  ;;  %v3388_v9 = vsel %vm3346_vm6, %v13859_v61, %v13858_v47  ;;  %v814_v7 = vmul.f32 %v10508_v32, %v13585_v54  ;;  %v3600_v0 = vsel %vm3527_vm7, %v10491_v59, 0.0  ;;  %v2660_v61 = vadd.f32 %v2563_v45, %v2385_v51  ;;  %v13867_v59 = vld [vmem:[#allocation74_spill] sm:$0xff]  ;;  %v13868_v51 = vld [vmem:[#allocation77_spill] sm:$0xff]  ;;  %v13885_v33 = vld [vmem:[#allocation88_spill] sm:$0xff] }
 0x30e   : > { %13860 = vst [vmem:[#allocation47_spill] sm:$0xff] %v10500_v41  ;;  %v879_v53 = vmul.f32 %v10523_v49, %v13483_v56  ;;  %v944_v47 = vmul.f32 %v10528_v42, %v12988_v62  ;;  %3601 = vadd.xlane.f32.xlu2 %v3600_v0  ;;  %v716_v24 = vadd.f32 %v684_v8, %v651_v31  ;;  %v13869_v41 = vld [vmem:[#allocation61_spill] sm:$0xff]  ;;  %v13874_v31 = vld [vmem:[#allocation76_spill] sm:$0xff] }
 0x30f   : > { %13861 = vst [vmem:[#allocation65_spill] sm:$0xff] %v10503_v10  ;;  %v1009_v45 = vmul.f32 %v13867_v59, %v13488_v5  ;;  %v1074_v58 = vmul.f32 %v13868_v51, %v13593_v3  ;;  %v2935_v32 = vadd.f32 %v2838_v48, %v2660_v61  ;;  %v10545_v10 = vld [vmem:[%s5644_s26 + $0x98] sm:$0xff]  ;;  %v10553_v8 = vmul.f32 %v13872_v11, %v13786_v38  ;;  %v13875_v51 = vld [vmem:[#allocation71_spill] sm:$0xff]  ;;  %v13880_v38 = vld [vmem:[#allocation25_spill] sm:$0xff] }
 0x310   : > { %13865 = vst [vmem:[#allocation92_spill] sm:$0xff] %v10523_v49  ;;  %v10542_v49 = vmul.f32 %v13869_v41, %v13595_v35  ;;  %v3996_v59 = vsel %vm3995_vm12, %v13835_v14, %v13874_v31  ;;  %v781_v0 = vadd.f32 %v749_v16, %v716_v24  ;;  %v10559_v17 = vmul.f32 %v13875_v51, %v13788_v26  ;;  %v13877_v41 = vld [vmem:[#allocation81_spill] sm:$0xff]  ;;  %v13878_v61 = vld [vmem:[#allocation64_spill] sm:$0xff]  ;;  %v13883_v16 = vld [vmem:[#allocation67_spill] sm:$0xff] }
 0x311   : > { %13866 = vst [vmem:[#allocation90_spill] sm:$0xff] %v10528_v42  ;;  %v10549_v42 = vmul.f32 %v10545_v10, %v13783_v44  ;;  %v4006_v48 = vsel %vm10516_vm11, %v13832_v57, %v13877_v41  ;;  %v3210_v44 = vadd.f32 %v3113_v52, %v2935_v32  ;;  %v13882_v14 = vld [vmem:[#allocation24_spill] sm:$0xff]  ;;  %v13884_v51 = vld [vmem:[#allocation39_spill] sm:$0xff]  ;;  %v457_v57 = vmul.f32 %v13885_v33, %v13839_v34  ;;  %v13886_v41 = vld [vmem:[#allocation73_spill] sm:$0xff] }
 0x312   : > { %13870 = vst [vmem:[#allocation85_spill] sm:$0xff] %v10545_v10  ;;  %v4217_v10 = vmul.f32 %v3996_v59, %v13878_v61  ;;  %v4509_v24 = vadd.f32 %v13883_v16, %v13882_v14  ;;  %v846_v31 = vadd.f32 %v814_v7, %v781_v0  ;;  %v10573_v26 = vmul.f32 %v13884_v51, %v13791_v22 }
 0x313   : > { %13871 = vst [vmem:[#allocation15_spill] sm:$0xff] %v10549_v42  ;;  %v13879_v42 = vld [vmem:[#allocation22_spill] sm:$0xff]  ;;  %v490_v59 = vmul.f32 %v13886_v41, %v13840_v25  ;;  %v3485_v52 = vadd.f32 %v3388_v9, %v3210_v44  ;;  %v620_v0 = vmul.f32 %v10139_v13, %v13847_v23  ;;  %v1464_v51 = vmul.f32 %v13810_v40, %v13599_v36  ;;  %v13889_v40 = vld [vmem:[#allocation72_spill] sm:$0xff] }
 0x314   : > { %13873 = vst [vmem:[#allocation8_spill] sm:$0xff] %v10553_v8  ;;  %v4218_v11 = vmul.f32 %v4006_v48, %v13879_v42  ;;  %v13881_v8 = vld [vmem:[#allocation21_spill] sm:$0xff]  ;;  %v4541_v48 = vmul.f32 0.7978846, %v4509_v24  ;;  %v911_v61 = vadd.f32 %v879_v53, %v846_v31  ;;  %v13890_v24 = vrot.slane %v13889_v40, 1 }
 0x315   : > { %13876 = vst [vmem:[#allocation9_spill] sm:$0xff] %v10559_v17  ;;  %v4508_v35 = vadd.f32 %v13881_v8, %v13880_v38  ;;  %v522_v8 = vadd.f32 %v490_v59, %v457_v57  ;;  %v10580_v17 = vld [vmem:[%s5644_s26] sm:$0xff]  ;;  %v10587_v16 = vadd.f32 %v10233_v63, %v3485_v52  ;;  %v13891_v57 = vrot.slane %v10318_v2, 2 }
 0x316   : > { %v4244_v32 = vpack.c.bf16 %v4218_v11, %v4217_v10  ;;  %v555_v7 = vmul.f32 %v10580_v17, %v13842_v50  ;;  %3791 = vadd.xlane.f32.xlu2 %v3790_v12  ;;  %v976_v44 = vadd.f32 %v944_v47, %v911_v61  ;;  %v685_v10 = vmul.f32 %v10147_v1, %v13658_v55  ;;  %v10622_v61 = vld [vmem:[%s5644_s26 + $0x30] sm:$0xff] }
 0x317   : > { %v4540_v42 = vmul.f32 0.7978846, %v4508_v35  ;;  %13887 = vst [vmem:[#allocation10_spill] sm:$0xff] %v10587_v16  ;;  %v1497_v35 = vmul.f32 %v10079_v27, %v13600_v30  ;;  %v3606_v53 = vsel %vm3527_vm7, %v10587_v16, 0.0  ;;  %v13888_v11 = vrot.slane %v10298_v60, 1 }
 0x318   : > { %5077 = vmatmul.msk.bf16.gmra.mxu0 %vm3527_vm7, %v4244_v32  ;;  %v587_v9 = vadd.f32 %v555_v7, %v522_v8  ;;  %v13892_v12 = vrot.slane %v10320_v39, 2  ;;  %v3718_v59 = vmul.f32 %v10483_v43, %v10483_v43  ;;  %3607 = vadd.xlane.f32.xlu0 %v3606_v53  ;;  %v1041_v52 = vadd.f32 %v1009_v45, %v976_v44  ;;  %v13913_v43 = vld [vmem:[#allocation37_spill] sm:$0xff] }
 0x319   : > { %5227 = vtanh.f32 %v4540_v42  ;;  %v10603_v31 = vsel %vm1696_vm0, %v13890_v24, %v13888_v11  ;;  %v13893_v32 = vrot.slane %v10350_v18, 3  ;;  %v13894_v60 = vrot.slane %v10358_v29, 3  ;;  %13895 = vst [vmem:[#allocation14_spill] sm:$0xff] %v10622_v61  ;;  %v13905_v24 = vld [vmem:[#allocation48_spill] sm:$0xff] }
 0x31a   : > { %5229 = vtanh.f32 %v4541_v48  ;;  %v10610_v47 = vsel %vm1971_vm1, %v13892_v12, %v13891_v57  ;;  %v652_v48 = vadd.f32 %v620_v0, %v587_v9  ;;  %v750_v2 = vmul.f32 %v10622_v61, %v13444_v19  ;;  %v13918_v61 = vld [vmem:[#allocation69_spill] sm:$0xff] }
 0x31b   : > { %v10619_v42 = vsel %vm2246_vm2, %v13894_v60, %v13893_v32  ;;  %v10626_v39 = vadd.f32 %v1497_v35, %v1464_v51  ;;  %v13896_v8 = vrot.slane %v10390_v46, 4  ;;  %v13897_v7 = vrot.slane %v10392_v37, 4  ;;  %v5131_v37 = vld [vmem:[%s11969_s7] sm:$0xff] }
 0x31c   : > { %v13898_v18 = vrot.slane %v10394_v21, 5  ;;  %v13899_v29 = vrot.slane %v10405_v4, 5  ;;  %v13900_v44 = vrot.slane %v10407_v6, 6  ;;  %v13901_v9 = vrot.slane %v10423_v15, 6  ;;  %v13904_v6 = vld [vmem:[#allocation80_spill] sm:$0xff]  ;;  %4759 = vmatpush.bf16.msra.mxu1 %v5131_v37  ;;  %5149 = vmatpush.bf16.msra.mxu2 %v5131_v37 }
 0x31d   : > { %v10633_v45 = vsel %vm2521_vm3, %v13897_v7, %v13896_v8  ;;  %v1106_v46 = vadd.f32 %v1074_v58, %v1041_v52  ;;  %v13902_v21 = vrot.slane %v10427_v20, 7  ;;  %v13903_v4 = vrot.slane %v10429_v28, 7  ;;  %v13906_v58 = vld [vmem:[#allocation26_spill] sm:$0xff]  ;;  %v13907_v20 = vld [vmem:[#allocation51_spill] sm:$0xff] }
 0x31e   : > { %v10640_v0 = vsel %vm2796_vm4, %v13899_v29, %v13898_v18  ;;  %v10647_v51 = vsel %vm12758_vm5, %v13901_v9, %v13900_v44  ;;  %v717_v53 = vadd.f32 %v685_v10, %v652_v48  ;;  %v815_v15 = vmul.f32 %v13904_v6, %v13585_v54  ;;  %v10670_v48 = vld [vmem:[%s5644_s26 + $0x80] sm:$0xff]  ;;  %v13909_v18 = vld [vmem:[#allocation27_spill] sm:$0xff] }
 0x31f   : > { %v10657_v35 = vsel %vm3346_vm6, %v13903_v4, %v13902_v21  ;;  %v5228_v11 = vpop.eup %5227  ;;  %v3796_v40 = vsel %vm3527_vm7, %v3718_v59, 0.0  ;;  %v880_v57 = vmul.f32 %v13905_v24, %v13483_v56  ;;  %v945_v12 = vmul.f32 %v13906_v58, %v12988_v62  ;;  %13908 = vst [vmem:[#allocation12_spill] sm:$0xff] %v10670_v48  ;;  %v13910_v29 = vld [vmem:[#allocation45_spill] sm:$0xff]  ;;  %v13911_v9 = vld [vmem:[#allocation31_spill] sm:$0xff]  ;;  %v13912_v4 = vld [vmem:[#allocation32_spill] sm:$0xff] }
 0x320   : > { %v1010_v28 = vmul.f32 %v13907_v20, %v13488_v5  ;;  %v5230_v52 = vpop.eup %5229  ;;  %v1171_v32 = vadd.f32 %v10542_v49, %v1106_v46  ;;  %v4604_v10 = vadd.f32 1.0, %v5228_v11  ;;  %v782_v60 = vadd.f32 %v750_v2, %v717_v53  ;;  %v3596_v8 = vpop.xlane.xlu2 %3595  ;;  %v13914_v49 = vld [vmem:[#allocation68_spill] sm:$0xff]  ;;  %v13915_v2 = vld [vmem:[#allocation15_spill] sm:$0xff]  ;;  %v13916_v20 = vld [vmem:[#allocation29_spill] sm:$0xff]  ;;  %3797 = vadd.xlane.f32.xlu0 %v3796_v40 }
 0x321   : > { %v1075_v59 = vmul.f32 %v10670_v48, %v13593_v3  ;;  %v4605_v7 = vadd.f32 1.0, %v5230_v52  ;;  %v1140_v44 = vmul.f32 %v13910_v29, %v13909_v18  ;;  %v1595_v21 = vmul.f32 %v13885_v33, %v13911_v9  ;;  %v4342_v11 = vpop.f32.mrf.mxu0  ;;  %v13917_v58 = vld [vmem:[#allocation75_spill] sm:$0xff]  ;;  %v13924_v18 = vld [vmem:[#allocation84_spill] sm:$0xff] }
 0x322   : > { %v1628_v16 = vmul.f32 %v13913_v43, %v13912_v4  ;;  %v3653_v46 = vmul.f32 %v13914_v49, %v3596_v8  ;;  %v1236_v53 = vadd.f32 %v13915_v2, %v1171_v32  ;;  %v1205_v48 = vmul.f32 %v13917_v58, %v13916_v20  ;;  %v13920_v8 = vld [vmem:[#allocation8_spill] sm:$0xff]  ;;  %v13921_v2 = vld [vmem:[#allocation30_spill] sm:$0xff] }
 0x323   : > { %v1596_v37 = vmul.f32 %v13913_v43, %v13911_v9  ;;  %v4636_v52 = vmul.f32 %v4604_v10, %v13880_v38  ;;  %v4637_v29 = vmul.f32 %v4605_v7, %v13882_v14  ;;  %v847_v24 = vadd.f32 %v815_v15, %v782_v60  ;;  %v13922_v49 = vld [vmem:[#allocation60_spill] sm:$0xff]  ;;  %v13926_v60 = vld [vmem:[#allocation9_spill] sm:$0xff] }
 0x324   : > { %v1629_v6 = vmul.f32 %v13885_v33, %v13912_v4  ;;  %v10691_v1 = vsub.f32 %v13918_v61, %v3653_v46  ;;  %v1301_v32 = vadd.f32 %v13920_v8, %v1236_v53  ;;  %v1270_v58 = vmul.f32 %v13922_v49, %v13921_v2  ;;  %v13923_v20 = vld [vmem:[#allocation36_spill] sm:$0xff] }
 0x325   : > { %v1870_v9 = vmul.f32 %v13885_v33, %v13923_v20  ;;  %v10699_v38 = vadd.f32 %v13924_v18, %v4342_v11  ;;  %v4668_v14 = vpack.c.bf16 %v4637_v29, %v4636_v52  ;;  %v912_v15 = vadd.f32 %v880_v57, %v847_v24  ;;  %v13927_v46 = vld [vmem:[#allocation40_spill] sm:$0xff] }
 0x326   : > { %13919 = vst [vmem:[#allocation44_spill] sm:$0xff] %v10691_v1  ;;  %v10701_v10 = vadd.f32 %v1628_v16, %v1595_v21  ;;  %v1366_v7 = vadd.f32 %v13926_v60, %v1301_v32  ;;  %v3717_v61 = vmul.f32 %v10691_v1, %v10691_v1  ;;  %v1871_v40 = vmul.f32 %v13913_v43, %v13923_v20  ;;  %v13928_v16 = vld [vmem:[#allocation41_spill] sm:$0xff] }
 0x327   : > { %13925 = vst [vmem:[#allocation74_spill] sm:$0xff] %v10699_v38  ;;  %v1903_v53 = vmul.f32 %v13913_v43, %v13927_v46  ;;  %4760 = vmatmul.bf16.vlgmr.msra.gmra.mxu1 %v4668_v14  ;;  %v977_v8 = vadd.f32 %v945_v12, %v912_v15  ;;  %v10710_v49 = vadd.f32 %v1629_v6, %v1596_v37  ;;  %v13929_v37 = vld [vmem:[#allocation42_spill] sm:$0xff] }
 0x328   : > { %v1904_v24 = vmul.f32 %v13885_v33, %v13927_v46  ;;  %v2145_v57 = vmul.f32 %v13885_v33, %v13928_v16  ;;  %v1431_v18 = vadd.f32 %v10573_v26, %v1366_v7  ;;  %v3793_v29 = vsel %vm3527_vm7, %v3717_v61, 0.0  ;;  %v13930_v61 = vld [vmem:[#allocation49_spill] sm:$0xff] }
 0x329   : > { %v10718_v21 = vadd.f32 %v1903_v53, %v1870_v9  ;;  %v2146_v11 = vmul.f32 %v13913_v43, %v13928_v16  ;;  %3794 = vadd.xlane.f32.xlu2 %v3793_v29  ;;  %v1042_v52 = vadd.f32 %v1010_v28, %v977_v8  ;;  %v1465_v6 = vmul.f32 %v13885_v33, %v13599_v36  ;;  %v13934_v28 = vld [vmem:[#allocation52_spill] sm:$0xff] }
 0x32a   : > { %v10724_v12 = vadd.f32 %v1904_v24, %v1871_v40  ;;  %v2178_v32 = vmul.f32 %v13913_v43, %v13929_v37  ;;  %v1561_v14 = vadd.f32 %v10626_v39, %v1431_v18  ;;  %v1498_v26 = vmul.f32 %v13913_v43, %v13600_v30  ;;  %v13931_v24 = vld [vmem:[#allocation50_spill] sm:$0xff]  ;;  %v13949_v16 = vld [vmem:[#allocation56_spill] sm:$0xff] }
 0x32b   : > { %v2179_v15 = vmul.f32 %v13885_v33, %v13929_v37  ;;  %v1107_v60 = vadd.f32 %v1075_v59, %v1042_v52  ;;  %v2420_v40 = vmul.f32 %v13885_v33, %v13930_v61  ;;  %v2453_v18 = vmul.f32 %v13913_v43, %v13931_v24 }
 0x32c   : > { %v10735_v7 = vadd.f32 %v2178_v32, %v2145_v57  ;;  %v1836_v53 = vadd.f32 %v10603_v31, %v1561_v14  ;;  %v2421_v59 = vmul.f32 %v13913_v43, %v13930_v61  ;;  %v2454_v57 = vmul.f32 %v13885_v33, %v13931_v24  ;;  %v13932_v32 = vld [vmem:[#allocation35_spill] sm:$0xff]  ;;  %v13933_v31 = vld [vmem:[#allocation66_spill] sm:$0xff] }
 0x32d   : > { %v10741_v8 = vadd.f32 %v2179_v15, %v2146_v11  ;;  %v1172_v29 = vadd.f32 %v1140_v44, %v1107_v60  ;;  %v1335_v14 = vmul.f32 %v13933_v31, %v13932_v32  ;;  %v10757_v44 = vmul.f32 %v10699_v38, %v10699_v38  ;;  %v13935_v11 = vld [vmem:[#allocation53_spill] sm:$0xff] }
 0x32e   : > { %v2111_v52 = vadd.f32 %v10610_v47, %v1836_v53  ;;  %v1400_v39 = vmul.f32 %v10079_v27, %v13791_v22  ;;  %v10761_v9 = vadd.f32 %v2453_v18, %v2420_v40  ;;  %v1530_v53 = vadd.f32 %v1498_v26, %v1465_v6 }
 0x32f   : > { %v1237_v60 = vadd.f32 %v1205_v48, %v1172_v29  ;;  %v2695_v31 = vmul.f32 %v13885_v33, %v13934_v28  ;;  %v2728_v1 = vmul.f32 %v13913_v43, %v13935_v11  ;;  %v13936_v24 = vrot.slane %v10710_v49, 1  ;;  %v10787_v29 = vld [vmem:[%s5644_s26 + $0xe8] sm:$0xff] }
 0x330   : > { %v2386_v47 = vadd.f32 %v10619_v42, %v2111_v52  ;;  %v13937_v61 = vrot.slane %v10701_v10, 1  ;;  %v13938_v27 = vrot.slane %v10724_v12, 2  ;;  %v13939_v40 = vrot.slane %v10718_v21, 2  ;;  %13942 = vst [vmem:[#allocation77_spill] sm:$0xff] %v10787_v29 }
 0x331   : > { %v1302_v15 = vadd.f32 %v1270_v58, %v1237_v60  ;;  %v10778_v6 = vadd.f32 %v2454_v57, %v2421_v59  ;;  %v13940_v18 = vrot.slane %v10741_v8, 3  ;;  %v13941_v43 = vrot.slane %v10735_v7, 3  ;;  %v13943_v57 = vld [vmem:[#allocation54_spill] sm:$0xff]  ;;  %v13944_v60 = vld [vmem:[#allocation55_spill] sm:$0xff] }
 0x332   : > { %v1741_v48 = vsel %vm1696_vm0, %v13937_v61, %v13936_v24  ;;  %v2016_v42 = vsel %vm1971_vm1, %v13939_v40, %v13938_v27  ;;  %v2661_v26 = vadd.f32 %v10633_v45, %v2386_v47  ;;  %v2696_v61 = vmul.f32 %v10787_v29, %v13934_v28  ;;  %v4344_v27 = vpop.f32.mrf.mxu0  ;;  %v13945_v40 = vld [vmem:[#allocation16_spill] sm:$0xff]  ;;  %v13947_v59 = vld [vmem:[#allocation23_spill] sm:$0xff] }
 0x333   : > { %v2291_v58 = vsel %vm2246_vm2, %v13941_v43, %v13940_v18  ;;  %v2729_v24 = vmul.f32 %v13885_v33, %v13935_v11  ;;  %v1367_v52 = vadd.f32 %v1335_v14, %v1302_v15  ;;  %v2970_v45 = vmul.f32 %v13885_v33, %v13943_v57  ;;  %v13946_v18 = vld [vmem:[#allocation38_spill] sm:$0xff]  ;;  %v13948_v11 = vld [vmem:[#allocation28_spill] sm:$0xff] }
 0x334   : > { %v3003_v47 = vmul.f32 %v10787_v29, %v13944_v60  ;;  %vm4023_vm13 = vweird.f32 %v13945_v40  ;;  %vm4024_vm14 = vweird.f32 %v13946_v18  ;;  %v2936_v43 = vadd.f32 %v10640_v0, %v2661_v26  ;;  %v13973_v40 = vld [vmem:[#allocation18_spill] sm:$0xff] }
 0x335   : > { %v10801_v28 = vadd.f32 %v2728_v1, %v2695_v31  ;;  %v2971_v14 = vmul.f32 %v10787_v29, %v13943_v57  ;;  %v3004_v15 = vmul.f32 %v13885_v33, %v13944_v60  ;;  %vm4013_vm15 = vweird.f32 %v13947_v59  ;;  %v13950_v1 = vld [vmem:[#allocation58_spill] sm:$0xff]  ;;  %vm10886_vm9 = vmor %vm4023_vm13, %vm4024_vm14  ;;  %v13979_v59 = vld [vmem:[#allocation47_spill] sm:$0xff] }
 0x336   : > { %vm4014_vm8 = vweird.f32 %v13948_v11  ;;  %v1432_v37 = vadd.f32 %v1400_v39, %v1367_v52  ;;  %v3245_v46 = vmul.f32 %v13885_v33, %v13949_v16  ;;  %v3246_v0 = vmul.f32 %v10787_v29, %v13949_v16  ;;  %v10823_v39 = vld [vmem:[%s11968_s6] ss:$0 sm:$0xff] }
 0x337   : > { %v3278_v31 = vmul.f32 %v10787_v29, %v13950_v1  ;;  %v3211_v26 = vadd.f32 %v10647_v51, %v2936_v43  ;;  %v10816_v57 = vadd.f32 %v2729_v24, %v2696_v61  ;;  %v3279_v60 = vmul.f32 %v13885_v33, %v13950_v1  ;;  %13951 = vst [vmem:[#allocation61_spill] sm:$0xff] %v10823_v39  ;;  %v10838_v1 = vld [vmem:[%s5644_s26 + $0xf8] sm:$0xff]  ;;  %vm10898_vm10 = vmor %vm4013_vm15, %vm4014_vm8 }
 0x338   : > { %v10826_v52 = vadd.f32 %v10823_v39, %v4344_v27  ;;  %v1562_v20 = vadd.f32 %v1530_v53, %v1432_v37  ;;  %v10829_v4 = vadd.f32 %v3003_v47, %v2970_v45  ;;  %v458_v51 = vmul.f32 %v10787_v29, %v13839_v34  ;;  %13954 = vst [vmem:[#allocation71_spill] sm:$0xff] %v10838_v1  ;;  %v13955_v45 = vld [vmem:[#allocation82_spill] sm:$0xff] }
 0x339   : > { %v3486_v61 = vadd.f32 %v10657_v35, %v3211_v26  ;;  %v10835_v43 = vadd.f32 %v3004_v15, %v2971_v14  ;;  %v491_v27 = vmul.f32 %v10838_v1, %v13840_v25  ;;  %v10842_v37 = vadd.f32 %v3278_v31, %v3245_v46 }
 0x33a   : > { %13952 = vst [vmem:[#allocation89_spill] sm:$0xff] %v10826_v52  ;;  %v1837_v39 = vadd.f32 %v1741_v48, %v1562_v20  ;;  %v10844_v53 = vadd.f32 %v3279_v60, %v3246_v0  ;;  %v556_v47 = vmul.f32 %v13955_v45, %v13842_v50  ;;  %v4417_v14 = vmul.f32 %v10826_v52, %v10826_v52  ;;  %v13959_v60 = vld [vmem:[#allocation43_spill] sm:$0xff] }
 0x33b   : > { %13953 = vst [vmem:[#allocation76_spill] sm:$0xff] %v10835_v43  ;;  %v10849_v16 = vadd.f32 %v10233_v63, %v3486_v61  ;;  %v523_v15 = vadd.f32 %v491_v27, %v458_v51  ;;  %v13957_v24 = vrot.slane %v10778_v6, 4  ;;  %v13958_v20 = vrot.slane %v10761_v9, 4  ;;  %v13960_v51 = vld [vmem:[#allocation65_spill] sm:$0xff]  ;;  %v13963_v61 = vld [vmem:[#allocation91_spill] sm:$0xff] }
 0x33c   : > { %v2112_v26 = vadd.f32 %v2016_v42, %v1837_v39  ;;  %v621_v0 = vmul.f32 %v13959_v60, %v13847_v23  ;;  %v686_v42 = vmul.f32 %v13960_v51, %v13658_v55  ;;  %v4448_v39 = vmul.f32 %v10757_v44, %v10699_v38  ;;  %v13964_v51 = vld [vmem:[#allocation87_spill] sm:$0xff] }
 0x33d   : > { %13956 = vst [vmem:[#allocation81_spill] sm:$0xff] %v10849_v16  ;;  %v2566_v46 = vsel %vm2521_vm3, %v13958_v20, %v13957_v24  ;;  %v3609_v31 = vsel %vm3527_vm7, %v10849_v16, 0.0  ;;  %v588_v35 = vadd.f32 %v556_v47, %v523_v15  ;;  %v13961_v48 = vrot.slane %v10816_v57, 5 }
 0x33e   : > { %3610 = vadd.xlane.f32.xlu1 %v3609_v31  ;;  %v2387_v27 = vadd.f32 %v2291_v58, %v2112_v26  ;;  %v13962_v60 = vrot.slane %v10801_v28, 5  ;;  %v4449_v47 = vmul.f32 %v4417_v14, %v10826_v52  ;;  %v751_v31 = vmul.f32 %v13963_v61, %v13444_v19  ;;  %v13968_v26 = vld [vmem:[#allocation19_spill] sm:$0xff] }
 0x33f   : > { %v653_v15 = vadd.f32 %v621_v0, %v588_v35  ;;  %v13965_v45 = vsub.f32 1.5, %v13964_v51  ;;  %v13970_v14 = vld [vmem:[#allocation7_spill] sm:$0xff]  ;;  %v4479_v61 = vmul.f32 0.044715, %v13979_v59  ;;  %v10914_v52 = vmul.f32 0.044715, %v4448_v39 }
 0x340   : > { %v2841_v16 = vsel %vm2796_vm4, %v13962_v60, %v13961_v48  ;;  %v13969_v48 = vsub.f32 1.5, %v13968_v26  ;;  %v4478_v60 = vmul.f32 0.044715, %v13970_v14  ;;  %v2662_v0 = vadd.f32 %v2566_v46, %v2387_v27  ;;  %v13974_v51 = vld [vmem:[#allocation63_spill] sm:$0xff]  ;;  %v13978_v27 = vld [vmem:[#allocation92_spill] sm:$0xff] }
 0x341   : > { %v4022_v44 = vmul.f32 %v13946_v18, %v13965_v45  ;;  %v10904_v24 = vmul.f32 %v13974_v51, %v13973_v40  ;;  %v13976_v26 = vrot.slane %v10835_v43, 6  ;;  %v718_v46 = vadd.f32 %v686_v42, %v653_v15  ;;  %v13982_v42 = vld [vmem:[#allocation90_spill] sm:$0xff]  ;;  %v10931_v59 = vld [vmem:[%s5644_s26 + $0x78] sm:$0xff]  ;;  %v13988_v45 = vld [vmem:[#allocation79_spill] sm:$0xff] }
 0x342   : > { %v4012_v35 = vmul.f32 %v13948_v11, %v13969_v48  ;;  %v13977_v48 = vrot.slane %v10829_v4, 6  ;;  %v816_v20 = vmul.f32 %v13978_v27, %v13585_v54  ;;  %v2937_v38 = vadd.f32 %v2841_v16, %v2662_v0  ;;  %13984 = vst [vmem:[#allocation25_spill] sm:$0xff] %v10931_v59  ;;  %v10942_v0 = vld [vmem:[%s5644_s26 + $0x88] sm:$0xff] }
 0x343   : > { %13975 = vst [vmem:[#allocation64_spill] sm:$0xff] %v10904_v24  ;;  %v13980_v1 = vrot.slane %v10844_v53, 7  ;;  %v13981_v40 = vrot.slane %v10842_v37, 7  ;;  %v10921_v24 = vmul.f32 0.044715, %v4449_v47  ;;  %v783_v43 = vadd.f32 %v751_v31, %v718_v46 }
 0x344   : > { %v3116_v14 = vsel %vm12758_vm5, %v13977_v48, %v13976_v26  ;;  %v881_v15 = vmul.f32 %v13982_v42, %v13483_v56  ;;  %v10926_v26 = vld [vmem:[%s5644_s26 + $0x68] sm:$0xff]  ;;  %v1011_v16 = vmul.f32 %v10931_v59, %v13488_v5  ;;  %v4026_v47 = vsel %vm10886_vm9, %v13946_v18, %v4022_v44  ;;  %v13987_v42 = vld [vmem:[#allocation5_spill] sm:$0xff] }
 0x345   : > { %v3391_v51 = vsel %vm3346_vm6, %v13981_v40, %v13980_v1  ;;  %13983 = vst [vmem:[#allocation22_spill] sm:$0xff] %v10926_v26  ;;  %v946_v48 = vmul.f32 %v10926_v26, %v12988_v62  ;;  %v3212_v39 = vadd.f32 %v3116_v14, %v2937_v38  ;;  %v4016_v1 = vsel %vm10898_vm10, %v13948_v11, %v4012_v35  ;;  %v13985_v38 = vld [vmem:[#allocation57_spill] sm:$0xff] }
 0x346   : > { %v848_v31 = vadd.f32 %v816_v20, %v783_v43  ;;  %v1076_v46 = vmul.f32 %v10942_v0, %v13593_v3  ;;  %v4219_v14 = vmul.f32 %v4016_v1, %v13985_v38  ;;  %v13986_v40 = vld [vmem:[#allocation33_spill] sm:$0xff]  ;;  %v4510_v27 = vadd.f32 %v4478_v60, %v13987_v42  ;;  %v13990_v1 = vld [vmem:[#allocation27_spill] sm:$0xff]  ;;  %v10962_v38 = vld [vmem:[%s5644_s26 + $0xa8] sm:$0xff] }
 0x347   : > { %v4220_v26 = vmul.f32 %v4026_v47, %v13986_v40  ;;  %v3487_v59 = vadd.f32 %v3391_v51, %v3212_v39  ;;  %v4511_v11 = vadd.f32 %v4479_v61, %v13988_v45  ;;  %v459_v58 = vmul.f32 %v13886_v41, %v13839_v34  ;;  %v13991_v51 = vld [vmem:[#allocation85_spill] sm:$0xff]  ;;  %v13994_v40 = vld [vmem:[#allocation14_spill] sm:$0xff] }
 0x348   : > { %v913_v18 = vadd.f32 %v881_v15, %v848_v31  ;;  %v492_v20 = vmul.f32 %v10580_v17, %v13840_v25  ;;  %v557_v44 = vmul.f32 %v10139_v13, %v13842_v50  ;;  %v1141_v39 = vmul.f32 %v13991_v51, %v13990_v1  ;;  %v13992_v15 = vld [vmem:[#allocation29_spill] sm:$0xff]  ;;  %v10988_v51 = vld [vmem:[%s5644_s26 + $0xd8] sm:$0xff] }
 0x349   : > { %v4245_v43 = vpack.c.bf16 %v4220_v26, %v4219_v14  ;;  %v10957_v35 = vadd.f32 %v10233_v63, %v3487_v59  ;;  %v4542_v60 = vmul.f32 0.7978846, %v4510_v27  ;;  %v4543_v47 = vmul.f32 0.7978846, %v4511_v11  ;;  %v13993_v63 = vld [vmem:[#allocation70_spill] sm:$0xff]  ;;  %13996 = vst [vmem:[#allocation67_spill] sm:$0xff] %v10988_v51 }
 0x34a   : > { %v978_v61 = vadd.f32 %v946_v48, %v913_v18  ;;  %v1206_v26 = vmul.f32 %v10962_v38, %v13992_v15  ;;  %v524_v13 = vadd.f32 %v492_v20, %v459_v58  ;;  %v622_v17 = vmul.f32 %v13993_v63, %v13847_v23  ;;  %v10978_v58 = vld [vmem:[%s5644_s26 + $0xb8] sm:$0xff] }
 0x34b   : > { %13989 = vst [vmem:[#allocation21_spill] sm:$0xff] %v10957_v35  ;;  %5078 = vmatmul.msk.bf16.gmra.mxu0 %vm3527_vm7, %v4245_v43  ;;  %v3612_v59 = vsel %vm3527_vm7, %v10957_v35, 0.0  ;;  %v1466_v27 = vmul.f32 %v10787_v29, %v13599_v36  ;;  %v1499_v48 = vmul.f32 %v13885_v33, %v13600_v30  ;;  %5231 = vtanh.f32 %v4542_v60  ;;  %v10983_v43 = vld [vmem:[%s5644_s26 + $0xc8] sm:$0xff] }
 0x34c   : > { %3613 = vadd.xlane.f32.xlu1 %v3612_v59  ;;  %v1043_v31 = vadd.f32 %v1011_v16, %v978_v61  ;;  %5233 = vtanh.f32 %v4543_v47  ;;  %v589_v14 = vadd.f32 %v557_v44, %v524_v13  ;;  %v687_v11 = vmul.f32 %v13994_v40, %v13658_v55  ;;  %13995 = vst [vmem:[#allocation24_spill] sm:$0xff] %v10983_v43  ;;  %v14001_v40 = vld [vmem:[#allocation80_spill] sm:$0xff] }
 0x34d   : > { %v1271_v18 = vmul.f32 %v10978_v58, %v13921_v2  ;;  %v1336_v20 = vmul.f32 %v10983_v43, %v13932_v32  ;;  %v1401_v33 = vmul.f32 %v10988_v51, %v13791_v22  ;;  %v13997_v16 = vrot.slane %v10701_v10, 1 }
 0x34e   : > { %v13998_v44 = vrot.slane %v10710_v49, 1  ;;  %v1108_v47 = vadd.f32 %v1076_v46, %v1043_v31  ;;  %v13999_v61 = vrot.slane %v10718_v21, 2  ;;  %v14000_v13 = vrot.slane %v10724_v12, 2 }
 0x34f   : > { %v654_v59 = vadd.f32 %v622_v17, %v589_v14  ;;  %v752_v35 = vmul.f32 %v14001_v40, %v13444_v19  ;;  %v1531_v29 = vadd.f32 %v1499_v48, %v1466_v27  ;;  %v14002_v51 = vrot.slane %v10735_v7, 3  ;;  %v14009_v48 = vld [vmem:[#allocation76_spill] sm:$0xff]  ;;  %v14014_v40 = vld [vmem:[#allocation31_spill] sm:$0xff] }
 0x350   : > { %v1807_v60 = vsel %vm1696_vm0, %v13998_v44, %v13997_v16  ;;  %v11002_v63 = vsel %vm1971_vm1, %v14000_v13, %v13999_v61  ;;  %v14003_v10 = vrot.slane %v10741_v8, 3  ;;  %v14004_v46 = vrot.slane %v10761_v9, 4 }
 0x351   : > { %v14005_v21 = vrot.slane %v10778_v6, 4  ;;  %v14006_v17 = vrot.slane %v10801_v28, 5  ;;  %v14007_v31 = vrot.slane %v10816_v57, 5  ;;  %v1173_v7 = vadd.f32 %v1141_v39, %v1108_v47  ;;  %v14011_v6 = vld [vmem:[#allocation48_spill] sm:$0xff]  ;;  %v5232_v44 = vpop.eup %5231  ;;  %v14012_v28 = vld [vmem:[#allocation26_spill] sm:$0xff]  ;;  %v14013_v57 = vld [vmem:[#allocation51_spill] sm:$0xff] }
 0x352   : > { %v11011_v49 = vsel %vm2246_vm2, %v14003_v10, %v14002_v51  ;;  %v14008_v8 = vrot.slane %v10829_v4, 6  ;;  %v14010_v14 = vrot.slane %v14009_v48, 6  ;;  %v719_v9 = vadd.f32 %v687_v11, %v654_v59  ;;  %v14015_v4 = vld [vmem:[#allocation71_spill] sm:$0xff]  ;;  %v5234_v10 = vpop.eup %5233  ;;  %v14016_v59 = vld [vmem:[#allocation32_spill] sm:$0xff] }
 0x353   : > { %v11018_v12 = vsel %vm2521_vm3, %v14005_v21, %v14004_v46  ;;  %v11025_v27 = vsel %vm2796_vm4, %v14007_v31, %v14006_v17  ;;  %v817_v16 = vmul.f32 %v14011_v6, %v13585_v54  ;;  %v882_v61 = vmul.f32 %v14012_v28, %v13483_v56  ;;  %v14017_v48 = vld [vmem:[#allocation36_spill] sm:$0xff] }
 0x354   : > { %v11032_v51 = vsel %vm12758_vm5, %v14010_v14, %v14008_v8  ;;  %v947_v13 = vmul.f32 %v14013_v57, %v12988_v62  ;;  %v1597_v39 = vmul.f32 %v13886_v41, %v14014_v40  ;;  %v1598_v47 = vmul.f32 %v14015_v4, %v14014_v40  ;;  %v14018_v40 = vld [vmem:[#allocation40_spill] sm:$0xff] }
 0x355   : > { %v1238_v46 = vadd.f32 %v1206_v26, %v1173_v7  ;;  %v4606_v21 = vadd.f32 1.0, %v5232_v44  ;;  %v784_v11 = vadd.f32 %v752_v35, %v719_v9  ;;  %v1630_v17 = vmul.f32 %v14015_v4, %v14016_v59 }
 0x356   : > { %v4607_v31 = vadd.f32 1.0, %v5234_v10  ;;  %v1631_v8 = vmul.f32 %v13886_v41, %v14016_v59  ;;  %v1872_v14 = vmul.f32 %v13886_v41, %v14017_v48  ;;  %v1873_v6 = vmul.f32 %v14015_v4, %v14017_v48  ;;  %v14022_v48 = vld [vmem:[#allocation45_spill] sm:$0xff] }
 0x357   : > { %v1303_v28 = vadd.f32 %v1271_v18, %v1238_v46  ;;  %v849_v57 = vadd.f32 %v817_v16, %v784_v11  ;;  %v1905_v26 = vmul.f32 %v14015_v4, %v14018_v40  ;;  %v1906_v35 = vmul.f32 %v13886_v41, %v14018_v40  ;;  %v14021_v18 = vld [vmem:[#allocation12_spill] sm:$0xff] }
 0x358   : > { %v14019_v7 = vrot.slane %v10842_v37, 7  ;;  %v14020_v9 = vrot.slane %v10844_v53, 7  ;;  %v4638_v10 = vmul.f32 %v4606_v21, %v13987_v42  ;;  %v4639_v59 = vmul.f32 %v4607_v31, %v13988_v45  ;;  %v14023_v37 = vld [vmem:[#allocation75_spill] sm:$0xff] }
 0x359   : > { %v1012_v16 = vmul.f32 %v14021_v18, %v13488_v5  ;;  %v1368_v46 = vadd.f32 %v1336_v20, %v1303_v28  ;;  %v914_v11 = vadd.f32 %v882_v61, %v849_v57  ;;  %v1077_v41 = vmul.f32 %v14022_v48, %v13593_v3  ;;  %v11082_v61 = vld [vmem:[%s5644_s26 + $0xf0] sm:$0xff]  ;;  %v14027_v28 = vld [vmem:[#allocation41_spill] sm:$0xff] }
 0x35a   : > { %v11061_v44 = vsel %vm3346_vm6, %v14020_v9, %v14019_v7  ;;  %v1142_v40 = vmul.f32 %v14023_v37, %v13990_v1  ;;  %v4669_v53 = vpack.c.bf16 %v4639_v59, %v4638_v10  ;;  %v14024_v7 = vld [vmem:[#allocation60_spill] sm:$0xff]  ;;  %v11073_v43 = vadd.f32 %v1630_v17, %v1597_v39  ;;  %v14028_v39 = vld [vmem:[#allocation42_spill] sm:$0xff] }
 0x35b   : > { %v1207_v9 = vmul.f32 %v14024_v7, %v13992_v15  ;;  %v11075_v42 = vadd.f32 %v1631_v8, %v1598_v47  ;;  %v1433_v45 = vadd.f32 %v1401_v33, %v1368_v46  ;;  %v979_v21 = vadd.f32 %v947_v13, %v914_v11  ;;  %v14029_v8 = vld [vmem:[#allocation49_spill] sm:$0xff] }
 0x35c   : > { %v11077_v31 = vadd.f32 %v1905_v26, %v1872_v14  ;;  %v11079_v20 = vadd.f32 %v1906_v35, %v1873_v6  ;;  %4765 = vmatmul.bf16.gmra.mxu1 %v4669_v53  ;;  %v2147_v57 = vmul.f32 %v11082_v61, %v14027_v28  ;;  %v2148_v10 = vmul.f32 %v14015_v4, %v14027_v28  ;;  %v14030_v6 = vld [vmem:[#allocation50_spill] sm:$0xff]  ;;  %v5460_v35 = vld [vmem:[%s5644_s26 + $0xc0] sm:$0xff] }
 0x35d   : > { %v2180_v17 = vmul.f32 %v14015_v4, %v14028_v39  ;;  %v2181_v33 = vmul.f32 %v11082_v61, %v14028_v39  ;;  %v1563_v13 = vadd.f32 %v1531_v29, %v1433_v45  ;;  %v1044_v47 = vadd.f32 %v1012_v16, %v979_v21 }
 0x35e   : > { %14025 = vst [vmem:[#allocation39_spill] sm:$0xff] %v11077_v31  ;;  %v2422_v14 = vmul.f32 %v11082_v61, %v14029_v8  ;;  %v2455_v26 = vmul.f32 %v14015_v4, %v14030_v6  ;;  %v1272_v59 = vmul.f32 %v5460_v35, %v13921_v2  ;;  %v1467_v18 = vmul.f32 %v11082_v61, %v13599_v36 }
 0x35f   : > { %14026 = vst [vmem:[#allocation88_spill] sm:$0xff] %v11079_v20  ;;  %v1500_v46 = vmul.f32 %v14015_v4, %v13600_v30  ;;  %v12743_v11 = vrot.slane %v11073_v43, 1  ;;  %v1838_v48 = vadd.f32 %v1807_v60, %v1563_v13  ;;  %v1109_v29 = vadd.f32 %v1077_v41, %v1044_v47  ;;  %v14031_v13 = vld [vmem:[#allocation52_spill] sm:$0xff] }
 0x360   : > { %v12740_v16 = vrot.slane %v11075_v42, 1  ;;  %v12742_v37 = vrot.slane %v11077_v31, 2  ;;  %v12741_v53 = vrot.slane %v11079_v20, 2  ;;  %v11106_v7 = vadd.f32 %v2180_v17, %v2147_v57  ;;  %v14032_v17 = vld [vmem:[#allocation53_spill] sm:$0xff] }
 0x361   : > { %v11108_v45 = vadd.f32 %v2181_v33, %v2148_v10  ;;  %v2423_v21 = vmul.f32 %v14015_v4, %v14029_v8  ;;  %v2113_v28 = vadd.f32 %v11002_v63, %v1838_v48  ;;  %v1174_v39 = vadd.f32 %v1142_v40, %v1109_v29  ;;  %v5461_v8 = vld [vmem:[%s5644_s26 + $0xd0] sm:$0xff] }
 0x362   : > { %v2456_v60 = vmul.f32 %v11082_v61, %v14030_v6  ;;  %v11115_v41 = vadd.f32 %v2455_v26, %v2422_v14  ;;  %v2697_v47 = vmul.f32 %v11082_v61, %v14031_v13  ;;  %v2698_v57 = vmul.f32 %v14015_v4, %v14031_v13  ;;  %v5462_v14 = vld [vmem:[%s5644_s26 + $0xe0] sm:$0xff] }
 0x363   : > { %v2730_v10 = vmul.f32 %v14015_v4, %v14032_v17  ;;  %v2731_v33 = vmul.f32 %v11082_v61, %v14032_v17  ;;  %v2388_v63 = vadd.f32 %v11011_v49, %v2113_v28  ;;  %v1239_v40 = vadd.f32 %v1207_v9, %v1174_v39 }
 0x364   : > { %v1337_v6 = vmul.f32 %v5461_v8, %v13932_v32  ;;  %v1402_v26 = vmul.f32 %v5462_v14, %v13791_v22  ;;  %v1532_v35 = vadd.f32 %v1500_v46, %v1467_v18  ;;  %v1744_v48 = vsel %vm1696_vm0, %v12743_v11, %v12740_v16  ;;  %v14033_v8 = vld [vmem:[#allocation54_spill] sm:$0xff]  ;;  %v3774_v16 = vpop.xlane.xlu1 %3773 }
 0x365   : > { %v2019_v49 = vsel %vm1971_vm1, %v12742_v37, %v12741_v53  ;;  %v2663_v29 = vadd.f32 %v11018_v12, %v2388_v63  ;;  %v1304_v28 = vadd.f32 %v1272_v59, %v1239_v40  ;;  %v11143_v18 = vadd.f32 %v2456_v60, %v2423_v21  ;;  %v11152_v53 = vpop.xlane.xlu0 %3782  ;;  %v14034_v21 = vld [vmem:[#allocation55_spill] sm:$0xff]  ;;  %v14037_v40 = vld [vmem:[#allocation89_spill] sm:$0xff]  ;;  %v14039_v46 = vld [vmem:[#allocation58_spill] sm:$0xff] }
 0x366   : > { %v11146_v13 = vadd.f32 %v2730_v10, %v2697_v47  ;;  %v11148_v17 = vadd.f32 %v2731_v33, %v2698_v57  ;;  %v2972_v14 = vmul.f32 %v11082_v61, %v14033_v8  ;;  %v2973_v59 = vmul.f32 %v14015_v4, %v14033_v8  ;;  %v14035_v57 = vld [vmem:[#allocation56_spill] sm:$0xff]  ;;  %v14036_v33 = vld [vmem:[#allocation74_spill] sm:$0xff] }
 0x367   : > { %v2938_v37 = vadd.f32 %v11025_v27, %v2663_v29  ;;  %v1369_v12 = vadd.f32 %v1337_v6, %v1304_v28  ;;  %v3005_v60 = vmul.f32 %v14015_v4, %v14034_v21  ;;  %v3006_v47 = vmul.f32 %v11082_v61, %v14034_v21  ;;  %v14038_v28 = vld [vmem:[#allocation68_spill] sm:$0xff] }
 0x368   : > { %v3247_v10 = vmul.f32 %v11082_v61, %v14035_v57  ;;  %v4512_v63 = vadd.f32 %v10914_v52, %v14036_v33  ;;  %v4513_v11 = vadd.f32 %v10921_v24, %v14037_v40  ;;  %v3248_v29 = vmul.f32 %v14015_v4, %v14035_v57 }
 0x369   : > { %v3213_v27 = vadd.f32 %v11032_v51, %v2938_v37  ;;  %v1434_v6 = vadd.f32 %v1402_v26, %v1369_v12  ;;  %v3838_v8 = vmul.f32 %v3774_v16, %v14038_v28  ;;  %v3280_v21 = vmul.f32 %v14015_v4, %v14039_v46 }
 0x36a   : > { %v3281_v9 = vmul.f32 %v11082_v61, %v14039_v46  ;;  %v4544_v39 = vmul.f32 0.7978846, %v4512_v63  ;;  %v4545_v20 = vmul.f32 0.7978846, %v4513_v11  ;;  %v14040_v24 = vrot.slane %v11108_v45, 3 }
 0x36b   : > { %v3488_v52 = vadd.f32 %v11061_v44, %v3213_v27  ;;  %v1564_v31 = vadd.f32 %v1532_v35, %v1434_v6  ;;  %v14041_v51 = vrot.slane %v11106_v7, 3  ;;  %v3870_v26 = vadd.f32 1e-06, %v3838_v8  ;;  %v11189_v11 = vld [vmem:[%s11966_s4] ss:$0 sm:$0xff] }
 0x36c   : > { %v12748_v16 = vrot.slane %v11143_v18, 4  ;;  %v11182_v12 = vadd.f32 %v3005_v60, %v2972_v14  ;;  %v11184_v57 = vadd.f32 %v3006_v47, %v2973_v59  ;;  %5235 = vtanh.f32 %v4544_v39  ;;  %v14043_v60 = vld [vmem:[#allocation64_spill] sm:$0xff] }
 0x36d   : > { %v2294_v37 = vsel %vm2246_vm2, %v14041_v51, %v14040_v24  ;;  %v11192_v44 = vadd.f32 %v11189_v11, %v3488_v52  ;;  %v1839_v35 = vadd.f32 %v1744_v48, %v1564_v31  ;;  %v12747_v46 = vrot.slane %v11146_v13, 5 }
 0x36e   : > { %5237 = vtanh.f32 %v4545_v20  ;;  %v12746_v63 = vrot.slane %v11148_v17, 5  ;;  %v11196_v27 = vadd.f32 %v3280_v21, %v3247_v10  ;;  %v11198_v14 = vadd.f32 %v3281_v9, %v3248_v29  ;;  %v3605_v9 = vpop.xlane.xlu0 %3604 }
 0x36f   : > { %14042 = vst [vmem:[#allocation73_spill] sm:$0xff] %v11192_v44  ;;  %5239 = vrsqrt.f32 %v3870_v26  ;;  %v3615_v39 = vsel %vm3527_vm7, %v11192_v44, 0.0  ;;  %v2114_v59 = vadd.f32 %v2019_v49, %v1839_v35  ;;  %v4030_v47 = vmul.f32 0.5, %v14043_v60 }
 0x370   : > { %3616 = vadd.xlane.f32.xlu2 %v3615_v39  ;;  %v14044_v31 = vrot.slane %v11115_v41, 4  ;;  %v12750_v48 = vrot.slane %v11182_v12, 6  ;;  %v12749_v10 = vrot.slane %v11184_v57, 6  ;;  %v2844_v49 = vsel %vm2796_vm4, %v12747_v46, %v12746_v63  ;;  %v14045_v46 = vld [vmem:[#allocation59_spill] sm:$0xff] }
 0x371   : > { %v2389_v6 = vadd.f32 %v2294_v37, %v2114_v59  ;;  %v12752_v8 = vrot.slane %v11196_v27, 7  ;;  %v12751_v21 = vrot.slane %v11198_v14, 7  ;;  %v3656_v35 = vmul.f32 %v14038_v28, %v3605_v9 }
 0x372   : > { %v2569_v20 = vsel %vm2521_vm3, %v14044_v31, %v12748_v16  ;;  %v5236_v29 = vpop.eup %5235  ;;  %v4031_v60 = vsub.f32 1.5, %v4030_v47  ;;  %v3119_v37 = vsel %vm12758_vm5, %v12750_v48, %v12749_v10  ;;  %vm4033_vm11 = vweird.f32 %v14045_v46  ;;  %v14047_v10 = vld [vmem:[#allocation62_spill] sm:$0xff] }
 0x373   : > { %v2664_v24 = vadd.f32 %v2569_v20, %v2389_v6  ;;  %v4608_v51 = vadd.f32 1.0, %v5236_v29  ;;  %v3394_v20 = vsel %vm3346_vm6, %v12752_v8, %v12751_v21  ;;  %v14046_v6 = vld [vmem:[#allocation63_spill] sm:$0xff]  ;;  %vm4043_vm13 = vweird.f32 %v3870_v26 }
 0x374   : > { %v5238_v52 = vpop.eup %5237  ;;  %vm4034_vm12 = vweird.f32 %v14046_v6 }
 0x375   : > { %v5240_v39 = vpop.eup %5239  ;;  %v4609_v59 = vadd.f32 1.0, %v5238_v52  ;;  %v2939_v31 = vadd.f32 %v2844_v49, %v2664_v24  ;;  %v4640_v9 = vmul.f32 %v4608_v51, %v14036_v33  ;;  %v11233_v52 = vsub.f32 %v14047_v10, %v3656_v35  ;;  %vm4035_vm15 = vmor %vm4033_vm11, %vm4034_vm12 }
 0x376   : > { %v4038_v63 = vmul.f32 %v5240_v39, %v3870_v26  ;;  %v4032_v49 = vmul.f32 %v14046_v6, %v4031_v60  ;;  %vm4044_vm14 = vweird.f32 %v5240_v39 }
 0x377   : > { %v4641_v47 = vmul.f32 %v4609_v59, %v14037_v40  ;;  %v3214_v29 = vadd.f32 %v3119_v37, %v2939_v31  ;;  %14048 = vst [vmem:[#allocation72_spill] sm:$0xff] %v11233_v52  ;;  %v3720_v51 = vmul.f32 %v11233_v52, %v11233_v52  ;;  %vm4045_vm8 = vmor %vm4043_vm13, %vm4044_vm14  ;;  %v14050_v37 = vld [vmem:[#allocation34_spill] sm:$0xff]  ;;  %v14051_v31 = vld [vmem:[#allocation17_spill] sm:$0xff] }
 0x378   : > { %v4039_v16 = vmul.f32 %v5240_v39, %v4038_v63  ;;  %v3777_v63 = vpop.xlane.xlu1 %3776  ;;  %v4036_v60 = vsel %vm4035_vm15, %v14046_v6, %v4032_v49  ;;  %v3841_v6 = vmul.f32 %v11152_v53, %v14038_v28  ;;  %v4347_v53 = vpop.f32.mrf.mxu0 }
 0x379   : > { %v4670_v46 = vpack.c.bf16 %v4641_v47, %v4640_v9  ;;  %v3489_v24 = vadd.f32 %v3394_v20, %v3214_v29  ;;  %v3802_v26 = vsel %vm3527_vm7, %v3720_v51, 0.0  ;;  %v4221_v59 = vmul.f32 %v4036_v60, %v14050_v37  ;;  %v3780_v9 = vpop.xlane.xlu2 %3779  ;;  %v14052_v60 = vld [vmem:[#allocation13_spill] sm:$0xff] }
 0x37a   : > { %v4040_v48 = vmul.f32 0.5, %v4039_v16  ;;  %3803 = vadd.xlane.f32.xlu1 %v3802_v26  ;;  %v3839_v47 = vmul.f32 %v3777_v63, %v14038_v28 }
 0x37b   : > { %4770 = vmatmul.bf16.gmra.mxu1 %v4670_v46  ;;  %v11237_v33 = vadd.f32 %v11189_v11, %v3489_v24  ;;  %v3840_v46 = vmul.f32 %v3780_v9, %v14038_v28  ;;  %v14054_v9 = vld [vmem:[#allocation10_spill] sm:$0xff] }
 0x37c   : > { %v4041_v40 = vsub.f32 1.5, %v4040_v48 }
 0x37d   : > { %14049 = vst [vmem:[#allocation37_spill] sm:$0xff] %v11237_v33  ;;  %v3618_v10 = vsel %vm3527_vm7, %v11237_v33, 0.0  ;;  %v11255_v24 = vadd.f32 1e-06, %v3840_v46 }
 0x37e   : > { %v4042_v35 = vmul.f32 %v5240_v39, %v4041_v40  ;;  %3619 = vadd.xlane.f32.xlu2 %v3618_v10  ;;  %v11257_v40 = vadd.f32 1e-06, %v3841_v6 }
 0x380   : > { %v4046_v16 = vsel %vm4045_vm8, %v5240_v39, %v4042_v35  ;;  %v3786_v29 = vpop.xlane.xlu1 %3785  ;;  %v11253_v39 = vadd.f32 1e-06, %v3839_v47  ;;  %vm4073_vm10 = vweird.f32 %v11257_v40 }
 0x381   : > { %v4222_v48 = vmul.f32 %v4046_v16, %v14051_v31  ;;  %v3842_v49 = vmul.f32 %v3786_v29, %v14038_v28  ;;  %v3602_v10 = vpop.xlane.xlu2 %3601  ;;  %v460_v29 = vmul.f32 %v14015_v4, %v13839_v34 }
 0x382   : > { %5241 = vrsqrt.f32 %v11253_v39  ;;  %v3655_v63 = vmul.f32 %v14038_v28, %v3602_v10  ;;  %vm4053_vm9 = vweird.f32 %v11253_v39 }
 0x383   : > { %v4246_v20 = vpack.c.bf16 %v4222_v48, %v4221_v59  ;;  %v11259_v51 = vadd.f32 1e-06, %v3842_v49  ;;  %5243 = vrsqrt.f32 %v11255_v24  ;;  %v14056_v49 = vld [vmem:[#allocation82_spill] sm:$0xff] }
 0x384   : > { %5245 = vrsqrt.f32 %v11257_v40  ;;  %v11269_v26 = vsub.f32 %v14052_v60, %v3655_v63  ;;  %v493_v10 = vmul.f32 %v14056_v49, %v13840_v25  ;;  %v14058_v49 = vld [vmem:[#allocation65_spill] sm:$0xff] }
 0x385   : > { %5079 = vmatmul.msk.bf16.gmra.mxu0 %vm3527_vm7, %v4246_v20  ;;  %5247 = vrsqrt.f32 %v11259_v51  ;;  %v623_v52 = vmul.f32 %v14058_v49, %v13847_v23  ;;  %v14061_v23 = vld [vmem:[#allocation92_spill] sm:$0xff]  ;;  %vm4083_vm12 = vweird.f32 %v11259_v51 }
 0x386   : > { %14053 = vst [vmem:[#allocation15_spill] sm:$0xff] %v11269_v26  ;;  %v3719_v6 = vmul.f32 %v11269_v26, %v11269_v26  ;;  %v525_v21 = vadd.f32 %v493_v10, %v460_v29  ;;  %v14059_v26 = vld [vmem:[#allocation61_spill] sm:$0xff]  ;;  %v14060_v29 = vld [vmem:[#allocation91_spill] sm:$0xff] }
 0x387   : > { %v11305_v33 = vadd.f32 %v14059_v26, %v4347_v53  ;;  %v753_v53 = vmul.f32 %v14061_v23, %v13444_v19 }
 0x388   : > { %v11266_v35 = vpop.eup %5241 }
 0x389   : > { %v11271_v37 = vpop.eup %5243  ;;  %v4048_v20 = vmul.f32 %v11266_v35, %v11253_v39  ;;  %vm4054_vm11 = vweird.f32 %v11266_v35 }
 0x38a   : > { %v11274_v31 = vpop.eup %5245  ;;  %v4058_v46 = vmul.f32 %v11271_v37, %v11255_v24  ;;  %vm4064_vm14 = vweird.f32 %v11271_v37  ;;  %vm11341_vm15 = vmor %vm4053_vm9, %vm4054_vm11  ;;  %vm4063_vm9 = vweird.f32 %v11255_v24 }
 0x38b   : > { %v3608_v16 = vpop.xlane.xlu0 %3607  ;;  %v11276_v48 = vpop.eup %5247  ;;  %v4068_v63 = vmul.f32 %v11274_v31, %v11257_v40  ;;  %v4049_v8 = vmul.f32 %v11266_v35, %v4048_v20  ;;  %vm4074_vm13 = vweird.f32 %v11274_v31  ;;  %vm11359_vm11 = vmor %vm4063_vm9, %vm4064_vm14 }
 0x38c   : > { %v3657_v59 = vmul.f32 %v14038_v28, %v3608_v16  ;;  %v14057_v16 = vld [vmem:[#allocation43_spill] sm:$0xff]  ;;  %v4078_v34 = vmul.f32 %v11276_v48, %v11259_v51  ;;  %vm4084_vm8 = vweird.f32 %v11276_v48  ;;  %vm11354_vm5 = vmor %vm4073_vm10, %vm4074_vm13  ;;  %v1208_v51 = vmul.f32 %v10978_v58, %v13992_v15 }
 0x38d   : > { %v4069_v44 = vmul.f32 %v11274_v31, %v4068_v63  ;;  %v14062_v63 = vld [vmem:[#allocation90_spill] sm:$0xff]  ;;  %vm11368_vm10 = vmor %vm4083_vm12, %vm4084_vm8  ;;  %v14078_v15 = vld [vmem:[#allocation67_spill] sm:$0xff] }
 0x38e   : > { %v11281_v47 = vsub.f32 %v14054_v9, %v3657_v59  ;;  %v558_v59 = vmul.f32 %v14057_v16, %v13842_v50  ;;  %v3799_v9 = vsel %vm3527_vm7, %v3719_v6, 0.0  ;;  %v4349_v50 = vpop.f32.mrf.mxu0  ;;  %v688_v6 = vmul.f32 %v14060_v29, %v13658_v55 }
 0x38f   : > { %3800 = vadd.xlane.f32.xlu0 %v3799_v9  ;;  %v4079_v20 = vmul.f32 %v11276_v48, %v4078_v34  ;;  %v11313_v9 = vadd.f32 %v14059_v26, %v4349_v50  ;;  %v818_v49 = vmul.f32 %v14062_v63, %v13585_v54  ;;  %v1338_v58 = vmul.f32 %v14078_v15, %v13932_v32 }
 0x390   : > { %14055 = vst [vmem:[#allocation69_spill] sm:$0xff] %v11281_v47  ;;  %v3721_v60 = vmul.f32 %v11281_v47, %v11281_v47  ;;  %v4059_v47 = vmul.f32 %v11271_v37, %v4058_v46  ;;  %v590_v16 = vadd.f32 %v558_v59, %v525_v21  ;;  %v4418_v46 = vmul.f32 %v11305_v33, %v11305_v33 }
 0x391   : > { %v4070_v59 = vmul.f32 0.5, %v4069_v44  ;;  %v4080_v55 = vmul.f32 0.5, %v4079_v20  ;;  %v3789_v44 = vpop.xlane.xlu1 %3788 }
 0x392   : > { %v3805_v25 = vsel %vm3527_vm7, %v3721_v60, 0.0  ;;  %v655_v10 = vadd.f32 %v623_v52, %v590_v16  ;;  %v4050_v60 = vmul.f32 0.5, %v4049_v8  ;;  %v4419_v8 = vmul.f32 %v11313_v9, %v11313_v9  ;;  %v14063_v52 = vld [vmem:[#allocation22_spill] sm:$0xff] }
 0x393   : > { %3806 = vadd.xlane.f32.xlu1 %v3805_v25  ;;  %v4060_v25 = vmul.f32 0.5, %v4059_v47  ;;  %v883_v19 = vmul.f32 %v14063_v52, %v13483_v56  ;;  %v4450_v47 = vmul.f32 %v4418_v46, %v11305_v33  ;;  %v4071_v54 = vsub.f32 1.5, %v4070_v59 }
 0x394   : > { %v720_v21 = vadd.f32 %v688_v6, %v655_v10  ;;  %v4051_v34 = vsub.f32 1.5, %v4050_v60  ;;  %v14064_v6 = vld [vmem:[#allocation25_spill] sm:$0xff]  ;;  %v4081_v10 = vsub.f32 1.5, %v4080_v55  ;;  %v1013_v60 = vmul.f32 %v10942_v0, %v13488_v5  ;;  %v5464_v5 = vld [vmem:[%s5644_s26 + $0x98] sm:$0xff]  ;;  %s368_s26 = sand.u32 1, %s5522_s10  }
 0x395   : > { %v4061_v50 = vsub.f32 1.5, %v4060_v25  ;;  %v948_v20 = vmul.f32 %v14064_v6, %v12988_v62  ;;  %v3843_v46 = vmul.f32 %v3789_v44, %v14038_v28  ;;  %v1078_v0 = vmul.f32 %v5464_v5, %v13593_v3  ;;  %v3792_v3 = vpop.xlane.xlu2 %3791  ;;  %v14080_v25 = vld [vmem:[#allocation86_spill] sm:$0xff]  ;;  %s5055_s27 = sshll.u32 %s368_s26, 8 }
 0x396   : > { %v785_v29 = vadd.f32 %v753_v53, %v720_v21  ;;  %v4052_v23 = vmul.f32 %v11266_v35, %v4051_v34  ;;  %v4451_v53 = vmul.f32 %v4419_v8, %v11313_v9  ;;  %v4072_v59 = vmul.f32 %v11274_v31, %v4071_v54  ;;  %v4352_v63 = vpop.f32.mrf.mxu0  ;;  %v14076_v54 = vld [vmem:[#allocation11_spill] sm:$0xff]  ;;  %s11533_s21 = scalar_lea.vmem [#allocation2], %s5055_s27  ;;  %s5139_s27 = sshll.u32 %s5606_s13, 8 }
 0x397   : > { %v4062_v62 = vmul.f32 %v11271_v37, %v4061_v50  ;;  %v4082_v55 = vmul.f32 %v11276_v48, %v4081_v10  ;;  %v1143_v34 = vmul.f32 %v10962_v38, %v13990_v1  ;;  %v4482_v8 = vmul.f32 0.044715, %v4450_v47  ;;  %v14077_v10 = vld [vmem:[#allocation24_spill] sm:$0xff]  ;;  %s4949_s22 = scalar_lea.hbm %s11971_s9, %s5139_s27  ;;  %s4950_s14 = sshll.u32 %s11533_s21, 4  ;;  %s4951_s14 = int_to_ptr.vmem [resolvable:$true] %s4950_s14 }
 0x398   : > { %v850_v16 = vadd.f32 %v818_v49, %v785_v29  ;;  %v4483_v24 = vmul.f32 0.044715, %v4451_v53  ;;  %v14073_v52 = vrot.slane %v11196_v27, 7  ;;  %v4056_v44 = vsel %vm11341_vm15, %v11266_v35, %v4052_v23  ;;  %v14079_v53 = vld [vmem:[#allocation6_spill] sm:$0xff]  ;;  %s4952_s16 = sshll.u32 %s4949_s22, 4  ;;  %s4938_s13 = scalar_lea.sflag [#allocation3], %s368_s26  ;;  %s4953_s16 = int_to_ptr.hbm [resolvable:$true] %s4952_s16 }
 0x399   : > { %v11382_v1 = vadd.f32 1e-06, %v3843_v46  ;;  %v4066_v47 = vsel %vm11359_vm11, %v11271_v37, %v4062_v62  ;;  %v3844_v27 = vmul.f32 %v3792_v3, %v14038_v28  ;;  %v4076_v35 = vsel %vm11354_vm5, %v11274_v31, %v4072_v59  ;;  %s5482_s17 = sshra.s32 %s4953_s16, 4  ;;  %s5483_s17 = int_to_ptr.hbm [resolvable:$true] %s5482_s17 }
 0x39a   : > { %v915_v56 = vadd.f32 %v883_v19, %v850_v16  ;;  %v14074_v19 = vrot.slane %v11198_v14, 7  ;;  %v14075_v14 = vld [vmem:[#allocation20_spill] sm:$0xff]  ;;  %v4224_v6 = vmul.f32 %v4066_v47, %v14076_v54  ;;  %v4086_v37 = vsel %vm11368_vm10, %v11276_v48, %v4082_v55  ;;  %s5484_s23 = scalar_lea.hbm %s5483_s17, 256  ;;  %p5489_p0 = scmp.lt.s32.totalorder %s5483_s17, %s11971_s9 }
 0x39b   : > { %v4223_v16 = vmul.f32 %v4056_v44, %v14075_v14  ;;  %v4225_v46 = vmul.f32 %v4076_v35, %v14079_v53  ;;  %v4226_v62 = vmul.f32 %v4086_v37, %v14080_v25  ;;  %v4515_v32 = vadd.f32 %v4483_v24, %v11313_v9  ;;  %v14084_v24 = vld [vmem:[#allocation81_spill] sm:$0xff]  ;;  %p5485_p11 = scmp.ne.s32.totalorder %s5483_s17, %s5484_s23 }
 0x39c   : > { %v980_v21 = vadd.f32 %v948_v20, %v915_v56  ;;  %v11377_v50 = vsel %vm3346_vm6, %v14074_v19, %v14073_v52  ;;  %v1273_v56 = vmul.f32 %v14077_v10, %v13921_v2  ;;  %v4514_v2 = vadd.f32 %v4482_v8, %v11305_v33 }
 0x39d   : > { %v4247_v23 = vpack.c.bf16 %v4224_v6, %v4223_v16  ;;  %v11410_v5 = vadd.f32 1e-06, %v3844_v27  ;;  %v4248_v48 = vpack.c.bf16 %v4226_v62, %v4225_v46  ;;  %v4547_v39 = vmul.f32 0.7978846, %v4515_v32  ;;  %v3795_v19 = vpop.xlane.xlu2 %3794  ;;  %v14087_v27 = vld [vmem:[#allocation88_spill] sm:$0xff]  ;;  %p5486_p12 = pnand %p5485_p11, %p5623_p5 }
 0x39e   : > { %v1045_v29 = vadd.f32 %v1013_v60, %v980_v21  ;;  %v1468_v60 = vmul.f32 %v14015_v4, %v13599_v36  ;;  %v1501_v21 = vmul.f32 %v11082_v61, %v13600_v30  ;;  %v14081_v36 = vld [vmem:[#allocation77_spill] sm:$0xff]  ;;  %v4546_v59 = vmul.f32 0.7978846, %v4514_v2  ;;  %v4354_v49 = vpop.f32.mrf.mxu0 }
 0x39f   : > { %5080 = vmatmul.msk.bf16.gmra.mxu0 %vm3527_vm7, %v4247_v23  ;;  %v1403_v4 = vmul.f32 %v14081_v36, %v13791_v22  ;;  %5249 = vrsqrt.f32 %v11382_v1  ;;  %5081 = vmatmul.msk.bf16.vlgmr.msra.gmra.mxu3 %vm3527_vm7, %v4248_v48  ;;  %v14083_v22 = vrot.slane %v11075_v42, 1  ;;  %v11425_v40 = vadd.f32 %v14059_v26, %v4352_v63  ;;  %v3798_v42 = vpop.xlane.xlu0 %3797  ;;  %p5487_p13 = pneg %p5486_p12 }
 0x3a0   : > { %v1110_v38 = vadd.f32 %v1078_v0, %v1045_v29  ;;  %v1533_v61 = vadd.f32 %v1501_v21, %v1468_v60  ;;  %5251 = vtanh.f32 %v4546_v59  ;;  %v14088_v14 = vrot.slane %v14087_v27, 2  ;;  %v4841_v27 = vld [vmem:[%s11492_s25] sm:$0xff] }
 0x3a1   : > { %5253 = vtanh.f32 %v4547_v39  ;;  %v3845_v35 = vmul.f32 %v3795_v19, %v14038_v28  ;;  %v14090_v10 = vrot.slane %v11108_v45, 3  ;;  %v4420_v37 = vmul.f32 %v11425_v40, %v11425_v40 }
 0x3a2   : > { %v1175_v20 = vadd.f32 %v1143_v34, %v1110_v38  ;;  %5255 = vrsqrt.f32 %v11410_v5  ;;  %v14082_v34 = vrot.slane %v11073_v43, 1  ;;  %v3846_v25 = vmul.f32 %v3798_v42, %v14038_v28 }
 0x3a3   : > { %v14092_v45 = vrot.slane %v11143_v18, 4  ;;  %v11465_v36 = vadd.f32 1e-06, %v3845_v35  ;;  %v14094_v18 = vrot.slane %v11148_v17, 5  ;;  %v4452_v59 = vmul.f32 %v4420_v37, %v11425_v40 }
 0x3a4   : > { %v1240_v31 = vadd.f32 %v1208_v51, %v1175_v20  ;;  %v1808_v8 = vsel %vm1696_vm0, %v14083_v22, %v14082_v34  ;;  %v14085_v51 = vld [vmem:[#allocation39_spill] sm:$0xff]  ;;  %v14089_v20 = vrot.slane %v11106_v7, 3  ;;  %v14091_v7 = vrot.slane %v11115_v41, 4  ;;  %v4761_v19 = vpop.f32.mrf.mxu1 }
 0x3a5   : > { %v11430_v38 = vpop.eup %5249  ;;  %v14086_v47 = vrot.slane %v14085_v51, 2  ;;  %v14093_v41 = vrot.slane %v11146_v13, 5  ;;  %vm14097_vm0 = vcmask 1041408   ;;  %5257 = vrsqrt.f32 %v11465_v36 }
 0x3a6   : > { %v1305_v0 = vadd.f32 %v1273_v56, %v1240_v31  ;;  %v5252_v16 = vpop.eup %5251  ;;  %v2358_v56 = vsel %vm2246_vm2, %v14090_v10, %v14089_v20  ;;  %v4088_v46 = vmul.f32 %v11430_v38, %v11382_v1  ;;  %v2633_v62 = vsel %vm2521_vm3, %v14092_v45, %v14091_v7  ;;  %v4357_v31 = vpop.f32.mrf.mxu0 }
 0x3a7   : > { %v2083_v43 = vsel %vm1971_vm1, %v14088_v14, %v14086_v47  ;;  %v5254_v6 = vpop.eup %5253  ;;  %v4610_v15 = vadd.f32 1.0, %v5252_v16  ;;  %v4484_v34 = vmul.f32 0.044715, %v4452_v59  ;;  %v11505_v47 = vadd.f32 %v14059_v26, %v4357_v31 }
 0x3a8   : > { %v1370_v30 = vadd.f32 %v1338_v58, %v1305_v0  ;;  %v11445_v58 = vpop.eup %5255  ;;  %v4611_v53 = vadd.f32 1.0, %v5254_v6  ;;  %v11463_v0 = vadd.f32 %v14059_v26, %v4354_v49  ;;  %v4089_v39 = vmul.f32 %v11430_v38, %v4088_v46 }
 0x3a9   : > { %v4642_v2 = vmul.f32 %v4610_v15, %v11305_v33  ;;  %v4098_v48 = vmul.f32 %v11445_v58, %v11410_v5  ;;  %v14095_v49 = vrot.slane %v11182_v12, 6  ;;  %vm4093_vm1 = vweird.f32 %v11382_v1 }
 0x3aa   : > { %v1435_v29 = vadd.f32 %v1403_v4, %v1370_v30  ;;  %v4643_v32 = vmul.f32 %v4611_v53, %v11313_v9  ;;  %v2908_v4 = vsel %vm2796_vm4, %v14094_v18, %v14093_v41  ;;  %v11474_v30 = vadd.f32 1e-06, %v3846_v25 }
 0x3ab   : > { %vm4094_vm2 = vweird.f32 %v11430_v38  ;;  %vm4103_vm3 = vweird.f32 %v11410_v5  ;;  %vm4104_vm4 = vweird.f32 %v11445_v58  ;;  %vm4113_vm12 = vweird.f32 %v11465_v36 }
 0x3ac   : > { %v1565_v44 = vadd.f32 %v1533_v61, %v1435_v29  ;;  %v4671_v9 = vpack.c.bf16 %v4643_v32, %v4642_v2  ;;  %v14096_v61 = vrot.slane %v11184_v57, 6  ;;  %v4421_v29 = vmul.f32 %v11463_v0, %v11463_v0  ;;  %vm11548_vm5 = vmor %vm4093_vm1, %vm4094_vm2  ;;  %v4763_v59 = vpop.f32.mrf.mxu1  ;;  %v14109_v2 = vld [vmem:[#allocation44_spill] sm:$0xff] }
 0x3ad   : > { %v4090_v57 = vmul.f32 0.5, %v4089_v39  ;;  %5259 = vrsqrt.f32 %v11474_v30  ;;  %vm11557_vm6 = vmor %vm4103_vm3, %vm4104_vm4  ;;  %vm4123_vm14 = vweird.f32 %v11474_v30 }
 0x3ae   : > { %v1840_v63 = vadd.f32 %v1808_v8, %v1565_v44  ;;  %v3183_v13 = vsel %vm14097_vm0, %v14096_v61, %v14095_v49  ;;  %4775 = vmatmul.bf16.gmra.mxu1 %v4671_v9  ;;  %v4453_v51 = vmul.f32 %v4421_v29, %v11463_v0  ;;  %v4359_v14 = vpop.f32.mrf.mxu0 }
 0x3af   : > { %v4091_v6 = vsub.f32 1.5, %v4090_v57  ;;  %v11521_v10 = vadd.f32 %v14059_v26, %v4359_v14 }
 0x3b0   : > { %v2115_v23 = vadd.f32 %v2083_v43, %v1840_v63  ;;  %v14098_v43 = vld [vmem:[#allocation21_spill] sm:$0xff]  ;;  %v11516_v63 = vpop.eup %5257  ;;  %v4485_v37 = vmul.f32 0.044715, %v4453_v51 }
 0x3b1   : > { %v3611_v55 = vpop.xlane.xlu1 %3610  ;;  %v4092_v53 = vmul.f32 %v11430_v38, %v4091_v6  ;;  %v4423_v25 = vmul.f32 %v11521_v10, %v11521_v10  ;;  %vm4114_vm13 = vweird.f32 %v11516_v63 }
 0x3b2   : > { %v3658_v3 = vmul.f32 %v14038_v28, %v3611_v55  ;;  %v2390_v21 = vadd.f32 %v2358_v56, %v2115_v23  ;;  %v4422_v23 = vmul.f32 %v11505_v47, %v11505_v47  ;;  %vm11599_vm8 = vmor %vm4113_vm12, %vm4114_vm13 }
 0x3b3   : > { %v11523_v56 = vpop.eup %5259  ;;  %v4455_v32 = vmul.f32 %v4423_v25, %v11521_v10 }
 0x3b4   : > { %v11428_v52 = vsub.f32 %v14084_v24, %v3658_v3  ;;  %v2665_v33 = vadd.f32 %v2633_v62, %v2390_v21  ;;  %v4099_v3 = vmul.f32 %v11445_v58, %v4098_v48  ;;  %v11501_v24 = vld [vmem:[%s11970_s8] ss:$0 sm:$0xff]  ;;  %v4118_v46 = vmul.f32 %v11523_v56, %v11474_v30 }
 0x3b5   : > { %v4762_v42 = vadd.f32 %v11501_v24, %v4761_v19  ;;  %v4454_v62 = vmul.f32 %v4422_v23, %v11505_v47  ;;  %v4517_v21 = vadd.f32 %v4485_v37, %v11463_v0  ;;  %v4096_v48 = vsel %vm11548_vm5, %v11430_v38, %v4092_v53 }
 0x3b6   : > { %v3722_v54 = vmul.f32 %v11428_v52, %v11428_v52  ;;  %v2940_v17 = vadd.f32 %v2908_v4, %v2665_v33  ;;  %v4100_v44 = vmul.f32 0.5, %v4099_v3  ;;  %v4119_v1 = vmul.f32 %v11523_v56, %v4118_v46  ;;  %v4842_v33 = vld [vmem:[%s11492_s25 + $0x8] sm:$0xff] }
 0x3b7   : > { %v4873_v20 = vadd.f32 %v4841_v27, %v4762_v42  ;;  %v4549_v41 = vmul.f32 0.7978846, %v4517_v21  ;;  %v4486_v4 = vmul.f32 0.044715, %v4454_v62  ;;  %v4764_v61 = vadd.f32 %v11501_v24, %v4763_v59 }
 0x3b8   : > { %v3808_v60 = vsel %vm3527_vm7, %v3722_v54, 0.0  ;;  %v3215_v12 = vadd.f32 %v3183_v13, %v2940_v17  ;;  %v4516_v54 = vadd.f32 %v4484_v34, %v11425_v40  ;;  %v14103_v13 = vld [vmem:[#allocation78_spill] sm:$0xff]  ;;  %v14104_v17 = vld [vmem:[#allocation83_spill] sm:$0xff]  ;;  %v4120_v3 = vmul.f32 0.5, %v4119_v1  ;;  %v11576_v34 = vld [vmem:[%s11968_s6] ss:$0 sm:$0xff] }
 0x3b9   : > { %3809 = vadd.xlane.f32.xlu2 %v3808_v60  ;;  %v4108_v60 = vmul.f32 %v11516_v63, %v11465_v36  ;;  %4905 = vst.msk [vmem:[%s11533_s21] sm:$0xff] %vm3527_vm7, %v4873_v20  ;;  %v4487_v29 = vmul.f32 0.044715, %v4455_v32  ;;  %v4518_v19 = vadd.f32 %v4486_v4, %v11505_v47  ;;  %vm4124_vm15 = vweird.f32 %v11523_v56  ;;  %v4843_v20 = vld [vmem:[%s11492_s25 + $0x10] sm:$0xff]  ;;  %v14110_v4 = vld [vmem:[#allocation46_spill] sm:$0xff] }
 0x3ba   : > { %v3490_v8 = vadd.f32 %v11377_v50, %v3215_v12  ;;  %v4548_v15 = vmul.f32 0.7978846, %v4516_v54  ;;  %v4121_v51 = vsub.f32 1.5, %v4120_v3  ;;  %vm11612_vm9 = vmor %vm4123_vm14, %vm4124_vm15 }
 0x3bb   : > { %v4109_v5 = vmul.f32 %v11516_v63, %v4108_v60  ;;  %v4519_v14 = vadd.f32 %v4487_v29, %v11521_v10 }
 0x3bc   : > { %v11512_v50 = vadd.f32 %v11189_v11, %v3490_v8  ;;  %v4101_v11 = vsub.f32 1.5, %v4100_v44  ;;  %5261 = vtanh.f32 %v4548_v15 }
 0x3bd   : > { %v4110_v18 = vmul.f32 0.5, %v4109_v5  ;;  %5263 = vtanh.f32 %v4549_v41  ;;  %v4551_v15 = vmul.f32 0.7978846, %v4519_v14 }
 0x3be   : > { %v3621_v35 = vsel %vm3527_vm7, %v11512_v50, 0.0  ;;  %v4102_v45 = vmul.f32 %v11445_v58, %v4101_v11 }
 0x3bf   : > { %v3614_v55 = vpop.xlane.xlu1 %3613  ;;  %3622 = vadd.xlane.f32.xlu0 %v3621_v35  ;;  %v4111_v57 = vsub.f32 1.5, %v4110_v18 }
 0x3c0   : > { %v3659_v22 = vmul.f32 %v14038_v28, %v3614_v55  ;;  %v4106_v9 = vsel %vm11557_vm6, %v11445_v58, %v4102_v45  ;;  %v4227_v55 = vmul.f32 %v4096_v48, %v14103_v13  ;;  %v4874_v58 = vadd.f32 %v4842_v33, %v4764_v61 }
 0x3c1   : > { %v4228_v38 = vmul.f32 %v4106_v9, %v14104_v17  ;;  %v4112_v54 = vmul.f32 %v11516_v63, %v4111_v57 }
 0x3c2   : > { %v11509_v16 = vsub.f32 %v14098_v43, %v3659_v22  ;;  %v5262_v49 = vpop.eup %5261  ;;  %4906 = vst.msk [vmem:[%s11533_s21 + $0x8] sm:$0xff] %vm3527_vm7, %v4874_v58  ;;  %v4550_v43 = vmul.f32 0.7978846, %v4518_v19 }
 0x3c3   : > { %v4249_v12 = vpack.c.bf16 %v4228_v38, %v4227_v55  ;;  %v4612_v8 = vadd.f32 1.0, %v5262_v49  ;;  %v5264_v44 = vpop.eup %5263  ;;  %v4116_v7 = vsel %vm11599_vm8, %v11516_v63, %v4112_v54  ;;  %v4844_v63 = vld [vmem:[%s11492_s25 + $0x18] sm:$0xff] }
 0x3c4   : > { %v3723_v26 = vmul.f32 %v11509_v16, %v11509_v16  ;;  %v4613_v42 = vadd.f32 1.0, %v5264_v44  ;;  %5265 = vtanh.f32 %v4550_v43  ;;  %v4229_v1 = vmul.f32 %v4116_v7, %v14109_v2 }
 0x3c5   : > { %5082 = vmatmul.msk.bf16.gmra.mxu3 %vm3527_vm7, %v4249_v12  ;;  %v4644_v6 = vmul.f32 %v4612_v8, %v11425_v40  ;;  %v4122_v40 = vmul.f32 %v11523_v56, %v4121_v51  ;;  %5267 = vtanh.f32 %v4551_v15 }
 0x3c6   : > { %v3811_v31 = vsel %vm3527_vm7, %v3723_v26, 0.0  ;;  %v4645_v60 = vmul.f32 %v4613_v42, %v11463_v0 }
 0x3c7   : > { %3812 = vadd.xlane.f32.xlu0 %v3811_v31  ;;  %v4126_v30 = vsel %vm11612_vm9, %v11523_v56, %v4122_v40 }
 0x3c8   : > { %v4362_v39 = vpop.f32.mrf.mxu0  ;;  %v4672_v46 = vpack.c.bf16 %v4645_v60, %v4644_v6  ;;  %v4230_v59 = vmul.f32 %v4126_v30, %v14110_v4 }
 0x3c9   : > { %v11579_v22 = vadd.f32 %v11576_v34, %v4362_v39  ;;  %v14111_v39 = vld [vmem:[#allocation73_spill] sm:$0xff] }
 0x3ca   : > { %4780 = vmatmul.bf16.gmra.mxu1 %v4672_v46  ;;  %v5266_v62 = vpop.eup %5265  ;;  %v4250_v13 = vpack.c.bf16 %v4230_v59, %v4229_v1 }
 0x3cb   : > { %v4424_v27 = vmul.f32 %v11579_v22, %v11579_v22  ;;  %v5268_v32 = vpop.eup %5267  ;;  %v4614_v55 = vadd.f32 1.0, %v5266_v62 }
 0x3cc   : > { %v4615_v33 = vadd.f32 1.0, %v5268_v32 }
 0x3cd   : > { %v4456_v53 = vmul.f32 %v4424_v27, %v11579_v22  ;;  %v4646_v12 = vmul.f32 %v4614_v55, %v11505_v47  ;;  %v14112_v27 = vld [vmem:[#allocation37_spill] sm:$0xff] }
 0x3ce   : > { %v4647_v3 = vmul.f32 %v4615_v33, %v11521_v10  ;;  %v4845_v47 = vld [vmem:[%s11492_s25 + $0x20] sm:$0xff] }
 0x3cf   : > { %v4488_v5 = vmul.f32 0.044715, %v4456_v53 }
 0x3d0   : > { %v4364_v11 = vpop.f32.mrf.mxu0  ;;  %v4673_v57 = vpack.c.bf16 %v4647_v3, %v4646_v12 }
 0x3d1   : > { %v4365_v26 = vadd.f32 %v11576_v34, %v4364_v11  ;;  %v4520_v56 = vadd.f32 %v4488_v5, %v11579_v22 }
 0x3d3   : > { %v4425_v25 = vmul.f32 %v4365_v26, %v4365_v26  ;;  %v4552_v58 = vmul.f32 0.7978846, %v4520_v56 }
 0x3d5   : > { %v4457_v45 = vmul.f32 %v4425_v25, %v4365_v26  ;;  %5083 = vmatmul.msk.bf16.gmra.mxu3 %vm3527_vm7, %v4250_v13 }
 0x3d7   : > { %v4489_v21 = vmul.f32 0.044715, %v4457_v45 }
 0x3d9   : > { %v4766_v35 = vpop.f32.mrf.mxu1  ;;  %v4521_v9 = vadd.f32 %v4489_v21, %v4365_v26 }
 0x3da   : > { %v4767_v23 = vadd.f32 %v11501_v24, %v4766_v35  ;;  %4785 = vmatmul.bf16.gmra.mxu1 %v4673_v57 }
 0x3db   : > { %v4553_v38 = vmul.f32 0.7978846, %v4521_v9 }
 0x3dc   : > { %v4875_v0 = vadd.f32 %v4843_v20, %v4767_v23  ;;  %v4846_v23 = vld [vmem:[%s11492_s25 + $0x28] sm:$0xff] }
 0x3dd   : > { %5269 = vtanh.f32 %v4553_v38 }
 0x3de   : > { %4907 = vst.msk [vmem:[%s11533_s21 + $0x10] sm:$0xff] %vm3527_vm7, %v4875_v0  ;;  %5271 = vtanh.f32 %v4552_v58 }
 0x3e1   : > { %v4768_v41 = vpop.f32.mrf.mxu1 }
 0x3e2   : > { %v4769_v18 = vadd.f32 %v11501_v24, %v4768_v41 }
 0x3e3   : > { %v3617_v31 = vpop.xlane.xlu2 %3616  ;;  %v5270_v19 = vpop.eup %5269 }
 0x3e4   : > { %v3660_v48 = vmul.f32 %v14038_v28, %v3617_v31  ;;  %v4876_v61 = vadd.f32 %v4844_v63, %v4769_v18  ;;  %v5272_v51 = vpop.eup %5271  ;;  %v4617_v14 = vadd.f32 1.0, %v5270_v19 }
 0x3e5   : > { %v4616_v54 = vadd.f32 1.0, %v5272_v51 }
 0x3e6   : > { %v11630_v49 = vsub.f32 %v14111_v39, %v3660_v48  ;;  %4908 = vst.msk [vmem:[%s11533_s21 + $0x18] sm:$0xff] %vm3527_vm7, %v4876_v61  ;;  %v4649_v20 = vmul.f32 %v4617_v14, %v4365_v26 }
 0x3e7   : > { %v4648_v15 = vmul.f32 %v4616_v54, %v11579_v22 }
 0x3e8   : > { %v3724_v17 = vmul.f32 %v11630_v49, %v11630_v49 }
 0x3e9   : > { %v4674_v37 = vpack.c.bf16 %v4649_v20, %v4648_v15 }
 0x3ea   : > { %v3814_v29 = vsel %vm3527_vm7, %v3724_v17, 0.0 }
 0x3eb   : > { %3815 = vadd.xlane.f32.xlu1 %v3814_v29  ;;  %4790 = vmatmul.bf16.gmra.mxu1 %v4674_v37 }
 0x3ed   : > { %v3804_v36 = vpop.xlane.xlu1 %3803 }
 0x3ee   : > { %v3848_v0 = vmul.f32 %v3804_v36, %v14038_v28 }
 0x3f0   : > { %v3880_v25 = vadd.f32 1e-06, %v3848_v0 }
 0x3f1   : > { %v3620_v8 = vpop.xlane.xlu2 %3619 }
 0x3f2   : > { %v3661_v44 = vmul.f32 %v14038_v28, %v3620_v8  ;;  %5273 = vrsqrt.f32 %v3880_v25  ;;  %vm4143_vm11 = vweird.f32 %v3880_v25 }
 0x3f4   : > { %v11643_v10 = vsub.f32 %v14112_v27, %v3661_v44 }
 0x3f6   : > { %v3725_v43 = vmul.f32 %v11643_v10, %v11643_v10 }
 0x3f8   : > { %v4771_v42 = vpop.f32.mrf.mxu1  ;;  %v3817_v6 = vsel %vm3527_vm7, %v3725_v43, 0.0  ;;  %v5274_v30 = vpop.eup %5273 }
 0x3f9   : > { %v4772_v35 = vadd.f32 %v11501_v24, %v4771_v42  ;;  %3818 = vadd.xlane.f32.xlu2 %v3817_v6  ;;  %v4138_v1 = vmul.f32 %v5274_v30, %v3880_v25  ;;  %vm4144_vm10 = vweird.f32 %v5274_v30 }
 0x3fa   : > { %vm11698_vm0 = vmor %vm4143_vm11, %vm4144_vm10 }
 0x3fb   : > { %v4877_v11 = vadd.f32 %v4845_v47, %v4772_v35  ;;  %v4139_v4 = vmul.f32 %v5274_v30, %v4138_v1  ;;  %v4847_v1 = vld [vmem:[%s11492_s25 + $0x30] sm:$0xff] }
 0x3fd   : > { %4909 = vst.msk [vmem:[%s11533_s21 + $0x20] sm:$0xff] %vm3527_vm7, %v4877_v11  ;;  %v4140_v39 = vmul.f32 0.5, %v4139_v4 }
 0x3ff   : > { %v4141_v58 = vsub.f32 1.5, %v4140_v39 }
 0x400   : > { %v4773_v60 = vpop.f32.mrf.mxu1 }
 0x401   : > { %v4774_v40 = vadd.f32 %v11501_v24, %v4773_v60  ;;  %v4142_v14 = vmul.f32 %v5274_v30, %v4141_v58 }
 0x402   : > { %v3801_v46 = vpop.xlane.xlu0 %3800  ;;  %v4367_v22 = vpop.f32.mrf.mxu0 }
 0x403   : > { %v4878_v53 = vadd.f32 %v4846_v23, %v4774_v40  ;;  %v3847_v26 = vmul.f32 %v3801_v46, %v14038_v28  ;;  %v11662_v2 = vadd.f32 %v11576_v34, %v4367_v22  ;;  %v4146_v15 = vsel %vm11698_vm0, %v5274_v30, %v4142_v14  ;;  %v14115_v46 = vld [vmem:[#allocation15_spill] sm:$0xff]  ;;  %v4848_v14 = vld [vmem:[%s11492_s25 + $0x38] sm:$0xff] }
 0x405   : > { %4910 = vst.msk [vmem:[%s11533_s21 + $0x28] sm:$0xff] %vm3527_vm7, %v4878_v53  ;;  %v3879_v7 = vadd.f32 1e-06, %v3847_v26  ;;  %v4426_v18 = vmul.f32 %v11662_v2, %v11662_v2  ;;  %v14116_v26 = vld [vmem:[#allocation72_spill] sm:$0xff] }
 0x406   : > { %v3807_v45 = vpop.xlane.xlu1 %3806  ;;  %v4232_v25 = vmul.f32 %v4146_v15, %v14116_v26 }
 0x407   : > { %5275 = vrsqrt.f32 %v3879_v7  ;;  %v3849_v21 = vmul.f32 %v3807_v45, %v14038_v28  ;;  %v4458_v33 = vmul.f32 %v4426_v18, %v11662_v2  ;;  %vm4133_vm2 = vweird.f32 %v3879_v7 }
 0x409   : > { %v11666_v63 = vadd.f32 1e-06, %v3849_v21  ;;  %v4490_v13 = vmul.f32 0.044715, %v4458_v33 }
 0x40a   : > { %v4369_v32 = vpop.f32.mrf.mxu0 }
 0x40b   : > { %v11674_v9 = vadd.f32 %v11576_v34, %v4369_v32  ;;  %v4522_v27 = vadd.f32 %v4490_v13, %v11662_v2  ;;  %vm4153_vm6 = vweird.f32 %v11666_v63 }
 0x40d   : > { %v5276_v31 = vpop.eup %5275  ;;  %v4427_v17 = vmul.f32 %v11674_v9, %v11674_v9  ;;  %v4554_v20 = vmul.f32 0.7978846, %v4522_v27 }
 0x40e   : > { %v4128_v48 = vmul.f32 %v5276_v31, %v3879_v7  ;;  %vm4134_vm1 = vweird.f32 %v5276_v31 }
 0x40f   : > { %v4459_v44 = vmul.f32 %v4427_v17, %v11674_v9  ;;  %vm4135_vm3 = vmor %vm4133_vm2, %vm4134_vm1 }
 0x410   : > { %v4129_v59 = vmul.f32 %v5276_v31, %v4128_v48 }
 0x411   : > { %v4491_v35 = vmul.f32 0.044715, %v4459_v44 }
 0x412   : > { %v4130_v56 = vmul.f32 0.5, %v4129_v59 }
 0x413   : > { %v4523_v53 = vadd.f32 %v4491_v35, %v11674_v9 }
 0x414   : > { %v4131_v57 = vsub.f32 1.5, %v4130_v56 }
 0x415   : > { %v4555_v22 = vmul.f32 0.7978846, %v4523_v53 }
 0x416   : > { %v4132_v54 = vmul.f32 %v5276_v31, %v4131_v57 }
 0x418   : > { %v4136_v40 = vsel %vm4135_vm3, %v5276_v31, %v4132_v54 }
 0x419   : > { %v4231_v0 = vmul.f32 %v4136_v40, %v14115_v46 }
 0x41c   : > { %v4372_v38 = vpop.f32.mrf.mxu0 }
 0x41d   : > { %v11687_v8 = vadd.f32 %v11576_v34, %v4372_v38 }
 0x41f   : > { %v4428_v47 = vmul.f32 %v11687_v8, %v11687_v8 }
 0x421   : > { %v4460_v60 = vmul.f32 %v4428_v47, %v11687_v8 }
 0x422   : > { %v4377_v32 = vpop.f32.mrf.mxu3 }
 0x423   : > { %v11722_v59 = vadd.f32 %v11576_v34, %v4377_v32 }
 0x424   : > { %v4374_v33 = vpop.f32.mrf.mxu0 }
 0x425   : > { %v11729_v56 = vadd.f32 %v11576_v34, %v4374_v33  ;;  %v4430_v58 = vmul.f32 %v11722_v59, %v11722_v59 }
 0x427   : > { %v4429_v17 = vmul.f32 %v11729_v56, %v11729_v56 }
 0x429   : > { %v4461_v44 = vmul.f32 %v4429_v17, %v11729_v56 }
 0x42b   : > { %v4776_v45 = vpop.f32.mrf.mxu1  ;;  %v4493_v54 = vmul.f32 0.044715, %v4461_v44 }
 0x42c   : > { %v3810_v5 = vpop.xlane.xlu2 %3809  ;;  %v4777_v21 = vadd.f32 %v11501_v24, %v4776_v45 }
 0x42d   : > { %v3850_v62 = vmul.f32 %v3810_v5, %v14038_v28  ;;  %v4251_v5 = vpack.c.bf16 %v4232_v25, %v4231_v0 }
 0x42e   : > { %v4879_v4 = vadd.f32 %v4847_v1, %v4777_v21 }
 0x42f   : > { %v11664_v41 = vadd.f32 1e-06, %v3850_v62  ;;  %v4492_v62 = vmul.f32 0.044715, %v4460_v60  ;;  %5084 = vmatmul.msk.bf16.gmra.mxu3 %vm3527_vm7, %v4251_v5  ;;  %v14121_v60 = vld [vmem:[#allocation69_spill] sm:$0xff] }
 0x430   : > { %4911 = vst.msk [vmem:[%s11533_s21 + $0x30] sm:$0xff] %vm3527_vm7, %v4879_v4 }
 0x431   : > { %5277 = vrsqrt.f32 %v11664_v41  ;;  %vm4163_vm4 = vweird.f32 %v11664_v41 }
 0x432   : > { %5279 = vrsqrt.f32 %v11666_v63  ;;  %v3623_v61 = vpop.xlane.xlu0 %3622 }
 0x433   : > { %v3662_v55 = vmul.f32 %v14038_v28, %v3623_v61  ;;  %5281 = vtanh.f32 %v4554_v20  ;;  %v4778_v57 = vpop.f32.mrf.mxu1  ;;  %v4850_v61 = vld [vmem:[%s11492_s25 + $0x48] sm:$0xff] }
 0x434   : > { %5283 = vtanh.f32 %v4555_v22  ;;  %v4849_v22 = vld [vmem:[%s11492_s25 + $0x40] sm:$0xff] }
 0x435   : > { %v11684_v12 = vsub.f32 %v11512_v50, %v3662_v55 }
 0x437   : > { %v11679_v3 = vpop.eup %5277  ;;  %v3726_v51 = vmul.f32 %v11684_v12, %v11684_v12 }
 0x438   : > { %v11681_v29 = vpop.eup %5279  ;;  %v4158_v19 = vmul.f32 %v11679_v3, %v11664_v41  ;;  %vm4164_vm5 = vweird.f32 %v11679_v3  ;;  %v4524_v41 = vadd.f32 %v4492_v62, %v11687_v8 }
 0x439   : > { %v4148_v50 = vmul.f32 %v11681_v29, %v11666_v63  ;;  %v3820_v43 = vsel %vm3527_vm7, %v3726_v51, 0.0  ;;  %v5282_v48 = vpop.eup %5281  ;;  %vm4154_vm12 = vweird.f32 %v11681_v29  ;;  %vm11732_vm13 = vmor %vm4163_vm4, %vm4164_vm5  ;;  %v4779_v51 = vadd.f32 %v11501_v24, %v4778_v57 }
 0x43a   : > { %3821 = vadd.xlane.f32.xlu0 %v3820_v43  ;;  %v4159_v6 = vmul.f32 %v11679_v3, %v4158_v19  ;;  %v3813_v37 = vpop.xlane.xlu0 %3812  ;;  %v4618_v63 = vadd.f32 1.0, %v5282_v48  ;;  %v5284_v13 = vpop.eup %5283  ;;  %vm11740_vm14 = vmor %vm4153_vm6, %vm4154_vm12 }
 0x43b   : > { %v4149_v11 = vmul.f32 %v11681_v29, %v4148_v50  ;;  %v3851_v7 = vmul.f32 %v3813_v37, %v14038_v28  ;;  %v4619_v19 = vadd.f32 1.0, %v5284_v13  ;;  %v4556_v50 = vmul.f32 0.7978846, %v4524_v41  ;;  %v4379_v43 = vpop.f32.mrf.mxu3 }
 0x43c   : > { %v4160_v23 = vmul.f32 0.5, %v4159_v6  ;;  %v4650_v42 = vmul.f32 %v4618_v63, %v11662_v2  ;;  %v4880_v6 = vadd.f32 %v4848_v14, %v4779_v51  ;;  %v11755_v35 = vadd.f32 %v11576_v34, %v4379_v43 }
 0x43d   : > { %v4150_v36 = vmul.f32 0.5, %v4149_v11  ;;  %v11718_v18 = vadd.f32 1e-06, %v3851_v7  ;;  %v4651_v47 = vmul.f32 %v4619_v19, %v11674_v9  ;;  %v4462_v11 = vmul.f32 %v4430_v58, %v11722_v59 }
 0x43e   : > { %v4161_v30 = vsub.f32 1.5, %v4160_v23  ;;  %4912 = vst.msk [vmem:[%s11533_s21 + $0x38] sm:$0xff] %vm3527_vm7, %v4880_v6  ;;  %v4431_v2 = vmul.f32 %v11755_v35, %v11755_v35  ;;  %v4525_v9 = vadd.f32 %v4493_v54, %v11729_v56 }
 0x43f   : > { %v4151_v31 = vsub.f32 1.5, %v4150_v36  ;;  %5285 = vrsqrt.f32 %v11718_v18  ;;  %v4675_v15 = vpack.c.bf16 %v4651_v47, %v4650_v42  ;;  %v4494_v36 = vmul.f32 0.044715, %v4462_v11 }
 0x440   : > { %v4162_v39 = vmul.f32 %v11679_v3, %v4161_v30  ;;  %5287 = vtanh.f32 %v4556_v50  ;;  %v4557_v40 = vmul.f32 0.7978846, %v4525_v9  ;;  %vm4173_vm15 = vweird.f32 %v11718_v18 }
 0x441   : > { %v4152_v55 = vmul.f32 %v11681_v29, %v4151_v31  ;;  %4795 = vmatmul.bf16.gmra.mxu1 %v4675_v15  ;;  %v4526_v32 = vadd.f32 %v4494_v36, %v11722_v59 }
 0x442   : > { %v4166_v27 = vsel %vm11732_vm13, %v11679_v3, %v4162_v39  ;;  %5289 = vtanh.f32 %v4557_v40 }
 0x443   : > { %v4156_v20 = vsel %vm11740_vm14, %v11681_v29, %v4152_v55  ;;  %v4234_v3 = vmul.f32 %v4166_v27, %v11428_v52  ;;  %v4463_v29 = vmul.f32 %v4431_v2, %v11755_v35  ;;  %v4558_v17 = vmul.f32 0.7978846, %v4526_v32 }
 0x444   : > { %v4233_v23 = vmul.f32 %v4156_v20, %v14121_v60  ;;  %v4851_v20 = vld [vmem:[%s11492_s25 + $0x50] sm:$0xff] }
 0x445   : > { %v11762_v37 = vpop.eup %5285  ;;  %v4495_v25 = vmul.f32 0.044715, %v4463_v29 }
 0x446   : > { %v4168_v52 = vmul.f32 %v11762_v37, %v11718_v18  ;;  %v4252_v0 = vpack.c.bf16 %v4234_v3, %v4233_v23  ;;  %v5288_v5 = vpop.eup %5287  ;;  %vm4174_vm8 = vweird.f32 %v11762_v37 }
 0x447   : > { %v4781_v46 = vpop.f32.mrf.mxu1  ;;  %v4527_v21 = vadd.f32 %v4495_v25, %v11755_v35  ;;  %v4620_v48 = vadd.f32 1.0, %v5288_v5  ;;  %vm11804_vm10 = vmor %vm4173_vm15, %vm4174_vm8 }
 0x448   : > { %v4782_v7 = vadd.f32 %v11501_v24, %v4781_v46  ;;  %v4382_v45 = vpop.f32.mrf.mxu3  ;;  %5085 = vmatmul.msk.bf16.gmra.mxu3 %vm3527_vm7, %v4252_v0  ;;  %v4169_v31 = vmul.f32 %v11762_v37, %v4168_v52  ;;  %v5290_v4 = vpop.eup %5289 }
 0x449   : > { %v11782_v1 = vadd.f32 %v11576_v34, %v4382_v45  ;;  %v4559_v33 = vmul.f32 0.7978846, %v4527_v21  ;;  %v4621_v63 = vadd.f32 1.0, %v5290_v4  ;;  %v4652_v58 = vmul.f32 %v4620_v48, %v11687_v8 }
 0x44a   : > { %v4881_v62 = vadd.f32 %v4849_v22, %v4782_v7  ;;  %v4170_v39 = vmul.f32 0.5, %v4169_v31 }
 0x44b   : > { %v4432_v13 = vmul.f32 %v11782_v1, %v11782_v1  ;;  %v4653_v57 = vmul.f32 %v4621_v63, %v11729_v56  ;;  %v4853_v63 = vld [vmem:[%s11492_s25 + $0x60] sm:$0xff] }
 0x44c   : > { %4913 = vst.msk [vmem:[%s11533_s21 + $0x40] sm:$0xff] %vm3527_vm7, %v4881_v62  ;;  %v4171_v27 = vsub.f32 1.5, %v4170_v39 }
 0x44d   : > { %v4676_v14 = vpack.c.bf16 %v4653_v57, %v4652_v58  ;;  %v4464_v43 = vmul.f32 %v4432_v13, %v11782_v1 }
 0x44e   : > { %v4172_v47 = vmul.f32 %v11762_v37, %v4171_v27 }
 0x44f   : > { %v4783_v41 = vpop.f32.mrf.mxu1  ;;  %4800 = vmatmul.bf16.vlgmr.msra.gmra.mxu2 %v4676_v14  ;;  %v4496_v18 = vmul.f32 0.044715, %v4464_v43  ;;  %v4854_v43 = vld [vmem:[%s11492_s25 + $0x68] sm:$0xff] }
 0x450   : > { %v4784_v55 = vadd.f32 %v11501_v24, %v4783_v41  ;;  %v4384_v38 = vpop.f32.mrf.mxu3  ;;  %v4176_v52 = vsel %vm11804_vm10, %v11762_v37, %v4172_v47 }
 0x451   : > { %v11792_v51 = vadd.f32 %v11576_v34, %v4384_v38  ;;  %v4528_v0 = vadd.f32 %v4496_v18, %v11782_v1  ;;  %v4235_v7 = vmul.f32 %v4176_v52, %v11509_v16 }
 0x452   : > { %v4882_v44 = vadd.f32 %v4850_v61, %v4784_v55 }
 0x453   : > { %v4433_v42 = vmul.f32 %v11792_v51, %v11792_v51  ;;  %v4560_v32 = vmul.f32 0.7978846, %v4528_v0 }
 0x454   : > { %4914 = vst.msk [vmem:[%s11533_s21 + $0x48] sm:$0xff] %vm3527_vm7, %v4882_v44 }
 0x455   : > { %v4465_v56 = vmul.f32 %v4433_v42, %v11792_v51 }
 0x457   : > { %v4786_v6 = vpop.f32.mrf.mxu1  ;;  %v4497_v3 = vmul.f32 0.044715, %v4465_v56 }
 0x458   : > { %v4787_v2 = vadd.f32 %v11501_v24, %v4786_v6  ;;  %v4387_v60 = vpop.f32.mrf.mxu3 }
 0x459   : > { %v4529_v36 = vadd.f32 %v4497_v3, %v11792_v51  ;;  %v4388_v46 = vadd.f32 %v11576_v34, %v4387_v60 }
 0x45a   : > { %v4883_v29 = vadd.f32 %v4851_v20, %v4787_v2 }
 0x45b   : > { %v4561_v45 = vmul.f32 0.7978846, %v4529_v36  ;;  %v4434_v62 = vmul.f32 %v4388_v46, %v4388_v46 }
 0x45c   : > { %4915 = vst.msk [vmem:[%s11533_s21 + $0x50] sm:$0xff] %vm3527_vm7, %v4883_v29 }
 0x45d   : > { %v4466_v39 = vmul.f32 %v4434_v62, %v4388_v46 }
 0x45e   : > { %v3816_v53 = vpop.xlane.xlu1 %3815 }
 0x45f   : > { %v3852_v26 = vmul.f32 %v3816_v53, %v14038_v28  ;;  %v4788_v5 = vpop.f32.mrf.mxu1 }
 0x460   : > { %v4789_v31 = vadd.f32 %v11501_v24, %v4788_v5  ;;  %v4389_v48 = vpop.f32.mrf.mxu3 }
 0x461   : > { %v3884_v30 = vadd.f32 1e-06, %v3852_v26 }
 0x463   : > { %5291 = vrsqrt.f32 %v3884_v30  ;;  %vm4183_vm9 = vweird.f32 %v3884_v30 }
 0x464   : > { %5293 = vtanh.f32 %v4559_v33 }
 0x465   : > { %5295 = vtanh.f32 %v4558_v17 }
 0x466   : > { %5297 = vtanh.f32 %v4561_v45 }
 0x467   : > { %5299 = vtanh.f32 %v4560_v32 }
 0x468   : > { %v4791_v61 = vpop.f32.mrf.mxu1 }
 0x469   : > { %v5292_v19 = vpop.eup %5291  ;;  %v4792_v17 = vadd.f32 %v11501_v24, %v4791_v61 }
 0x46a   : > { %v4178_v50 = vmul.f32 %v5292_v19, %v3884_v30  ;;  %vm4184_vm11 = vweird.f32 %v5292_v19  ;;  %v5294_v11 = vpop.eup %5293  ;;  %v4852_v30 = vld [vmem:[%s11492_s25 + $0x58] sm:$0xff] }
 0x46b   : > { %v5296_v23 = vpop.eup %5295  ;;  %vm4185_vm0 = vmor %vm4183_vm9, %vm4184_vm11  ;;  %v4623_v53 = vadd.f32 1.0, %v5294_v11  ;;  %v4884_v16 = vadd.f32 %v4852_v30, %v4789_v31  ;;  %v4885_v58 = vadd.f32 %v4853_v63, %v4792_v17  ;;  %v4856_v17 = vld [vmem:[%s11492_s25 + $0x78] sm:$0xff] }
 0x46c   : > { %v4179_v8 = vmul.f32 %v5292_v19, %v4178_v50  ;;  %v4622_v25 = vadd.f32 1.0, %v5296_v23  ;;  %v5298_v13 = vpop.eup %5297 }
 0x46d   : > { %v4655_v37 = vmul.f32 %v4623_v53, %v11755_v35  ;;  %4916 = vst.msk [vmem:[%s11533_s21 + $0x58] sm:$0xff] %vm3527_vm7, %v4884_v16  ;;  %v5300_v38 = vpop.eup %5299 }
 0x46e   : > { %v4180_v54 = vmul.f32 0.5, %v4179_v8  ;;  %v4654_v4 = vmul.f32 %v4622_v25, %v11722_v59  ;;  %v4498_v59 = vmul.f32 0.044715, %v4466_v39  ;;  %4917 = vst.msk [vmem:[%s11533_s21 + $0x60] sm:$0xff] %vm3527_vm7, %v4885_v58  ;;  %v4624_v27 = vadd.f32 1.0, %v5300_v38 }
 0x470   : > { %v4181_v9 = vsub.f32 1.5, %v4180_v54  ;;  %v4677_v33 = vpack.c.bf16 %v4655_v37, %v4654_v4  ;;  %v4530_v44 = vadd.f32 %v4498_v59, %v4388_v46  ;;  %v4793_v14 = vpop.f32.mrf.mxu1  ;;  %v4656_v47 = vmul.f32 %v4624_v27, %v11782_v1 }
 0x471   : > { %v4794_v8 = vadd.f32 %v11501_v24, %v4793_v14 }
 0x472   : > { %v4182_v40 = vmul.f32 %v5292_v19, %v4181_v9  ;;  %4805 = vmatmul.bf16.gmra.mxu2 %v4677_v33  ;;  %v4562_v56 = vmul.f32 0.7978846, %v4530_v44  ;;  %v4855_v33 = vld [vmem:[%s11492_s25 + $0x70] sm:$0xff] }
 0x473   : > { %v4886_v54 = vadd.f32 %v4854_v43, %v4794_v8 }
 0x474   : > { %v4186_v26 = vsel %vm4185_vm0, %v5292_v19, %v4182_v40  ;;  %v4625_v19 = vadd.f32 1.0, %v5298_v13 }
 0x475   : > { %v4236_v22 = vmul.f32 %v4186_v26, %v11630_v49  ;;  %v4390_v49 = vadd.f32 %v11576_v34, %v4389_v48  ;;  %4918 = vst.msk [vmem:[%s11533_s21 + $0x68] sm:$0xff] %vm3527_vm7, %v4886_v54 }
 0x476   : > { %v4657_v42 = vmul.f32 %v4625_v19, %v11792_v51  ;;  %v3819_v51 = vpop.xlane.xlu2 %3818 }
 0x477   : > { %v4253_v21 = vpack.c.bf16 %v4236_v22, %v4235_v7  ;;  %v4435_v35 = vmul.f32 %v4390_v49, %v4390_v49  ;;  %v3853_v60 = vmul.f32 %v3819_v51, %v14038_v28 }
 0x478   : > { %v4678_v6 = vpack.c.bf16 %v4657_v42, %v4656_v47 }
 0x479   : > { %5086 = vmatmul.msk.bf16.gmra.mxu3 %vm3527_vm7, %v4253_v21  ;;  %v4467_v41 = vmul.f32 %v4435_v35, %v4390_v49  ;;  %v3885_v23 = vadd.f32 1e-06, %v3853_v60 }
 0x47b   : > { %v4499_v55 = vmul.f32 0.044715, %v4467_v41  ;;  %vm4193_vm1 = vweird.f32 %v3885_v23 }
 0x47d   : > { %v4531_v57 = vadd.f32 %v4499_v55, %v4390_v49 }
 0x47f   : > { %v4563_v50 = vmul.f32 0.7978846, %v4531_v57 }
 0x481   : > { %5301 = vtanh.f32 %v4563_v50 }
 0x482   : > { %5303 = vtanh.f32 %v4562_v56  ;;  %4810 = vmatmul.bf16.gmra.mxu2 %v4678_v6 }
 0x483   : > { %5305 = vrsqrt.f32 %v3885_v23 }
 0x487   : > { %v5302_v20 = vpop.eup %5301 }
 0x488   : > { %v5304_v11 = vpop.eup %5303  ;;  %v4627_v15 = vadd.f32 1.0, %v5302_v20 }
 0x489   : > { %v4626_v18 = vadd.f32 1.0, %v5304_v11  ;;  %v5306_v1 = vpop.eup %5305 }
 0x48a   : > { %v4659_v3 = vmul.f32 %v4627_v15, %v4390_v49  ;;  %v4188_v29 = vmul.f32 %v5306_v1, %v3885_v23  ;;  %vm4194_vm2 = vweird.f32 %v5306_v1 }
 0x48b   : > { %v4658_v2 = vmul.f32 %v4626_v18, %v4388_v46  ;;  %vm4195_vm3 = vmor %vm4193_vm1, %vm4194_vm2  ;;  %v4857_v18 = vld [vmem:[%s11492_s25 + $0x80] sm:$0xff] }
 0x48c   : > { %v4189_v36 = vmul.f32 %v5306_v1, %v4188_v29 }
 0x48d   : > { %v4679_v9 = vpack.c.bf16 %v4659_v3, %v4658_v2 }
 0x48e   : > { %v4190_v0 = vmul.f32 0.5, %v4189_v36 }
 0x490   : > { %v4191_v25 = vsub.f32 1.5, %v4190_v0  ;;  %v4858_v0 = vld [vmem:[%s11492_s25 + $0x88] sm:$0xff] }
 0x492   : > { %4815 = vmatmul.bf16.gmra.mxu2 %v4679_v9  ;;  %v4192_v22 = vmul.f32 %v5306_v1, %v4191_v25 }
 0x494   : > { %v4196_v37 = vsel %vm4195_vm3, %v5306_v1, %v4192_v22 }
 0x495   : > { %v4237_v62 = vmul.f32 %v4196_v37, %v11643_v10 }
 0x4ad   : > { %v3822_v40 = vpop.xlane.xlu0 %3821 }
 0x4ae   : > { %v3854_v52 = vmul.f32 %v3822_v40, %v14038_v28 }
 0x4b0   : > { %v3886_v53 = vadd.f32 1e-06, %v3854_v52 }
 0x4b2   : > { %5307 = vrsqrt.f32 %v3886_v53  ;;  %vm4203_vm5 = vweird.f32 %v3886_v53  ;;  %v4392_v32 = vpop.f32.mrf.mxu3 }
 0x4b3   : > { %v4393_v48 = vadd.f32 %v11576_v34, %v4392_v32 }
 0x4b5   : > { %v4436_v4 = vmul.f32 %v4393_v48, %v4393_v48 }
 0x4b7   : > { %v4468_v16 = vmul.f32 %v4436_v4, %v4393_v48 }
 0x4b8   : > { %v5308_v26 = vpop.eup %5307 }
 0x4b9   : > { %v4198_v7 = vmul.f32 %v5308_v26, %v3886_v53  ;;  %vm4204_vm4 = vweird.f32 %v5308_v26  ;;  %v4500_v39 = vmul.f32 0.044715, %v4468_v16 }
 0x4ba   : > { %vm4205_vm6 = vmor %vm4203_vm5, %vm4204_vm4  ;;  %v4394_v41 = vpop.f32.mrf.mxu3 }
 0x4bb   : > { %v4199_v46 = vmul.f32 %v5308_v26, %v4198_v7  ;;  %v4395_v10 = vadd.f32 %v11576_v34, %v4394_v41 }
 0x4bd   : > { %v4200_v45 = vmul.f32 0.5, %v4199_v46  ;;  %v4437_v63 = vmul.f32 %v4395_v10, %v4395_v10 }
 0x4be   : > { %v4796_v49 = vpop.f32.mrf.mxu1 }
 0x4bf   : > { %v4201_v5 = vsub.f32 1.5, %v4200_v45  ;;  %v4797_v35 = vadd.f32 %v11501_v24, %v4796_v49  ;;  %v4469_v13 = vmul.f32 %v4437_v63, %v4395_v10 }
 0x4c1   : > { %v4202_v30 = vmul.f32 %v5308_v26, %v4201_v5  ;;  %v4887_v61 = vadd.f32 %v4855_v33, %v4797_v35  ;;  %v4501_v38 = vmul.f32 0.044715, %v4469_v13 }
 0x4c3   : > { %v4206_v28 = vsel %vm4205_vm6, %v5308_v26, %v4202_v30  ;;  %4919 = vst.msk [vmem:[%s11533_s21 + $0x70] sm:$0xff] %vm3527_vm7, %v4887_v61  ;;  %v4533_v27 = vadd.f32 %v4501_v38, %v4395_v10 }
 0x4c4   : > { %v4238_v21 = vmul.f32 %v4206_v28, %v11684_v12  ;;  %v4532_v12 = vadd.f32 %v4500_v39, %v4393_v48  ;;  %v4859_v28 = vld [vmem:[%s11492_s25 + $0x90] sm:$0xff] }
 0x4c5   : > { %v4565_v14 = vmul.f32 0.7978846, %v4533_v27 }
 0x4c6   : > { %v4254_v31 = vpack.c.bf16 %v4238_v21, %v4237_v62  ;;  %v4564_v59 = vmul.f32 0.7978846, %v4532_v12  ;;  %v4798_v55 = vpop.f32.mrf.mxu1 }
 0x4c7   : > { %v4799_v58 = vadd.f32 %v11501_v24, %v4798_v55 }
 0x4c8   : > { %5087 = vmatmul.msk.bf16.gmra.mxu3 %vm3527_vm7, %v4254_v31  ;;  %5309 = vtanh.f32 %v4564_v59 }
 0x4c9   : > { %v4888_v19 = vadd.f32 %v4856_v17, %v4799_v58  ;;  %5311 = vtanh.f32 %v4565_v14  ;;  %v4861_v58 = vld [vmem:[%s11492_s25 + $0xa0] sm:$0xff] }
 0x4cb   : > { %v4397_v57 = vpop.f32.mrf.mxu3  ;;  %4920 = vst.msk [vmem:[%s11533_s21 + $0x78] sm:$0xff] %vm3527_vm7, %v4888_v19 }
 0x4cc   : > { %v4398_v44 = vadd.f32 %v11576_v34, %v4397_v57 }
 0x4ce   : > { %v4438_v50 = vmul.f32 %v4398_v44, %v4398_v44  ;;  %v5310_v42 = vpop.eup %5309 }
 0x4cf   : > { %v4628_v6 = vadd.f32 1.0, %v5310_v42  ;;  %v5312_v20 = vpop.eup %5311 }
 0x4d0   : > { %v4470_v43 = vmul.f32 %v4438_v50, %v4398_v44  ;;  %v4629_v3 = vadd.f32 1.0, %v5312_v20 }
 0x4d1   : > { %v4660_v60 = vmul.f32 %v4628_v6, %v4393_v48 }
 0x4d2   : > { %v4502_v8 = vmul.f32 0.044715, %v4470_v43  ;;  %v4801_v15 = vpop.f32.mrf.mxu2  ;;  %v4661_v23 = vmul.f32 %v4629_v3, %v4395_v10  ;;  %v4860_v10 = vld [vmem:[%s11492_s25 + $0x98] sm:$0xff]  ;;  %v4862_v43 = vld [vmem:[%s11492_s25 + $0xa8] sm:$0xff] }
 0x4d3   : > { %v4399_v56 = vpop.f32.mrf.mxu3  ;;  %v4802_v9 = vadd.f32 %v11501_v24, %v4801_v15 }
 0x4d4   : > { %v4400_v47 = vadd.f32 %v11576_v34, %v4399_v56  ;;  %v4534_v54 = vadd.f32 %v4502_v8, %v4398_v44  ;;  %v4680_v40 = vpack.c.bf16 %v4661_v23, %v4660_v60  ;;  %v5467_v23 = vld [vmem:[%s11968_s6] ss:$0 sm:$0xff] }
 0x4d5   : > { %v4889_v29 = vadd.f32 %v4857_v18, %v4802_v9 }
 0x4d6   : > { %v4439_v11 = vmul.f32 %v4400_v47, %v4400_v47  ;;  %v4566_v51 = vmul.f32 0.7978846, %v4534_v54  ;;  %4820 = vmatmul.bf16.gmra.mxu2 %v4680_v40 }
 0x4d7   : > { %4921 = vst.msk [vmem:[%s11533_s21 + $0x80] sm:$0xff] %vm3527_vm7, %v4889_v29 }
 0x4d8   : > { %v4471_v2 = vmul.f32 %v4439_v11, %v4400_v47  ;;  %5313 = vtanh.f32 %v4566_v51  ;;  %v4863_v11 = vld [vmem:[%s11492_s25 + $0xb0] sm:$0xff] }
 0x4da   : > { %v4503_v1 = vmul.f32 0.044715, %v4471_v2  ;;  %v4803_v36 = vpop.f32.mrf.mxu2  ;;  %v4864_v2 = vld [vmem:[%s11492_s25 + $0xb8] sm:$0xff] }
 0x4db   : > { %v4804_v26 = vadd.f32 %v11501_v24, %v4803_v36  ;;  %v11867_v24 = vld [vmem:[%s11970_s8] ss:$0 sm:$0xff] }
 0x4dc   : > { %v4535_v52 = vadd.f32 %v4503_v1, %v4400_v47 }
 0x4dd   : > { %v4890_v7 = vadd.f32 %v4858_v0, %v4804_v26 }
 0x4de   : > { %v4567_v53 = vmul.f32 0.7978846, %v4535_v52  ;;  %v5314_v25 = vpop.eup %5313 }
 0x4df   : > { %4922 = vst.msk [vmem:[%s11533_s21 + $0x88] sm:$0xff] %vm3527_vm7, %v4890_v7  ;;  %v4630_v45 = vadd.f32 1.0, %v5314_v25 }
 0x4e0   : > { %5315 = vtanh.f32 %v4567_v53 }
 0x4e1   : > { %v4662_v32 = vmul.f32 %v4630_v45, %v4398_v44 }
 0x4e6   : > { %v5316_v5 = vpop.eup %5315 }
 0x4e7   : > { %v4631_v62 = vadd.f32 1.0, %v5316_v5 }
 0x4e9   : > { %v4663_v48 = vmul.f32 %v4631_v62, %v4400_v47 }
 0x4eb   : > { %v4681_v49 = vpack.c.bf16 %v4663_v48, %v4662_v32  ;;  %v4865_v48 = vld [vmem:[%s11492_s25 + $0xc0] sm:$0xff] }
 0x4ed   : > { %4825 = vmatmul.bf16.gmra.mxu2 %v4681_v49 }
 0x4f5   : > { %v4806_v37 = vpop.f32.mrf.mxu2 }
 0x4f6   : > { %v4807_v21 = vadd.f32 %v11867_v24, %v4806_v37 }
 0x4f8   : > { %v4891_v4 = vadd.f32 %v4859_v28, %v4807_v21 }
 0x4fa   : > { %4923 = vst.msk [vmem:[%s11533_s21 + $0x90] sm:$0xff] %vm3527_vm7, %v4891_v4 }
 0x4fc   : > { %v4402_v46 = vpop.f32.mrf.mxu3 }
 0x4fd   : > { %v4403_v22 = vadd.f32 %v11576_v34, %v4402_v46  ;;  %v4808_v61 = vpop.f32.mrf.mxu2 }
 0x4fe   : > { %v4809_v12 = vadd.f32 %v11867_v24, %v4808_v61  ;;  %v4867_v61 = vld [vmem:[%s11492_s25 + $0xd0] sm:$0xff] }
 0x4ff   : > { %v4440_v30 = vmul.f32 %v4403_v22, %v4403_v22 }
 0x500   : > { %v4892_v59 = vadd.f32 %v4860_v10, %v4809_v12 }
 0x501   : > { %v4472_v31 = vmul.f32 %v4440_v30, %v4403_v22 }
 0x502   : > { %4924 = vst.msk [vmem:[%s11533_s21 + $0x98] sm:$0xff] %vm3527_vm7, %v4892_v59 }
 0x503   : > { %v4504_v16 = vmul.f32 0.044715, %v4472_v31 }
 0x504   : > { %v4404_v33 = vpop.f32.mrf.mxu3 }
 0x505   : > { %v4405_v39 = vadd.f32 %v11576_v34, %v4404_v33  ;;  %v4536_v35 = vadd.f32 %v4504_v16, %v4403_v22  ;;  %v4811_v38 = vpop.f32.mrf.mxu2  ;;  %v4866_v33 = vld [vmem:[%s11492_s25 + $0xc8] sm:$0xff] }
 0x506   : > { %v4812_v57 = vadd.f32 %v11867_v24, %v4811_v38  ;;  %v4869_v38 = vld [vmem:[%s11492_s25 + $0xe0] sm:$0xff] }
 0x507   : > { %v4441_v41 = vmul.f32 %v4405_v39, %v4405_v39  ;;  %v4568_v13 = vmul.f32 0.7978846, %v4536_v35 }
 0x508   : > { %v4893_v19 = vadd.f32 %v4861_v58, %v4812_v57 }
 0x509   : > { %v4473_v63 = vmul.f32 %v4441_v41, %v4405_v39  ;;  %5317 = vtanh.f32 %v4568_v13  ;;  %v4868_v13 = vld [vmem:[%s11492_s25 + $0xd8] sm:$0xff] }
 0x50a   : > { %4925 = vst.msk [vmem:[%s11533_s21 + $0xa0] sm:$0xff] %vm3527_vm7, %v4893_v19  ;;  %v4870_v19 = vld [vmem:[%s11492_s25 + $0xe8] sm:$0xff] }
 0x50b   : > { %v4505_v55 = vmul.f32 0.044715, %v4473_v63 }
 0x50d   : > { %v4537_v17 = vadd.f32 %v4505_v55, %v4405_v39  ;;  %v4813_v14 = vpop.f32.mrf.mxu2 }
 0x50e   : > { %v4814_v8 = vadd.f32 %v11867_v24, %v4813_v14  ;;  %v4871_v14 = vld [vmem:[%s11492_s25 + $0xf0] sm:$0xff] }
 0x50f   : > { %v4569_v34 = vmul.f32 0.7978846, %v4537_v17  ;;  %v5318_v44 = vpop.eup %5317 }
 0x510   : > { %v4632_v27 = vadd.f32 1.0, %v5318_v44  ;;  %v4894_v54 = vadd.f32 %v4862_v43, %v4814_v8 }
 0x511   : > { %5319 = vtanh.f32 %v4569_v34 }
 0x512   : > { %v4664_v56 = vmul.f32 %v4632_v27, %v4403_v22  ;;  %4926 = vst.msk [vmem:[%s11533_s21 + $0xa8] sm:$0xff] %vm3527_vm7, %v4894_v54 }
 0x515   : > { %v4816_v20 = vpop.f32.mrf.mxu2 }
 0x516   : > { %v4817_v15 = vadd.f32 %v11867_v24, %v4816_v20 }
 0x517   : > { %v5320_v50 = vpop.eup %5319 }
 0x518   : > { %v4633_v42 = vadd.f32 1.0, %v5320_v50  ;;  %v4895_v18 = vadd.f32 %v4863_v11, %v4817_v15 }
 0x51a   : > { %v4665_v47 = vmul.f32 %v4633_v42, %v4405_v39  ;;  %4927 = vst.msk [vmem:[%s11533_s21 + $0xb0] sm:$0xff] %vm3527_vm7, %v4895_v18 }
 0x51c   : > { %v4682_v6 = vpack.c.bf16 %v4665_v47, %v4664_v56  ;;  %v4872_v56 = vld [vmem:[%s11492_s25 + $0xf8] sm:$0xff]  ;;  %s5488_s25 = scalar_lea.hbm %s11971_s9, 512 }
 0x51d   : > { %v4818_v3 = vpop.f32.mrf.mxu2  ;;  %p5490_p1 = scmp.lt.s32.totalorder %s5488_s25, %s5484_s23 }
 0x51e   : > { %4830 = vmatmul.bf16.gmra.mxu2 %v4682_v6  ;;  %v4819_v9 = vadd.f32 %v11867_v24, %v4818_v3 }
 0x51f   : > { %p5491_p2 = por %p5490_p1, %p5489_p0 }
 0x520   : > { %v4896_v51 = vadd.f32 %v4864_v2, %v4819_v9 }
 0x521   : > { %p5492_p3 = pnand %p5491_p2, %p5487_p13 }
 0x522   : > { %4928 = vst.msk [vmem:[%s11533_s21 + $0xb8] sm:$0xff] %vm3527_vm7, %v4896_v51 }
 0x54b   : > { %v4407_v60 = vpop.f32.mrf.mxu3 }
 0x54c   : > { %v4408_v1 = vadd.f32 %v5467_v23, %v4407_v60 }
 0x54e   : > { %v4442_v29 = vmul.f32 %v4408_v1, %v4408_v1 }
 0x550   : > { %v4474_v40 = vmul.f32 %v4442_v29, %v4408_v1 }
 0x552   : > { %v4506_v52 = vmul.f32 0.044715, %v4474_v40 }
 0x553   : > { %v4409_v53 = vpop.f32.mrf.mxu3 }
 0x554   : > { %v4410_v36 = vadd.f32 %v5467_v23, %v4409_v53  ;;  %v4538_v0 = vadd.f32 %v4506_v52, %v4408_v1 }
 0x556   : > { %v4443_v26 = vmul.f32 %v4410_v36, %v4410_v36  ;;  %v4570_v7 = vmul.f32 0.7978846, %v4538_v0 }
 0x558   : > { %v4475_v25 = vmul.f32 %v4443_v26, %v4410_v36  ;;  %5321 = vtanh.f32 %v4570_v7 }
 0x559   : > { %v4821_v32 = vpop.f32.mrf.mxu2 }
 0x55a   : > { %v4507_v46 = vmul.f32 0.044715, %v4475_v25  ;;  %v4822_v4 = vadd.f32 %v11867_v24, %v4821_v32 }
 0x55c   : > { %v4539_v22 = vadd.f32 %v4507_v46, %v4410_v36  ;;  %v4897_v16 = vadd.f32 %v4865_v48, %v4822_v4 }
 0x55e   : > { %v4571_v45 = vmul.f32 0.7978846, %v4539_v22  ;;  %v5322_v5 = vpop.eup %5321  ;;  %4929 = vst.msk [vmem:[%s11533_s21 + $0xc0] sm:$0xff] %vm3527_vm7, %v4897_v16 }
 0x55f   : > { %v4634_v30 = vadd.f32 1.0, %v5322_v5 }
 0x560   : > { %5323 = vtanh.f32 %v4571_v45 }
 0x561   : > { %v4666_v62 = vmul.f32 %v4634_v30, %v4408_v1  ;;  %v4823_v49 = vpop.f32.mrf.mxu2 }
 0x562   : > { %v4824_v39 = vadd.f32 %v11867_v24, %v4823_v49 }
 0x564   : > { %v4898_v35 = vadd.f32 %v4866_v33, %v4824_v39 }
 0x566   : > { %v5324_v37 = vpop.eup %5323  ;;  %4930 = vst.msk [vmem:[%s11533_s21 + $0xc8] sm:$0xff] %vm3527_vm7, %v4898_v35 }
 0x567   : > { %v4635_v28 = vadd.f32 1.0, %v5324_v37 }
 0x569   : > { %v4667_v21 = vmul.f32 %v4635_v28, %v4410_v36 }
 0x56b   : > { %v4683_v31 = vpack.c.bf16 %v4667_v21, %v4666_v62 }
 0x56d   : > { %4835 = vmatmul.bf16.gmra.mxu2 %v4683_v31 }
 0x570   : > { %v4826_v41 = vpop.f32.mrf.mxu2 }
 0x571   : > { %v4827_v10 = vadd.f32 %v11867_v24, %v4826_v41 }
 0x573   : > { %v4899_v12 = vadd.f32 %v4867_v61, %v4827_v10 }
 0x575   : > { %4931 = vst.msk [vmem:[%s11533_s21 + $0xd0] sm:$0xff] %vm3527_vm7, %v4899_v12 }
 0x578   : > { %v4828_v63 = vpop.f32.mrf.mxu2 }
 0x579   : > { %v4829_v59 = vadd.f32 %v11867_v24, %v4828_v63 }
 0x57b   : > { %v4900_v55 = vadd.f32 %v4868_v13, %v4829_v59 }
 0x57d   : > { %4932 = vst.msk [vmem:[%s11533_s21 + $0xd8] sm:$0xff] %vm3527_vm7, %v4900_v55 }
 0x5a1   : > { %v4831_v17 = vpop.f32.mrf.mxu2 }
 0x5a2   : > { %v4832_v58 = vadd.f32 %v11867_v24, %v4831_v17 }
 0x5a4   : > { %v4901_v34 = vadd.f32 %v4869_v38, %v4832_v58 }
 0x5a6   : > { %4933 = vst.msk [vmem:[%s11533_s21 + $0xe0] sm:$0xff] %vm3527_vm7, %v4901_v34 }
 0x5a9   : > { %v4833_v57 = vpop.f32.mrf.mxu2 }
 0x5aa   : > { %v4834_v44 = vadd.f32 %v11867_v24, %v4833_v57 }
 0x5ac   : > { %v4902_v27 = vadd.f32 %v4870_v19, %v4834_v44 }
 0x5ae   : > { %4934 = vst.msk [vmem:[%s11533_s21 + $0xe8] sm:$0xff] %vm3527_vm7, %v4902_v27 }
 0x5f0   : > { %v4836_v50 = vpop.f32.mrf.mxu2 }
 0x5f1   : > { %v4837_v43 = vadd.f32 %v11867_v24, %v4836_v50 }
 0x5f3   : > { %v4903_v42 = vadd.f32 %v4871_v14, %v4837_v43 }
 0x5f5   : > { %4935 = vst.msk [vmem:[%s11533_s21 + $0xf0] sm:$0xff] %vm3527_vm7, %v4903_v42 }
 0x5f8   : > { %v4838_v8 = vpop.f32.mrf.mxu2 }
 0x5f9   : > { %v4839_v47 = vadd.f32 %v11867_v24, %v4838_v8 }
 0x5fb   : > { %v4904_v54 = vadd.f32 %v4872_v56, %v4839_v47 }
 0x5fd   : > { %4936 = vst.msk [vmem:[%s11533_s21 + $0xf8] sm:$0xff] %vm3527_vm7, %v4904_v54 }
 0x5fe   : > { %5495 = shalt.err (!%p5492_p3)
}
 0x5ff   : > { %s5533_s26 = smov 128   ;;  %s5534_s21 = smov 8  }
 0x600   : > { %5150 = dma.vmem_to_hbm [thread:$0]  (%p5623_p5), %s4951_s14, 4096, %s4953_s16, %s4938_s13, %s5533_s26, %s5533_s26, %s5534_s21  }
 0x601 PF: > { %p5156_p4 = scmp.ge.s32.totalorder %s5530_s12, 2  ;;  %s4967_s22 = sand.u32 1, %s5518_s30  }
 0x602   : > { %s4968_s24 = scalar_lea.sflag [#allocation3], %s4967_s22 }
 0x603   : > { %p5153_p7 = pnand %p5156_p4, %p5627_p6 }
 0x605   : > { %p5154_p8 = pneg %p5153_p7 }
 0x607   : > { %5513 = dma.done.wait (%p5154_p8), %s4968_s24, 4096  }
 0x608   : > { %5515 = vsyncadd (%p5154_p8), %s4968_s24, 4294963200  ;;  %p19_p9 = scmp.ge.s32.totalorder %s5610_s15, 4   ;;  %s14124_s30 = smov %s5522_s10 }
 0x609   : > { %s14125_s10 = smov %s5526_s11  ;;  %s14126_s11 = smov %s5621_s18 }
 0x60a   : > { %s14127_s12 = smov %s5610_s15  ;;  %21 = sbr.rel (!%p19_p9) target bundleno = 3 (0x3), region = 100 }
 0x60f   :  { %4974 = vsyncpa [#allocation3], 1 }
 0x610   :  { %4976 = vsyncpa [#allocation3 + $0x1], 1 }

</bundles_post_ra>
